<compile_context>
chip_gen: v5e
topology: v5e:2x2
jax: 0.10.0
libtpu: 0.0.40
codegen_flags: <defaults>
</compile_context>

<pallas_src>
import functools

import jax
import jax.numpy as jnp
from jax.experimental import pallas as pl
from jax.experimental.pallas import tpu as pltpu

MATMUL_DTYPE = jnp.bfloat16   # MXU operand dtype (accumulation stays f32)
BN_EPS = 1e-5
LRELU_SLOPE = 0.2


# ----------------------------- Pallas kernel --------------------------------

def _conv_block_kernel(x_ref, w_ref, b_ref, y_ref, *stats_refs,
                       taps, toh, ow, apply_lrelu):
    """Fused 3x3 conv (+bias, +LeakyReLU, +BN partial stats) for one output-row block.

    x_ref : (P, Hh, Wh, Cin)   bf16  phase-stacked padded input (one image)
    w_ref : (9, Cin, Cout)     bf16  one (Cin, Cout) weight slice per tap (resident)
    b_ref : (1, Cout)          f32   (resident)
    y_ref : (1, toh, ow, Cout) f32   un-normalized activation (BN applied lazily)
    stats_refs (optional): two (1, 1, Cout) f32 refs -> per-tile sum / sum-of-squares
    """
    rb = pl.program_id(1)
    row0 = pl.multiple_of(rb * toh, toh)
    cin = x_ref.shape[-1]
    cout = y_ref.shape[-1]

    # Bias seeds the f32 accumulator (avoids a separate whole-tile add at the end).
    acc = jnp.broadcast_to(b_ref[...], (toh * ow, cout)).astype(jnp.float32)
    for t, (ph, ro, co) in enumerate(taps):            # 9 taps, fully unrolled
        xt = x_ref[pl.ds(ph, 1), pl.ds(row0 + ro, toh), pl.ds(co, ow), :]
        xt = xt.reshape(toh * ow, cin)                  # collapse leading dims only
        acc = acc + jnp.dot(xt, w_ref[t], preferred_element_type=jnp.float32)

    y = acc                                             # (toh*ow, Cout) f32
    if apply_lrelu:
        y = jnp.where(y >= 0.0, y, LRELU_SLOPE * y)     # LeakyReLU(0.2) in f32
    y_ref[...] = y.reshape(1, toh, ow, cout)

    if stats_refs:                                      # partial BatchNorm statistics
        s_ref, ss_ref = stats_refs
        s_ref[...] = jnp.sum(y, axis=0, keepdims=True).reshape(1, 1, cout)
        ss_ref[...] = jnp.sum(y * y, axis=0, keepdims=True).reshape(1, 1, cout)


# ------------------------------ wrappers -------------------------------------

def _pick_row_block(oh, ow, target_rows=1024):
    """Largest divisor of `oh` whose row tile (toh * ow) stays near target_rows."""
    best = 1
    for t in range(1, oh + 1):
        if oh % t == 0 and t * ow <= target_rows:
            best = t
    return best


def conv_layer(x, in_scale, in_shift, w, b, *, stride, apply_lrelu, with_stats):
    """3x3 conv with pad=1.  `in_scale`/`in_shift` is the lazily-applied BatchNorm
    affine of the previous layer, folded into this layer's input transform."""
    n, h, wd, cin = x.shape
    cout = w.shape[-1]

    # Previous layer's BN affine; XLA fuses this with the pad/phase transform below,
    # so the activation makes a single HBM round trip between layers.  Padding is
    # applied AFTER the affine so borders stay exactly zero (matches PyTorch).
    xn = x.astype(jnp.float32) * in_scale + in_shift

    if stride == 2:
        assert h % 2 == 0 and wd % 2 == 0, "stride-2 path expects even spatial dims"
        oh, ow = h // 2, wd // 2
        xp = jnp.pad(xn, ((0, 0), (1, 1), (1, 1), (0, 0)))
        # space-to-phase: phase (pi, pj) holds xp[:, pi::2, pj::2, :] so that every
        # conv tap becomes a *contiguous* slice inside the kernel.
        phs = xp.reshape(n, oh + 1, 2, ow + 1, 2, cin).transpose(0, 2, 4, 1, 3, 5)
        x_stack = phs.reshape(n * 4, oh + 1, ow + 1, cin).astype(MATMUL_DTYPE)
        p = 4
        taps = tuple(((di % 2) * 2 + (dj % 2), di // 2, dj // 2)
                     for di in range(3) for dj in range(3))
    else:
        oh, ow = h, wd
        xp = jnp.pad(xn, ((0, 0), (1, 1), (1, 1), (0, 0)))
        x_stack = xp.astype(MATMUL_DTYPE)               # (n, h+2, w+2, cin)
        p = 1
        taps = tuple((0, di, dj) for di in range(3) for dj in range(3))

    hh, wh = x_stack.shape[-3], x_stack.shape[-2]
    toh = _pick_row_block(oh, ow)
    n_rb = oh // toh
    grid = (n, n_rb)

    w9 = w.reshape(9, cin, cout).astype(MATMUL_DTYPE)   # tap-major weight slices
    b2 = b.reshape(1, cout).astype(jnp.float32)

    kern = functools.partial(_conv_block_kernel, taps=taps, toh=toh, ow=ow,
                             apply_lrelu=apply_lrelu)

    in_specs = [
        pl.BlockSpec((p, hh, wh, cin), lambda i, r: (i, 0, 0, 0)),   # per-image input
        pl.BlockSpec((9, cin, cout), lambda i, r: (0, 0, 0)),        # resident weights
        pl.BlockSpec((1, cout), lambda i, r: (0, 0)),                # resident bias
    ]
    y_shape = jax.ShapeDtypeStruct((n, oh, ow, cout), jnp.float32)
    y_spec = pl.BlockSpec((1, toh, ow, cout), lambda i, r: (i, r, 0, 0))

    if with_stats:
        stat_shape = jax.ShapeDtypeStruct((n * n_rb, 1, cout), jnp.float32)
        stat_spec = pl.BlockSpec((1, 1, cout), lambda i, r: (i * n_rb + r, 0, 0))
        out_shape = (y_shape, stat_shape, stat_shape)
        out_specs = (y_spec, stat_spec, stat_spec)
    else:
        out_shape = y_shape
        out_specs = y_spec

    return pl.pallas_call(
        kern,
        grid=grid,
        in_specs=in_specs,
        out_specs=out_specs,
        out_shape=out_shape,
        compiler_params=pltpu.CompilerParams(
            dimension_semantics=("parallel", "parallel"),
            vmem_limit_bytes=32 * 1024 * 1024),
    )(x_stack, w9, b2)


# ------------------------------ model glue -----------------------------------

def init_conv(key, cin, cout, k=3):
    kw, kb = jax.random.split(key)
    fan_in = cin * k * k
    bound = 1.0 / (fan_in ** 0.5)
    w = jax.random.uniform(kw, (k, k, cin, cout), jnp.float32, -bound, bound)
    b = jax.random.uniform(kb, (cout,), jnp.float32, -bound, bound)
    return w, b


def init_discriminator(key, c):
    chans = [c * 2, 64, 128, 256, 512]
    keys = jax.random.split(key, 5)
    blocks = []
    for i in range(4):
        w, b = init_conv(keys[i], chans[i], chans[i + 1])
        gamma = jnp.ones((chans[i + 1],), jnp.float32)   # BatchNorm2d affine defaults
        beta = jnp.zeros((chans[i + 1],), jnp.float32)
        blocks.append((w, b, gamma, beta))
    w_fin, b_fin = init_conv(keys[4], 512, 1)
    return {"blocks": blocks, "final": (w_fin, b_fin)}


def discriminator_forward(params, img_A, img_B):
    """img_A, img_B: NCHW float32.  Returns validity map in NCHW (N, 1, H/16, W/16)."""
    x = jnp.concatenate([img_A, img_B], axis=1)          # channel concat (NCHW)
    x = jnp.transpose(x, (0, 2, 3, 1))                   # -> NHWC
    scale = jnp.ones((x.shape[-1],), jnp.float32)        # identity affine for layer 1
    shift = jnp.zeros((x.shape[-1],), jnp.float32)

    # TODO(synk): BatchNorm running-stat updates are training-side state and are not
    # tracked; normalization uses batch statistics (train()-mode semantics of a
    # freshly-built module).
    for (w, b, gamma, beta) in params["blocks"]:
        y, s, ss = conv_layer(x, scale, shift, w, b,
                              stride=2, apply_lrelu=True, with_stats=True)
        m = float(y.shape[0] * y.shape[1] * y.shape[2])  # rows per channel
        mean = jnp.sum(s, axis=(0, 1)) / m
        var = jnp.maximum(jnp.sum(ss, axis=(0, 1)) / m - mean * mean, 0.0)
        scale = gamma * jax.lax.rsqrt(var + BN_EPS)      # BN(y) = y * scale + shift
        shift = beta - mean * scale
        x = y                                            # BN applied lazily next layer

    w_fin, b_fin = params["final"]
    w_pad = jnp.pad(w_fin, ((0, 0), (0, 0), (0, 0), (0, 127)))   # Cout 1 -> 128 lanes
    b_pad = jnp.pad(b_fin, ((0, 127),))
    y = conv_layer(x, scale, shift, w_pad, b_pad,
                   stride=1, apply_lrelu=False, with_stats=False)
    out = y[..., :1]                                     # strip Cout padding
    return jnp.transpose(out, (0, 3, 1, 2))              # back to NCHW


# ------------------------------- main ----------------------------------------

if __name__ == "__main__":
    key = jax.random.PRNGKey(0)
    k_params, k_a, k_b = jax.random.split(key, 3)

    H, W, C = 16, 16, 2          # small deterministic example (16 -> 8 -> 4 -> 2 -> 1)
    N = 2
    params = init_discriminator(k_params, C)

    img_A = jax.random.normal(k_a, (N, C, H, W), jnp.float32)   # NCHW like PyTorch
    img_B = jax.random.normal(k_b, (N, C, H, W), jnp.float32)

    fwd = jax.jit(discriminator_forward)
    out = fwd(params, img_A, img_B)
    out = jax.block_until_ready(out)

    assert out.shape == (N, 1, 1, 1), out.shape
    assert out.dtype == jnp.float32
    assert bool(jnp.all(jnp.isfinite(out)))
    print("KERNEL_OK")
</pallas_src>

<mosaic_0001>
module attributes {stable_mosaic.version = 11 : i64} {
  func.func @_conv_block_kernel(%arg0: i32, %arg1: i32, %arg2: memref<4x9x9x4xbf16, #tpu.memory_space<vmem>>, %arg3: memref<9x4x64xbf16, #tpu.memory_space<vmem>>, %arg4: memref<1x64xf32, #tpu.memory_space<vmem>>, %arg5: memref<1x8x8x64xf32, #tpu.memory_space<vmem>>, %arg6: memref<1x1x64xf32, #tpu.memory_space<vmem>>, %arg7: memref<1x1x64xf32, #tpu.memory_space<vmem>>) attributes {dimension_semantics = [#tpu.dimension_semantics<parallel>, #tpu.dimension_semantics<parallel>], iteration_bounds = array<i64: 2, 1>, scalar_prefetch = 0 : i64, scratch_operands = 0 : i64, tpu.core_type = #tpu.core_type<tc>, window_params = [{transform_indices = @transform_0, window_bounds = array<i64: 4, 9, 9, 4>}, {pipeline_mode = #tpu.pipeline_mode<synchronous>, transform_indices = @transform_1, window_bounds = array<i64: 9, 4, 64>}, {pipeline_mode = #tpu.pipeline_mode<synchronous>, transform_indices = @transform_2, window_bounds = array<i64: 1, 64>}, {transform_indices = @transform_3, window_bounds = array<i64: 1, 8, 8, 64>}, {transform_indices = @transform_4, window_bounds = array<i64: 1, 1, 64>}, {transform_indices = @transform_5, window_bounds = array<i64: 1, 1, 64>}]} {
    %c8_i32 = arith.constant 8 : i32
    %0 = arith.muli %arg1, %c8_i32 : i32
    %1 = tpu.assume_multiple %0, 8 : i32
    %c0 = arith.constant 0 : index
    %c0_0 = arith.constant 0 : index
    %2 = vector.load %arg4[%c0, %c0_0] : memref<1x64xf32, #tpu.memory_space<vmem>>, vector<1x64xf32>
    %3 = vector.shape_cast %2 : vector<1x64xf32> to vector<1x64xf32>
    %4 = vector.broadcast %3 : vector<1x64xf32> to vector<64x64xf32>
    %c0_i32 = arith.constant 0 : i32
    %5 = arith.addi %1, %c0_i32 : i32
    %c0_1 = arith.constant 0 : index
    %6 = arith.index_cast %5 : i32 to index
    %c0_2 = arith.constant 0 : index
    %c0_3 = arith.constant 0 : index
    %7 = vector.load %arg2[%c0_1, %6, %c0_2, %c0_3] : memref<4x9x9x4xbf16, #tpu.memory_space<vmem>>, vector<1x8x8x4xbf16>
    %8 = vector.shape_cast %7 : vector<1x8x8x4xbf16> to vector<64x4xbf16>
    %c0_4 = arith.constant 0 : index
    %c0_5 = arith.constant 0 : index
    %c0_6 = arith.constant 0 : index
    %9 = vector.load %arg3[%c0_4, %c0_5, %c0_6] : memref<9x4x64xbf16, #tpu.memory_space<vmem>>, vector<1x4x64xbf16>
    %10 = vector.shape_cast %9 : vector<1x4x64xbf16> to vector<4x64xbf16>
    %cst = arith.constant dense<0.000000e+00> : vector<64x64xf32>
    %11 = tpu.matmul %8, %10, %cst {dimension_numbers = #tpu.dot_dimension_numbers<[1], [0], [0], [1], [0, 0, 1, 1], [], []>} : vector<64x4xbf16>, vector<4x64xbf16>, vector<64x64xf32> -> vector<64x64xf32>
    %12 = arith.addf %4, %11 : vector<64x64xf32>
    %c0_i32_7 = arith.constant 0 : i32
    %13 = arith.addi %1, %c0_i32_7 : i32
    %c1 = arith.constant 1 : index
    %14 = arith.index_cast %13 : i32 to index
    %c0_8 = arith.constant 0 : index
    %c0_9 = arith.constant 0 : index
    %15 = vector.load %arg2[%c1, %14, %c0_8, %c0_9] : memref<4x9x9x4xbf16, #tpu.memory_space<vmem>>, vector<1x8x8x4xbf16>
    %16 = vector.shape_cast %15 : vector<1x8x8x4xbf16> to vector<64x4xbf16>
    %c1_10 = arith.constant 1 : index
    %c0_11 = arith.constant 0 : index
    %c0_12 = arith.constant 0 : index
    %17 = vector.load %arg3[%c1_10, %c0_11, %c0_12] : memref<9x4x64xbf16, #tpu.memory_space<vmem>>, vector<1x4x64xbf16>
    %18 = vector.shape_cast %17 : vector<1x4x64xbf16> to vector<4x64xbf16>
    %cst_13 = arith.constant dense<0.000000e+00> : vector<64x64xf32>
    %19 = tpu.matmul %16, %18, %cst_13 {dimension_numbers = #tpu.dot_dimension_numbers<[1], [0], [0], [1], [0, 0, 1, 1], [], []>} : vector<64x4xbf16>, vector<4x64xbf16>, vector<64x64xf32> -> vector<64x64xf32>
    %20 = arith.addf %12, %19 : vector<64x64xf32>
    %c0_i32_14 = arith.constant 0 : i32
    %21 = arith.addi %1, %c0_i32_14 : i32
    %c0_15 = arith.constant 0 : index
    %22 = arith.index_cast %21 : i32 to index
    %c1_16 = arith.constant 1 : index
    %c0_17 = arith.constant 0 : index
    %23 = vector.load %arg2[%c0_15, %22, %c1_16, %c0_17] : memref<4x9x9x4xbf16, #tpu.memory_space<vmem>>, vector<1x8x8x4xbf16>
    %24 = vector.shape_cast %23 : vector<1x8x8x4xbf16> to vector<64x4xbf16>
    %c2 = arith.constant 2 : index
    %c0_18 = arith.constant 0 : index
    %c0_19 = arith.constant 0 : index
    %25 = vector.load %arg3[%c2, %c0_18, %c0_19] : memref<9x4x64xbf16, #tpu.memory_space<vmem>>, vector<1x4x64xbf16>
    %26 = vector.shape_cast %25 : vector<1x4x64xbf16> to vector<4x64xbf16>
    %cst_20 = arith.constant dense<0.000000e+00> : vector<64x64xf32>
    %27 = tpu.matmul %24, %26, %cst_20 {dimension_numbers = #tpu.dot_dimension_numbers<[1], [0], [0], [1], [0, 0, 1, 1], [], []>} : vector<64x4xbf16>, vector<4x64xbf16>, vector<64x64xf32> -> vector<64x64xf32>
    %28 = arith.addf %20, %27 : vector<64x64xf32>
    %c0_i32_21 = arith.constant 0 : i32
    %29 = arith.addi %1, %c0_i32_21 : i32
    %c2_22 = arith.constant 2 : index
    %30 = arith.index_cast %29 : i32 to index
    %c0_23 = arith.constant 0 : index
    %c0_24 = arith.constant 0 : index
    %31 = vector.load %arg2[%c2_22, %30, %c0_23, %c0_24] : memref<4x9x9x4xbf16, #tpu.memory_space<vmem>>, vector<1x8x8x4xbf16>
    %32 = vector.shape_cast %31 : vector<1x8x8x4xbf16> to vector<64x4xbf16>
    %c3 = arith.constant 3 : index
    %c0_25 = arith.constant 0 : index
    %c0_26 = arith.constant 0 : index
    %33 = vector.load %arg3[%c3, %c0_25, %c0_26] : memref<9x4x64xbf16, #tpu.memory_space<vmem>>, vector<1x4x64xbf16>
    %34 = vector.shape_cast %33 : vector<1x4x64xbf16> to vector<4x64xbf16>
    %cst_27 = arith.constant dense<0.000000e+00> : vector<64x64xf32>
    %35 = tpu.matmul %32, %34, %cst_27 {dimension_numbers = #tpu.dot_dimension_numbers<[1], [0], [0], [1], [0, 0, 1, 1], [], []>} : vector<64x4xbf16>, vector<4x64xbf16>, vector<64x64xf32> -> vector<64x64xf32>
    %36 = arith.addf %28, %35 : vector<64x64xf32>
    %c0_i32_28 = arith.constant 0 : i32
    %37 = arith.addi %1, %c0_i32_28 : i32
    %c3_29 = arith.constant 3 : index
    %38 = arith.index_cast %37 : i32 to index
    %c0_30 = arith.constant 0 : index
    %c0_31 = arith.constant 0 : index
    %39 = vector.load %arg2[%c3_29, %38, %c0_30, %c0_31] : memref<4x9x9x4xbf16, #tpu.memory_space<vmem>>, vector<1x8x8x4xbf16>
    %40 = vector.shape_cast %39 : vector<1x8x8x4xbf16> to vector<64x4xbf16>
    %c4 = arith.constant 4 : index
    %c0_32 = arith.constant 0 : index
    %c0_33 = arith.constant 0 : index
    %41 = vector.load %arg3[%c4, %c0_32, %c0_33] : memref<9x4x64xbf16, #tpu.memory_space<vmem>>, vector<1x4x64xbf16>
    %42 = vector.shape_cast %41 : vector<1x4x64xbf16> to vector<4x64xbf16>
    %cst_34 = arith.constant dense<0.000000e+00> : vector<64x64xf32>
    %43 = tpu.matmul %40, %42, %cst_34 {dimension_numbers = #tpu.dot_dimension_numbers<[1], [0], [0], [1], [0, 0, 1, 1], [], []>} : vector<64x4xbf16>, vector<4x64xbf16>, vector<64x64xf32> -> vector<64x64xf32>
    %44 = arith.addf %36, %43 : vector<64x64xf32>
    %c0_i32_35 = arith.constant 0 : i32
    %45 = arith.addi %1, %c0_i32_35 : i32
    %c2_36 = arith.constant 2 : index
    %46 = arith.index_cast %45 : i32 to index
    %c1_37 = arith.constant 1 : index
    %c0_38 = arith.constant 0 : index
    %47 = vector.load %arg2[%c2_36, %46, %c1_37, %c0_38] : memref<4x9x9x4xbf16, #tpu.memory_space<vmem>>, vector<1x8x8x4xbf16>
    %48 = vector.shape_cast %47 : vector<1x8x8x4xbf16> to vector<64x4xbf16>
    %c5 = arith.constant 5 : index
    %c0_39 = arith.constant 0 : index
    %c0_40 = arith.constant 0 : index
    %49 = vector.load %arg3[%c5, %c0_39, %c0_40] : memref<9x4x64xbf16, #tpu.memory_space<vmem>>, vector<1x4x64xbf16>
    %50 = vector.shape_cast %49 : vector<1x4x64xbf16> to vector<4x64xbf16>
    %cst_41 = arith.constant dense<0.000000e+00> : vector<64x64xf32>
    %51 = tpu.matmul %48, %50, %cst_41 {dimension_numbers = #tpu.dot_dimension_numbers<[1], [0], [0], [1], [0, 0, 1, 1], [], []>} : vector<64x4xbf16>, vector<4x64xbf16>, vector<64x64xf32> -> vector<64x64xf32>
    %52 = arith.addf %44, %51 : vector<64x64xf32>
    %c1_i32 = arith.constant 1 : i32
    %53 = arith.addi %1, %c1_i32 : i32
    %c0_42 = arith.constant 0 : index
    %54 = arith.index_cast %53 : i32 to index
    %c0_43 = arith.constant 0 : index
    %c0_44 = arith.constant 0 : index
    %55 = vector.load %arg2[%c0_42, %54, %c0_43, %c0_44] : memref<4x9x9x4xbf16, #tpu.memory_space<vmem>>, vector<1x8x8x4xbf16>
    %56 = vector.shape_cast %55 : vector<1x8x8x4xbf16> to vector<64x4xbf16>
    %c6 = arith.constant 6 : index
    %c0_45 = arith.constant 0 : index
    %c0_46 = arith.constant 0 : index
    %57 = vector.load %arg3[%c6, %c0_45, %c0_46] : memref<9x4x64xbf16, #tpu.memory_space<vmem>>, vector<1x4x64xbf16>
    %58 = vector.shape_cast %57 : vector<1x4x64xbf16> to vector<4x64xbf16>
    %cst_47 = arith.constant dense<0.000000e+00> : vector<64x64xf32>
    %59 = tpu.matmul %56, %58, %cst_47 {dimension_numbers = #tpu.dot_dimension_numbers<[1], [0], [0], [1], [0, 0, 1, 1], [], []>} : vector<64x4xbf16>, vector<4x64xbf16>, vector<64x64xf32> -> vector<64x64xf32>
    %60 = arith.addf %52, %59 : vector<64x64xf32>
    %c1_i32_48 = arith.constant 1 : i32
    %61 = arith.addi %1, %c1_i32_48 : i32
    %c1_49 = arith.constant 1 : index
    %62 = arith.index_cast %61 : i32 to index
    %c0_50 = arith.constant 0 : index
    %c0_51 = arith.constant 0 : index
    %63 = vector.load %arg2[%c1_49, %62, %c0_50, %c0_51] : memref<4x9x9x4xbf16, #tpu.memory_space<vmem>>, vector<1x8x8x4xbf16>
    %64 = vector.shape_cast %63 : vector<1x8x8x4xbf16> to vector<64x4xbf16>
    %c7 = arith.constant 7 : index
    %c0_52 = arith.constant 0 : index
    %c0_53 = arith.constant 0 : index
    %65 = vector.load %arg3[%c7, %c0_52, %c0_53] : memref<9x4x64xbf16, #tpu.memory_space<vmem>>, vector<1x4x64xbf16>
    %66 = vector.shape_cast %65 : vector<1x4x64xbf16> to vector<4x64xbf16>
    %cst_54 = arith.constant dense<0.000000e+00> : vector<64x64xf32>
    %67 = tpu.matmul %64, %66, %cst_54 {dimension_numbers = #tpu.dot_dimension_numbers<[1], [0], [0], [1], [0, 0, 1, 1], [], []>} : vector<64x4xbf16>, vector<4x64xbf16>, vector<64x64xf32> -> vector<64x64xf32>
    %68 = arith.addf %60, %67 : vector<64x64xf32>
    %c1_i32_55 = arith.constant 1 : i32
    %69 = arith.addi %1, %c1_i32_55 : i32
    %c0_56 = arith.constant 0 : index
    %70 = arith.index_cast %69 : i32 to index
    %c1_57 = arith.constant 1 : index
    %c0_58 = arith.constant 0 : index
    %71 = vector.load %arg2[%c0_56, %70, %c1_57, %c0_58] : memref<4x9x9x4xbf16, #tpu.memory_space<vmem>>, vector<1x8x8x4xbf16>
    %72 = vector.shape_cast %71 : vector<1x8x8x4xbf16> to vector<64x4xbf16>
    %c8 = arith.constant 8 : index
    %c0_59 = arith.constant 0 : index
    %c0_60 = arith.constant 0 : index
    %73 = vector.load %arg3[%c8, %c0_59, %c0_60] : memref<9x4x64xbf16, #tpu.memory_space<vmem>>, vector<1x4x64xbf16>
    %74 = vector.shape_cast %73 : vector<1x4x64xbf16> to vector<4x64xbf16>
    %cst_61 = arith.constant dense<0.000000e+00> : vector<64x64xf32>
    %75 = tpu.matmul %72, %74, %cst_61 {dimension_numbers = #tpu.dot_dimension_numbers<[1], [0], [0], [1], [0, 0, 1, 1], [], []>} : vector<64x4xbf16>, vector<4x64xbf16>, vector<64x64xf32> -> vector<64x64xf32>
    %76 = arith.addf %68, %75 : vector<64x64xf32>
    %cst_62 = arith.constant 0.000000e+00 : f32
    %77 = vector.broadcast %cst_62 : f32 to vector<64x64xf32>
    %78 = arith.cmpf oge, %76, %77 : vector<64x64xf32>
    %cst_63 = arith.constant 2.000000e-01 : f32
    %79 = vector.broadcast %cst_63 : f32 to vector<64x64xf32>
    %80 = arith.mulf %79, %76 : vector<64x64xf32>
    %81 = arith.select %78, %76, %80 : vector<64x64xi1>, vector<64x64xf32>
    %82 = vector.shape_cast %81 : vector<64x64xf32> to vector<1x8x8x64xf32>
    %c0_64 = arith.constant 0 : index
    %c0_65 = arith.constant 0 : index
    %c0_66 = arith.constant 0 : index
    %c0_67 = arith.constant 0 : index
    %83 = vector.load %arg5[%c0_64, %c0_65, %c0_66, %c0_67] : memref<1x8x8x64xf32, #tpu.memory_space<vmem>>, vector<1x8x8x64xf32>
    tpu.vector_store %arg5[%c0_64, %c0_65, %c0_66, %c0_67], %82 {strides = array<i32>} : memref<1x8x8x64xf32, #tpu.memory_space<vmem>>, vector<1x8x8x64xf32>,
    %cst_68 = arith.constant dense<0.000000e+00> : vector<64xf32>
    %84 = vector.multi_reduction <add>, %81, %cst_68 [0] : vector<64x64xf32> to vector<64xf32>
    %85 = vector.shape_cast %84 : vector<64xf32> to vector<1x64xf32>
    %86 = vector.shape_cast %85 : vector<1x64xf32> to vector<1x1x64xf32>
    %c0_69 = arith.constant 0 : index
    %c0_70 = arith.constant 0 : index
    %c0_71 = arith.constant 0 : index
    %87 = vector.load %arg6[%c0_69, %c0_70, %c0_71] : memref<1x1x64xf32, #tpu.memory_space<vmem>>, vector<1x1x64xf32>
    tpu.vector_store %arg6[%c0_69, %c0_70, %c0_71], %86 {strides = array<i32>} : memref<1x1x64xf32, #tpu.memory_space<vmem>>, vector<1x1x64xf32>,
    %88 = arith.mulf %81, %81 : vector<64x64xf32>
    %cst_72 = arith.constant dense<0.000000e+00> : vector<64xf32>
    %89 = vector.multi_reduction <add>, %88, %cst_72 [0] : vector<64x64xf32> to vector<64xf32>
    %90 = vector.shape_cast %89 : vector<64xf32> to vector<1x64xf32>
    %91 = vector.shape_cast %90 : vector<1x64xf32> to vector<1x1x64xf32>
    %c0_73 = arith.constant 0 : index
    %c0_74 = arith.constant 0 : index
    %c0_75 = arith.constant 0 : index
    %92 = vector.load %arg7[%c0_73, %c0_74, %c0_75] : memref<1x1x64xf32, #tpu.memory_space<vmem>>, vector<1x1x64xf32>
    tpu.vector_store %arg7[%c0_73, %c0_74, %c0_75], %91 {strides = array<i32>} : memref<1x1x64xf32, #tpu.memory_space<vmem>>, vector<1x1x64xf32>,
    return
  }
  func.func @transform_0(%arg0: i32, %arg1: i32) -> (i32, i32, i32, i32) {
    %c0_i32 = arith.constant 0 : i32
    %c0_i32_0 = arith.constant 0 : i32
    %c0_i32_1 = arith.constant 0 : i32
    %c0_i32_2 = arith.constant 0 : i32
    return %arg0, %c0_i32, %c0_i32_0, %c0_i32_1 : i32, i32, i32, i32
  }
  func.func @transform_1(%arg0: i32, %arg1: i32) -> (i32, i32, i32) {
    %c0_i32 = arith.constant 0 : i32
    %c0_i32_0 = arith.constant 0 : i32
    %c0_i32_1 = arith.constant 0 : i32
    %c0_i32_2 = arith.constant 0 : i32
    return %c0_i32, %c0_i32_0, %c0_i32_1 : i32, i32, i32
  }
  func.func @transform_2(%arg0: i32, %arg1: i32) -> (i32, i32) {
    %c0_i32 = arith.constant 0 : i32
    %c0_i32_0 = arith.constant 0 : i32
    %c0_i32_1 = arith.constant 0 : i32
    return %c0_i32, %c0_i32_0 : i32, i32
  }
  func.func @transform_3(%arg0: i32, %arg1: i32) -> (i32, i32, i32, i32) {
    %c0_i32 = arith.constant 0 : i32
    %c0_i32_0 = arith.constant 0 : i32
    %c0_i32_1 = arith.constant 0 : i32
    return %arg0, %arg1, %c0_i32, %c0_i32_0 : i32, i32, i32, i32
  }
  func.func @transform_4(%arg0: i32, %arg1: i32) -> (i32, i32, i32) {
    %c1_i32 = arith.constant 1 : i32
    %0 = arith.muli %arg0, %c1_i32 : i32
    %1 = arith.addi %0, %arg1 : i32
    %c0_i32 = arith.constant 0 : i32
    %c0_i32_0 = arith.constant 0 : i32
    %c0_i32_1 = arith.constant 0 : i32
    return %1, %c0_i32, %c0_i32_0 : i32, i32, i32
  }
  func.func @transform_5(%arg0: i32, %arg1: i32) -> (i32, i32, i32) {
    %c1_i32 = arith.constant 1 : i32
    %0 = arith.muli %arg0, %c1_i32 : i32
    %1 = arith.addi %0, %arg1 : i32
    %c0_i32 = arith.constant 0 : i32
    %c0_i32_0 = arith.constant 0 : i32
    %c0_i32_1 = arith.constant 0 : i32
    return %1, %c0_i32, %c0_i32_0 : i32, i32, i32
  }
}

module attributes {stable_mosaic.version = 11 : i64} {
  func.func @_conv_block_kernel(%arg0: i32, %arg1: i32, %arg2: memref<4x5x5x64xbf16, #tpu.memory_space<vmem>>, %arg3: memref<9x64x128xbf16, #tpu.memory_space<vmem>>, %arg4: memref<1x128xf32, #tpu.memory_space<vmem>>, %arg5: memref<1x4x4x128xf32, #tpu.memory_space<vmem>>, %arg6: memref<1x1x128xf32, #tpu.memory_space<vmem>>, %arg7: memref<1x1x128xf32, #tpu.memory_space<vmem>>) attributes {dimension_semantics = [#tpu.dimension_semantics<parallel>, #tpu.dimension_semantics<parallel>], iteration_bounds = array<i64: 2, 1>, scalar_prefetch = 0 : i64, scratch_operands = 0 : i64, tpu.core_type = #tpu.core_type<tc>, window_params = [{transform_indices = @transform_0, window_bounds = array<i64: 4, 5, 5, 64>}, {pipeline_mode = #tpu.pipeline_mode<synchronous>, transform_indices = @transform_1, window_bounds = array<i64: 9, 64, 128>}, {pipeline_mode = #tpu.pipeline_mode<synchronous>, transform_indices = @transform_2, window_bounds = array<i64: 1, 128>}, {transform_indices = @transform_3, window_bounds = array<i64: 1, 4, 4, 128>}, {transform_indices = @transform_4, window_bounds = array<i64: 1, 1, 128>}, {transform_indices = @transform_5, window_bounds = array<i64: 1, 1, 128>}]} {
    %c4_i32 = arith.constant 4 : i32
    %0 = arith.muli %arg1, %c4_i32 : i32
    %1 = tpu.assume_multiple %0, 4 : i32
    %c0 = arith.constant 0 : index
    %c0_0 = arith.constant 0 : index
    %2 = vector.load %arg4[%c0, %c0_0] : memref<1x128xf32, #tpu.memory_space<vmem>>, vector<1x128xf32>
    %3 = vector.shape_cast %2 : vector<1x128xf32> to vector<1x128xf32>
    %4 = vector.broadcast %3 : vector<1x128xf32> to vector<16x128xf32>
    %c0_i32 = arith.constant 0 : i32
    %5 = arith.addi %1, %c0_i32 : i32
    %c0_1 = arith.constant 0 : index
    %6 = arith.index_cast %5 : i32 to index
    %c0_2 = arith.constant 0 : index
    %c0_3 = arith.constant 0 : index
    %7 = vector.load %arg2[%c0_1, %6, %c0_2, %c0_3] : memref<4x5x5x64xbf16, #tpu.memory_space<vmem>>, vector<1x4x4x64xbf16>
    %8 = vector.shape_cast %7 : vector<1x4x4x64xbf16> to vector<16x64xbf16>
    %c0_4 = arith.constant 0 : index
    %c0_5 = arith.constant 0 : index
    %c0_6 = arith.constant 0 : index
    %9 = vector.load %arg3[%c0_4, %c0_5, %c0_6] : memref<9x64x128xbf16, #tpu.memory_space<vmem>>, vector<1x64x128xbf16>
    %10 = vector.shape_cast %9 : vector<1x64x128xbf16> to vector<64x128xbf16>
    %cst = arith.constant dense<0.000000e+00> : vector<16x128xf32>
    %11 = tpu.matmul %8, %10, %cst {dimension_numbers = #tpu.dot_dimension_numbers<[1], [0], [0], [1], [0, 0, 1, 1], [], []>} : vector<16x64xbf16>, vector<64x128xbf16>, vector<16x128xf32> -> vector<16x128xf32>
    %12 = arith.addf %4, %11 : vector<16x128xf32>
    %c0_i32_7 = arith.constant 0 : i32
    %13 = arith.addi %1, %c0_i32_7 : i32
    %c1 = arith.constant 1 : index
    %14 = arith.index_cast %13 : i32 to index
    %c0_8 = arith.constant 0 : index
    %c0_9 = arith.constant 0 : index
    %15 = vector.load %arg2[%c1, %14, %c0_8, %c0_9] : memref<4x5x5x64xbf16, #tpu.memory_space<vmem>>, vector<1x4x4x64xbf16>
    %16 = vector.shape_cast %15 : vector<1x4x4x64xbf16> to vector<16x64xbf16>
    %c1_10 = arith.constant 1 : index
    %c0_11 = arith.constant 0 : index
    %c0_12 = arith.constant 0 : index
    %17 = vector.load %arg3[%c1_10, %c0_11, %c0_12] : memref<9x64x128xbf16, #tpu.memory_space<vmem>>, vector<1x64x128xbf16>
    %18 = vector.shape_cast %17 : vector<1x64x128xbf16> to vector<64x128xbf16>
    %cst_13 = arith.constant dense<0.000000e+00> : vector<16x128xf32>
    %19 = tpu.matmul %16, %18, %cst_13 {dimension_numbers = #tpu.dot_dimension_numbers<[1], [0], [0], [1], [0, 0, 1, 1], [], []>} : vector<16x64xbf16>, vector<64x128xbf16>, vector<16x128xf32> -> vector<16x128xf32>
    %20 = arith.addf %12, %19 : vector<16x128xf32>
    %c0_i32_14 = arith.constant 0 : i32
    %21 = arith.addi %1, %c0_i32_14 : i32
    %c0_15 = arith.constant 0 : index
    %22 = arith.index_cast %21 : i32 to index
    %c1_16 = arith.constant 1 : index
    %c0_17 = arith.constant 0 : index
    %23 = vector.load %arg2[%c0_15, %22, %c1_16, %c0_17] : memref<4x5x5x64xbf16, #tpu.memory_space<vmem>>, vector<1x4x4x64xbf16>
    %24 = vector.shape_cast %23 : vector<1x4x4x64xbf16> to vector<16x64xbf16>
    %c2 = arith.constant 2 : index
    %c0_18 = arith.constant 0 : index
    %c0_19 = arith.constant 0 : index
    %25 = vector.load %arg3[%c2, %c0_18, %c0_19] : memref<9x64x128xbf16, #tpu.memory_space<vmem>>, vector<1x64x128xbf16>
    %26 = vector.shape_cast %25 : vector<1x64x128xbf16> to vector<64x128xbf16>
    %cst_20 = arith.constant dense<0.000000e+00> : vector<16x128xf32>
    %27 = tpu.matmul %24, %26, %cst_20 {dimension_numbers = #tpu.dot_dimension_numbers<[1], [0], [0], [1], [0, 0, 1, 1], [], []>} : vector<16x64xbf16>, vector<64x128xbf16>, vector<16x128xf32> -> vector<16x128xf32>
    %28 = arith.addf %20, %27 : vector<16x128xf32>
    %c0_i32_21 = arith.constant 0 : i32
    %29 = arith.addi %1, %c0_i32_21 : i32
    %c2_22 = arith.constant 2 : index
    %30 = arith.index_cast %29 : i32 to index
    %c0_23 = arith.constant 0 : index
    %c0_24 = arith.constant 0 : index
    %31 = vector.load %arg2[%c2_22, %30, %c0_23, %c0_24] : memref<4x5x5x64xbf16, #tpu.memory_space<vmem>>, vector<1x4x4x64xbf16>
    %32 = vector.shape_cast %31 : vector<1x4x4x64xbf16> to vector<16x64xbf16>
    %c3 = arith.constant 3 : index
    %c0_25 = arith.constant 0 : index
    %c0_26 = arith.constant 0 : index
    %33 = vector.load %arg3[%c3, %c0_25, %c0_26] : memref<9x64x128xbf16, #tpu.memory_space<vmem>>, vector<1x64x128xbf16>
    %34 = vector.shape_cast %33 : vector<1x64x128xbf16> to vector<64x128xbf16>
    %cst_27 = arith.constant dense<0.000000e+00> : vector<16x128xf32>
    %35 = tpu.matmul %32, %34, %cst_27 {dimension_numbers = #tpu.dot_dimension_numbers<[1], [0], [0], [1], [0, 0, 1, 1], [], []>} : vector<16x64xbf16>, vector<64x128xbf16>, vector<16x128xf32> -> vector<16x128xf32>
    %36 = arith.addf %28, %35 : vector<16x128xf32>
    %c0_i32_28 = arith.constant 0 : i32
    %37 = arith.addi %1, %c0_i32_28 : i32
    %c3_29 = arith.constant 3 : index
    %38 = arith.index_cast %37 : i32 to index
    %c0_30 = arith.constant 0 : index
    %c0_31 = arith.constant 0 : index
    %39 = vector.load %arg2[%c3_29, %38, %c0_30, %c0_31] : memref<4x5x5x64xbf16, #tpu.memory_space<vmem>>, vector<1x4x4x64xbf16>
    %40 = vector.shape_cast %39 : vector<1x4x4x64xbf16> to vector<16x64xbf16>
    %c4 = arith.constant 4 : index
    %c0_32 = arith.constant 0 : index
    %c0_33 = arith.constant 0 : index
    %41 = vector.load %arg3[%c4, %c0_32, %c0_33] : memref<9x64x128xbf16, #tpu.memory_space<vmem>>, vector<1x64x128xbf16>
    %42 = vector.shape_cast %41 : vector<1x64x128xbf16> to vector<64x128xbf16>
    %cst_34 = arith.constant dense<0.000000e+00> : vector<16x128xf32>
    %43 = tpu.matmul %40, %42, %cst_34 {dimension_numbers = #tpu.dot_dimension_numbers<[1], [0], [0], [1], [0, 0, 1, 1], [], []>} : vector<16x64xbf16>, vector<64x128xbf16>, vector<16x128xf32> -> vector<16x128xf32>
    %44 = arith.addf %36, %43 : vector<16x128xf32>
    %c0_i32_35 = arith.constant 0 : i32
    %45 = arith.addi %1, %c0_i32_35 : i32
    %c2_36 = arith.constant 2 : index
    %46 = arith.index_cast %45 : i32 to index
    %c1_37 = arith.constant 1 : index
    %c0_38 = arith.constant 0 : index
    %47 = vector.load %arg2[%c2_36, %46, %c1_37, %c0_38] : memref<4x5x5x64xbf16, #tpu.memory_space<vmem>>, vector<1x4x4x64xbf16>
    %48 = vector.shape_cast %47 : vector<1x4x4x64xbf16> to vector<16x64xbf16>
    %c5 = arith.constant 5 : index
    %c0_39 = arith.constant 0 : index
    %c0_40 = arith.constant 0 : index
    %49 = vector.load %arg3[%c5, %c0_39, %c0_40] : memref<9x64x128xbf16, #tpu.memory_space<vmem>>, vector<1x64x128xbf16>
    %50 = vector.shape_cast %49 : vector<1x64x128xbf16> to vector<64x128xbf16>
    %cst_41 = arith.constant dense<0.000000e+00> : vector<16x128xf32>
    %51 = tpu.matmul %48, %50, %cst_41 {dimension_numbers = #tpu.dot_dimension_numbers<[1], [0], [0], [1], [0, 0, 1, 1], [], []>} : vector<16x64xbf16>, vector<64x128xbf16>, vector<16x128xf32> -> vector<16x128xf32>
    %52 = arith.addf %44, %51 : vector<16x128xf32>
    %c1_i32 = arith.constant 1 : i32
    %53 = arith.addi %1, %c1_i32 : i32
    %c0_42 = arith.constant 0 : index
    %54 = arith.index_cast %53 : i32 to index
    %c0_43 = arith.constant 0 : index
    %c0_44 = arith.constant 0 : index
    %55 = vector.load %arg2[%c0_42, %54, %c0_43, %c0_44] : memref<4x5x5x64xbf16, #tpu.memory_space<vmem>>, vector<1x4x4x64xbf16>
    %56 = vector.shape_cast %55 : vector<1x4x4x64xbf16> to vector<16x64xbf16>
    %c6 = arith.constant 6 : index
    %c0_45 = arith.constant 0 : index
    %c0_46 = arith.constant 0 : index
    %57 = vector.load %arg3[%c6, %c0_45, %c0_46] : memref<9x64x128xbf16, #tpu.memory_space<vmem>>, vector<1x64x128xbf16>
    %58 = vector.shape_cast %57 : vector<1x64x128xbf16> to vector<64x128xbf16>
    %cst_47 = arith.constant dense<0.000000e+00> : vector<16x128xf32>
    %59 = tpu.matmul %56, %58, %cst_47 {dimension_numbers = #tpu.dot_dimension_numbers<[1], [0], [0], [1], [0, 0, 1, 1], [], []>} : vector<16x64xbf16>, vector<64x128xbf16>, vector<16x128xf32> -> vector<16x128xf32>
    %60 = arith.addf %52, %59 : vector<16x128xf32>
    %c1_i32_48 = arith.constant 1 : i32
    %61 = arith.addi %1, %c1_i32_48 : i32
    %c1_49 = arith.constant 1 : index
    %62 = arith.index_cast %61 : i32 to index
    %c0_50 = arith.constant 0 : index
    %c0_51 = arith.constant 0 : index
    %63 = vector.load %arg2[%c1_49, %62, %c0_50, %c0_51] : memref<4x5x5x64xbf16, #tpu.memory_space<vmem>>, vector<1x4x4x64xbf16>
    %64 = vector.shape_cast %63 : vector<1x4x4x64xbf16> to vector<16x64xbf16>
    %c7 = arith.constant 7 : index
    %c0_52 = arith.constant 0 : index
    %c0_53 = arith.constant 0 : index
    %65 = vector.load %arg3[%c7, %c0_52, %c0_53] : memref<9x64x128xbf16, #tpu.memory_space<vmem>>, vector<1x64x128xbf16>
    %66 = vector.shape_cast %65 : vector<1x64x128xbf16> to vector<64x128xbf16>
    %cst_54 = arith.constant dense<0.000000e+00> : vector<16x128xf32>
    %67 = tpu.matmul %64, %66, %cst_54 {dimension_numbers = #tpu.dot_dimension_numbers<[1], [0], [0], [1], [0, 0, 1, 1], [], []>} : vector<16x64xbf16>, vector<64x128xbf16>, vector<16x128xf32> -> vector<16x128xf32>
    %68 = arith.addf %60, %67 : vector<16x128xf32>
    %c1_i32_55 = arith.constant 1 : i32
    %69 = arith.addi %1, %c1_i32_55 : i32
    %c0_56 = arith.constant 0 : index
    %70 = arith.index_cast %69 : i32 to index
    %c1_57 = arith.constant 1 : index
    %c0_58 = arith.constant 0 : index
    %71 = vector.load %arg2[%c0_56, %70, %c1_57, %c0_58] : memref<4x5x5x64xbf16, #tpu.memory_space<vmem>>, vector<1x4x4x64xbf16>
    %72 = vector.shape_cast %71 : vector<1x4x4x64xbf16> to vector<16x64xbf16>
    %c8 = arith.constant 8 : index
    %c0_59 = arith.constant 0 : index
    %c0_60 = arith.constant 0 : index
    %73 = vector.load %arg3[%c8, %c0_59, %c0_60] : memref<9x64x128xbf16, #tpu.memory_space<vmem>>, vector<1x64x128xbf16>
    %74 = vector.shape_cast %73 : vector<1x64x128xbf16> to vector<64x128xbf16>
    %cst_61 = arith.constant dense<0.000000e+00> : vector<16x128xf32>
    %75 = tpu.matmul %72, %74, %cst_61 {dimension_numbers = #tpu.dot_dimension_numbers<[1], [0], [0], [1], [0, 0, 1, 1], [], []>} : vector<16x64xbf16>, vector<64x128xbf16>, vector<16x128xf32> -> vector<16x128xf32>
    %76 = arith.addf %68, %75 : vector<16x128xf32>
    %cst_62 = arith.constant 0.000000e+00 : f32
    %77 = vector.broadcast %cst_62 : f32 to vector<16x128xf32>
    %78 = arith.cmpf oge, %76, %77 : vector<16x128xf32>
    %cst_63 = arith.constant 2.000000e-01 : f32
    %79 = vector.broadcast %cst_63 : f32 to vector<16x128xf32>
    %80 = arith.mulf %79, %76 : vector<16x128xf32>
    %81 = arith.select %78, %76, %80 : vector<16x128xi1>, vector<16x128xf32>
    %82 = vector.shape_cast %81 : vector<16x128xf32> to vector<1x4x4x128xf32>
    %c0_64 = arith.constant 0 : index
    %c0_65 = arith.constant 0 : index
    %c0_66 = arith.constant 0 : index
    %c0_67 = arith.constant 0 : index
    %83 = vector.load %arg5[%c0_64, %c0_65, %c0_66, %c0_67] : memref<1x4x4x128xf32, #tpu.memory_space<vmem>>, vector<1x4x4x128xf32>
    tpu.vector_store %arg5[%c0_64, %c0_65, %c0_66, %c0_67], %82 {strides = array<i32>} : memref<1x4x4x128xf32, #tpu.memory_space<vmem>>, vector<1x4x4x128xf32>,
    %cst_68 = arith.constant dense<0.000000e+00> : vector<128xf32>
    %84 = vector.multi_reduction <add>, %81, %cst_68 [0] : vector<16x128xf32> to vector<128xf32>
    %85 = vector.shape_cast %84 : vector<128xf32> to vector<1x128xf32>
    %86 = vector.shape_cast %85 : vector<1x128xf32> to vector<1x1x128xf32>
    %c0_69 = arith.constant 0 : index
    %c0_70 = arith.constant 0 : index
    %c0_71 = arith.constant 0 : index
    %87 = vector.load %arg6[%c0_69, %c0_70, %c0_71] : memref<1x1x128xf32, #tpu.memory_space<vmem>>, vector<1x1x128xf32>
    tpu.vector_store %arg6[%c0_69, %c0_70, %c0_71], %86 {strides = array<i32>} : memref<1x1x128xf32, #tpu.memory_space<vmem>>, vector<1x1x128xf32>,
    %88 = arith.mulf %81, %81 : vector<16x128xf32>
    %cst_72 = arith.constant dense<0.000000e+00> : vector<128xf32>
    %89 = vector.multi_reduction <add>, %88, %cst_72 [0] : vector<16x128xf32> to vector<128xf32>
    %90 = vector.shape_cast %89 : vector<128xf32> to vector<1x128xf32>
    %91 = vector.shape_cast %90 : vector<1x128xf32> to vector<1x1x128xf32>
    %c0_73 = arith.constant 0 : index
    %c0_74 = arith.constant 0 : index
    %c0_75 = arith.constant 0 : index
    %92 = vector.load %arg7[%c0_73, %c0_74, %c0_75] : memref<1x1x128xf32, #tpu.memory_space<vmem>>, vector<1x1x128xf32>
    tpu.vector_store %arg7[%c0_73, %c0_74, %c0_75], %91 {strides = array<i32>} : memref<1x1x128xf32, #tpu.memory_space<vmem>>, vector<1x1x128xf32>,
    return
  }
  func.func @transform_0(%arg0: i32, %arg1: i32) -> (i32, i32, i32, i32) {
    %c0_i32 = arith.constant 0 : i32
    %c0_i32_0 = arith.constant 0 : i32
    %c0_i32_1 = arith.constant 0 : i32
    %c0_i32_2 = arith.constant 0 : i32
    return %arg0, %c0_i32, %c0_i32_0, %c0_i32_1 : i32, i32, i32, i32
  }
  func.func @transform_1(%arg0: i32, %arg1: i32) -> (i32, i32, i32) {
    %c0_i32 = arith.constant 0 : i32
    %c0_i32_0 = arith.constant 0 : i32
    %c0_i32_1 = arith.constant 0 : i32
    %c0_i32_2 = arith.constant 0 : i32
    return %c0_i32, %c0_i32_0, %c0_i32_1 : i32, i32, i32
  }
  func.func @transform_2(%arg0: i32, %arg1: i32) -> (i32, i32) {
    %c0_i32 = arith.constant 0 : i32
    %c0_i32_0 = arith.constant 0 : i32
    %c0_i32_1 = arith.constant 0 : i32
    return %c0_i32, %c0_i32_0 : i32, i32
  }
  func.func @transform_3(%arg0: i32, %arg1: i32) -> (i32, i32, i32, i32) {
    %c0_i32 = arith.constant 0 : i32
    %c0_i32_0 = arith.constant 0 : i32
    %c0_i32_1 = arith.constant 0 : i32
    return %arg0, %arg1, %c0_i32, %c0_i32_0 : i32, i32, i32, i32
  }
  func.func @transform_4(%arg0: i32, %arg1: i32) -> (i32, i32, i32) {
    %c1_i32 = arith.constant 1 : i32
    %0 = arith.muli %arg0, %c1_i32 : i32
    %1 = arith.addi %0, %arg1 : i32
    %c0_i32 = arith.constant 0 : i32
    %c0_i32_0 = arith.constant 0 : i32
    %c0_i32_1 = arith.constant 0 : i32
    return %1, %c0_i32, %c0_i32_0 : i32, i32, i32
  }
  func.func @transform_5(%arg0: i32, %arg1: i32) -> (i32, i32, i32) {
    %c1_i32 = arith.constant 1 : i32
    %0 = arith.muli %arg0, %c1_i32 : i32
    %1 = arith.addi %0, %arg1 : i32
    %c0_i32 = arith.constant 0 : i32
    %c0_i32_0 = arith.constant 0 : i32
    %c0_i32_1 = arith.constant 0 : i32
    return %1, %c0_i32, %c0_i32_0 : i32, i32, i32
  }
}

module attributes {stable_mosaic.version = 11 : i64} {
  func.func @_conv_block_kernel(%arg0: i32, %arg1: i32, %arg2: memref<4x3x3x128xbf16, #tpu.memory_space<vmem>>, %arg3: memref<9x128x256xbf16, #tpu.memory_space<vmem>>, %arg4: memref<1x256xf32, #tpu.memory_space<vmem>>, %arg5: memref<1x2x2x256xf32, #tpu.memory_space<vmem>>, %arg6: memref<1x1x256xf32, #tpu.memory_space<vmem>>, %arg7: memref<1x1x256xf32, #tpu.memory_space<vmem>>) attributes {dimension_semantics = [#tpu.dimension_semantics<parallel>, #tpu.dimension_semantics<parallel>], iteration_bounds = array<i64: 2, 1>, scalar_prefetch = 0 : i64, scratch_operands = 0 : i64, tpu.core_type = #tpu.core_type<tc>, window_params = [{transform_indices = @transform_0, window_bounds = array<i64: 4, 3, 3, 128>}, {pipeline_mode = #tpu.pipeline_mode<synchronous>, transform_indices = @transform_1, window_bounds = array<i64: 9, 128, 256>}, {pipeline_mode = #tpu.pipeline_mode<synchronous>, transform_indices = @transform_2, window_bounds = array<i64: 1, 256>}, {transform_indices = @transform_3, window_bounds = array<i64: 1, 2, 2, 256>}, {transform_indices = @transform_4, window_bounds = array<i64: 1, 1, 256>}, {transform_indices = @transform_5, window_bounds = array<i64: 1, 1, 256>}]} {
    %c2_i32 = arith.constant 2 : i32
    %0 = arith.muli %arg1, %c2_i32 : i32
    %1 = tpu.assume_multiple %0, 2 : i32
    %c0 = arith.constant 0 : index
    %c0_0 = arith.constant 0 : index
    %2 = vector.load %arg4[%c0, %c0_0] : memref<1x256xf32, #tpu.memory_space<vmem>>, vector<1x256xf32>
    %3 = vector.shape_cast %2 : vector<1x256xf32> to vector<1x256xf32>
    %4 = vector.broadcast %3 : vector<1x256xf32> to vector<4x256xf32>
    %c0_i32 = arith.constant 0 : i32
    %5 = arith.addi %1, %c0_i32 : i32
    %c0_1 = arith.constant 0 : index
    %6 = arith.index_cast %5 : i32 to index
    %c0_2 = arith.constant 0 : index
    %c0_3 = arith.constant 0 : index
    %7 = vector.load %arg2[%c0_1, %6, %c0_2, %c0_3] : memref<4x3x3x128xbf16, #tpu.memory_space<vmem>>, vector<1x2x2x128xbf16>
    %8 = vector.shape_cast %7 : vector<1x2x2x128xbf16> to vector<4x128xbf16>
    %c0_4 = arith.constant 0 : index
    %c0_5 = arith.constant 0 : index
    %c0_6 = arith.constant 0 : index
    %9 = vector.load %arg3[%c0_4, %c0_5, %c0_6] : memref<9x128x256xbf16, #tpu.memory_space<vmem>>, vector<1x128x256xbf16>
    %10 = vector.shape_cast %9 : vector<1x128x256xbf16> to vector<128x256xbf16>
    %cst = arith.constant dense<0.000000e+00> : vector<4x256xf32>
    %11 = tpu.matmul %8, %10, %cst {dimension_numbers = #tpu.dot_dimension_numbers<[1], [0], [0], [1], [0, 0, 1, 1], [], []>} : vector<4x128xbf16>, vector<128x256xbf16>, vector<4x256xf32> -> vector<4x256xf32>
    %12 = arith.addf %4, %11 : vector<4x256xf32>
    %c0_i32_7 = arith.constant 0 : i32
    %13 = arith.addi %1, %c0_i32_7 : i32
    %c1 = arith.constant 1 : index
    %14 = arith.index_cast %13 : i32 to index
    %c0_8 = arith.constant 0 : index
    %c0_9 = arith.constant 0 : index
    %15 = vector.load %arg2[%c1, %14, %c0_8, %c0_9] : memref<4x3x3x128xbf16, #tpu.memory_space<vmem>>, vector<1x2x2x128xbf16>
    %16 = vector.shape_cast %15 : vector<1x2x2x128xbf16> to vector<4x128xbf16>
    %c1_10 = arith.constant 1 : index
    %c0_11 = arith.constant 0 : index
    %c0_12 = arith.constant 0 : index
    %17 = vector.load %arg3[%c1_10, %c0_11, %c0_12] : memref<9x128x256xbf16, #tpu.memory_space<vmem>>, vector<1x128x256xbf16>
    %18 = vector.shape_cast %17 : vector<1x128x256xbf16> to vector<128x256xbf16>
    %cst_13 = arith.constant dense<0.000000e+00> : vector<4x256xf32>
    %19 = tpu.matmul %16, %18, %cst_13 {dimension_numbers = #tpu.dot_dimension_numbers<[1], [0], [0], [1], [0, 0, 1, 1], [], []>} : vector<4x128xbf16>, vector<128x256xbf16>, vector<4x256xf32> -> vector<4x256xf32>
    %20 = arith.addf %12, %19 : vector<4x256xf32>
    %c0_i32_14 = arith.constant 0 : i32
    %21 = arith.addi %1, %c0_i32_14 : i32
    %c0_15 = arith.constant 0 : index
    %22 = arith.index_cast %21 : i32 to index
    %c1_16 = arith.constant 1 : index
    %c0_17 = arith.constant 0 : index
    %23 = vector.load %arg2[%c0_15, %22, %c1_16, %c0_17] : memref<4x3x3x128xbf16, #tpu.memory_space<vmem>>, vector<1x2x2x128xbf16>
    %24 = vector.shape_cast %23 : vector<1x2x2x128xbf16> to vector<4x128xbf16>
    %c2 = arith.constant 2 : index
    %c0_18 = arith.constant 0 : index
    %c0_19 = arith.constant 0 : index
    %25 = vector.load %arg3[%c2, %c0_18, %c0_19] : memref<9x128x256xbf16, #tpu.memory_space<vmem>>, vector<1x128x256xbf16>
    %26 = vector.shape_cast %25 : vector<1x128x256xbf16> to vector<128x256xbf16>
    %cst_20 = arith.constant dense<0.000000e+00> : vector<4x256xf32>
    %27 = tpu.matmul %24, %26, %cst_20 {dimension_numbers = #tpu.dot_dimension_numbers<[1], [0], [0], [1], [0, 0, 1, 1], [], []>} : vector<4x128xbf16>, vector<128x256xbf16>, vector<4x256xf32> -> vector<4x256xf32>
    %28 = arith.addf %20, %27 : vector<4x256xf32>
    %c0_i32_21 = arith.constant 0 : i32
    %29 = arith.addi %1, %c0_i32_21 : i32
    %c2_22 = arith.constant 2 : index
    %30 = arith.index_cast %29 : i32 to index
    %c0_23 = arith.constant 0 : index
    %c0_24 = arith.constant 0 : index
    %31 = vector.load %arg2[%c2_22, %30, %c0_23, %c0_24] : memref<4x3x3x128xbf16, #tpu.memory_space<vmem>>, vector<1x2x2x128xbf16>
    %32 = vector.shape_cast %31 : vector<1x2x2x128xbf16> to vector<4x128xbf16>
    %c3 = arith.constant 3 : index
    %c0_25 = arith.constant 0 : index
    %c0_26 = arith.constant 0 : index
    %33 = vector.load %arg3[%c3, %c0_25, %c0_26] : memref<9x128x256xbf16, #tpu.memory_space<vmem>>, vector<1x128x256xbf16>
    %34 = vector.shape_cast %33 : vector<1x128x256xbf16> to vector<128x256xbf16>
    %cst_27 = arith.constant dense<0.000000e+00> : vector<4x256xf32>
    %35 = tpu.matmul %32, %34, %cst_27 {dimension_numbers = #tpu.dot_dimension_numbers<[1], [0], [0], [1], [0, 0, 1, 1], [], []>} : vector<4x128xbf16>, vector<128x256xbf16>, vector<4x256xf32> -> vector<4x256xf32>
    %36 = arith.addf %28, %35 : vector<4x256xf32>
    %c0_i32_28 = arith.constant 0 : i32
    %37 = arith.addi %1, %c0_i32_28 : i32
    %c3_29 = arith.constant 3 : index
    %38 = arith.index_cast %37 : i32 to index
    %c0_30 = arith.constant 0 : index
    %c0_31 = arith.constant 0 : index
    %39 = vector.load %arg2[%c3_29, %38, %c0_30, %c0_31] : memref<4x3x3x128xbf16, #tpu.memory_space<vmem>>, vector<1x2x2x128xbf16>
    %40 = vector.shape_cast %39 : vector<1x2x2x128xbf16> to vector<4x128xbf16>
    %c4 = arith.constant 4 : index
    %c0_32 = arith.constant 0 : index
    %c0_33 = arith.constant 0 : index
    %41 = vector.load %arg3[%c4, %c0_32, %c0_33] : memref<9x128x256xbf16, #tpu.memory_space<vmem>>, vector<1x128x256xbf16>
    %42 = vector.shape_cast %41 : vector<1x128x256xbf16> to vector<128x256xbf16>
    %cst_34 = arith.constant dense<0.000000e+00> : vector<4x256xf32>
    %43 = tpu.matmul %40, %42, %cst_34 {dimension_numbers = #tpu.dot_dimension_numbers<[1], [0], [0], [1], [0, 0, 1, 1], [], []>} : vector<4x128xbf16>, vector<128x256xbf16>, vector<4x256xf32> -> vector<4x256xf32>
    %44 = arith.addf %36, %43 : vector<4x256xf32>
    %c0_i32_35 = arith.constant 0 : i32
    %45 = arith.addi %1, %c0_i32_35 : i32
    %c2_36 = arith.constant 2 : index
    %46 = arith.index_cast %45 : i32 to index
    %c1_37 = arith.constant 1 : index
    %c0_38 = arith.constant 0 : index
    %47 = vector.load %arg2[%c2_36, %46, %c1_37, %c0_38] : memref<4x3x3x128xbf16, #tpu.memory_space<vmem>>, vector<1x2x2x128xbf16>
    %48 = vector.shape_cast %47 : vector<1x2x2x128xbf16> to vector<4x128xbf16>
    %c5 = arith.constant 5 : index
    %c0_39 = arith.constant 0 : index
    %c0_40 = arith.constant 0 : index
    %49 = vector.load %arg3[%c5, %c0_39, %c0_40] : memref<9x128x256xbf16, #tpu.memory_space<vmem>>, vector<1x128x256xbf16>
    %50 = vector.shape_cast %49 : vector<1x128x256xbf16> to vector<128x256xbf16>
    %cst_41 = arith.constant dense<0.000000e+00> : vector<4x256xf32>
    %51 = tpu.matmul %48, %50, %cst_41 {dimension_numbers = #tpu.dot_dimension_numbers<[1], [0], [0], [1], [0, 0, 1, 1], [], []>} : vector<4x128xbf16>, vector<128x256xbf16>, vector<4x256xf32> -> vector<4x256xf32>
    %52 = arith.addf %44, %51 : vector<4x256xf32>
    %c1_i32 = arith.constant 1 : i32
    %53 = arith.addi %1, %c1_i32 : i32
    %c0_42 = arith.constant 0 : index
    %54 = arith.index_cast %53 : i32 to index
    %c0_43 = arith.constant 0 : index
    %c0_44 = arith.constant 0 : index
    %55 = vector.load %arg2[%c0_42, %54, %c0_43, %c0_44] : memref<4x3x3x128xbf16, #tpu.memory_space<vmem>>, vector<1x2x2x128xbf16>
    %56 = vector.shape_cast %55 : vector<1x2x2x128xbf16> to vector<4x128xbf16>
    %c6 = arith.constant 6 : index
    %c0_45 = arith.constant 0 : index
    %c0_46 = arith.constant 0 : index
    %57 = vector.load %arg3[%c6, %c0_45, %c0_46] : memref<9x128x256xbf16, #tpu.memory_space<vmem>>, vector<1x128x256xbf16>
    %58 = vector.shape_cast %57 : vector<1x128x256xbf16> to vector<128x256xbf16>
    %cst_47 = arith.constant dense<0.000000e+00> : vector<4x256xf32>
    %59 = tpu.matmul %56, %58, %cst_47 {dimension_numbers = #tpu.dot_dimension_numbers<[1], [0], [0], [1], [0, 0, 1, 1], [], []>} : vector<4x128xbf16>, vector<128x256xbf16>, vector<4x256xf32> -> vector<4x256xf32>
    %60 = arith.addf %52, %59 : vector<4x256xf32>
    %c1_i32_48 = arith.constant 1 : i32
    %61 = arith.addi %1, %c1_i32_48 : i32
    %c1_49 = arith.constant 1 : index
    %62 = arith.index_cast %61 : i32 to index
    %c0_50 = arith.constant 0 : index
    %c0_51 = arith.constant 0 : index
    %63 = vector.load %arg2[%c1_49, %62, %c0_50, %c0_51] : memref<4x3x3x128xbf16, #tpu.memory_space<vmem>>, vector<1x2x2x128xbf16>
    %64 = vector.shape_cast %63 : vector<1x2x2x128xbf16> to vector<4x128xbf16>
    %c7 = arith.constant 7 : index
    %c0_52 = arith.constant 0 : index
    %c0_53 = arith.constant 0 : index
    %65 = vector.load %arg3[%c7, %c0_52, %c0_53] : memref<9x128x256xbf16, #tpu.memory_space<vmem>>, vector<1x128x256xbf16>
    %66 = vector.shape_cast %65 : vector<1x128x256xbf16> to vector<128x256xbf16>
    %cst_54 = arith.constant dense<0.000000e+00> : vector<4x256xf32>
    %67 = tpu.matmul %64, %66, %cst_54 {dimension_numbers = #tpu.dot_dimension_numbers<[1], [0], [0], [1], [0, 0, 1, 1], [], []>} : vector<4x128xbf16>, vector<128x256xbf16>, vector<4x256xf32> -> vector<4x256xf32>
    %68 = arith.addf %60, %67 : vector<4x256xf32>
    %c1_i32_55 = arith.constant 1 : i32
    %69 = arith.addi %1, %c1_i32_55 : i32
    %c0_56 = arith.constant 0 : index
    %70 = arith.index_cast %69 : i32 to index
    %c1_57 = arith.constant 1 : index
    %c0_58 = arith.constant 0 : index
    %71 = vector.load %arg2[%c0_56, %70, %c1_57, %c0_58] : memref<4x3x3x128xbf16, #tpu.memory_space<vmem>>, vector<1x2x2x128xbf16>
    %72 = vector.shape_cast %71 : vector<1x2x2x128xbf16> to vector<4x128xbf16>
    %c8 = arith.constant 8 : index
    %c0_59 = arith.constant 0 : index
    %c0_60 = arith.constant 0 : index
    %73 = vector.load %arg3[%c8, %c0_59, %c0_60] : memref<9x128x256xbf16, #tpu.memory_space<vmem>>, vector<1x128x256xbf16>
    %74 = vector.shape_cast %73 : vector<1x128x256xbf16> to vector<128x256xbf16>
    %cst_61 = arith.constant dense<0.000000e+00> : vector<4x256xf32>
    %75 = tpu.matmul %72, %74, %cst_61 {dimension_numbers = #tpu.dot_dimension_numbers<[1], [0], [0], [1], [0, 0, 1, 1], [], []>} : vector<4x128xbf16>, vector<128x256xbf16>, vector<4x256xf32> -> vector<4x256xf32>
    %76 = arith.addf %68, %75 : vector<4x256xf32>
    %cst_62 = arith.constant 0.000000e+00 : f32
    %77 = vector.broadcast %cst_62 : f32 to vector<4x256xf32>
    %78 = arith.cmpf oge, %76, %77 : vector<4x256xf32>
    %cst_63 = arith.constant 2.000000e-01 : f32
    %79 = vector.broadcast %cst_63 : f32 to vector<4x256xf32>
    %80 = arith.mulf %79, %76 : vector<4x256xf32>
    %81 = arith.select %78, %76, %80 : vector<4x256xi1>, vector<4x256xf32>
    %82 = vector.shape_cast %81 : vector<4x256xf32> to vector<1x2x2x256xf32>
    %c0_64 = arith.constant 0 : index
    %c0_65 = arith.constant 0 : index
    %c0_66 = arith.constant 0 : index
    %c0_67 = arith.constant 0 : index
    %83 = vector.load %arg5[%c0_64, %c0_65, %c0_66, %c0_67] : memref<1x2x2x256xf32, #tpu.memory_space<vmem>>, vector<1x2x2x256xf32>
    tpu.vector_store %arg5[%c0_64, %c0_65, %c0_66, %c0_67], %82 {strides = array<i32>} : memref<1x2x2x256xf32, #tpu.memory_space<vmem>>, vector<1x2x2x256xf32>,
    %cst_68 = arith.constant dense<0.000000e+00> : vector<256xf32>
    %84 = vector.multi_reduction <add>, %81, %cst_68 [0] : vector<4x256xf32> to vector<256xf32>
    %85 = vector.shape_cast %84 : vector<256xf32> to vector<1x256xf32>
    %86 = vector.shape_cast %85 : vector<1x256xf32> to vector<1x1x256xf32>
    %c0_69 = arith.constant 0 : index
    %c0_70 = arith.constant 0 : index
    %c0_71 = arith.constant 0 : index
    %87 = vector.load %arg6[%c0_69, %c0_70, %c0_71] : memref<1x1x256xf32, #tpu.memory_space<vmem>>, vector<1x1x256xf32>
    tpu.vector_store %arg6[%c0_69, %c0_70, %c0_71], %86 {strides = array<i32>} : memref<1x1x256xf32, #tpu.memory_space<vmem>>, vector<1x1x256xf32>,
    %88 = arith.mulf %81, %81 : vector<4x256xf32>
    %cst_72 = arith.constant dense<0.000000e+00> : vector<256xf32>
    %89 = vector.multi_reduction <add>, %88, %cst_72 [0] : vector<4x256xf32> to vector<256xf32>
    %90 = vector.shape_cast %89 : vector<256xf32> to vector<1x256xf32>
    %91 = vector.shape_cast %90 : vector<1x256xf32> to vector<1x1x256xf32>
    %c0_73 = arith.constant 0 : index
    %c0_74 = arith.constant 0 : index
    %c0_75 = arith.constant 0 : index
    %92 = vector.load %arg7[%c0_73, %c0_74, %c0_75] : memref<1x1x256xf32, #tpu.memory_space<vmem>>, vector<1x1x256xf32>
    tpu.vector_store %arg7[%c0_73, %c0_74, %c0_75], %91 {strides = array<i32>} : memref<1x1x256xf32, #tpu.memory_space<vmem>>, vector<1x1x256xf32>,
    return
  }
  func.func @transform_0(%arg0: i32, %arg1: i32) -> (i32, i32, i32, i32) {
    %c0_i32 = arith.constant 0 : i32
    %c0_i32_0 = arith.constant 0 : i32
    %c0_i32_1 = arith.constant 0 : i32
    %c0_i32_2 = arith.constant 0 : i32
    return %arg0, %c0_i32, %c0_i32_0, %c0_i32_1 : i32, i32, i32, i32
  }
  func.func @transform_1(%arg0: i32, %arg1: i32) -> (i32, i32, i32) {
    %c0_i32 = arith.constant 0 : i32
    %c0_i32_0 = arith.constant 0 : i32
    %c0_i32_1 = arith.constant 0 : i32
    %c0_i32_2 = arith.constant 0 : i32
    return %c0_i32, %c0_i32_0, %c0_i32_1 : i32, i32, i32
  }
  func.func @transform_2(%arg0: i32, %arg1: i32) -> (i32, i32) {
    %c0_i32 = arith.constant 0 : i32
    %c0_i32_0 = arith.constant 0 : i32
    %c0_i32_1 = arith.constant 0 : i32
    return %c0_i32, %c0_i32_0 : i32, i32
  }
  func.func @transform_3(%arg0: i32, %arg1: i32) -> (i32, i32, i32, i32) {
    %c0_i32 = arith.constant 0 : i32
    %c0_i32_0 = arith.constant 0 : i32
    %c0_i32_1 = arith.constant 0 : i32
    return %arg0, %arg1, %c0_i32, %c0_i32_0 : i32, i32, i32, i32
  }
  func.func @transform_4(%arg0: i32, %arg1: i32) -> (i32, i32, i32) {
    %c1_i32 = arith.constant 1 : i32
    %0 = arith.muli %arg0, %c1_i32 : i32
    %1 = arith.addi %0, %arg1 : i32
    %c0_i32 = arith.constant 0 : i32
    %c0_i32_0 = arith.constant 0 : i32
    %c0_i32_1 = arith.constant 0 : i32
    return %1, %c0_i32, %c0_i32_0 : i32, i32, i32
  }
  func.func @transform_5(%arg0: i32, %arg1: i32) -> (i32, i32, i32) {
    %c1_i32 = arith.constant 1 : i32
    %0 = arith.muli %arg0, %c1_i32 : i32
    %1 = arith.addi %0, %arg1 : i32
    %c0_i32 = arith.constant 0 : i32
    %c0_i32_0 = arith.constant 0 : i32
    %c0_i32_1 = arith.constant 0 : i32
    return %1, %c0_i32, %c0_i32_0 : i32, i32, i32
  }
}

module attributes {stable_mosaic.version = 11 : i64} {
  func.func @_conv_block_kernel(%arg0: i32, %arg1: i32, %arg2: memref<4x2x2x256xbf16, #tpu.memory_space<vmem>>, %arg3: memref<9x256x512xbf16, #tpu.memory_space<vmem>>, %arg4: memref<1x512xf32, #tpu.memory_space<vmem>>, %arg5: memref<1x1x1x512xf32, #tpu.memory_space<vmem>>, %arg6: memref<1x1x512xf32, #tpu.memory_space<vmem>>, %arg7: memref<1x1x512xf32, #tpu.memory_space<vmem>>) attributes {dimension_semantics = [#tpu.dimension_semantics<parallel>, #tpu.dimension_semantics<parallel>], iteration_bounds = array<i64: 2, 1>, scalar_prefetch = 0 : i64, scratch_operands = 0 : i64, tpu.core_type = #tpu.core_type<tc>, window_params = [{transform_indices = @transform_0, window_bounds = array<i64: 4, 2, 2, 256>}, {pipeline_mode = #tpu.pipeline_mode<synchronous>, transform_indices = @transform_1, window_bounds = array<i64: 9, 256, 512>}, {pipeline_mode = #tpu.pipeline_mode<synchronous>, transform_indices = @transform_2, window_bounds = array<i64: 1, 512>}, {transform_indices = @transform_3, window_bounds = array<i64: 1, 1, 1, 512>}, {transform_indices = @transform_4, window_bounds = array<i64: 1, 1, 512>}, {transform_indices = @transform_5, window_bounds = array<i64: 1, 1, 512>}]} {
    %c1_i32 = arith.constant 1 : i32
    %0 = arith.muli %arg1, %c1_i32 : i32
    %1 = tpu.assume_multiple %0, 1 : i32
    %c0 = arith.constant 0 : index
    %c0_0 = arith.constant 0 : index
    %2 = vector.load %arg4[%c0, %c0_0] : memref<1x512xf32, #tpu.memory_space<vmem>>, vector<1x512xf32>
    %c0_i32 = arith.constant 0 : i32
    %3 = arith.addi %1, %c0_i32 : i32
    %c0_1 = arith.constant 0 : index
    %4 = arith.index_cast %3 : i32 to index
    %c0_2 = arith.constant 0 : index
    %c0_3 = arith.constant 0 : index
    %5 = vector.load %arg2[%c0_1, %4, %c0_2, %c0_3] : memref<4x2x2x256xbf16, #tpu.memory_space<vmem>>, vector<1x1x1x256xbf16>
    %6 = vector.shape_cast %5 : vector<1x1x1x256xbf16> to vector<1x256xbf16>
    %c0_4 = arith.constant 0 : index
    %c0_5 = arith.constant 0 : index
    %c0_6 = arith.constant 0 : index
    %7 = vector.load %arg3[%c0_4, %c0_5, %c0_6] : memref<9x256x512xbf16, #tpu.memory_space<vmem>>, vector<1x256x512xbf16>
    %8 = vector.shape_cast %7 : vector<1x256x512xbf16> to vector<256x512xbf16>
    %cst = arith.constant dense<0.000000e+00> : vector<1x512xf32>
    %9 = tpu.matmul %6, %8, %cst {dimension_numbers = #tpu.dot_dimension_numbers<[1], [0], [0], [1], [0, 0, 1, 1], [], []>} : vector<1x256xbf16>, vector<256x512xbf16>, vector<1x512xf32> -> vector<1x512xf32>
    %10 = arith.addf %2, %9 : vector<1x512xf32>
    %c0_i32_7 = arith.constant 0 : i32
    %11 = arith.addi %1, %c0_i32_7 : i32
    %c1 = arith.constant 1 : index
    %12 = arith.index_cast %11 : i32 to index
    %c0_8 = arith.constant 0 : index
    %c0_9 = arith.constant 0 : index
    %13 = vector.load %arg2[%c1, %12, %c0_8, %c0_9] : memref<4x2x2x256xbf16, #tpu.memory_space<vmem>>, vector<1x1x1x256xbf16>
    %14 = vector.shape_cast %13 : vector<1x1x1x256xbf16> to vector<1x256xbf16>
    %c1_10 = arith.constant 1 : index
    %c0_11 = arith.constant 0 : index
    %c0_12 = arith.constant 0 : index
    %15 = vector.load %arg3[%c1_10, %c0_11, %c0_12] : memref<9x256x512xbf16, #tpu.memory_space<vmem>>, vector<1x256x512xbf16>
    %16 = vector.shape_cast %15 : vector<1x256x512xbf16> to vector<256x512xbf16>
    %cst_13 = arith.constant dense<0.000000e+00> : vector<1x512xf32>
    %17 = tpu.matmul %14, %16, %cst_13 {dimension_numbers = #tpu.dot_dimension_numbers<[1], [0], [0], [1], [0, 0, 1, 1], [], []>} : vector<1x256xbf16>, vector<256x512xbf16>, vector<1x512xf32> -> vector<1x512xf32>
    %18 = arith.addf %10, %17 : vector<1x512xf32>
    %c0_i32_14 = arith.constant 0 : i32
    %19 = arith.addi %1, %c0_i32_14 : i32
    %c0_15 = arith.constant 0 : index
    %20 = arith.index_cast %19 : i32 to index
    %c1_16 = arith.constant 1 : index
    %c0_17 = arith.constant 0 : index
    %21 = vector.load %arg2[%c0_15, %20, %c1_16, %c0_17] : memref<4x2x2x256xbf16, #tpu.memory_space<vmem>>, vector<1x1x1x256xbf16>
    %22 = vector.shape_cast %21 : vector<1x1x1x256xbf16> to vector<1x256xbf16>
    %c2 = arith.constant 2 : index
    %c0_18 = arith.constant 0 : index
    %c0_19 = arith.constant 0 : index
    %23 = vector.load %arg3[%c2, %c0_18, %c0_19] : memref<9x256x512xbf16, #tpu.memory_space<vmem>>, vector<1x256x512xbf16>
    %24 = vector.shape_cast %23 : vector<1x256x512xbf16> to vector<256x512xbf16>
    %cst_20 = arith.constant dense<0.000000e+00> : vector<1x512xf32>
    %25 = tpu.matmul %22, %24, %cst_20 {dimension_numbers = #tpu.dot_dimension_numbers<[1], [0], [0], [1], [0, 0, 1, 1], [], []>} : vector<1x256xbf16>, vector<256x512xbf16>, vector<1x512xf32> -> vector<1x512xf32>
    %26 = arith.addf %18, %25 : vector<1x512xf32>
    %c0_i32_21 = arith.constant 0 : i32
    %27 = arith.addi %1, %c0_i32_21 : i32
    %c2_22 = arith.constant 2 : index
    %28 = arith.index_cast %27 : i32 to index
    %c0_23 = arith.constant 0 : index
    %c0_24 = arith.constant 0 : index
    %29 = vector.load %arg2[%c2_22, %28, %c0_23, %c0_24] : memref<4x2x2x256xbf16, #tpu.memory_space<vmem>>, vector<1x1x1x256xbf16>
    %30 = vector.shape_cast %29 : vector<1x1x1x256xbf16> to vector<1x256xbf16>
    %c3 = arith.constant 3 : index
    %c0_25 = arith.constant 0 : index
    %c0_26 = arith.constant 0 : index
    %31 = vector.load %arg3[%c3, %c0_25, %c0_26] : memref<9x256x512xbf16, #tpu.memory_space<vmem>>, vector<1x256x512xbf16>
    %32 = vector.shape_cast %31 : vector<1x256x512xbf16> to vector<256x512xbf16>
    %cst_27 = arith.constant dense<0.000000e+00> : vector<1x512xf32>
    %33 = tpu.matmul %30, %32, %cst_27 {dimension_numbers = #tpu.dot_dimension_numbers<[1], [0], [0], [1], [0, 0, 1, 1], [], []>} : vector<1x256xbf16>, vector<256x512xbf16>, vector<1x512xf32> -> vector<1x512xf32>
    %34 = arith.addf %26, %33 : vector<1x512xf32>
    %c0_i32_28 = arith.constant 0 : i32
    %35 = arith.addi %1, %c0_i32_28 : i32
    %c3_29 = arith.constant 3 : index
    %36 = arith.index_cast %35 : i32 to index
    %c0_30 = arith.constant 0 : index
    %c0_31 = arith.constant 0 : index
    %37 = vector.load %arg2[%c3_29, %36, %c0_30, %c0_31] : memref<4x2x2x256xbf16, #tpu.memory_space<vmem>>, vector<1x1x1x256xbf16>
    %38 = vector.shape_cast %37 : vector<1x1x1x256xbf16> to vector<1x256xbf16>
    %c4 = arith.constant 4 : index
    %c0_32 = arith.constant 0 : index
    %c0_33 = arith.constant 0 : index
    %39 = vector.load %arg3[%c4, %c0_32, %c0_33] : memref<9x256x512xbf16, #tpu.memory_space<vmem>>, vector<1x256x512xbf16>
    %40 = vector.shape_cast %39 : vector<1x256x512xbf16> to vector<256x512xbf16>
    %cst_34 = arith.constant dense<0.000000e+00> : vector<1x512xf32>
    %41 = tpu.matmul %38, %40, %cst_34 {dimension_numbers = #tpu.dot_dimension_numbers<[1], [0], [0], [1], [0, 0, 1, 1], [], []>} : vector<1x256xbf16>, vector<256x512xbf16>, vector<1x512xf32> -> vector<1x512xf32>
    %42 = arith.addf %34, %41 : vector<1x512xf32>
    %c0_i32_35 = arith.constant 0 : i32
    %43 = arith.addi %1, %c0_i32_35 : i32
    %c2_36 = arith.constant 2 : index
    %44 = arith.index_cast %43 : i32 to index
    %c1_37 = arith.constant 1 : index
    %c0_38 = arith.constant 0 : index
    %45 = vector.load %arg2[%c2_36, %44, %c1_37, %c0_38] : memref<4x2x2x256xbf16, #tpu.memory_space<vmem>>, vector<1x1x1x256xbf16>
    %46 = vector.shape_cast %45 : vector<1x1x1x256xbf16> to vector<1x256xbf16>
    %c5 = arith.constant 5 : index
    %c0_39 = arith.constant 0 : index
    %c0_40 = arith.constant 0 : index
    %47 = vector.load %arg3[%c5, %c0_39, %c0_40] : memref<9x256x512xbf16, #tpu.memory_space<vmem>>, vector<1x256x512xbf16>
    %48 = vector.shape_cast %47 : vector<1x256x512xbf16> to vector<256x512xbf16>
    %cst_41 = arith.constant dense<0.000000e+00> : vector<1x512xf32>
    %49 = tpu.matmul %46, %48, %cst_41 {dimension_numbers = #tpu.dot_dimension_numbers<[1], [0], [0], [1], [0, 0, 1, 1], [], []>} : vector<1x256xbf16>, vector<256x512xbf16>, vector<1x512xf32> -> vector<1x512xf32>
    %50 = arith.addf %42, %49 : vector<1x512xf32>
    %c1_i32_42 = arith.constant 1 : i32
    %51 = arith.addi %1, %c1_i32_42 : i32
    %c0_43 = arith.constant 0 : index
    %52 = arith.index_cast %51 : i32 to index
    %c0_44 = arith.constant 0 : index
    %c0_45 = arith.constant 0 : index
    %53 = vector.load %arg2[%c0_43, %52, %c0_44, %c0_45] : memref<4x2x2x256xbf16, #tpu.memory_space<vmem>>, vector<1x1x1x256xbf16>
    %54 = vector.shape_cast %53 : vector<1x1x1x256xbf16> to vector<1x256xbf16>
    %c6 = arith.constant 6 : index
    %c0_46 = arith.constant 0 : index
    %c0_47 = arith.constant 0 : index
    %55 = vector.load %arg3[%c6, %c0_46, %c0_47] : memref<9x256x512xbf16, #tpu.memory_space<vmem>>, vector<1x256x512xbf16>
    %56 = vector.shape_cast %55 : vector<1x256x512xbf16> to vector<256x512xbf16>
    %cst_48 = arith.constant dense<0.000000e+00> : vector<1x512xf32>
    %57 = tpu.matmul %54, %56, %cst_48 {dimension_numbers = #tpu.dot_dimension_numbers<[1], [0], [0], [1], [0, 0, 1, 1], [], []>} : vector<1x256xbf16>, vector<256x512xbf16>, vector<1x512xf32> -> vector<1x512xf32>
    %58 = arith.addf %50, %57 : vector<1x512xf32>
    %c1_i32_49 = arith.constant 1 : i32
    %59 = arith.addi %1, %c1_i32_49 : i32
    %c1_50 = arith.constant 1 : index
    %60 = arith.index_cast %59 : i32 to index
    %c0_51 = arith.constant 0 : index
    %c0_52 = arith.constant 0 : index
    %61 = vector.load %arg2[%c1_50, %60, %c0_51, %c0_52] : memref<4x2x2x256xbf16, #tpu.memory_space<vmem>>, vector<1x1x1x256xbf16>
    %62 = vector.shape_cast %61 : vector<1x1x1x256xbf16> to vector<1x256xbf16>
    %c7 = arith.constant 7 : index
    %c0_53 = arith.constant 0 : index
    %c0_54 = arith.constant 0 : index
    %63 = vector.load %arg3[%c7, %c0_53, %c0_54] : memref<9x256x512xbf16, #tpu.memory_space<vmem>>, vector<1x256x512xbf16>
    %64 = vector.shape_cast %63 : vector<1x256x512xbf16> to vector<256x512xbf16>
    %cst_55 = arith.constant dense<0.000000e+00> : vector<1x512xf32>
    %65 = tpu.matmul %62, %64, %cst_55 {dimension_numbers = #tpu.dot_dimension_numbers<[1], [0], [0], [1], [0, 0, 1, 1], [], []>} : vector<1x256xbf16>, vector<256x512xbf16>, vector<1x512xf32> -> vector<1x512xf32>
    %66 = arith.addf %58, %65 : vector<1x512xf32>
    %c1_i32_56 = arith.constant 1 : i32
    %67 = arith.addi %1, %c1_i32_56 : i32
    %c0_57 = arith.constant 0 : index
    %68 = arith.index_cast %67 : i32 to index
    %c1_58 = arith.constant 1 : index
    %c0_59 = arith.constant 0 : index
    %69 = vector.load %arg2[%c0_57, %68, %c1_58, %c0_59] : memref<4x2x2x256xbf16, #tpu.memory_space<vmem>>, vector<1x1x1x256xbf16>
    %70 = vector.shape_cast %69 : vector<1x1x1x256xbf16> to vector<1x256xbf16>
    %c8 = arith.constant 8 : index
    %c0_60 = arith.constant 0 : index
    %c0_61 = arith.constant 0 : index
    %71 = vector.load %arg3[%c8, %c0_60, %c0_61] : memref<9x256x512xbf16, #tpu.memory_space<vmem>>, vector<1x256x512xbf16>
    %72 = vector.shape_cast %71 : vector<1x256x512xbf16> to vector<256x512xbf16>
    %cst_62 = arith.constant dense<0.000000e+00> : vector<1x512xf32>
    %73 = tpu.matmul %70, %72, %cst_62 {dimension_numbers = #tpu.dot_dimension_numbers<[1], [0], [0], [1], [0, 0, 1, 1], [], []>} : vector<1x256xbf16>, vector<256x512xbf16>, vector<1x512xf32> -> vector<1x512xf32>
    %74 = arith.addf %66, %73 : vector<1x512xf32>
    %cst_63 = arith.constant 0.000000e+00 : f32
    %75 = vector.broadcast %cst_63 : f32 to vector<1x512xf32>
    %76 = arith.cmpf oge, %74, %75 : vector<1x512xf32>
    %cst_64 = arith.constant 2.000000e-01 : f32
    %77 = vector.broadcast %cst_64 : f32 to vector<1x512xf32>
    %78 = arith.mulf %77, %74 : vector<1x512xf32>
    %79 = arith.select %76, %74, %78 : vector<1x512xi1>, vector<1x512xf32>
    %80 = vector.shape_cast %79 : vector<1x512xf32> to vector<1x1x1x512xf32>
    %c0_65 = arith.constant 0 : index
    %c0_66 = arith.constant 0 : index
    %c0_67 = arith.constant 0 : index
    %c0_68 = arith.constant 0 : index
    %81 = vector.load %arg5[%c0_65, %c0_66, %c0_67, %c0_68] : memref<1x1x1x512xf32, #tpu.memory_space<vmem>>, vector<1x1x1x512xf32>
    tpu.vector_store %arg5[%c0_65, %c0_66, %c0_67, %c0_68], %80 {strides = array<i32>} : memref<1x1x1x512xf32, #tpu.memory_space<vmem>>, vector<1x1x1x512xf32>,
    %cst_69 = arith.constant dense<0.000000e+00> : vector<512xf32>
    %82 = vector.multi_reduction <add>, %79, %cst_69 [0] : vector<1x512xf32> to vector<512xf32>
    %83 = vector.shape_cast %82 : vector<512xf32> to vector<1x512xf32>
    %84 = vector.shape_cast %83 : vector<1x512xf32> to vector<1x1x512xf32>
    %c0_70 = arith.constant 0 : index
    %c0_71 = arith.constant 0 : index
    %c0_72 = arith.constant 0 : index
    %85 = vector.load %arg6[%c0_70, %c0_71, %c0_72] : memref<1x1x512xf32, #tpu.memory_space<vmem>>, vector<1x1x512xf32>
    tpu.vector_store %arg6[%c0_70, %c0_71, %c0_72], %84 {strides = array<i32>} : memref<1x1x512xf32, #tpu.memory_space<vmem>>, vector<1x1x512xf32>,
    %86 = arith.mulf %79, %79 : vector<1x512xf32>
    %cst_73 = arith.constant dense<0.000000e+00> : vector<512xf32>
    %87 = vector.multi_reduction <add>, %86, %cst_73 [0] : vector<1x512xf32> to vector<512xf32>
    %88 = vector.shape_cast %87 : vector<512xf32> to vector<1x512xf32>
    %89 = vector.shape_cast %88 : vector<1x512xf32> to vector<1x1x512xf32>
    %c0_74 = arith.constant 0 : index
    %c0_75 = arith.constant 0 : index
    %c0_76 = arith.constant 0 : index
    %90 = vector.load %arg7[%c0_74, %c0_75, %c0_76] : memref<1x1x512xf32, #tpu.memory_space<vmem>>, vector<1x1x512xf32>
    tpu.vector_store %arg7[%c0_74, %c0_75, %c0_76], %89 {strides = array<i32>} : memref<1x1x512xf32, #tpu.memory_space<vmem>>, vector<1x1x512xf32>,
    return
  }
  func.func @transform_0(%arg0: i32, %arg1: i32) -> (i32, i32, i32, i32) {
    %c0_i32 = arith.constant 0 : i32
    %c0_i32_0 = arith.constant 0 : i32
    %c0_i32_1 = arith.constant 0 : i32
    %c0_i32_2 = arith.constant 0 : i32
    return %arg0, %c0_i32, %c0_i32_0, %c0_i32_1 : i32, i32, i32, i32
  }
  func.func @transform_1(%arg0: i32, %arg1: i32) -> (i32, i32, i32) {
    %c0_i32 = arith.constant 0 : i32
    %c0_i32_0 = arith.constant 0 : i32
    %c0_i32_1 = arith.constant 0 : i32
    %c0_i32_2 = arith.constant 0 : i32
    return %c0_i32, %c0_i32_0, %c0_i32_1 : i32, i32, i32
  }
  func.func @transform_2(%arg0: i32, %arg1: i32) -> (i32, i32) {
    %c0_i32 = arith.constant 0 : i32
    %c0_i32_0 = arith.constant 0 : i32
    %c0_i32_1 = arith.constant 0 : i32
    return %c0_i32, %c0_i32_0 : i32, i32
  }
  func.func @transform_3(%arg0: i32, %arg1: i32) -> (i32, i32, i32, i32) {
    %c0_i32 = arith.constant 0 : i32
    %c0_i32_0 = arith.constant 0 : i32
    %c0_i32_1 = arith.constant 0 : i32
    return %arg0, %arg1, %c0_i32, %c0_i32_0 : i32, i32, i32, i32
  }
  func.func @transform_4(%arg0: i32, %arg1: i32) -> (i32, i32, i32) {
    %c1_i32 = arith.constant 1 : i32
    %0 = arith.muli %arg0, %c1_i32 : i32
    %1 = arith.addi %0, %arg1 : i32
    %c0_i32 = arith.constant 0 : i32
    %c0_i32_0 = arith.constant 0 : i32
    %c0_i32_1 = arith.constant 0 : i32
    return %1, %c0_i32, %c0_i32_0 : i32, i32, i32
  }
  func.func @transform_5(%arg0: i32, %arg1: i32) -> (i32, i32, i32) {
    %c1_i32 = arith.constant 1 : i32
    %0 = arith.muli %arg0, %c1_i32 : i32
    %1 = arith.addi %0, %arg1 : i32
    %c0_i32 = arith.constant 0 : i32
    %c0_i32_0 = arith.constant 0 : i32
    %c0_i32_1 = arith.constant 0 : i32
    return %1, %c0_i32, %c0_i32_0 : i32, i32, i32
  }
}

module attributes {stable_mosaic.version = 11 : i64} {
  func.func @_conv_block_kernel(%arg0: i32, %arg1: i32, %arg2: memref<1x3x3x512xbf16, #tpu.memory_space<vmem>>, %arg3: memref<9x512x128xbf16, #tpu.memory_space<vmem>>, %arg4: memref<1x128xf32, #tpu.memory_space<vmem>>, %arg5: memref<1x1x1x128xf32, #tpu.memory_space<vmem>>) attributes {dimension_semantics = [#tpu.dimension_semantics<parallel>, #tpu.dimension_semantics<parallel>], iteration_bounds = array<i64: 2, 1>, scalar_prefetch = 0 : i64, scratch_operands = 0 : i64, tpu.core_type = #tpu.core_type<tc>, window_params = [{transform_indices = @transform_0, window_bounds = array<i64: 1, 3, 3, 512>}, {pipeline_mode = #tpu.pipeline_mode<synchronous>, transform_indices = @transform_1, window_bounds = array<i64: 9, 512, 128>}, {pipeline_mode = #tpu.pipeline_mode<synchronous>, transform_indices = @transform_2, window_bounds = array<i64: 1, 128>}, {transform_indices = @transform_3, window_bounds = array<i64: 1, 1, 1, 128>}]} {
    %c1_i32 = arith.constant 1 : i32
    %0 = arith.muli %arg1, %c1_i32 : i32
    %1 = tpu.assume_multiple %0, 1 : i32
    %c0 = arith.constant 0 : index
    %c0_0 = arith.constant 0 : index
    %2 = vector.load %arg4[%c0, %c0_0] : memref<1x128xf32, #tpu.memory_space<vmem>>, vector<1x128xf32>
    %c0_i32 = arith.constant 0 : i32
    %3 = arith.addi %1, %c0_i32 : i32
    %c0_1 = arith.constant 0 : index
    %4 = arith.index_cast %3 : i32 to index
    %c0_2 = arith.constant 0 : index
    %c0_3 = arith.constant 0 : index
    %5 = vector.load %arg2[%c0_1, %4, %c0_2, %c0_3] : memref<1x3x3x512xbf16, #tpu.memory_space<vmem>>, vector<1x1x1x512xbf16>
    %6 = vector.shape_cast %5 : vector<1x1x1x512xbf16> to vector<1x512xbf16>
    %c0_4 = arith.constant 0 : index
    %c0_5 = arith.constant 0 : index
    %c0_6 = arith.constant 0 : index
    %7 = vector.load %arg3[%c0_4, %c0_5, %c0_6] : memref<9x512x128xbf16, #tpu.memory_space<vmem>>, vector<1x512x128xbf16>
    %8 = vector.shape_cast %7 : vector<1x512x128xbf16> to vector<512x128xbf16>
    %cst = arith.constant dense<0.000000e+00> : vector<1x128xf32>
    %9 = tpu.matmul %6, %8, %cst {dimension_numbers = #tpu.dot_dimension_numbers<[1], [0], [0], [1], [0, 0, 1, 1], [], []>} : vector<1x512xbf16>, vector<512x128xbf16>, vector<1x128xf32> -> vector<1x128xf32>
    %10 = arith.addf %2, %9 : vector<1x128xf32>
    %c0_i32_7 = arith.constant 0 : i32
    %11 = arith.addi %1, %c0_i32_7 : i32
    %c0_8 = arith.constant 0 : index
    %12 = arith.index_cast %11 : i32 to index
    %c1 = arith.constant 1 : index
    %c0_9 = arith.constant 0 : index
    %13 = vector.load %arg2[%c0_8, %12, %c1, %c0_9] : memref<1x3x3x512xbf16, #tpu.memory_space<vmem>>, vector<1x1x1x512xbf16>
    %14 = vector.shape_cast %13 : vector<1x1x1x512xbf16> to vector<1x512xbf16>
    %c1_10 = arith.constant 1 : index
    %c0_11 = arith.constant 0 : index
    %c0_12 = arith.constant 0 : index
    %15 = vector.load %arg3[%c1_10, %c0_11, %c0_12] : memref<9x512x128xbf16, #tpu.memory_space<vmem>>, vector<1x512x128xbf16>
    %16 = vector.shape_cast %15 : vector<1x512x128xbf16> to vector<512x128xbf16>
    %cst_13 = arith.constant dense<0.000000e+00> : vector<1x128xf32>
    %17 = tpu.matmul %14, %16, %cst_13 {dimension_numbers = #tpu.dot_dimension_numbers<[1], [0], [0], [1], [0, 0, 1, 1], [], []>} : vector<1x512xbf16>, vector<512x128xbf16>, vector<1x128xf32> -> vector<1x128xf32>
    %18 = arith.addf %10, %17 : vector<1x128xf32>
    %c0_i32_14 = arith.constant 0 : i32
    %19 = arith.addi %1, %c0_i32_14 : i32
    %c0_15 = arith.constant 0 : index
    %20 = arith.index_cast %19 : i32 to index
    %c2 = arith.constant 2 : index
    %c0_16 = arith.constant 0 : index
    %21 = vector.load %arg2[%c0_15, %20, %c2, %c0_16] : memref<1x3x3x512xbf16, #tpu.memory_space<vmem>>, vector<1x1x1x512xbf16>
    %22 = vector.shape_cast %21 : vector<1x1x1x512xbf16> to vector<1x512xbf16>
    %c2_17 = arith.constant 2 : index
    %c0_18 = arith.constant 0 : index
    %c0_19 = arith.constant 0 : index
    %23 = vector.load %arg3[%c2_17, %c0_18, %c0_19] : memref<9x512x128xbf16, #tpu.memory_space<vmem>>, vector<1x512x128xbf16>
    %24 = vector.shape_cast %23 : vector<1x512x128xbf16> to vector<512x128xbf16>
    %cst_20 = arith.constant dense<0.000000e+00> : vector<1x128xf32>
    %25 = tpu.matmul %22, %24, %cst_20 {dimension_numbers = #tpu.dot_dimension_numbers<[1], [0], [0], [1], [0, 0, 1, 1], [], []>} : vector<1x512xbf16>, vector<512x128xbf16>, vector<1x128xf32> -> vector<1x128xf32>
    %26 = arith.addf %18, %25 : vector<1x128xf32>
    %c1_i32_21 = arith.constant 1 : i32
    %27 = arith.addi %1, %c1_i32_21 : i32
    %c0_22 = arith.constant 0 : index
    %28 = arith.index_cast %27 : i32 to index
    %c0_23 = arith.constant 0 : index
    %c0_24 = arith.constant 0 : index
    %29 = vector.load %arg2[%c0_22, %28, %c0_23, %c0_24] : memref<1x3x3x512xbf16, #tpu.memory_space<vmem>>, vector<1x1x1x512xbf16>
    %30 = vector.shape_cast %29 : vector<1x1x1x512xbf16> to vector<1x512xbf16>
    %c3 = arith.constant 3 : index
    %c0_25 = arith.constant 0 : index
    %c0_26 = arith.constant 0 : index
    %31 = vector.load %arg3[%c3, %c0_25, %c0_26] : memref<9x512x128xbf16, #tpu.memory_space<vmem>>, vector<1x512x128xbf16>
    %32 = vector.shape_cast %31 : vector<1x512x128xbf16> to vector<512x128xbf16>
    %cst_27 = arith.constant dense<0.000000e+00> : vector<1x128xf32>
    %33 = tpu.matmul %30, %32, %cst_27 {dimension_numbers = #tpu.dot_dimension_numbers<[1], [0], [0], [1], [0, 0, 1, 1], [], []>} : vector<1x512xbf16>, vector<512x128xbf16>, vector<1x128xf32> -> vector<1x128xf32>
    %34 = arith.addf %26, %33 : vector<1x128xf32>
    %c1_i32_28 = arith.constant 1 : i32
    %35 = arith.addi %1, %c1_i32_28 : i32
    %c0_29 = arith.constant 0 : index
    %36 = arith.index_cast %35 : i32 to index
    %c1_30 = arith.constant 1 : index
    %c0_31 = arith.constant 0 : index
    %37 = vector.load %arg2[%c0_29, %36, %c1_30, %c0_31] : memref<1x3x3x512xbf16, #tpu.memory_space<vmem>>, vector<1x1x1x512xbf16>
    %38 = vector.shape_cast %37 : vector<1x1x1x512xbf16> to vector<1x512xbf16>
    %c4 = arith.constant 4 : index
    %c0_32 = arith.constant 0 : index
    %c0_33 = arith.constant 0 : index
    %39 = vector.load %arg3[%c4, %c0_32, %c0_33] : memref<9x512x128xbf16, #tpu.memory_space<vmem>>, vector<1x512x128xbf16>
    %40 = vector.shape_cast %39 : vector<1x512x128xbf16> to vector<512x128xbf16>
    %cst_34 = arith.constant dense<0.000000e+00> : vector<1x128xf32>
    %41 = tpu.matmul %38, %40, %cst_34 {dimension_numbers = #tpu.dot_dimension_numbers<[1], [0], [0], [1], [0, 0, 1, 1], [], []>} : vector<1x512xbf16>, vector<512x128xbf16>, vector<1x128xf32> -> vector<1x128xf32>
    %42 = arith.addf %34, %41 : vector<1x128xf32>
    %c1_i32_35 = arith.constant 1 : i32
    %43 = arith.addi %1, %c1_i32_35 : i32
    %c0_36 = arith.constant 0 : index
    %44 = arith.index_cast %43 : i32 to index
    %c2_37 = arith.constant 2 : index
    %c0_38 = arith.constant 0 : index
    %45 = vector.load %arg2[%c0_36, %44, %c2_37, %c0_38] : memref<1x3x3x512xbf16, #tpu.memory_space<vmem>>, vector<1x1x1x512xbf16>
    %46 = vector.shape_cast %45 : vector<1x1x1x512xbf16> to vector<1x512xbf16>
    %c5 = arith.constant 5 : index
    %c0_39 = arith.constant 0 : index
    %c0_40 = arith.constant 0 : index
    %47 = vector.load %arg3[%c5, %c0_39, %c0_40] : memref<9x512x128xbf16, #tpu.memory_space<vmem>>, vector<1x512x128xbf16>
    %48 = vector.shape_cast %47 : vector<1x512x128xbf16> to vector<512x128xbf16>
    %cst_41 = arith.constant dense<0.000000e+00> : vector<1x128xf32>
    %49 = tpu.matmul %46, %48, %cst_41 {dimension_numbers = #tpu.dot_dimension_numbers<[1], [0], [0], [1], [0, 0, 1, 1], [], []>} : vector<1x512xbf16>, vector<512x128xbf16>, vector<1x128xf32> -> vector<1x128xf32>
    %50 = arith.addf %42, %49 : vector<1x128xf32>
    %c2_i32 = arith.constant 2 : i32
    %51 = arith.addi %1, %c2_i32 : i32
    %c0_42 = arith.constant 0 : index
    %52 = arith.index_cast %51 : i32 to index
    %c0_43 = arith.constant 0 : index
    %c0_44 = arith.constant 0 : index
    %53 = vector.load %arg2[%c0_42, %52, %c0_43, %c0_44] : memref<1x3x3x512xbf16, #tpu.memory_space<vmem>>, vector<1x1x1x512xbf16>
    %54 = vector.shape_cast %53 : vector<1x1x1x512xbf16> to vector<1x512xbf16>
    %c6 = arith.constant 6 : index
    %c0_45 = arith.constant 0 : index
    %c0_46 = arith.constant 0 : index
    %55 = vector.load %arg3[%c6, %c0_45, %c0_46] : memref<9x512x128xbf16, #tpu.memory_space<vmem>>, vector<1x512x128xbf16>
    %56 = vector.shape_cast %55 : vector<1x512x128xbf16> to vector<512x128xbf16>
    %cst_47 = arith.constant dense<0.000000e+00> : vector<1x128xf32>
    %57 = tpu.matmul %54, %56, %cst_47 {dimension_numbers = #tpu.dot_dimension_numbers<[1], [0], [0], [1], [0, 0, 1, 1], [], []>} : vector<1x512xbf16>, vector<512x128xbf16>, vector<1x128xf32> -> vector<1x128xf32>
    %58 = arith.addf %50, %57 : vector<1x128xf32>
    %c2_i32_48 = arith.constant 2 : i32
    %59 = arith.addi %1, %c2_i32_48 : i32
    %c0_49 = arith.constant 0 : index
    %60 = arith.index_cast %59 : i32 to index
    %c1_50 = arith.constant 1 : index
    %c0_51 = arith.constant 0 : index
    %61 = vector.load %arg2[%c0_49, %60, %c1_50, %c0_51] : memref<1x3x3x512xbf16, #tpu.memory_space<vmem>>, vector<1x1x1x512xbf16>
    %62 = vector.shape_cast %61 : vector<1x1x1x512xbf16> to vector<1x512xbf16>
    %c7 = arith.constant 7 : index
    %c0_52 = arith.constant 0 : index
    %c0_53 = arith.constant 0 : index
    %63 = vector.load %arg3[%c7, %c0_52, %c0_53] : memref<9x512x128xbf16, #tpu.memory_space<vmem>>, vector<1x512x128xbf16>
    %64 = vector.shape_cast %63 : vector<1x512x128xbf16> to vector<512x128xbf16>
    %cst_54 = arith.constant dense<0.000000e+00> : vector<1x128xf32>
    %65 = tpu.matmul %62, %64, %cst_54 {dimension_numbers = #tpu.dot_dimension_numbers<[1], [0], [0], [1], [0, 0, 1, 1], [], []>} : vector<1x512xbf16>, vector<512x128xbf16>, vector<1x128xf32> -> vector<1x128xf32>
    %66 = arith.addf %58, %65 : vector<1x128xf32>
    %c2_i32_55 = arith.constant 2 : i32
    %67 = arith.addi %1, %c2_i32_55 : i32
    %c0_56 = arith.constant 0 : index
    %68 = arith.index_cast %67 : i32 to index
    %c2_57 = arith.constant 2 : index
    %c0_58 = arith.constant 0 : index
    %69 = vector.load %arg2[%c0_56, %68, %c2_57, %c0_58] : memref<1x3x3x512xbf16, #tpu.memory_space<vmem>>, vector<1x1x1x512xbf16>
    %70 = vector.shape_cast %69 : vector<1x1x1x512xbf16> to vector<1x512xbf16>
    %c8 = arith.constant 8 : index
    %c0_59 = arith.constant 0 : index
    %c0_60 = arith.constant 0 : index
    %71 = vector.load %arg3[%c8, %c0_59, %c0_60] : memref<9x512x128xbf16, #tpu.memory_space<vmem>>, vector<1x512x128xbf16>
    %72 = vector.shape_cast %71 : vector<1x512x128xbf16> to vector<512x128xbf16>
    %cst_61 = arith.constant dense<0.000000e+00> : vector<1x128xf32>
    %73 = tpu.matmul %70, %72, %cst_61 {dimension_numbers = #tpu.dot_dimension_numbers<[1], [0], [0], [1], [0, 0, 1, 1], [], []>} : vector<1x512xbf16>, vector<512x128xbf16>, vector<1x128xf32> -> vector<1x128xf32>
    %74 = arith.addf %66, %73 : vector<1x128xf32>
    %75 = vector.shape_cast %74 : vector<1x128xf32> to vector<1x1x1x128xf32>
    %c0_62 = arith.constant 0 : index
    %c0_63 = arith.constant 0 : index
    %c0_64 = arith.constant 0 : index
    %c0_65 = arith.constant 0 : index
    %76 = vector.load %arg5[%c0_62, %c0_63, %c0_64, %c0_65] : memref<1x1x1x128xf32, #tpu.memory_space<vmem>>, vector<1x1x1x128xf32>
    tpu.vector_store %arg5[%c0_62, %c0_63, %c0_64, %c0_65], %75 {strides = array<i32>} : memref<1x1x1x128xf32, #tpu.memory_space<vmem>>, vector<1x1x1x128xf32>,
    return
  }
  func.func @transform_0(%arg0: i32, %arg1: i32) -> (i32, i32, i32, i32) {
    %c0_i32 = arith.constant 0 : i32
    %c0_i32_0 = arith.constant 0 : i32
    %c0_i32_1 = arith.constant 0 : i32
    %c0_i32_2 = arith.constant 0 : i32
    return %arg0, %c0_i32, %c0_i32_0, %c0_i32_1 : i32, i32, i32, i32
  }
  func.func @transform_1(%arg0: i32, %arg1: i32) -> (i32, i32, i32) {
    %c0_i32 = arith.constant 0 : i32
    %c0_i32_0 = arith.constant 0 : i32
    %c0_i32_1 = arith.constant 0 : i32
    %c0_i32_2 = arith.constant 0 : i32
    return %c0_i32, %c0_i32_0, %c0_i32_1 : i32, i32, i32
  }
  func.func @transform_2(%arg0: i32, %arg1: i32) -> (i32, i32) {
    %c0_i32 = arith.constant 0 : i32
    %c0_i32_0 = arith.constant 0 : i32
    %c0_i32_1 = arith.constant 0 : i32
    return %c0_i32, %c0_i32_0 : i32, i32
  }
  func.func @transform_3(%arg0: i32, %arg1: i32) -> (i32, i32, i32, i32) {
    %c0_i32 = arith.constant 0 : i32
    %c0_i32_0 = arith.constant 0 : i32
    %c0_i32_1 = arith.constant 0 : i32
    return %arg0, %arg1, %c0_i32, %c0_i32_0 : i32, i32, i32, i32
  }
}

</mosaic_0001>

<bundles_post_ra>
// kernel: discriminator_forward.5
= control target key start
LH: loop header
LB: loop body
LE: loop exit
PB: predicated region body
PF: predicated region fallthrough
CT: control target
= control target key end

     0   :  { %11 = vsyncpa [#allocation3], 0  ;;  %s2035_s18 = smov 0   ;;  %s2037_s19 = smov 0   ;;  %s2428_s0 = inlined_call_operand.vmem [shape: bf16[8,9,9,4], index: 0, kind: input, shape index: {}]   ;;  %s2429_s1 = inlined_call_operand.vmem [shape: bf16[9,4,64], index: 1, kind: input, shape index: {}]   ;;  %s2430_s2 = inlined_call_operand.hbm [shape: f32[1,64], index: 2, kind: input, shape index: {}]   ;;  %s2431_s3 = inlined_call_operand.vmem [shape: f32[2,8,8,64], index: 3, kind: output, shape index: {0}]   ;;  %s2432_s4 = inlined_call_operand.vmem [shape: f32[2,1,64], index: 4, kind: output, shape index: {1}]   ;;  %s2433_s5 = inlined_call_operand.vmem [shape: f32[2,1,64], index: 5, kind: output, shape index: {2}]  }
   0x1   :  { %s2039_s20 = smov 0  }
   0x2 LB: > { %s1656_s21 = sadd.s32 4294967295, %s2002_s20   ;;  %s29_s22 = sadd.s32 1, %s1998_s19  ;;  %s2002_s20 = sphi %s2039_s20, %s17_s20   ;;  %s1998_s19 = sphi %s2037_s19, %s2437_s19   ;;  %s1994_s18 = sphi %s2035_s18, %s2436_s18  }
   0x3   : > { %p31_p0 = scmp.ge.s32.totalorder %s29_s22, 2  ;;  %p1658_p1 = scmp.ge.s32.totalorder %s2002_s20, 1 }
   0x4   : > { %p186_p2 = scmp.lt.s32.totalorder %s2002_s20, 3  ;;  %p1918_p4 = scmp.eq.s32.totalorder %s1656_s21, 0 }
   0x5   : > { %s2439_s22 = smov (%p31_p0, %s29_s22), 0  ;;  %s201_s25 = sshll.u32 %s2430_s2, 4  ;;  %s202_s25 = int_to_ptr.hbm [resolvable:$true] %s201_s25 }
   0x6   : > { %p187_p3 = pnand %p1658_p1, %p186_p2  ;;  %s2004_s26 = smov [#allocation2]  }
   0x7   : > { %s203_s27 = sshll.u32 %s2004_s26, 4  ;;  %s204_s27 = int_to_ptr.vmem [resolvable:$true] %s203_s27 }
   0x8   : > { %p1914_p5 = pneg %p187_p3  ;;  %226 = sbr.rel (%p187_p3) target bundleno = 320 (0x140), region = 32 }
   0xa   : > { %p1915_p6 = pnand %p1918_p4, %p1914_p5 }
   0xc   : > { %1917 = dma.hbm_to_vmem [thread:$0]  (!%p1915_p6), %s202_s25, 16, %s204_s27, [#allocation3]  }
   0xd   : > { %1989 = dma.done.wait (%p1918_p4), [#allocation3], 16  }
   0xe   : > { %1991 = vsyncadd (%p1918_p4), [#allocation3], 4294967280  ;;  %s1663_s28 = sshll.u32 %s1994_s18, 2  ;;  %vm346_vm0 = vcmask 1041408   ;;  %vm333_vm1 = vcmask 31744   ;;  %p276_p8 = scmp.lt.s32.totalorder %s1994_s18, 1 }
   0xf   : > { %p269_p7 = scmp.lt.s32.totalorder %s1663_s28, 7  ;;  %v312_v0 = vld [vmem:[%s2429_s1] sm:$0x3]  ;;  %v1716_v1 = vld [vmem:[%s2429_s1 + $0x4] sm:$0x3]  ;;  %vm1422_vm6 = vcmask 523264  }
  0x10   : > { %v1729_v2 = vld [vmem:[%s2429_s1 + $0x6] sm:$0x3]  ;;  %v348_v3 = vsel %vm346_vm0, %v312_v0, 0  ;;  %v630_v6 = vsel %vm346_vm0, %v1716_v1, 0  ;;  %v1695_v18 = vld [vmem:[%s2429_s1 + $0x2] sm:$0x3] }
  0x11   : > { %s2441_s28 = smov (!%p269_p7, %s1663_s28), 7  ;;  %1906 = vmatpush.bf16.msra.mxu1 %v348_v3  ;;  %1907 = vmatpush.bf16.msra.mxu2 %v348_v3  ;;  %v715_v17 = vsel %vm346_vm0, %v1729_v2, 0  ;;  %v1758_v19 = vld [vmem:[%s2429_s1 + $0x8] sm:$0x3]  ;;  %v433_v20 = vsel %vm346_vm0, %v1695_v18, 0  ;;  %s2443_s18 = smov (!%p276_p8, %s1994_s18), 1 }
  0x12   : > { %s1909_s29 = smul.u32 72, %s2441_s28  ;;  %1908 = vmatpush.bf16.msra.mxu3 %v348_v3  ;;  %357 = vmatpush.bf16.msra.mxu0 %v348_v3  ;;  %v800_v21 = vsel %vm346_vm0, %v1758_v19, 0  ;;  %vm488_vm2 = vsmask.f32 3328  ;;  %vm489_vm3 = vsmask.f32 7440  ;;  %s288_s11 = scalar_lea.vmem %s2432_s4, %s2443_s18 }
  0x13   : > { %v1808_v35 = vld [vmem:[%s2429_s1 + $0xc] sm:$0x3]  ;;  %v1837_v42 = vld [vmem:[%s2429_s1 + $0xe] sm:$0x3]  ;;  %v1795_v43 = vld [vmem:[%s2429_s1 + $0xa] sm:$0x3]  ;;  %s293_s14 = scalar_lea.vmem %s2433_s5, %s2443_s18 }
  0x14   : > { %s2066_s9 = scalar_lea.vmem %s2428_s0, %s1909_s29  ;;  %v1080_v39 = vsel %vm346_vm0, %v1808_v35, 0  ;;  %vm2115_vm4 = vmor %vm488_vm2, %vm489_vm3  ;;  %v1165_v49 = vsel %vm346_vm0, %v1837_v42, 0  ;;  %v994_v50 = vsel %vm346_vm0, %v1795_v43, 0  ;;  %v1874_v51 = vld [vmem:[%s2429_s1 + $0x10] sm:$0x3]  ;;  %s1881_s30 = sshll.u32 %s2443_s18, 6 }
  0x15   : > { %v1673_v4 = vld [vmem:[%s2066_s9 + $0x10] sm:$0xf]  ;;  %v1883_v5 = vld [vmem:[%s2066_s9 + $0x14] sm:$0xf0]  ;;  %v1677_v8 = vld [vmem:[%s2066_s9 + $0x20] sm:$0xf]  ;;  %639 = vmatpush.bf16.msrb.mxu2 %v630_v6  ;;  %442 = vmatpush.bf16.msrb.mxu1 %v433_v20  ;;  %s2348_s8 = scalar_lea.vmem %s2431_s3, %s1881_s30 }
  0x16   : > { %v1674_v7 = vor.u32 %v1883_v5, %v1673_v4  ;;  %v1884_v9 = vld [vmem:[%s2066_s9 + $0x24] sm:$0xf0]  ;;  %v1681_v10 = vld [vmem:[%s2066_s9 + $0x30] sm:$0xf]  ;;  %v1885_v12 = vld [vmem:[%s2066_s9 + $0x34] sm:$0xf0]  ;;  %724 = vmatpush.bf16.msrb.mxu3 %v715_v17  ;;  %809 = vmatpush.bf16.msrb.mxu0 %v800_v21 }
  0x17   : > { %v1678_v11 = vor.u32 %v1884_v9, %v1677_v8  ;;  %v1669_v13 = vld [vmem:[%s2066_s9] sm:$0xf]  ;;  %v1882_v14 = vld [vmem:[%s2066_s9 + $0x4] sm:$0xf0]  ;;  %v1682_v15 = vor.u32 %v1885_v12, %v1681_v10  ;;  %v473_v23 = vld [vmem:[%s2066_s9 + $0x4] sm:$0x1] }
  0x18   : > { %v1670_v16 = vor.u32 %v1882_v14, %v1669_v13  ;;  %1684 = vmatmul.msk.bf16.vlgmr.msra.gmra.mxu1 %vm333_vm1, %v1674_v7  ;;  %v472_v22 = vld [vmem:[%s2066_s9] sm:$0xf]  ;;  %v474_v24 = vld [vmem:[%s2066_s9 + $0x8] sm:$0xf]  ;;  %v475_v25 = vld [vmem:[%s2066_s9 + $0xc] sm:$0x1] }
  0x19   : > { %1685 = vmatmul.msk.bf16.vlgmr.msra.gmra.mxu2 %vm333_vm1, %v1678_v11  ;;  %1686 = vmatmul.msk.bf16.vlgmr.msra.gmra.mxu3 %vm333_vm1, %v1682_v15  ;;  %v492_v26 = vshrl.u32 %v472_v22, 16  ;;  %v495_v27 = vshll.u32 %v472_v22, 16  ;;  %v501_v28 = vshll.u32 %v473_v23, 16  ;;  %v506_v29 = vshrl.u32 %v474_v24, 16  ;;  %v1698_v36 = vld [vmem:[%s2066_s9 + $0x48] sm:$0xf] }
  0x1a   : > { %1683 = vmatmul.msk.bf16.vlgmr.msra.gmra.mxu0 %vm333_vm1, %v1670_v16  ;;  %v509_v30 = vshll.u32 %v474_v24, 16  ;;  %v515_v31 = vshll.u32 %v475_v25, 16  ;;  %v1886_v37 = vld [vmem:[%s2066_s9 + $0x4c] sm:$0xf0]  ;;  %1089 = vmatpush.bf16.msra.mxu2 %v1080_v39  ;;  %v1890_v48 = vld [vmem:[%s2066_s9 + $0x94] sm:$0xf0] }
  0x1b   : > { %v494_v32 = vrot.slane %v492_v26, 4  ;;  %v497_v33 = vrot.slane %v495_v27, 5  ;;  %v508_v34 = vrot.slane %v506_v29, 4  ;;  %v503_v41 = vrot.slane %v501_v28, 5  ;;  %v1732_v47 = vld [vmem:[%s2066_s9 + $0x90] sm:$0xf]  ;;  %1174 = vmatpush.bf16.msra.mxu3 %v1165_v49  ;;  %1003 = vmatpush.bf16.msra.mxu1 %v994_v50 }
  0x1c   : > { %v511_v38 = vrot.slane %v509_v30, 5  ;;  %v517_v46 = vrot.slane %v515_v31, 5  ;;  %v1761_v53 = vld [vmem:[%s2066_s9 + $0xd8] sm:$0xf]  ;;  %v1359_v54 = vsel %vm346_vm0, %v1874_v51, 0  ;;  %v1699_v60 = vor.u32 %v1886_v37, %v1698_v36 }
  0x1d   : > { %v498_v40 = vor.u32 %v497_v33, %v494_v32  ;;  %v476_v55 = vld [vmem:[%s2066_s9 + $0x10] sm:$0xf]  ;;  %v1894_v57 = vld [vmem:[%s2066_s9 + $0xdc] sm:$0xf0]  ;;  %1368 = vmatpush.bf16.msra.mxu0 %v1359_v54  ;;  %v478_v58 = vld [vmem:[%s2066_s9 + $0x18] sm:$0xf]  ;;  %v1733_v7 = vor.u32 %v1890_v48, %v1732_v47 }
  0x1e   : > { %v512_v45 = vor.u32 %v511_v38, %v508_v34  ;;  %v520_v59 = vshrl.u32 %v476_v55, 16  ;;  %v477_v62 = vld [vmem:[%s2066_s9 + $0x14] sm:$0x1]  ;;  %v479_v63 = vld [vmem:[%s2066_s9 + $0x1c] sm:$0x1]  ;;  %v523_v0 = vshll.u32 %v476_v55, 16  ;;  %v1762_v10 = vor.u32 %v1894_v57, %v1761_v53 }
  0x1f   : > { %v499_v52 = vrot.slane %v498_v40, 4  ;;  %v534_v1 = vshrl.u32 %v478_v58, 16  ;;  %v537_v5 = vshll.u32 %v478_v58, 16  ;;  %v529_v11 = vshll.u32 %v477_v62, 16  ;;  %v480_v21 = vld [vmem:[%s2066_s9 + $0x20] sm:$0xf] }
  0x20   : > { %v513_v56 = vrot.slane %v512_v45, 4  ;;  %v522_v4 = vrot.slane %v520_v59, 4  ;;  %v525_v8 = vrot.slane %v523_v0, 5  ;;  %v543_v13 = vshll.u32 %v479_v63, 16  ;;  %v482_v22 = vld [vmem:[%s2066_s9 + $0x28] sm:$0xf] }
  0x21   : > { %v504_v61 = vsel %vm2115_vm4, %v499_v52, %v503_v41  ;;  %v536_v9 = vrot.slane %v534_v1, 4  ;;  %v539_v12 = vrot.slane %v537_v5, 5  ;;  %v531_v18 = vrot.slane %v529_v11, 5  ;;  %v1702_v29 = vld [vmem:[%s2066_s9 + $0x58] sm:$0xf] }
  0x22   : > { %v518_v2 = vsel %vm2115_vm4, %v513_v56, %v517_v46  ;;  %v605_v3 = vunpack.c.l.b16 %v504_v61  ;;  %v526_v15 = vor.u32 %v525_v8, %v522_v4  ;;  %v545_v20 = vrot.slane %v543_v13, 5  ;;  %v1887_v30 = vld [vmem:[%s2066_s9 + $0x5c] sm:$0xf0]  ;;  %v1891_v34 = vld [vmem:[%s2066_s9 + $0xa4] sm:$0xf0] }
  0x23   : > { %v606_v6 = vunpack.c.l.b16 %v518_v2  ;;  %v540_v16 = vor.u32 %v539_v12, %v536_v9  ;;  %v548_v23 = vshrl.u32 %v480_v21, 16  ;;  %v551_v24 = vshll.u32 %v480_v21, 16  ;;  %v1736_v33 = vld [vmem:[%s2066_s9 + $0xa0] sm:$0xf]  ;;  %v1765_v35 = vld [vmem:[%s2066_s9 + $0xe8] sm:$0xf] }
  0x24   : > { %v527_v17 = vrot.slane %v526_v15, 4  ;;  %v562_v27 = vshrl.u32 %v482_v22, 16  ;;  %v565_v28 = vshll.u32 %v482_v22, 16  ;;  %v1895_v36 = vld [vmem:[%s2066_s9 + $0xec] sm:$0xf0]  ;;  %v1703_v43 = vor.u32 %v1887_v30, %v1702_v29 }
  0x25   : > { %v613_v14 = vpack.c.b16 %v606_v6, %v605_v3  ;;  %v541_v19 = vrot.slane %v540_v16, 4  ;;  %v550_v37 = vrot.slane %v548_v23, 4  ;;  %v553_v38 = vrot.slane %v551_v24, 5  ;;  %v481_v41 = vld [vmem:[%s2066_s9 + $0x24] sm:$0x1] }
  0x26   : > { %v532_v25 = vsel %vm2115_vm4, %v527_v17, %v531_v18  ;;  %v564_v39 = vrot.slane %v562_v27, 4  ;;  %v567_v40 = vrot.slane %v565_v28, 5  ;;  %v483_v42 = vld [vmem:[%s2066_s9 + $0x2c] sm:$0x1]  ;;  %v1737_v46 = vor.u32 %v1891_v34, %v1736_v33  ;;  %v484_v52 = vld [vmem:[%s2066_s9 + $0x30] sm:$0xf] }
  0x27   : > { %v546_v26 = vsel %vm2115_vm4, %v541_v19, %v545_v20  ;;  %v607_v31 = vunpack.c.l.b16 %v532_v25  ;;  %v1766_v47 = vor.u32 %v1895_v36, %v1765_v35  ;;  %v554_v48 = vor.u32 %v553_v38, %v550_v37  ;;  %v486_v53 = vld [vmem:[%s2066_s9 + $0x38] sm:$0xf]  ;;  %v485_v4 = vld [vmem:[%s2066_s9 + $0x34] sm:$0x1]  ;;  %v487_v5 = vld [vmem:[%s2066_s9 + $0x3c] sm:$0x1] }
  0x28   : > { %1712 = vmatmul.msk.bf16.vlgmr.msrb.gmra.mxu1 %vm333_vm1, %v1699_v60  ;;  %v608_v32 = vunpack.c.l.b16 %v546_v26  ;;  %v557_v49 = vshll.u32 %v481_v41, 16  ;;  %v568_v50 = vor.u32 %v567_v40, %v564_v39  ;;  %v571_v51 = vshll.u32 %v483_v42, 16  ;;  %v1706_v6 = vld [vmem:[%s2066_s9 + $0x68] sm:$0xf]  ;;  %v1888_v9 = vld [vmem:[%s2066_s9 + $0x6c] sm:$0xf0] }
  0x29   : > { %1717 = vmatmul.msk.bf16.vlgmr.msrb.gmra.mxu2 %vm333_vm1, %v613_v14  ;;  %1746 = vmatmul.msk.bf16.vlgmr.msrb.gmra.mxu3 %vm333_vm1, %v1733_v7  ;;  %v555_v54 = vrot.slane %v554_v48, 4  ;;  %v576_v58 = vshrl.u32 %v484_v52, 16  ;;  %v579_v59 = vshll.u32 %v484_v52, 16  ;;  %v590_v60 = vshrl.u32 %v486_v53, 16  ;;  %v1892_v11 = vld [vmem:[%s2066_s9 + $0xb4] sm:$0xf0] }
  0x2a   : > { %1775 = vmatmul.msk.bf16.vlgmr.msrb.gmra.mxu0 %vm333_vm1, %v1762_v10  ;;  %v614_v45 = vpack.c.b16 %v608_v32, %v607_v31  ;;  %v559_v55 = vrot.slane %v557_v49, 5  ;;  %v569_v56 = vrot.slane %v568_v50, 4  ;;  %v573_v57 = vrot.slane %v571_v51, 5  ;;  %v1740_v10 = vld [vmem:[%s2066_s9 + $0xb0] sm:$0xf] }
  0x2b   : > { %v593_v61 = vshll.u32 %v486_v53, 16  ;;  %v578_v0 = vrot.slane %v576_v58, 4  ;;  %v581_v1 = vrot.slane %v579_v59, 5  ;;  %v592_v2 = vrot.slane %v590_v60, 4  ;;  %v1769_v12 = vld [vmem:[%s2066_s9 + $0xf8] sm:$0xf] }
  0x2c   : > { %v560_v62 = vsel %vm2115_vm4, %v555_v54, %v559_v55  ;;  %v574_v63 = vsel %vm2115_vm4, %v569_v56, %v573_v57  ;;  %v1896_v13 = vld [vmem:[%s2066_s9 + $0xfc] sm:$0xf0]  ;;  %v585_v15 = vshll.u32 %v485_v4, 16  ;;  %v599_v17 = vshll.u32 %v487_v5, 16  ;;  %v1779_v26 = vld [vmem:[%s2066_s9 + $0x90] sm:$0xf] }
  0x2d   : > { %v595_v3 = vrot.slane %v593_v61, 5  ;;  %v609_v7 = vunpack.c.l.b16 %v560_v62  ;;  %v610_v8 = vunpack.c.l.b16 %v574_v63  ;;  %v582_v14 = vor.u32 %v581_v1, %v578_v0  ;;  %v1781_v27 = vld [vmem:[%s2066_s9 + $0x98] sm:$0xf]  ;;  %v1858_v28 = vld [vmem:[%s2066_s9 + $0x8] sm:$0xf] }
  0x2e   : > { %v1707_v18 = vor.u32 %v1888_v9, %v1706_v6  ;;  %v1741_v20 = vor.u32 %v1892_v11, %v1740_v10  ;;  %v1770_v21 = vor.u32 %v1896_v13, %v1769_v12  ;;  %v587_v23 = vrot.slane %v585_v15, 5  ;;  %v1860_v29 = vld [vmem:[%s2066_s9 + $0x10] sm:$0xf]  ;;  %v1710_v40 = vld [vmem:[%s2066_s9 + $0x78] sm:$0xf] }
  0x2f   : > { %v596_v16 = vor.u32 %v595_v3, %v592_v2  ;;  %v615_v19 = vpack.c.b16 %v610_v8, %v609_v7  ;;  %v583_v22 = vrot.slane %v582_v14, 4  ;;  %v601_v25 = vrot.slane %v599_v17, 5  ;;  %v1889_v41 = vld [vmem:[%s2066_s9 + $0x7c] sm:$0xf0]  ;;  %v1782_v50 = vld [vmem:[%s2066_s9 + $0x9c] sm:$0x1] }
  0x30   : > { %v856_v32 = vshrl.u32 %v1779_v26, 16  ;;  %v859_v33 = vshll.u32 %v1779_v26, 16  ;;  %v870_v34 = vshrl.u32 %v1781_v27, 16  ;;  %v873_v35 = vshll.u32 %v1781_v27, 16  ;;  %v1744_v55 = vld [vmem:[%s2066_s9 + $0xc0] sm:$0xf] }
  0x31   : > { %v597_v24 = vrot.slane %v596_v16, 4  ;;  %v588_v30 = vsel %vm2115_vm4, %v583_v22, %v587_v23  ;;  %v1221_v36 = vshrl.u32 %v1858_v28, 16  ;;  %v1224_v37 = vshll.u32 %v1858_v28, 16  ;;  %v1859_v56 = vld [vmem:[%s2066_s9 + $0xc] sm:$0x1] }
  0x32   : > { %v1235_v38 = vshrl.u32 %v1860_v29, 16  ;;  %v1238_v39 = vshll.u32 %v1860_v29, 16  ;;  %v611_v42 = vunpack.c.l.b16 %v588_v30  ;;  %v872_v48 = vrot.slane %v870_v34, 4  ;;  %v1861_v57 = vld [vmem:[%s2066_s9 + $0x14] sm:$0x1] }
  0x33   : > { %v602_v31 = vsel %vm2115_vm4, %v597_v24, %v601_v25  ;;  %v875_v49 = vrot.slane %v873_v35, 5  ;;  %v1223_v51 = vrot.slane %v1221_v36, 4  ;;  %v1226_v52 = vrot.slane %v1224_v37, 5  ;;  %v1893_v60 = vld [vmem:[%s2066_s9 + $0xc4] sm:$0xf0] }
  0x34   : > { %v1237_v53 = vrot.slane %v1235_v38, 4  ;;  %v1240_v54 = vrot.slane %v1238_v39, 5  ;;  %v1711_v58 = vor.u32 %v1889_v41, %v1710_v40  ;;  %v1773_v61 = vld [vmem:[%s2066_s9 + $0x108] sm:$0xf]  ;;  %v1897_v62 = vld [vmem:[%s2066_s9 + $0x10c] sm:$0xf0]  ;;  %v1745_v7 = vor.u32 %v1893_v60, %v1744_v55 }
  0x35   : > { %v876_v1 = vor.u32 %v875_v49, %v872_v48  ;;  %v879_v2 = vshll.u32 %v1782_v50, 16  ;;  %v1227_v3 = vor.u32 %v1226_v52, %v1223_v51  ;;  %v1230_v4 = vshll.u32 %v1859_v56, 16  ;;  %v1783_v9 = vld [vmem:[%s2066_s9 + $0xa0] sm:$0xf]  ;;  %v1785_v10 = vld [vmem:[%s2066_s9 + $0xa8] sm:$0xf] }
  0x36   : > { %v1241_v5 = vor.u32 %v1240_v54, %v1237_v53  ;;  %v1244_v6 = vshll.u32 %v1861_v57, 16  ;;  %v1774_v8 = vor.u32 %v1897_v62, %v1773_v61  ;;  %v901_v22 = vshll.u32 %v1785_v10, 16  ;;  %v1862_v23 = vld [vmem:[%s2066_s9 + $0x18] sm:$0xf]  ;;  %v1864_v24 = vld [vmem:[%s2066_s9 + $0x20] sm:$0xf] }
  0x37   : > { %v877_v13 = vrot.slane %v876_v1, 4  ;;  %v881_v14 = vrot.slane %v879_v2, 5  ;;  %v1228_v15 = vrot.slane %v1227_v3, 4  ;;  %v1232_v16 = vrot.slane %v1230_v4, 5  ;;  %v1784_v29 = vld [vmem:[%s2066_s9 + $0xa4] sm:$0x1] }
  0x38   : > { %1713 = vmatmul.msk.bf16.gmra.mxu1 %vm333_vm1, %v1703_v43  ;;  %v612_v43 = vunpack.c.l.b16 %v602_v31  ;;  %v1242_v17 = vrot.slane %v1241_v5, 4  ;;  %v1786_v34 = vld [vmem:[%s2066_s9 + $0xac] sm:$0x1]  ;;  %v1249_v35 = vshrl.u32 %v1862_v23, 16  ;;  %v1252_v36 = vshll.u32 %v1862_v23, 16 }
  0x39   : > { %1718 = vmatmul.msk.bf16.gmra.mxu2 %vm333_vm1, %v614_v45  ;;  %1747 = vmatmul.msk.bf16.gmra.mxu3 %vm333_vm1, %v1737_v46  ;;  %v1780_v45 = vld [vmem:[%s2066_s9 + $0x94] sm:$0x1]  ;;  %v858_v46 = vrot.slane %v856_v32, 4  ;;  %v882_v26 = vsel %vm2115_vm4, %v877_v13, %v881_v14  ;;  %v1233_v27 = vsel %vm2115_vm4, %v1228_v15, %v1232_v16  ;;  %v1263_v37 = vshrl.u32 %v1864_v24, 16  ;;  %v1811_v41 = vld [vmem:[%s2066_s9 + $0x8] sm:$0xf] }
  0x3a   : > { %1776 = vmatmul.msk.bf16.gmra.mxu0 %vm333_vm1, %v1766_v47  ;;  %v861_v47 = vrot.slane %v859_v33, 5  ;;  %v616_v59 = vpack.c.b16 %v612_v43, %v611_v42  ;;  %v865_v0 = vshll.u32 %v1780_v45, 16  ;;  %v903_v33 = vrot.slane %v901_v22, 5  ;;  %v1898_v42 = vld [vmem:[%s2066_s9 + $0xc] sm:$0xf0] }
  0x3b   : > { %v1266_v38 = vshll.u32 %v1864_v24, 16  ;;  %v970_v40 = vunpack.c.l.b16 %v882_v26  ;;  %v1334_v43 = vunpack.c.l.b16 %v1233_v27  ;;  %v893_v49 = vshll.u32 %v1784_v29, 16  ;;  %v1863_v56 = vld [vmem:[%s2066_s9 + $0x1c] sm:$0x1]  ;;  %v1865_v57 = vld [vmem:[%s2066_s9 + $0x24] sm:$0x1] }
  0x3c   : > { %v862_v63 = vor.u32 %v861_v47, %v858_v46  ;;  %v867_v12 = vrot.slane %v865_v0, 5  ;;  %v1840_v46 = vld [vmem:[%s2066_s9 + $0x50] sm:$0xf]  ;;  %v1902_v47 = vld [vmem:[%s2066_s9 + $0x54] sm:$0xf0]  ;;  %v907_v51 = vshll.u32 %v1786_v34, 16 }
  0x3d   : > { %v1251_v52 = vrot.slane %v1249_v35, 4  ;;  %v1254_v53 = vrot.slane %v1252_v36, 5  ;;  %v1265_v54 = vrot.slane %v1263_v37, 4  ;;  %v1268_v55 = vrot.slane %v1266_v38, 5  ;;  %v1815_v26 = vld [vmem:[%s2066_s9 + $0x18] sm:$0xf] }
  0x3e   : > { %v863_v11 = vrot.slane %v862_v63, 4  ;;  %v1841_v60 = vor.u32 %v1902_v47, %v1840_v46  ;;  %v895_v63 = vrot.slane %v893_v49, 5  ;;  %v909_v1 = vrot.slane %v907_v51, 5  ;;  %v1899_v27 = vld [vmem:[%s2066_s9 + $0x1c] sm:$0xf0] }
  0x3f   : > { %v1255_v2 = vor.u32 %v1254_v53, %v1251_v52  ;;  %v1258_v3 = vshll.u32 %v1863_v56, 16  ;;  %v1269_v4 = vor.u32 %v1268_v55, %v1265_v54  ;;  %v1272_v5 = vshll.u32 %v1865_v57, 16  ;;  %v1790_v35 = vld [vmem:[%s2066_s9 + $0xbc] sm:$0x1]  ;;  %v1844_v47 = vld [vmem:[%s2066_s9 + $0x60] sm:$0xf] }
  0x40   : > { %v868_v25 = vsel %vm2115_vm4, %v863_v11, %v867_v12  ;;  %v1868_v11 = vld [vmem:[%s2066_s9 + $0x30] sm:$0xf]  ;;  %v1816_v46 = vor.u32 %v1899_v27, %v1815_v26  ;;  %v935_v52 = vshll.u32 %v1790_v35, 16  ;;  %v1792_v27 = vld [vmem:[%s2066_s9 + $0xc4] sm:$0x1]  ;;  %vm1452_vm14 = vcmask 516096  }
  0x41   : > { %v969_v39 = vunpack.c.l.b16 %v868_v25  ;;  %v1256_v12 = vrot.slane %v1255_v2, 4  ;;  %v1260_v13 = vrot.slane %v1258_v3, 5  ;;  %v1270_v14 = vrot.slane %v1269_v4, 4  ;;  %v1791_v3 = vld [vmem:[%s2066_s9 + $0xc0] sm:$0xf] }
  0x42   : > { %v1274_v15 = vrot.slane %v1272_v5, 5  ;;  %v1291_v22 = vshrl.u32 %v1868_v11, 16  ;;  %v1294_v23 = vshll.u32 %v1868_v11, 16  ;;  %v1793_v4 = vld [vmem:[%s2066_s9 + $0xc8] sm:$0xf]  ;;  %v940_v11 = vshrl.u32 %v1791_v3, 16 }
  0x43   : > { %v1870_v5 = vld [vmem:[%s2066_s9 + $0x38] sm:$0xf] }
  0x44   : > { %v1275_v29 = vsel %vm2115_vm4, %v1270_v14, %v1274_v15  ;;  %v1293_v38 = vrot.slane %v1291_v22, 4  ;;  %v957_v14 = vshll.u32 %v1793_v4, 16  ;;  %v1305_v15 = vshrl.u32 %v1870_v5, 16  ;;  %v1900_v22 = vld [vmem:[%s2066_s9 + $0x2c] sm:$0xf0] }
  0x48   : > { %1714 = vmatmul.msk.bf16.gmra.mxu1 %vm333_vm1, %v1707_v18  ;;  %v1246_v18 = vrot.slane %v1244_v6, 5  ;;  %v1787_v6 = vld [vmem:[%s2066_s9 + $0xb0] sm:$0xf] }
  0x49   : > { %1719 = vmatmul.msk.bf16.gmra.mxu2 %vm333_vm1, %v615_v19  ;;  %1748 = vmatmul.msk.bf16.gmra.mxu3 %vm333_vm1, %v1741_v20  ;;  %v884_v19 = vshrl.u32 %v1783_v9, 16  ;;  %v887_v20 = vshll.u32 %v1783_v9, 16  ;;  %v912_v16 = vshrl.u32 %v1787_v6, 16 }
  0x4a   : > { %1777 = vmatmul.msk.bf16.gmra.mxu0 %vm333_vm1, %v1770_v21  ;;  %v898_v21 = vshrl.u32 %v1785_v10, 16  ;;  %v1247_v28 = vsel %vm2115_vm4, %v1242_v17, %v1246_v18  ;;  %v1866_v10 = vld [vmem:[%s2066_s9 + $0x28] sm:$0xf]  ;;  %v915_v17 = vshll.u32 %v1787_v6, 16  ;;  %v1872_v6 = vld [vmem:[%s2066_s9 + $0x40] sm:$0xf] }
  0x4b   : > { %v886_v30 = vrot.slane %v884_v19, 4  ;;  %v889_v31 = vrot.slane %v887_v20, 5  ;;  %v1335_v45 = vunpack.c.l.b16 %v1247_v28  ;;  %v1277_v20 = vshrl.u32 %v1866_v10, 16 }
  0x4c   : > { %v900_v32 = vrot.slane %v898_v21, 4  ;;  %v1280_v21 = vshll.u32 %v1866_v10, 16  ;;  %v1261_v28 = vsel %vm2115_vm4, %v1256_v12, %v1260_v13  ;;  %v943_v12 = vshll.u32 %v1791_v3, 16  ;;  %v1901_v3 = vld [vmem:[%s2066_s9 + $0x3c] sm:$0xf0] }
  0x4d   : > { %v890_v48 = vor.u32 %v889_v31, %v886_v30  ;;  %v1342_v61 = vpack.c.b16 %v1335_v45, %v1334_v43  ;;  %v1788_v30 = vld [vmem:[%s2066_s9 + $0xb4] sm:$0x1]  ;;  %v914_v31 = vrot.slane %v912_v16, 4  ;;  %v1279_v36 = vrot.slane %v1277_v20, 4 }
  0x4e   : > { %v904_v50 = vor.u32 %v903_v33, %v900_v32  ;;  %v917_v32 = vrot.slane %v915_v17, 5  ;;  %v1282_v37 = vrot.slane %v1280_v21, 5  ;;  %v1869_v43 = vld [vmem:[%s2066_s9 + $0x34] sm:$0x1]  ;;  %v954_v13 = vshrl.u32 %v1793_v4, 16 }
  0x4f   : > { %v891_v62 = vrot.slane %v890_v48, 4  ;;  %v1903_v48 = vld [vmem:[%s2066_s9 + $0x64] sm:$0xf0]  ;;  %v1300_v56 = vshll.u32 %v1869_v43, 16  ;;  %v1308_v16 = vshll.u32 %v1870_v5, 16  ;;  %v1319_v17 = vshrl.u32 %v1872_v6, 16 }
  0x50   : > { %v905_v0 = vrot.slane %v904_v50, 4  ;;  %v918_v49 = vor.u32 %v917_v32, %v914_v31  ;;  %v921_v50 = vshll.u32 %v1788_v30, 16  ;;  %v1283_v53 = vor.u32 %v1282_v37, %v1279_v36  ;;  %v1794_v32 = vld [vmem:[%s2066_s9 + $0xcc] sm:$0x1]  ;;  %v1871_v37 = vld [vmem:[%s2066_s9 + $0x3c] sm:$0x1] }
  0x51   : > { %v1845_v57 = vor.u32 %v1903_v48, %v1844_v47  ;;  %v1302_v2 = vrot.slane %v1300_v56, 5  ;;  %v956_v30 = vrot.slane %v954_v13, 4  ;;  %v959_v31 = vrot.slane %v957_v14, 5 }
  0x52   : > { %v910_v9 = vsel %vm2115_vm4, %v905_v0, %v909_v1  ;;  %v1321_v35 = vrot.slane %v1319_v17, 4  ;;  %v963_v47 = vshll.u32 %v1794_v32, 16 }
  0x53   : > { %v972_v25 = vunpack.c.l.b16 %v910_v9 }
  0x58   : > { %1715 = vmatmul.msk.bf16.gmra.mxu1 %vm333_vm1, %v1711_v58  ;;  %v977_v58 = vpack.c.b16 %v970_v40, %v969_v39  ;;  %v1296_v39 = vrot.slane %v1294_v23, 5  ;;  %v1336_v40 = vunpack.c.l.b16 %v1261_v28  ;;  %v1848_v23 = vld [vmem:[%s2066_s9 + $0x70] sm:$0xf]  ;;  %v942_v28 = vrot.slane %v940_v11, 4 }
  0x59   : > { %1720 = vmatmul.msk.bf16.gmra.mxu2 %vm333_vm1, %v616_v59  ;;  %1749 = vmatmul.msk.bf16.gmra.mxu3 %vm333_vm1, %v1745_v7  ;;  %v1812_v59 = vor.u32 %v1898_v42, %v1811_v41  ;;  %v1789_v7 = vld [vmem:[%s2066_s9 + $0xb8] sm:$0xf]  ;;  %v1337_v41 = vunpack.c.l.b16 %v1275_v29  ;;  %v1867_v42 = vld [vmem:[%s2066_s9 + $0x2c] sm:$0x1]  ;;  %v945_v29 = vrot.slane %v943_v12, 5 }
  0x5a   : > { %1778 = vmatmul.msk.bf16.gmra.mxu0 %vm333_vm1, %v1774_v8  ;;  %v896_v8 = vsel %vm2115_vm4, %v891_v62, %v895_v63  ;;  %v926_v18 = vshrl.u32 %v1789_v7, 16  ;;  %v929_v19 = vshll.u32 %v1789_v7, 16  ;;  %v1286_v54 = vshll.u32 %v1867_v42, 16 }
  0x5b   : > { %v971_v24 = vunpack.c.l.b16 %v896_v8  ;;  %v1297_v55 = vor.u32 %v1296_v39, %v1293_v38  ;;  %v937_v62 = vrot.slane %v935_v52, 5  ;;  %v1284_v63 = vrot.slane %v1283_v53, 4  ;;  %v1873_v38 = vld [vmem:[%s2066_s9 + $0x44] sm:$0x1] }
  0x5c   : > { %v928_v33 = vrot.slane %v926_v18, 4  ;;  %v931_v34 = vrot.slane %v929_v19, 5  ;;  %v1288_v0 = vrot.slane %v1286_v54, 5  ;;  %v1322_v18 = vshll.u32 %v1872_v6, 16  ;;  %v1819_v19 = vld [vmem:[%s2066_s9 + $0x28] sm:$0xf] }
  0x5d   : > { %v978_v45 = vpack.c.b16 %v972_v25, %v971_v24  ;;  %v1298_v1 = vrot.slane %v1297_v55, 4  ;;  %v1904_v24 = vld [vmem:[%s2066_s9 + $0x74] sm:$0xf0]  ;;  %v946_v43 = vor.u32 %v945_v29, %v942_v28  ;;  %v965_v55 = vrot.slane %v963_v47, 5  ;;  %v1852_v6 = vld [vmem:[%s2066_s9 + $0x80] sm:$0xf] }
  0x5e   : > { %v932_v51 = vor.u32 %v931_v34, %v928_v33  ;;  %v1289_v9 = vsel %vm2115_vm4, %v1284_v63, %v1288_v0  ;;  %v1307_v33 = vrot.slane %v1305_v15, 4  ;;  %v1310_v34 = vrot.slane %v1308_v16, 5 }
  0x5f   : > { %v1303_v10 = vsel %vm2115_vm4, %v1298_v1, %v1302_v2  ;;  %v1338_v25 = vunpack.c.l.b16 %v1289_v9  ;;  %v1324_v36 = vrot.slane %v1322_v18, 5  ;;  %v947_v52 = vrot.slane %v946_v43, 4  ;;  %v1823_v2 = vld [vmem:[%s2066_s9 + $0x38] sm:$0xf] }
  0x60   : > { %v1339_v26 = vunpack.c.l.b16 %v1303_v10  ;;  %v1311_v48 = vor.u32 %v1310_v34, %v1307_v33  ;;  %v1824_v9 = vor.u32 %v1901_v3, %v1823_v2 }
  0x62   : > { %v1344_v42 = vpack.c.b16 %v1339_v26, %v1338_v25  ;;  %v1312_v56 = vrot.slane %v1311_v48, 4 }
  0x68   : > { %1796 = vmatmul.msk.bf16.vlgmr.msra.gmra.mxu1 %vm333_vm1, %v977_v58  ;;  %v1343_v58 = vpack.c.b16 %v1337_v41, %v1336_v40  ;;  %v1820_v40 = vor.u32 %v1900_v22, %v1819_v19  ;;  %v1849_v41 = vor.u32 %v1904_v24, %v1848_v23 }
  0x69   : > { %1825 = vmatmul.msk.bf16.vlgmr.msra.gmra.mxu2 %vm333_vm1, %v1812_v59  ;;  %1854 = vmatmul.msk.bf16.vlgmr.msra.gmra.mxu3 %vm333_vm1, %v1841_v60  ;;  %v919_v59 = vrot.slane %v918_v49, 4  ;;  %v923_v60 = vrot.slane %v921_v50, 5  ;;  %v1314_v49 = vshll.u32 %v1871_v37, 16  ;;  %v1325_v50 = vor.u32 %v1324_v36, %v1321_v35 }
  0x6a   : > { %1875 = vmatmul.msk.bf16.vlgmr.msra.gmra.mxu0 %vm333_vm1, %v1342_v61  ;;  %v933_v61 = vrot.slane %v932_v51, 4  ;;  %v1328_v51 = vshll.u32 %v1873_v38, 16 }
  0x6b   : > { %v924_v7 = vsel %vm2115_vm4, %v919_v59, %v923_v60 }
  0x6c   : > { %v938_v8 = vsel %vm2115_vm4, %v933_v61, %v937_v62  ;;  %v973_v20 = vunpack.c.l.b16 %v924_v7  ;;  %v1330_v59 = vrot.slane %v1328_v51, 5  ;;  %v1905_v7 = vld [vmem:[%s2066_s9 + $0x84] sm:$0xf0] }
  0x6d   : > { %v974_v21 = vunpack.c.l.b16 %v938_v8  ;;  %v1853_v11 = vor.u32 %v1905_v7, %v1852_v6 }
  0x6f   : > { %v979_v39 = vpack.c.b16 %v974_v21, %v973_v20 }
  0x78   : > { %1797 = vmatmul.msk.bf16.gmra.mxu1 %vm333_vm1, %v978_v45  ;;  %v949_v45 = vshll.u32 %v1792_v27, 16 }
  0x79   : > { %1826 = vmatmul.msk.bf16.gmra.mxu2 %vm333_vm1, %v1816_v46  ;;  %1855 = vmatmul.msk.bf16.gmra.mxu3 %vm333_vm1, %v1845_v57  ;;  %v960_v46 = vor.u32 %v959_v31, %v956_v30  ;;  %v1316_v57 = vrot.slane %v1314_v49, 5 }
  0x7a   : > { %1876 = vmatmul.msk.bf16.gmra.mxu0 %vm333_vm1, %v1343_v58  ;;  %v951_v53 = vrot.slane %v949_v45, 5  ;;  %v1326_v58 = vrot.slane %v1325_v50, 4 }
  0x7b   : > { %v961_v54 = vrot.slane %v960_v46, 4  ;;  %v1317_v62 = vsel %vm2115_vm4, %v1312_v56, %v1316_v57  ;;  %v2323_v46 = vld [vmem:[#allocation2] ss:$0 sm:$0xff] }
  0x7c   : > { %v952_v60 = vsel %vm2115_vm4, %v947_v52, %v951_v53  ;;  %v1331_v63 = vsel %vm2115_vm4, %v1326_v58, %v1330_v59  ;;  %v1340_v4 = vunpack.c.l.b16 %v1317_v62 }
  0x7d   : > { %v966_v61 = vsel %vm2115_vm4, %v961_v54, %v965_v55  ;;  %v975_v0 = vunpack.c.l.b16 %v952_v60  ;;  %v1341_v5 = vunpack.c.l.b16 %v1331_v63 }
  0x7e   : > { %v976_v1 = vunpack.c.l.b16 %v966_v61 }
  0x7f   : > { %v1345_v12 = vpack.c.b16 %v1341_v5, %v1340_v4 }
  0x80   : > { %v980_v8 = vpack.c.b16 %v976_v1, %v975_v0 }
  0x88   : > { %1798 = vmatmul.msk.bf16.gmra.mxu1 %vm333_vm1, %v979_v39 }
  0x89   : > { %1827 = vmatmul.msk.bf16.gmra.mxu2 %vm333_vm1, %v1820_v40  ;;  %1856 = vmatmul.msk.bf16.gmra.mxu3 %vm333_vm1, %v1849_v41 }
  0x8a   : > { %1877 = vmatmul.msk.bf16.gmra.mxu0 %vm333_vm1, %v1344_v42 }
  0x95   : > { %v364_v10 = vpop.f32.mrf.mxu1 }
  0x96   : > { %v381_v1 = vadd.f32 %v2323_v46, %v364_v10 }
  0x97   : > { %v359_v13 = vpop.f32.mrf.mxu0 }
  0x98   : > { %1799 = vmatmul.msk.bf16.gmra.mxu1 %vm333_vm1, %v980_v8  ;;  %v379_v48 = vadd.f32 %v2323_v46, %v359_v13 }
  0x99   : > { %1828 = vmatmul.msk.bf16.gmra.mxu2 %vm333_vm1, %v1824_v9  ;;  %1857 = vmatmul.msk.bf16.gmra.mxu3 %vm333_vm1, %v1853_v11 }
  0x9a   : > { %1878 = vmatmul.msk.bf16.gmra.mxu0 %vm333_vm1, %v1345_v12 }
  0x9c   : > { %v2287_v44 = vpop.f32.mrf.mxu2  ;;  %v2289_v14 = vpop.f32.mrf.mxu3 }
  0x9d   : > { %v2291_v15 = vpop.f32.mrf.mxu1 }
  0x9f   : > { %v361_v16 = vpop.f32.mrf.mxu0 }
  0xa0   : > { %v380_v55 = vadd.f32 %v2323_v46, %v361_v16 }
  0xa4   : > { %v2293_v17 = vpop.f32.mrf.mxu2  ;;  %v2295_v18 = vpop.f32.mrf.mxu3 }
  0xa5   : > { %v444_v19 = vpop.f32.mrf.mxu1 }
  0xa6   : > { %v464_v51 = vadd.f32 %v444_v19, %v379_v48  ;;  %v382_v19 = vadd.f32 %v2323_v46, %v2291_v15 }
  0xa7   : > { %v811_v20 = vpop.f32.mrf.mxu0 }
  0xac   : > { %v641_v21 = vpop.f32.mrf.mxu2  ;;  %v726_v22 = vpop.f32.mrf.mxu3 }
  0xad   : > { %v446_v23 = vpop.f32.mrf.mxu1  ;;  %v661_v53 = vadd.f32 %v641_v21, %v464_v51 }
  0xae   : > { %v465_v59 = vadd.f32 %v446_v23, %v380_v55 }
  0xaf   : > { %v813_v24 = vpop.f32.mrf.mxu0  ;;  %v746_v56 = vadd.f32 %v726_v22, %v661_v53 }
  0xb1   : > { %v831_v62 = vadd.f32 %v811_v20, %v746_v56 }
  0xb4   : > { %v643_v25 = vpop.f32.mrf.mxu2  ;;  %v728_v26 = vpop.f32.mrf.mxu3 }
  0xb5   : > { %v449_v27 = vpop.f32.mrf.mxu1  ;;  %v662_v61 = vadd.f32 %v643_v25, %v465_v59 }
  0xb6   : > { %v466_v6 = vadd.f32 %v449_v27, %v381_v1 }
  0xb7   : > { %v2297_v28 = vpop.f32.mrf.mxu0  ;;  %v747_v2 = vadd.f32 %v728_v26, %v662_v61 }
  0xb9   : > { %v832_v12 = vadd.f32 %v813_v24, %v747_v2 }
  0xbc   : > { %v646_v29 = vpop.f32.mrf.mxu2  ;;  %v731_v30 = vpop.f32.mrf.mxu3 }
  0xbd   : > { %v451_v31 = vpop.f32.mrf.mxu1  ;;  %v663_v9 = vadd.f32 %v646_v29, %v466_v6 }
  0xbe   : > { %v467_v25 = vadd.f32 %v451_v31, %v382_v19 }
  0xbf   : > { %v2299_v32 = vpop.f32.mrf.mxu0  ;;  %v748_v20 = vadd.f32 %v731_v30, %v663_v9  ;;  %v383_v30 = vadd.f32 %v2323_v46, %v2287_v44 }
  0xc1   : > { %v833_v51 = vadd.f32 %v2297_v28, %v748_v20 }
  0xc4   : > { %v648_v33 = vpop.f32.mrf.mxu2  ;;  %v2301_v34 = vpop.f32.mrf.mxu3 }
  0xc5   : > { %v2303_v35 = vpop.f32.mrf.mxu1  ;;  %v664_v29 = vadd.f32 %v648_v33, %v467_v25 }
  0xc7   : > { %v2305_v36 = vpop.f32.mrf.mxu0 }
  0xcc   : > { %v2307_v37 = vpop.f32.mrf.mxu2  ;;  %v2309_v38 = vpop.f32.mrf.mxu3 }
  0xcd   : > { %v2311_v39 = vpop.f32.mrf.mxu1 }
  0xcf   : > { %v2313_v40 = vpop.f32.mrf.mxu0 }
  0xd4   : > { %v2315_v41 = vpop.f32.mrf.mxu2  ;;  %v2317_v42 = vpop.f32.mrf.mxu3 }
  0xd5   : > { %v2319_v43 = vpop.f32.mrf.mxu1 }
  0xd7   : > { %v2321_v45 = vpop.f32.mrf.mxu0 }
  0xdc   : > { %v2325_v47 = vpop.f32.mrf.mxu2  ;;  %v2328_v49 = vpop.f32.mrf.mxu3 }
  0xdd   : > { %v2330_v50 = vpop.f32.mrf.mxu1 }
  0xdf   : > { %v2332_v52 = vpop.f32.mrf.mxu0 }
  0xe4   : > { %v2334_v54 = vpop.f32.mrf.mxu2  ;;  %v2337_v57 = vpop.f32.mrf.mxu3 }
  0xe5   : > { %v1005_v58 = vpop.f32.mrf.mxu1 }
  0xe6   : > { %v1025_v63 = vadd.f32 %v1005_v58, %v831_v62  ;;  %v749_v58 = vadd.f32 %v2301_v34, %v664_v29 }
  0xe7   : > { %v1370_v60 = vpop.f32.mrf.mxu0 }
  0xe8   : > { %v834_v6 = vadd.f32 %v2299_v32, %v749_v58 }
  0xec   : > { %v1091_v0 = vpop.f32.mrf.mxu2  ;;  %v1176_v4 = vpop.f32.mrf.mxu3 }
  0xed   : > { %v1111_v3 = vadd.f32 %v1091_v0, %v1025_v63  ;;  %v1007_v5 = vpop.f32.mrf.mxu1  ;;  %v468_v63 = vadd.f32 %v2303_v35, %v383_v30  ;;  %v384_v35 = vadd.f32 %v2323_v46, %v2293_v17 }
  0xee   : > { %v1026_v10 = vadd.f32 %v1007_v5, %v832_v12 }
  0xef   : > { %v1196_v7 = vadd.f32 %v1176_v4, %v1111_v3  ;;  %v1372_v8 = vpop.f32.mrf.mxu0  ;;  %v665_v3 = vadd.f32 %v2307_v37, %v468_v63  ;;  %v469_v32 = vadd.f32 %v2311_v39, %v384_v35  ;;  %v386_v63 = vadd.f32 %v2323_v46, %v2295_v18 }
  0xf1   : > { %v1390_v11 = vadd.f32 %v1370_v60, %v1196_v7  ;;  %v666_v17 = vadd.f32 %v2315_v41, %v469_v32 }
  0xf3   : > { %vm1398_vm5 = vcmp.ge.f32.partialorder %v1390_v11, 0.0  ;;  %v1406_v13 = vmul.f32 0.2, %v1390_v11  ;;  %v751_v39 = vadd.f32 %v2317_v42, %v666_v17 }
  0xf4   : > { %v1093_v16 = vpop.f32.mrf.mxu2  ;;  %v1178_v23 = vpop.f32.mrf.mxu3 }
  0xf5   : > { %v1414_v21 = vsel %vm1398_vm5, %v1390_v11, %v1406_v13  ;;  %v1112_v22 = vadd.f32 %v1093_v16, %v1026_v10  ;;  %v1010_v24 = vpop.f32.mrf.mxu1  ;;  %v750_v11 = vadd.f32 %v2309_v38, %v665_v3 }
  0xf6   : > { %1423 = vst.msk [vmem:[%s2348_s8] sm:$0xff] %vm1422_vm6, %v1414_v21  ;;  %v1027_v55 = vadd.f32 %v1010_v24, %v833_v51  ;;  %v1454_v56 = vmul.f32 %v1414_v21, %v1414_v21  ;;  %v1431_v61 = vsel %vm1422_vm6, %v1414_v21, 0.0 }
  0xf7   : > { %v1197_v26 = vadd.f32 %v1178_v23, %v1112_v22  ;;  %v1375_v27 = vpop.f32.mrf.mxu0  ;;  %v835_v24 = vadd.f32 %v2305_v36, %v750_v11 }
  0xf8   : > { %v1462_v2 = vsel %vm1422_vm6, %v1454_v56, 0.0 }
  0xf9   : > { %v1391_v48 = vadd.f32 %v1372_v8, %v1197_v26 }
  0xfb   : > { %vm1399_vm7 = vcmp.ge.f32.partialorder %v1391_v48, 0.0  ;;  %v1407_v53 = vmul.f32 0.2, %v1391_v48 }
  0xfc   : > { %v1096_v15 = vpop.f32.mrf.mxu2  ;;  %v1181_v31 = vpop.f32.mrf.mxu3 }
  0xfd   : > { %v1415_v59 = vsel %vm1399_vm7, %v1391_v48, %v1407_v53  ;;  %v1113_v60 = vadd.f32 %v1096_v15, %v1027_v55  ;;  %v1012_v62 = vpop.f32.mrf.mxu1  ;;  %v385_v48 = vadd.f32 %v2323_v46, %v2289_v14 }
  0xfe   : > { %1424 = vst.msk [vmem:[%s2348_s8 + $0x8] sm:$0xff] %vm1422_vm6, %v1415_v59  ;;  %v1432_v33 = vsel %vm1422_vm6, %v1415_v59, 0.0  ;;  %v1455_v28 = vmul.f32 %v1415_v59, %v1415_v59  ;;  %v1028_v8 = vadd.f32 %v1012_v62, %v834_v6 }
  0xff   : > { %v1433_v0 = vadd.f32 %v1432_v33, %v1431_v61  ;;  %v1198_v1 = vadd.f32 %v1181_v31, %v1113_v60  ;;  %v1377_v34 = vpop.f32.mrf.mxu0  ;;  %v470_v36 = vadd.f32 %v2319_v43, %v385_v48  ;;  %v836_v31 = vadd.f32 %v2313_v40, %v751_v39 }
 0x100   : > { %v1463_v44 = vsel %vm1422_vm6, %v1455_v28, 0.0  ;;  %v471_v40 = vadd.f32 %v2330_v50, %v386_v63 }
 0x101   : > { %v1464_v4 = vadd.f32 %v1463_v44, %v1462_v2  ;;  %v1392_v5 = vadd.f32 %v1375_v27, %v1198_v1  ;;  %v667_v14 = vadd.f32 %v2325_v47, %v470_v36 }
 0x102   : > { %v668_v18 = vadd.f32 %v2334_v54, %v471_v40 }
 0x103   : > { %vm1400_vm8 = vcmp.ge.f32.partialorder %v1392_v5, 0.0  ;;  %v1408_v7 = vmul.f32 0.2, %v1392_v5  ;;  %v752_v43 = vadd.f32 %v2328_v49, %v667_v14 }
 0x104   : > { %v1098_v9 = vpop.f32.mrf.mxu2  ;;  %v1183_v10 = vpop.f32.mrf.mxu3  ;;  %v753_v35 = vadd.f32 %v2337_v57, %v668_v18 }
 0x105   : > { %v1416_v12 = vsel %vm1400_vm8, %v1392_v5, %v1408_v7  ;;  %v1114_v13 = vadd.f32 %v1098_v9, %v1028_v8  ;;  %v1015_v19 = vpop.f32.mrf.mxu1  ;;  %v837_v6 = vadd.f32 %v2321_v45, %v752_v43 }
 0x106   : > { %1425 = vst.msk [vmem:[%s2348_s8 + $0x10] sm:$0xff] %vm1422_vm6, %v1416_v12  ;;  %v1434_v37 = vsel %vm1422_vm6, %v1416_v12, 0.0  ;;  %v1456_v16 = vmul.f32 %v1416_v12, %v1416_v12  ;;  %v1029_v27 = vadd.f32 %v1015_v19, %v835_v24 }
 0x107   : > { %v1435_v20 = vadd.f32 %v1434_v37, %v1433_v0  ;;  %v1199_v21 = vadd.f32 %v1183_v10, %v1114_v13  ;;  %v1380_v25 = vpop.f32.mrf.mxu0 }
 0x108   : > { %v1465_v22 = vsel %vm1422_vm6, %v1456_v16, 0.0 }
 0x109   : > { %v1466_v23 = vadd.f32 %v1465_v22, %v1464_v4  ;;  %v1393_v38 = vadd.f32 %v1377_v34, %v1199_v21  ;;  %v838_v21 = vadd.f32 %v2332_v52, %v753_v35 }
 0x10b   : > { %vm1401_vm9 = vcmp.ge.f32.partialorder %v1393_v38, 0.0  ;;  %v1409_v26 = vmul.f32 0.2, %v1393_v38 }
 0x10c   : > { %v1101_v29 = vpop.f32.mrf.mxu2  ;;  %v1186_v55 = vpop.f32.mrf.mxu3 }
 0x10d   : > { %v1417_v51 = vsel %vm1401_vm9, %v1393_v38, %v1409_v26  ;;  %v1115_v53 = vadd.f32 %v1101_v29, %v1029_v27  ;;  %v1017_v15 = vpop.f32.mrf.mxu1 }
 0x10e   : > { %1426 = vst.msk [vmem:[%s2348_s8 + $0x18] sm:$0xff] %vm1422_vm6, %v1417_v51  ;;  %v1436_v41 = vsel %vm1422_vm6, %v1417_v51, 0.0  ;;  %v1457_v56 = vmul.f32 %v1417_v51, %v1417_v51  ;;  %v1030_v33 = vadd.f32 %v1017_v15, %v836_v31 }
 0x10f   : > { %v1437_v30 = vadd.f32 %v1436_v41, %v1435_v20  ;;  %v1200_v58 = vadd.f32 %v1186_v55, %v1115_v53  ;;  %v1382_v28 = vpop.f32.mrf.mxu0 }
 0x110   : > { %v1467_v59 = vsel %vm1422_vm6, %v1457_v56, 0.0 }
 0x111   : > { %v1468_v60 = vadd.f32 %v1467_v59, %v1466_v23  ;;  %v1394_v42 = vadd.f32 %v1380_v25, %v1200_v58 }
 0x113   : > { %vm1402_vm10 = vcmp.ge.f32.partialorder %v1394_v42, 0.0  ;;  %v1410_v61 = vmul.f32 0.2, %v1394_v42 }
 0x114   : > { %v1103_v62 = vpop.f32.mrf.mxu2  ;;  %v1188_v2 = vpop.f32.mrf.mxu3 }
 0x115   : > { %v1418_v0 = vsel %vm1402_vm10, %v1394_v42, %v1410_v61  ;;  %v1116_v1 = vadd.f32 %v1103_v62, %v1030_v33  ;;  %v1020_v34 = vpop.f32.mrf.mxu1 }
 0x116   : > { %1427 = vst.msk [vmem:[%s2348_s8 + $0x20] sm:$0xff] %vm1422_vm6, %v1418_v0  ;;  %v1438_v47 = vsel %vm1422_vm6, %v1418_v0, 0.0  ;;  %v1458_v44 = vmul.f32 %v1418_v0, %v1418_v0  ;;  %v1031_v8 = vadd.f32 %v1020_v34, %v837_v6 }
 0x117   : > { %v1439_v3 = vadd.f32 %v1438_v47, %v1437_v30  ;;  %v1201_v4 = vadd.f32 %v1188_v2, %v1116_v1  ;;  %v1385_v54 = vpop.f32.mrf.mxu0 }
 0x118   : > { %v1469_v5 = vsel %vm1422_vm6, %v1458_v44, 0.0 }
 0x119   : > { %v1470_v46 = vadd.f32 %v1469_v5, %v1468_v60  ;;  %v1395_v49 = vadd.f32 %v1382_v28, %v1201_v4 }
 0x11b   : > { %vm1403_vm11 = vcmp.ge.f32.partialorder %v1395_v49, 0.0  ;;  %v1411_v7 = vmul.f32 0.2, %v1395_v49 }
 0x11c   : > { %v1106_v9 = vpop.f32.mrf.mxu2  ;;  %v1191_v50 = vpop.f32.mrf.mxu3 }
 0x11d   : > { %v1419_v11 = vsel %vm1403_vm11, %v1395_v49, %v1411_v7  ;;  %v1117_v12 = vadd.f32 %v1106_v9, %v1031_v8  ;;  %v1022_v19 = vpop.f32.mrf.mxu1 }
 0x11e   : > { %1428 = vst.msk [vmem:[%s2348_s8 + $0x28] sm:$0xff] %vm1422_vm6, %v1419_v11  ;;  %v1440_v13 = vsel %vm1422_vm6, %v1419_v11, 0.0  ;;  %v1459_v10 = vmul.f32 %v1419_v11, %v1419_v11  ;;  %v1032_v22 = vadd.f32 %v1022_v19, %v838_v21 }
 0x11f   : > { %v1441_v37 = vadd.f32 %v1440_v13, %v1439_v3  ;;  %v1202_v16 = vadd.f32 %v1191_v50, %v1117_v12  ;;  %v1387_v39 = vpop.f32.mrf.mxu0 }
 0x120   : > { %v1471_v45 = vsel %vm1422_vm6, %v1459_v10, 0.0 }
 0x121   : > { %v1472_v32 = vadd.f32 %v1471_v45, %v1470_v46  ;;  %v1396_v20 = vadd.f32 %v1385_v54, %v1202_v16 }
 0x123   : > { %vm1404_vm12 = vcmp.ge.f32.partialorder %v1396_v20, 0.0  ;;  %v1412_v57 = vmul.f32 0.2, %v1396_v20 }
 0x124   : > { %v1108_v17 = vpop.f32.mrf.mxu2  ;;  %v1193_v26 = vpop.f32.mrf.mxu3 }
 0x125   : > { %v1420_v23 = vsel %vm1404_vm12, %v1396_v20, %v1412_v57  ;;  %v1118_v38 = vadd.f32 %v1108_v17, %v1032_v22 }
 0x126   : > { %1429 = vst.msk [vmem:[%s2348_s8 + $0x30] sm:$0xff] %vm1422_vm6, %v1420_v23  ;;  %v1442_v24 = vsel %vm1422_vm6, %v1420_v23, 0.0  ;;  %v1460_v25 = vmul.f32 %v1420_v23, %v1420_v23 }
 0x127   : > { %v1443_v27 = vadd.f32 %v1442_v24, %v1441_v37  ;;  %v1203_v29 = vadd.f32 %v1193_v26, %v1118_v38 }
 0x128   : > { %v1473_v48 = vsel %vm1422_vm6, %v1460_v25, 0.0 }
 0x129   : > { %v1474_v51 = vadd.f32 %v1473_v48, %v1472_v32  ;;  %v1397_v52 = vadd.f32 %v1387_v39, %v1203_v29 }
 0x12b   : > { %vm1405_vm13 = vcmp.ge.f32.partialorder %v1397_v52, 0.0  ;;  %v1413_v53 = vmul.f32 0.2, %v1397_v52 }
 0x12d   : > { %v1421_v55 = vsel %vm1405_vm13, %v1397_v52, %v1413_v53 }
 0x12e   : > { %1430 = vst.msk [vmem:[%s2348_s8 + $0x38] sm:$0xff] %vm1422_vm6, %v1421_v55  ;;  %v1444_v41 = vsel %vm1422_vm6, %v1421_v55, 0.0  ;;  %v1461_v56 = vmul.f32 %v1421_v55, %v1421_v55 }
 0x12f   : > { %v1445_v15 = vadd.f32 %v1444_v41, %v1443_v27 }
 0x130   : > { %v1475_v36 = vsel %vm1422_vm6, %v1461_v56, 0.0 }
 0x131   : > { %v1446_v30 = vrot.slane %v1445_v15, 4  ;;  %v1476_v58 = vadd.f32 %v1475_v36, %v1474_v51 }
 0x133   : > { %v1447_v59 = vadd.f32 %v1446_v30, %v1445_v15  ;;  %v1477_v14 = vrot.slane %v1476_v58, 4 }
 0x135   : > { %v1448_v60 = vrot.slane %v1447_v59, 2  ;;  %v1478_v42 = vadd.f32 %v1477_v14, %v1476_v58 }
 0x137   : > { %v1449_v31 = vadd.f32 %v1448_v60, %v1447_v59  ;;  %v1479_v61 = vrot.slane %v1478_v42, 2 }
 0x139   : > { %v1450_v33 = vrot.slane %v1449_v31, 1  ;;  %v1480_v28 = vadd.f32 %v1479_v61, %v1478_v42 }
 0x13b   : > { %v1451_v62 = vadd.f32 %v1450_v33, %v1449_v31  ;;  %v1481_v63 = vrot.slane %v1480_v28, 1 }
 0x13d   : > { %1453 = vst.msk [vmem:[%s288_s11] sm:$0x1] %vm1452_vm14, %v1451_v62  ;;  %v1482_v43 = vadd.f32 %v1481_v63, %v1480_v28 }
 0x13f   : > { %1483 = vst.msk [vmem:[%s293_s14] sm:$0x1] %vm1452_vm14, %v1482_v43 }
 0x140 PF: > { %s17_s20 = sadd.s32 1, %s2002_s20   ;;  %s2436_s18 = smov %s1998_s19 }
 0x141   : > { %p14_p9 = scmp.ge.s32.totalorder %s17_s20, 4   ;;  %s2437_s19 = smov %s2439_s22 }
 0x143   :  { %16 = sbr.rel (!%p14_p9) target bundleno = 2 (0x2), region = 105 }
 0x148   :  { %1544 = vsyncpa [#allocation3], 1 }
 0x149   :  { %1546 = vsyncpa [#allocation3 + $0x1], 1 }

// kernel: discriminator_forward.6
= control target key start
LH: loop header
LB: loop body
LE: loop exit
PB: predicated region body
PF: predicated region fallthrough
CT: control target
= control target key end

     0   :  { %s1733_s18 = smov 0   ;;  %s1735_s19 = smov 0   ;;  %s2008_s0 = inlined_call_operand.vmem [shape: bf16[8,5,5,64], index: 0, kind: input, shape index: {}]   ;;  %s2009_s1 = inlined_call_operand.vmem [shape: bf16[9,64,128], index: 1, kind: input, shape index: {}]   ;;  %s2010_s2 = inlined_call_operand.vmem [shape: f32[1,128], index: 2, kind: input, shape index: {}]   ;;  %s2011_s3 = inlined_call_operand.vmem [shape: f32[2,4,4,128], index: 3, kind: output, shape index: {0}]   ;;  %s2012_s4 = inlined_call_operand.vmem [shape: f32[2,1,128], index: 4, kind: output, shape index: {1}]   ;;  %s2013_s5 = inlined_call_operand.vmem [shape: f32[2,1,128], index: 5, kind: output, shape index: {2}]  }
   0x1   :  { %s1737_s20 = smov 0  }
   0x2 LB: > { %s28_s21 = sadd.s32 1, %s1697_s19  ;;  %p1364_p0 = scmp.ge.s32.totalorder %s1701_s20, 1  ;;  %s1701_s20 = sphi %s1737_s20, %s16_s20   ;;  %s1697_s19 = sphi %s1735_s19, %s2021_s19   ;;  %s1693_s18 = sphi %s1733_s18, %s2020_s18  }
   0x3   : > { %p30_p1 = scmp.ge.s32.totalorder %s28_s21, 2  ;;  %p212_p2 = scmp.lt.s32.totalorder %s1701_s20, 3 }
   0x5   : > { %s2023_s21 = smov (%p30_p1, %s28_s21), 0  ;;  %p213_p3 = pnand %p1364_p0, %p212_p2 }
   0x6   : > { %s1365_s26 = sshll.u32 (!%p213_p3), %s1693_s18, 2  ;;  %p261_p5 = scmp.lt.s32.totalorder (!%p213_p3), %s1693_s18, 1 }
   0x7   : > { %216 = sbr.rel (%p213_p3) target bundleno = 272 (0x110), region = 32  ;;  %p254_p4 = scmp.lt.s32.totalorder (!%p213_p3), %s1365_s26, 7 }
   0xc   : > { %v1620_v0 = vld [vmem:[%s2009_s1 + $0x18] sm:$0xff]  ;;  %v1619_v4 = vld [vmem:[%s2009_s1 + $0x10] sm:$0xff]  ;;  %s2025_s26 = smov (!%p254_p4, %s1365_s26), 7  ;;  %v1618_v8 = vld [vmem:[%s2009_s1 + $0x8] sm:$0xff]  ;;  %vm437_vm0 = vcmask 1041408   ;;  %vm441_vm1 = vcmask 1043458  }
   0xd   : > { %v1628_v1 = vld [vmem:[%s2009_s1 + $0x58] sm:$0xff]  ;;  %343 = vmatpush.bf16.msra.mxu0 %v1620_v0  ;;  %v1627_v5 = vld [vmem:[%s2009_s1 + $0x50] sm:$0xff]  ;;  %s1653_s14 = smul.u32 20, %s2025_s26  ;;  %v1626_v9 = vld [vmem:[%s2009_s1 + $0x48] sm:$0xff]  ;;  %vm463_vm2 = vsmask.f32 1280 }
   0xe   : > { %v1624_v2 = vld [vmem:[%s2009_s1 + $0x38] sm:$0xff]  ;;  %573 = vmatpush.bf16.msra.mxu2 %v1628_v1  ;;  %v1623_v6 = vld [vmem:[%s2009_s1 + $0x30] sm:$0xff]  ;;  %v1622_v10 = vld [vmem:[%s2009_s1 + $0x28] sm:$0xff]  ;;  %vm464_vm3 = vsmask.f32 3336  ;;  %vm336_vm6 = vcmask 523264  }
   0xf   : > { %v1632_v3 = vld [vmem:[%s2009_s1 + $0x78] sm:$0xff]  ;;  %413 = vmatpush.bf16.msra.mxu1 %v1624_v2  ;;  %v1631_v7 = vld [vmem:[%s2009_s1 + $0x70] sm:$0xff]  ;;  %s1787_s25 = scalar_lea.vmem %s2008_s0, %s1653_s14  ;;  %v1630_v11 = vld [vmem:[%s2009_s1 + $0x68] sm:$0xff]  ;;  %vm466_vm4 = vsmask.f32 5392  ;;  %s2027_s18 = smov (!%p261_p5, %s1693_s18), 1 }
  0x10   : > { %643 = vmatpush.bf16.msra.mxu3 %v1632_v3  ;;  %v288_v12 = vld [vmem:[%s1787_s25] sm:$0x3]  ;;  %v289_v13 = vld [vmem:[%s1787_s25 + $0x4] sm:$0x3]  ;;  %v290_v14 = vld [vmem:[%s1787_s25 + $0x8] sm:$0x3]  ;;  %s273_s24 = scalar_lea.vmem %s2012_s4, %s2027_s18  ;;  %s278_s26 = scalar_lea.vmem %s2013_s5, %s2027_s18 }
  0x11   : > { %344 = vmatpush.bf16.msra.mxu0 %v1619_v4  ;;  %v291_v15 = vld [vmem:[%s1787_s25 + $0xc] sm:$0x3]  ;;  %301 = vst [vmem:[#allocation1] ss:$4 sm:$0xff] %v288_v12  ;;  %v1617_v16 = vld [vmem:[%s2009_s1] sm:$0xff]  ;;  %v1636_v17 = vld [vmem:[%s2009_s1 + $0x98] sm:$0xff] }
  0x12   : > { %574 = vmatpush.bf16.msra.mxu2 %v1627_v5  ;;  %304 = vst [vmem:[#allocation1 + $0x1] ss:$4 sm:$0xff] %v289_v13  ;;  %v1625_v18 = vld [vmem:[%s2009_s1 + $0x40] sm:$0xff]  ;;  %v427_v23 = vld [vmem:[%s1787_s25 + $0x8] sm:$0x7]  ;;  %v1635_v28 = vld [vmem:[%s2009_s1 + $0x90] sm:$0xff] }
  0x13   : > { %414 = vmatpush.bf16.msra.mxu1 %v1623_v6  ;;  %307 = vst [vmem:[#allocation1 + $0x2] ss:$4 sm:$0xff] %v290_v14  ;;  %v1621_v19 = vld [vmem:[%s2009_s1 + $0x20] sm:$0xff]  ;;  %v428_v24 = vld [vmem:[%s1787_s25 + $0xc] sm:$0x7]  ;;  %v435_v27 = vrot.slane %v427_v23, 2  ;;  %vm1835_vm7 = vmor %vm463_vm2, %vm464_vm3 }
  0x14   : > { %644 = vmatpush.bf16.msra.mxu3 %v1631_v7  ;;  %v1629_v20 = vld [vmem:[%s2009_s1 + $0x60] sm:$0xff]  ;;  %310 = vst [vmem:[#allocation1 + $0x3] ss:$4 sm:$0xff] %v291_v15  ;;  %v436_v29 = vrot.slane %v428_v24, 2  ;;  %vm468_vm5 = vsmask.f32 7448  ;;  %vm1843_vm8 = vmor %vm1835_vm7, %vm466_vm4 }
  0x15   : > { %345 = vmatpush.bf16.msra.mxu0 %v1618_v8  ;;  %v425_v21 = vld [vmem:[%s1787_s25] sm:$0x7]  ;;  %v426_v22 = vld [vmem:[%s1787_s25 + $0x4] sm:$0x7]  ;;  %v1386_v32 = vld [vmem:[%s1787_s25 + $0x14] sm:$0x3]  ;;  %v454_v36 = vsel %vm441_vm1, %v427_v23, %v435_v27  ;;  %v453_v40 = vsel %vm437_vm0, %v427_v23, %v435_v27 }
  0x16   : > { %575 = vmatpush.bf16.msra.mxu2 %v1626_v9  ;;  %v433_v25 = vrot.slane %v425_v21, 2  ;;  %v434_v26 = vrot.slane %v426_v22, 2  ;;  %v1387_v37 = vld [vmem:[%s1787_s25 + $0x18] sm:$0x3]  ;;  %v1388_v38 = vld [vmem:[%s1787_s25 + $0x1c] sm:$0x3]  ;;  %v460_v41 = vsel %vm441_vm1, %v428_v24, %v436_v29  ;;  %v459_v47 = vsel %vm437_vm0, %v428_v24, %v436_v29  ;;  %vm1859_vm9 = vmor %vm1843_vm8, %vm468_vm5 }
  0x17   : > { %415 = vmatpush.bf16.msra.mxu1 %v1622_v10  ;;  %v1389_v42 = vld [vmem:[%s1787_s25 + $0x20] sm:$0x3]  ;;  %v456_v43 = vrot.slane %v454_v36, 2  ;;  %v462_v48 = vrot.slane %v460_v41, 2  ;;  %v496_v55 = vshrl.u32 %v453_v40, 16  ;;  %v499_v59 = vshll.u32 %v453_v40, 16 }
  0x18   : > { %645 = vmatpush.bf16.msra.mxu3 %v1630_v11  ;;  %v440_v30 = vsel %vm437_vm0, %v425_v21, %v433_v25  ;;  %v442_v31 = vsel %vm441_vm1, %v425_v21, %v433_v25  ;;  %v447_v34 = vsel %vm437_vm0, %v426_v22, %v434_v26  ;;  %v448_v35 = vsel %vm441_vm1, %v426_v22, %v434_v26  ;;  %v1634_v1 = vld [vmem:[%s2009_s1 + $0x88] sm:$0xff]  ;;  %v1640_v6 = vld [vmem:[%s2009_s1 + $0xb8] sm:$0xff]  ;;  %v1633_v10 = vld [vmem:[%s2009_s1 + $0x80] sm:$0xff] }
  0x19   : > { %346 = vmatpush.bf16.msra.mxu0 %v1617_v16  ;;  %v444_v33 = vrot.slane %v442_v31, 2  ;;  %v450_v39 = vrot.slane %v448_v35, 2  ;;  %v470_v44 = vshrl.u32 %v440_v30, 16  ;;  %v473_v45 = vshll.u32 %v440_v30, 16  ;;  %v1639_v16 = vld [vmem:[%s2009_s1 + $0xb0] sm:$0xff]  ;;  %v1644_v29 = vld [vmem:[%s2009_s1 + $0xd8] sm:$0xff] }
  0x1a   : > { %576 = vmatpush.bf16.msra.mxu2 %v1625_v18  ;;  %v483_v50 = vshrl.u32 %v447_v34, 16  ;;  %v486_v51 = vshll.u32 %v447_v34, 16  ;;  %v498_v62 = vrot.slane %v496_v55, 6  ;;  %v505_v63 = vshll.u32 %v456_v43, 16  ;;  %v1498_v26 = vld [vmem:[%s1787_s25 + $0x28] sm:$0x7] }
  0x1b   : > { %416 = vmatpush.bf16.msra.mxu1 %v1621_v19  ;;  %v311_v46 = vld.sshfl [vmem:[#allocation1] sm:$0xff pattern:$0x73625140]  ;;  %v472_v52 = vrot.slane %v470_v44, 6  ;;  %v475_v53 = vrot.slane %v473_v45, 7  ;;  %v479_v54 = vshll.u32 %v444_v33, 16 }
  0x1c   : > { %646 = vmatpush.bf16.msra.mxu3 %v1629_v20  ;;  %1385 = vmatmul.msk.bf16.vlgmr.msra.gmra.mxu0 %vm336_vm6, %v311_v46  ;;  %372 = vst [vmem:[#allocation1] ss:$4 sm:$0xff] %v1386_v32  ;;  %v485_v56 = vrot.slane %v483_v50, 6  ;;  %v488_v57 = vrot.slane %v486_v51, 7  ;;  %v492_v58 = vshll.u32 %v450_v39, 16  ;;  %v509_v0 = vshrl.u32 %v459_v47, 16 }
  0x1d   : > { %713 = vmatpush.bf16.msrb.mxu0 %v1636_v17  ;;  %375 = vst [vmem:[#allocation1 + $0x1] ss:$4 sm:$0xff] %v1387_v37  ;;  %v476_v61 = vor.u32 %v475_v53, %v472_v52  ;;  %v501_v3 = vrot.slane %v499_v59, 7  ;;  %v512_v4 = vshll.u32 %v459_v47, 16  ;;  %v518_v5 = vshll.u32 %v462_v48, 16  ;;  %v1637_v32 = vld [vmem:[%s2009_s1 + $0xa0] sm:$0xff] }
  0x1e   : > { %378 = vst [vmem:[#allocation1 + $0x2] ss:$4 sm:$0xff] %v1388_v38  ;;  %v489_v2 = vor.u32 %v488_v57, %v485_v56  ;;  %v481_v8 = vrot.slane %v479_v54, 7  ;;  %v511_v9 = vrot.slane %v509_v0, 6  ;;  %v494_v13 = vrot.slane %v492_v58, 7  ;;  %934 = vmatpush.bf16.msrb.mxu2 %v1644_v29  ;;  %v1643_v33 = vld [vmem:[%s2009_s1 + $0xd0] sm:$0xff] }
  0x1f   : > { %381 = vst [vmem:[#allocation1 + $0x3] ss:$4 sm:$0xff] %v1389_v42  ;;  %v477_v7 = vrot.slane %v476_v61, 2  ;;  %v502_v14 = vor.u32 %v501_v3, %v498_v62  ;;  %v514_v15 = vrot.slane %v512_v4, 7  ;;  %864 = vmatpush.bf16.msrb.mxu1 %v1640_v6  ;;  %v507_v17 = vrot.slane %v505_v63, 7  ;;  %v1648_v56 = vld [vmem:[%s2009_s1 + $0xf8] sm:$0xff] }
  0x20   : > { %v490_v12 = vrot.slane %v489_v2, 2  ;;  %v520_v20 = vrot.slane %v518_v5, 7  ;;  %v1499_v30 = vld [vmem:[%s1787_s25 + $0x2c] sm:$0x7]  ;;  %v1500_v31 = vld [vmem:[%s1787_s25 + $0x30] sm:$0x7]  ;;  %1004 = vmatpush.bf16.msrb.mxu3 %v1648_v56 }
  0x21   : > { %714 = vmatpush.bf16.msrb.mxu0 %v1635_v28  ;;  %v503_v18 = vrot.slane %v502_v14, 2  ;;  %v515_v19 = vor.u32 %v514_v15, %v511_v9  ;;  %v482_v21 = vsel %vm1859_vm9, %v477_v7, %v481_v8  ;;  %v1638_v28 = vld [vmem:[%s2009_s1 + $0xa8] sm:$0xff]  ;;  %v733_v34 = vrot.slane %v1498_v26, 2  ;;  %v1501_v37 = vld [vmem:[%s1787_s25 + $0x34] sm:$0x7]  ;;  %v1641_v63 = vld [vmem:[%s2009_s1 + $0xc0] sm:$0xff] }
  0x22   : > { %v495_v22 = vsel %vm1859_vm9, %v490_v12, %v494_v13  ;;  %v734_v35 = vrot.slane %v1499_v30, 2  ;;  %v735_v36 = vrot.slane %v1500_v31, 2  ;;  %935 = vmatpush.bf16.msrb.mxu2 %v1643_v33  ;;  %v1440_v40 = vld [vmem:[%s1787_s25 + $0x28] sm:$0x3]  ;;  %v1441_v41 = vld [vmem:[%s1787_s25 + $0x2c] sm:$0x3] }
  0x23   : > { %v516_v23 = vrot.slane %v515_v19, 2  ;;  %865 = vmatpush.bf16.msrb.mxu1 %v1639_v16  ;;  %v508_v25 = vsel %vm1859_vm9, %v503_v18, %v507_v17  ;;  %v739_v38 = vsel %vm437_vm0, %v1498_v26, %v733_v34  ;;  %v1442_v43 = vld [vmem:[%s1787_s25 + $0x30] sm:$0x3]  ;;  %v1443_v44 = vld [vmem:[%s1787_s25 + $0x34] sm:$0x3]  ;;  %v736_v45 = vrot.slane %v1501_v37, 2 }
  0x24   : > { %v745_v39 = vsel %vm437_vm0, %v1499_v30, %v734_v35  ;;  %v751_v42 = vsel %vm437_vm0, %v1500_v31, %v735_v36  ;;  %v740_v46 = vsel %vm441_vm1, %v1498_v26, %v733_v34  ;;  %v746_v47 = vsel %vm441_vm1, %v1499_v30, %v734_v35  ;;  %v1642_v57 = vld [vmem:[%s2009_s1 + $0xc8] sm:$0xff]  ;;  %v1647_v62 = vld [vmem:[%s2009_s1 + $0xf0] sm:$0xff]  ;;  %v1469_v15 = vld [vmem:[%s1787_s25 + $0x3c] sm:$0x3] }
  0x25   : > { %715 = vmatpush.bf16.msrb.mxu0 %v1634_v1  ;;  %v521_v27 = vsel %vm1859_vm9, %v516_v23, %v520_v20  ;;  %v761_v48 = vshrl.u32 %v739_v38, 16  ;;  %v752_v50 = vsel %vm441_vm1, %v1500_v31, %v735_v36  ;;  %v764_v51 = vshll.u32 %v739_v38, 16  ;;  %1005 = vmatpush.bf16.msrb.mxu3 %v1647_v62  ;;  %v1470_v16 = vld [vmem:[%s1787_s25 + $0x40] sm:$0x3]  ;;  %v1471_v19 = vld [vmem:[%s1787_s25 + $0x44] sm:$0x3] }
  0x26   : > { %v382_v24 = vld.sshfl [vmem:[#allocation1] sm:$0xff pattern:$0x73625140]  ;;  %v774_v52 = vshrl.u32 %v745_v39, 16  ;;  %v777_v53 = vshll.u32 %v745_v39, 16  ;;  %v787_v54 = vshrl.u32 %v751_v42, 16  ;;  %v757_v61 = vsel %vm437_vm0, %v1501_v37, %v736_v45  ;;  %936 = vmatpush.bf16.msrb.mxu2 %v1642_v57 }
  0x27   : > { %532 = vst [vmem:[#allocation1] ss:$4 sm:$0xff] %v482_v21  ;;  %1414 = vmatmul.msk.bf16.vlgmr.msra.gmra.mxu1 %vm336_vm6, %v382_v24  ;;  %v790_v55 = vshll.u32 %v751_v42, 16  ;;  %v742_v58 = vrot.slane %v740_v46, 2  ;;  %v748_v59 = vrot.slane %v746_v47, 2  ;;  %v754_v60 = vrot.slane %v752_v50, 2 }
  0x28   : > { %535 = vst [vmem:[#allocation1 + $0x1] ss:$4 sm:$0xff] %v495_v22  ;;  %866 = vmatpush.bf16.msrb.mxu1 %v1638_v28  ;;  %v758_v0 = vsel %vm441_vm1, %v1501_v37, %v736_v45  ;;  %v763_v1 = vrot.slane %v761_v48, 6  ;;  %v766_v2 = vrot.slane %v764_v51, 7  ;;  %v776_v3 = vrot.slane %v774_v52, 6  ;;  %v1646_v29 = vld [vmem:[%s2009_s1 + $0xe8] sm:$0xff] }
  0x29   : > { %716 = vmatpush.bf16.msrb.mxu0 %v1633_v10  ;;  %538 = vst [vmem:[#allocation1 + $0x2] ss:$4 sm:$0xff] %v508_v25  ;;  %v779_v4 = vrot.slane %v777_v53, 7  ;;  %v789_v5 = vrot.slane %v787_v54, 6  ;;  %v792_v6 = vrot.slane %v790_v55, 7  ;;  %v800_v7 = vshrl.u32 %v757_v61, 16  ;;  %1006 = vmatpush.bf16.msrb.mxu3 %v1646_v29 }
  0x2a   : > { %541 = vst [vmem:[#allocation1 + $0x3] ss:$4 sm:$0xff] %v521_v27  ;;  %v803_v8 = vshll.u32 %v757_v61, 16  ;;  %v770_v9 = vshll.u32 %v742_v58, 16  ;;  %v783_v10 = vshll.u32 %v748_v59, 16  ;;  %v796_v12 = vshll.u32 %v754_v60, 16  ;;  %937 = vmatpush.bf16.msrb.mxu2 %v1641_v63 }
  0x2b   : > { %v760_v13 = vrot.slane %v758_v0, 2  ;;  %v767_v14 = vor.u32 %v766_v2, %v763_v1  ;;  %v780_v17 = vor.u32 %v779_v4, %v776_v3  ;;  %v793_v18 = vor.u32 %v792_v6, %v789_v5  ;;  %v1472_v20 = vld [vmem:[%s1787_s25 + $0x48] sm:$0x3]  ;;  %v1652_v30 = vld [vmem:[%s2009_s1 + $0x118] sm:$0xff]  ;;  %v1585_v33 = vld [vmem:[%s1787_s25 + $0x4] sm:$0x7] }
  0x2c   : > { %867 = vmatpush.bf16.msrb.mxu1 %v1637_v32  ;;  %v802_v21 = vrot.slane %v800_v7, 6  ;;  %v805_v22 = vrot.slane %v803_v8, 7  ;;  %v772_v24 = vrot.slane %v770_v9, 7  ;;  %v785_v25 = vrot.slane %v783_v10, 7  ;;  %v1645_v35 = vld [vmem:[%s2009_s1 + $0xe0] sm:$0xff]  ;;  %v1651_v36 = vld [vmem:[%s2009_s1 + $0x110] sm:$0xff] }
  0x2d   : > { %v798_v26 = vrot.slane %v796_v12, 7  ;;  %v768_v27 = vrot.slane %v767_v14, 2  ;;  %v809_v28 = vshll.u32 %v760_v13, 16  ;;  %v781_v31 = vrot.slane %v780_v17, 2  ;;  %1155 = vmatpush.bf16.msra.mxu0 %v1652_v30  ;;  %v1586_v37 = vld [vmem:[%s1787_s25 + $0x8] sm:$0x7]  ;;  %1007 = vmatpush.bf16.msrb.mxu3 %v1645_v35 }
  0x2e   : > { %v794_v32 = vrot.slane %v793_v18, 2  ;;  %v806_v34 = vor.u32 %v805_v22, %v802_v21  ;;  %v1587_v38 = vld [vmem:[%s1787_s25 + $0xc] sm:$0x7]  ;;  %v1025_v42 = vrot.slane %v1586_v37, 2  ;;  %v1649_v29 = vld [vmem:[%s2009_s1 + $0x100] sm:$0xff] }
  0x2f   : > { %v811_v39 = vrot.slane %v809_v28, 7  ;;  %v786_v45 = vsel %vm1859_vm9, %v781_v31, %v785_v25  ;;  %v1650_v22 = vld [vmem:[%s2009_s1 + $0x108] sm:$0xff]  ;;  %v1527_v35 = vld [vmem:[%s1787_s25 + $0x4] sm:$0x3] }
  0x30   : > { %v799_v46 = vsel %vm1859_vm9, %v794_v32, %v798_v26  ;;  %v807_v48 = vrot.slane %v806_v34, 2  ;;  %v1036_v51 = vsel %vm437_vm0, %v1586_v37, %v1025_v42  ;;  %v1037_v53 = vsel %vm441_vm1, %v1586_v37, %v1025_v42 }
  0x31   : > { %v542_v49 = vld.sshfl [vmem:[#allocation1] sm:$0xff pattern:$0x73625140]  ;;  %1156 = vmatpush.bf16.msra.mxu0 %v1651_v36  ;;  %v1039_v56 = vrot.slane %v1037_v53, 2  ;;  %v1065_v2 = vshrl.u32 %v1036_v51, 16  ;;  %v1068_v3 = vshll.u32 %v1036_v51, 16 }
  0x32   : > { %1439 = vmatmul.msk.bf16.vlgmr.msra.gmra.mxu2 %vm336_vm6, %v542_v49  ;;  %602 = vst [vmem:[#allocation1] ss:$4 sm:$0xff] %v1440_v40  ;;  %v1588_v40 = vld [vmem:[%s1787_s25 + $0x10] sm:$0x7]  ;;  %v812_v1 = vsel %vm1859_vm9, %v807_v48, %v811_v39  ;;  %v1528_v36 = vld [vmem:[%s1787_s25 + $0x8] sm:$0x3] }
  0x33   : > { %605 = vst [vmem:[#allocation1 + $0x1] ss:$4 sm:$0xff] %v1441_v41  ;;  %v1024_v41 = vrot.slane %v1585_v33, 2  ;;  %v1027_v47 = vrot.slane %v1588_v40, 2  ;;  %v1074_v4 = vshll.u32 %v1039_v56, 16  ;;  %v1067_v9 = vrot.slane %v1065_v2, 6 }
  0x34   : > { %608 = vst [vmem:[#allocation1 + $0x2] ss:$4 sm:$0xff] %v1442_v43  ;;  %v1026_v43 = vrot.slane %v1587_v38, 2  ;;  %v1070_v10 = vrot.slane %v1068_v3, 7  ;;  %v1678_v51 = vld [vmem:[%s2010_s2] ss:$0 sm:$0xff] }
  0x35   : > { %611 = vst [vmem:[#allocation1 + $0x3] ss:$4 sm:$0xff] %v1443_v44  ;;  %v773_v44 = vsel %vm1859_vm9, %v768_v27, %v772_v24  ;;  %v1030_v49 = vsel %vm437_vm0, %v1585_v33, %v1024_v41  ;;  %v1031_v50 = vsel %vm441_vm1, %v1585_v33, %v1024_v41  ;;  %v1048_v58 = vsel %vm437_vm0, %v1588_v40, %v1027_v47  ;;  %v1530_v41 = vld [vmem:[%s1787_s25 + $0x10] sm:$0x3] }
  0x36   : > { %v1033_v52 = vrot.slane %v1031_v50, 2  ;;  %v1042_v54 = vsel %vm437_vm0, %v1587_v38, %v1026_v43  ;;  %v1043_v55 = vsel %vm441_vm1, %v1587_v38, %v1026_v43  ;;  %v1049_v59 = vsel %vm441_vm1, %v1588_v40, %v1027_v47  ;;  %1157 = vmatpush.bf16.msra.mxu0 %v1650_v22  ;;  %v1529_v40 = vld [vmem:[%s1787_s25 + $0xc] sm:$0x3]  ;;  %v1556_v43 = vld [vmem:[%s1787_s25 + $0x18] sm:$0x3] }
  0x37   : > { %v1045_v57 = vrot.slane %v1043_v55, 2  ;;  %v1051_v60 = vrot.slane %v1049_v59, 2  ;;  %v1052_v61 = vshrl.u32 %v1030_v49, 16  ;;  %v1055_v62 = vshll.u32 %v1030_v49, 16  ;;  %v1559_v47 = vld [vmem:[%s1787_s25 + $0x24] sm:$0x3] }
  0x38   : > { %v1061_v63 = vshll.u32 %v1033_v52, 16  ;;  %v1078_v8 = vshrl.u32 %v1042_v54, 16  ;;  %v1076_v12 = vrot.slane %v1074_v4, 7  ;;  %v1081_v13 = vshll.u32 %v1042_v54, 16 }
  0x39   : > { %v1054_v5 = vrot.slane %v1052_v61, 6  ;;  %v1057_v6 = vrot.slane %v1055_v62, 7  ;;  %v1091_v17 = vshrl.u32 %v1048_v58, 16  ;;  %v1071_v18 = vor.u32 %v1070_v10, %v1067_v9 }
  0x3a   : > { %v1063_v7 = vrot.slane %v1061_v63, 7  ;;  %v1100_v21 = vshll.u32 %v1051_v60, 16  ;;  %1158 = vmatpush.bf16.msra.mxu0 %v1649_v29 }
  0x3b   : > { %v1058_v14 = vor.u32 %v1057_v6, %v1054_v5  ;;  %v1093_v24 = vrot.slane %v1091_v17, 6  ;;  %v1072_v25 = vrot.slane %v1071_v18, 2 }
  0x3c   : > { %v612_v23 = vld.sshfl [vmem:[#allocation1] sm:$0xff pattern:$0x73625140]  ;;  %v1102_v34 = vrot.slane %v1100_v21, 7 }
  0x3d   : > { %1468 = vmatmul.msk.bf16.vlgmr.msra.gmra.mxu3 %vm336_vm6, %v612_v23  ;;  %672 = vst [vmem:[#allocation1] ss:$4 sm:$0xff] %v1469_v15  ;;  %v1080_v15 = vrot.slane %v1078_v8, 6  ;;  %v1059_v23 = vrot.slane %v1058_v14, 2  ;;  %v1077_v31 = vsel %vm1859_vm9, %v1072_v25, %v1076_v12 }
  0x3e   : > { %675 = vst [vmem:[#allocation1 + $0x1] ss:$4 sm:$0xff] %v1470_v16  ;;  %v1087_v16 = vshll.u32 %v1045_v57, 16 }
  0x3f   : > { %678 = vst [vmem:[#allocation1 + $0x2] ss:$4 sm:$0xff] %v1471_v19  ;;  %v1083_v19 = vrot.slane %v1081_v13, 7  ;;  %v1064_v30 = vsel %vm1859_vm9, %v1059_v23, %v1063_v7 }
  0x40   : > { %681 = vst [vmem:[#allocation1 + $0x3] ss:$4 sm:$0xff] %v1472_v20  ;;  %v1094_v20 = vshll.u32 %v1048_v58, 16  ;;  %v1089_v27 = vrot.slane %v1087_v16, 7 }
  0x41   : > { %v1084_v26 = vor.u32 %v1083_v19, %v1080_v15 }
  0x42   : > { %v1096_v28 = vrot.slane %v1094_v20, 7 }
  0x43   : > { %v1085_v32 = vrot.slane %v1084_v26, 2 }
  0x44   : > { %v1097_v33 = vor.u32 %v1096_v28, %v1093_v24 }
  0x45   : > { %v1090_v37 = vsel %vm1859_vm9, %v1085_v32, %v1089_v27 }
  0x46   : > { %v1098_v38 = vrot.slane %v1097_v33, 2 }
  0x47   : > { %v682_v0 = vld.sshfl [vmem:[#allocation1] sm:$0xff pattern:$0x73625140] }
  0x48   : > { %1497 = vmatmul.msk.bf16.vlgmr.msrb.gmra.mxu0 %vm336_vm6, %v682_v0  ;;  %823 = vst [vmem:[#allocation1] ss:$4 sm:$0xff] %v773_v44  ;;  %v1103_v42 = vsel %vm1859_vm9, %v1098_v38, %v1102_v34  ;;  %v1557_v44 = vld [vmem:[%s1787_s25 + $0x1c] sm:$0x3] }
  0x49   : > { %826 = vst [vmem:[#allocation1 + $0x1] ss:$4 sm:$0xff] %v786_v45 }
  0x4a   : > { %829 = vst [vmem:[#allocation1 + $0x2] ss:$4 sm:$0xff] %v799_v46  ;;  %v1558_v46 = vld [vmem:[%s1787_s25 + $0x20] sm:$0x3]  ;;  %s1616_s25 = sshll.u32 %s2027_s18, 4 }
  0x4b   : > { %832 = vst [vmem:[#allocation1 + $0x3] ss:$4 sm:$0xff] %v812_v1  ;;  %s268_s17 = scalar_lea.vmem %s2011_s3, %s1616_s25 }
  0x52   : > { %v833_v39 = vld.sshfl [vmem:[#allocation1] sm:$0xff pattern:$0x73625140] }
  0x53   : > { %1526 = vmatmul.msk.bf16.vlgmr.msrb.gmra.mxu1 %vm336_vm6, %v833_v39  ;;  %893 = vst [vmem:[#allocation1] ss:$4 sm:$0xff] %v1527_v35 }
  0x54   : > { %896 = vst [vmem:[#allocation1 + $0x1] ss:$4 sm:$0xff] %v1528_v36 }
  0x55   : > { %899 = vst [vmem:[#allocation1 + $0x2] ss:$4 sm:$0xff] %v1529_v40 }
  0x56   : > { %902 = vst [vmem:[#allocation1 + $0x3] ss:$4 sm:$0xff] %v1530_v41 }
  0x5d   : > { %v903_v45 = vld.sshfl [vmem:[#allocation1] sm:$0xff pattern:$0x73625140] }
  0x5e   : > { %1555 = vmatmul.msk.bf16.vlgmr.msrb.gmra.mxu2 %vm336_vm6, %v903_v45  ;;  %963 = vst [vmem:[#allocation1] ss:$4 sm:$0xff] %v1556_v43 }
  0x5f   : > { %966 = vst [vmem:[#allocation1 + $0x1] ss:$4 sm:$0xff] %v1557_v44 }
  0x60   : > { %969 = vst [vmem:[#allocation1 + $0x2] ss:$4 sm:$0xff] %v1558_v46 }
  0x61   : > { %972 = vst [vmem:[#allocation1 + $0x3] ss:$4 sm:$0xff] %v1559_v47 }
  0x68   : > { %v973_v48 = vld.sshfl [vmem:[#allocation1] sm:$0xff pattern:$0x73625140] }
  0x69   : > { %1584 = vmatmul.msk.bf16.vlgmr.msrb.gmra.mxu3 %vm336_vm6, %v973_v48  ;;  %1114 = vst [vmem:[#allocation1] ss:$4 sm:$0xff] %v1064_v30 }
  0x6a   : > { %1117 = vst [vmem:[#allocation1 + $0x1] ss:$4 sm:$0xff] %v1077_v31 }
  0x6b   : > { %1120 = vst [vmem:[#allocation1 + $0x2] ss:$4 sm:$0xff] %v1090_v37 }
  0x6c   : > { %1123 = vst [vmem:[#allocation1 + $0x3] ss:$4 sm:$0xff] %v1103_v42 }
  0x73   : > { %v1124_v11 = vld.sshfl [vmem:[#allocation1] sm:$0xff pattern:$0x73625140] }
  0x74   : > { %1613 = vmatmul.msk.bf16.vlgmr.msra.gmra.mxu0 %vm336_vm6, %v1124_v11 }
  0x99   : > { %v348_v49 = vpop.f32.mrf.mxu0 }
  0x9a   : > { %v353_v54 = vadd.f32 %v1678_v51, %v348_v49 }
  0xa1   : > { %v350_v52 = vpop.f32.mrf.mxu0 }
  0xa2   : > { %v354_v61 = vadd.f32 %v1678_v51, %v350_v52 }
  0xa4   : > { %v418_v50 = vpop.f32.mrf.mxu1 }
  0xa5   : > { %v423_v55 = vadd.f32 %v418_v50, %v353_v54 }
  0xac   : > { %v420_v57 = vpop.f32.mrf.mxu1 }
  0xad   : > { %v424_v63 = vadd.f32 %v420_v57, %v354_v61 }
  0xb5   : > { %v578_v53 = vpop.f32.mrf.mxu2 }
  0xb6   : > { %v583_v58 = vadd.f32 %v578_v53, %v423_v55 }
  0xbd   : > { %v580_v60 = vpop.f32.mrf.mxu2 }
  0xbe   : > { %v584_v4 = vadd.f32 %v580_v60, %v424_v63 }
  0xc0   : > { %v648_v56 = vpop.f32.mrf.mxu3 }
  0xc1   : > { %v653_v62 = vadd.f32 %v648_v56, %v583_v58 }
  0xc5   : > { %v718_v59 = vpop.f32.mrf.mxu0 }
  0xc6   : > { %v723_v2 = vadd.f32 %v718_v59, %v653_v62 }
  0xc8   : > { %v650_v0 = vpop.f32.mrf.mxu3 }
  0xc9   : > { %v654_v7 = vadd.f32 %v650_v0, %v584_v4 }
  0xcd   : > { %v720_v5 = vpop.f32.mrf.mxu0 }
  0xce   : > { %v724_v13 = vadd.f32 %v720_v5, %v654_v7 }
  0xd0   : > { %v869_v1 = vpop.f32.mrf.mxu1 }
  0xd1   : > { %v874_v6 = vadd.f32 %v869_v1, %v723_v2 }
  0xd8   : > { %v871_v12 = vpop.f32.mrf.mxu1 }
  0xd9   : > { %v875_v16 = vadd.f32 %v871_v12, %v724_v13 }
  0xe1   : > { %v939_v3 = vpop.f32.mrf.mxu2 }
  0xe2   : > { %v944_v8 = vadd.f32 %v939_v3, %v874_v6 }
  0xe9   : > { %v941_v14 = vpop.f32.mrf.mxu2 }
  0xea   : > { %v945_v18 = vadd.f32 %v941_v14, %v875_v16 }
  0xec   : > { %v1009_v9 = vpop.f32.mrf.mxu3 }
  0xed   : > { %v1014_v10 = vadd.f32 %v1009_v9, %v944_v8 }
  0xf1   : > { %v1160_v15 = vpop.f32.mrf.mxu0 }
  0xf2   : > { %v1165_v17 = vadd.f32 %v1160_v15, %v1014_v10 }
  0xf4   : > { %vm1167_vm10 = vcmp.ge.f32.partialorder %v1165_v17, 0.0  ;;  %v1169_v19 = vmul.f32 0.2, %v1165_v17  ;;  %v1011_v20 = vpop.f32.mrf.mxu3 }
  0xf5   : > { %v1015_v22 = vadd.f32 %v1011_v20, %v945_v18 }
  0xf6   : > { %v1171_v21 = vsel %vm1167_vm10, %v1165_v17, %v1169_v19 }
  0xf7   : > { %v1175_v23 = vrot.slane %v1171_v21, 4  ;;  %1179 = vst [vmem:[%s268_s17] sm:$0xf] %v1171_v21  ;;  %v1191_v28 = vmul.f32 %v1171_v21, %v1171_v21 }
  0xf9   : > { %1180 = vst [vmem:[%s268_s17 + $0x4] sm:$0xf] %v1175_v23  ;;  %v1162_v24 = vpop.f32.mrf.mxu0 }
  0xfa   : > { %v1166_v25 = vadd.f32 %v1162_v24, %v1015_v22 }
  0xfc   : > { %vm1168_vm11 = vcmp.ge.f32.partialorder %v1166_v25, 0.0  ;;  %v1170_v26 = vmul.f32 0.2, %v1166_v25 }
  0xfe   : > { %v1172_v27 = vsel %vm1168_vm11, %v1166_v25, %v1170_v26 }
  0xff   : > { %v1176_v29 = vrot.slane %v1172_v27, 4  ;;  %1181 = vst [vmem:[%s268_s17 + $0x8] sm:$0xf] %v1172_v27  ;;  %v1183_v30 = vadd.f32 %v1172_v27, %v1171_v21  ;;  %v1192_v31 = vmul.f32 %v1172_v27, %v1172_v27 }
 0x101   : > { %1182 = vst [vmem:[%s268_s17 + $0xc] sm:$0xf] %v1176_v29  ;;  %v1184_v32 = vrot.slane %v1183_v30, 4  ;;  %v1193_v33 = vadd.f32 %v1192_v31, %v1191_v28 }
 0x103   : > { %v1185_v34 = vadd.f32 %v1184_v32, %v1183_v30  ;;  %v1194_v35 = vrot.slane %v1193_v33, 4 }
 0x105   : > { %v1186_v36 = vrot.slane %v1185_v34, 2  ;;  %v1195_v37 = vadd.f32 %v1194_v35, %v1193_v33 }
 0x107   : > { %v1187_v38 = vadd.f32 %v1186_v36, %v1185_v34  ;;  %v1196_v39 = vrot.slane %v1195_v37, 2 }
 0x109   : > { %v1188_v40 = vrot.slane %v1187_v38, 1  ;;  %v1197_v41 = vadd.f32 %v1196_v39, %v1195_v37 }
 0x10b   : > { %v1189_v42 = vadd.f32 %v1188_v40, %v1187_v38  ;;  %v1198_v43 = vrot.slane %v1197_v41, 1 }
 0x10d   : > { %1190 = vst [vmem:[%s273_s24] sm:$0x1] %v1189_v42  ;;  %v1199_v44 = vadd.f32 %v1198_v43, %v1197_v41 }
 0x10f   : > { %1200 = vst [vmem:[%s278_s26] sm:$0x1] %v1199_v44 }
 0x110 PF: > { %s16_s20 = sadd.s32 1, %s1701_s20   ;;  %s2020_s18 = smov %s1697_s19 }
 0x111   : > { %p13_p6 = scmp.ge.s32.totalorder %s16_s20, 4   ;;  %s2021_s19 = smov %s2023_s21 }
 0x113   :  { %15 = sbr.rel (!%p13_p6) target bundleno = 2 (0x2), region = 127 }

// kernel: discriminator_forward.7
= control target key start
LH: loop header
LB: loop body
LE: loop exit
PB: predicated region body
PF: predicated region fallthrough
CT: control target
= control target key end

     0   :  { %s2882_s18 = smov 0   ;;  %s2884_s19 = smov 0   ;;  %s4024_s0 = inlined_call_operand.vmem [shape: bf16[8,3,3,128], index: 0, kind: input, shape index: {}]   ;;  %s4025_s1 = inlined_call_operand.vmem [shape: bf16[9,128,256], index: 1, kind: input, shape index: {}]   ;;  %s4026_s2 = inlined_call_operand.vmem [shape: f32[1,256], index: 2, kind: input, shape index: {}]   ;;  %s4027_s3 = inlined_call_operand.vmem [shape: f32[2,2,2,256], index: 3, kind: output, shape index: {0}]   ;;  %s4028_s4 = inlined_call_operand.vmem [shape: f32[2,1,256], index: 4, kind: output, shape index: {1}]   ;;  %s4029_s5 = inlined_call_operand.vmem [shape: f32[2,1,256], index: 5, kind: output, shape index: {2}]  }
   0x1   :  { %s2886_s20 = smov 0  }
   0x2 LB: > { %s28_s21 = sadd.s32 1, %s2846_s19  ;;  %p1925_p0 = scmp.ge.s32.totalorder %s2850_s20, 1  ;;  %s2850_s20 = sphi %s2886_s20, %s16_s20   ;;  %s2846_s19 = sphi %s2884_s19, %s4033_s19   ;;  %s2842_s18 = sphi %s2882_s18, %s4032_s18  }
   0x3   : > { %p30_p1 = scmp.ge.s32.totalorder %s28_s21, 2  ;;  %p212_p2 = scmp.lt.s32.totalorder %s2850_s20, 3 }
   0x5   : > { %s4035_s21 = smov (%p30_p1, %s28_s21), 0  ;;  %p213_p3 = pnand %p1925_p0, %p212_p2 }
   0x6   : > { %s1926_s10 = sshll.u32 (!%p213_p3), %s2842_s18, 2  ;;  %p264_p5 = scmp.lt.s32.totalorder (!%p213_p3), %s2842_s18, 1 }
   0x7   : > { %216 = sbr.rel (%p213_p3) target bundleno = 326 (0x146), region = 32  ;;  %p257_p4 = scmp.lt.s32.totalorder (!%p213_p3), %s1926_s10, 7 }
   0xc   : > { %v1990_v0 = vld [vmem:[%s4025_s1 + $0x70] sm:$0xf]  ;;  %v2674_v1 = vld [vmem:[%s4025_s1 + $0x74] sm:$0xf0]  ;;  %v2673_v2 = vld [vmem:[%s4025_s1 + $0x74] sm:$0xf] }
   0xd   : > { %v1991_v3 = vor.u32 %v2674_v1, %v1990_v0  ;;  %v1992_v4 = vld [vmem:[%s4025_s1 + $0x78] sm:$0xf0]  ;;  %v2072_v5 = vld [vmem:[%s4025_s1 + $0xf0] sm:$0xf]  ;;  %v2690_v6 = vld [vmem:[%s4025_s1 + $0xf4] sm:$0xf0] }
   0xe   : > { %v1995_v7 = vor.u32 %v2673_v2, %v1992_v4  ;;  %v2073_v8 = vor.u32 %v2690_v6, %v2072_v5  ;;  %v2689_v9 = vld [vmem:[%s4025_s1 + $0xf4] sm:$0xf]  ;;  %v2074_v10 = vld [vmem:[%s4025_s1 + $0xf8] sm:$0xf0]  ;;  %v1982_v11 = vld [vmem:[%s4025_s1 + $0x60] sm:$0xf] }
   0xf   : > { %400 = vmatpush.bf16.msra.mxu0 %v1991_v3  ;;  %v2077_v12 = vor.u32 %v2689_v9, %v2074_v10  ;;  %v2672_v13 = vld [vmem:[%s4025_s1 + $0x64] sm:$0xf0]  ;;  %v2671_v14 = vld [vmem:[%s4025_s1 + $0x64] sm:$0xf]  ;;  %v1984_v15 = vld [vmem:[%s4025_s1 + $0x68] sm:$0xf0] }
  0x10   : > { %413 = vmatpush.bf16.msra.mxu1 %v1995_v7  ;;  %537 = vmatpush.bf16.msra.mxu2 %v2073_v8  ;;  %v1983_v16 = vor.u32 %v2672_v13, %v1982_v11  ;;  %v1987_v17 = vor.u32 %v2671_v14, %v1984_v15  ;;  %v2064_v18 = vld [vmem:[%s4025_s1 + $0xe0] sm:$0xf]  ;;  %v2688_v19 = vld [vmem:[%s4025_s1 + $0xe4] sm:$0xf0]  ;;  %v2687_v20 = vld [vmem:[%s4025_s1 + $0xe4] sm:$0xf] }
  0x11   : > { %550 = vmatpush.bf16.msra.mxu3 %v2077_v12  ;;  %v2065_v21 = vor.u32 %v2688_v19, %v2064_v18  ;;  %v2066_v22 = vld [vmem:[%s4025_s1 + $0xe8] sm:$0xf0]  ;;  %v1974_v23 = vld [vmem:[%s4025_s1 + $0x50] sm:$0xf]  ;;  %v2670_v24 = vld [vmem:[%s4025_s1 + $0x54] sm:$0xf0] }
  0x12   : > { %v2069_v25 = vor.u32 %v2687_v20, %v2066_v22  ;;  %v2669_v26 = vld [vmem:[%s4025_s1 + $0x54] sm:$0xf]  ;;  %v1976_v27 = vld [vmem:[%s4025_s1 + $0x58] sm:$0xf0]  ;;  %v2056_v28 = vld [vmem:[%s4025_s1 + $0xd0] sm:$0xf]  ;;  %v1975_v29 = vor.u32 %v2670_v24, %v1974_v23 }
  0x13   : > { %401 = vmatpush.bf16.msra.mxu0 %v1983_v16  ;;  %v2686_v30 = vld [vmem:[%s4025_s1 + $0xd4] sm:$0xf0]  ;;  %v2685_v31 = vld [vmem:[%s4025_s1 + $0xd4] sm:$0xf]  ;;  %v2058_v32 = vld [vmem:[%s4025_s1 + $0xd8] sm:$0xf0]  ;;  %v1979_v33 = vor.u32 %v2669_v26, %v1976_v27 }
  0x14   : > { %414 = vmatpush.bf16.msra.mxu1 %v1987_v17  ;;  %538 = vmatpush.bf16.msra.mxu2 %v2065_v21  ;;  %v2057_v34 = vor.u32 %v2686_v30, %v2056_v28  ;;  %v1966_v35 = vld [vmem:[%s4025_s1 + $0x40] sm:$0xf]  ;;  %v2668_v36 = vld [vmem:[%s4025_s1 + $0x44] sm:$0xf0]  ;;  %v2667_v37 = vld [vmem:[%s4025_s1 + $0x44] sm:$0xf]  ;;  %v2061_v38 = vor.u32 %v2685_v31, %v2058_v32 }
  0x15   : > { %551 = vmatpush.bf16.msra.mxu3 %v2069_v25  ;;  %v1968_v39 = vld [vmem:[%s4025_s1 + $0x48] sm:$0xf0]  ;;  %v2048_v40 = vld [vmem:[%s4025_s1 + $0xc0] sm:$0xf]  ;;  %v2684_v41 = vld [vmem:[%s4025_s1 + $0xc4] sm:$0xf0]  ;;  %v1967_v44 = vor.u32 %v2668_v36, %v1966_v35 }
  0x16   : > { %v2683_v42 = vld [vmem:[%s4025_s1 + $0xc4] sm:$0xf]  ;;  %v2050_v43 = vld [vmem:[%s4025_s1 + $0xc8] sm:$0xf0]  ;;  %v1971_v45 = vor.u32 %v2667_v37, %v1968_v39  ;;  %v2049_v46 = vor.u32 %v2684_v41, %v2048_v40  ;;  %v1958_v47 = vld [vmem:[%s4025_s1 + $0x30] sm:$0xf] }
  0x17   : > { %402 = vmatpush.bf16.msra.mxu0 %v1975_v29  ;;  %v2666_v48 = vld [vmem:[%s4025_s1 + $0x34] sm:$0xf0]  ;;  %v2665_v49 = vld [vmem:[%s4025_s1 + $0x34] sm:$0xf]  ;;  %v2053_v50 = vor.u32 %v2683_v42, %v2050_v43  ;;  %v1960_v51 = vld [vmem:[%s4025_s1 + $0x38] sm:$0xf0] }
  0x18   : > { %415 = vmatpush.bf16.msra.mxu1 %v1979_v33  ;;  %539 = vmatpush.bf16.msra.mxu2 %v2057_v34  ;;  %v2040_v52 = vld [vmem:[%s4025_s1 + $0xb0] sm:$0xf]  ;;  %v2682_v53 = vld [vmem:[%s4025_s1 + $0xb4] sm:$0xf0]  ;;  %v2681_v54 = vld [vmem:[%s4025_s1 + $0xb4] sm:$0xf]  ;;  %v1959_v56 = vor.u32 %v2666_v48, %v1958_v47  ;;  %v1963_v57 = vor.u32 %v2665_v49, %v1960_v51 }
  0x19   : > { %552 = vmatpush.bf16.msra.mxu3 %v2061_v38  ;;  %v2042_v55 = vld [vmem:[%s4025_s1 + $0xb8] sm:$0xf0]  ;;  %v2041_v58 = vor.u32 %v2682_v53, %v2040_v52  ;;  %v1950_v59 = vld [vmem:[%s4025_s1 + $0x20] sm:$0xf]  ;;  %v2664_v60 = vld [vmem:[%s4025_s1 + $0x24] sm:$0xf0] }
  0x1a   : > { %v2663_v61 = vld [vmem:[%s4025_s1 + $0x24] sm:$0xf]  ;;  %v2045_v62 = vor.u32 %v2681_v54, %v2042_v55  ;;  %v1952_v63 = vld [vmem:[%s4025_s1 + $0x28] sm:$0xf0]  ;;  %v2032_v0 = vld [vmem:[%s4025_s1 + $0xa0] sm:$0xf]  ;;  %v1951_v4 = vor.u32 %v2664_v60, %v1950_v59 }
  0x1b   : > { %403 = vmatpush.bf16.msra.mxu0 %v1967_v44  ;;  %v2680_v1 = vld [vmem:[%s4025_s1 + $0xa4] sm:$0xf0]  ;;  %v2679_v2 = vld [vmem:[%s4025_s1 + $0xa4] sm:$0xf]  ;;  %v2034_v3 = vld [vmem:[%s4025_s1 + $0xa8] sm:$0xf0]  ;;  %v1955_v5 = vor.u32 %v2663_v61, %v1952_v63 }
  0x1c   : > { %416 = vmatpush.bf16.msra.mxu1 %v1971_v45  ;;  %540 = vmatpush.bf16.msra.mxu2 %v2049_v46  ;;  %v2033_v6 = vor.u32 %v2680_v1, %v2032_v0  ;;  %v1942_v7 = vld [vmem:[%s4025_s1 + $0x10] sm:$0xf]  ;;  %v2662_v8 = vld [vmem:[%s4025_s1 + $0x14] sm:$0xf0]  ;;  %v2661_v9 = vld [vmem:[%s4025_s1 + $0x14] sm:$0xf]  ;;  %v2037_v10 = vor.u32 %v2679_v2, %v2034_v3 }
  0x1d   : > { %553 = vmatpush.bf16.msra.mxu3 %v2053_v50  ;;  %v1944_v11 = vld [vmem:[%s4025_s1 + $0x18] sm:$0xf0]  ;;  %v2024_v12 = vld [vmem:[%s4025_s1 + $0x90] sm:$0xf]  ;;  %v2678_v13 = vld [vmem:[%s4025_s1 + $0x94] sm:$0xf0]  ;;  %v1943_v16 = vor.u32 %v2662_v8, %v1942_v7 }
  0x1e   : > { %v2677_v14 = vld [vmem:[%s4025_s1 + $0x94] sm:$0xf]  ;;  %v2026_v15 = vld [vmem:[%s4025_s1 + $0x98] sm:$0xf0]  ;;  %v1934_v17 = vld [vmem:[%s4025_s1] sm:$0xf]  ;;  %v1947_v19 = vor.u32 %v2661_v9, %v1944_v11  ;;  %v2025_v20 = vor.u32 %v2678_v13, %v2024_v12 }
  0x1f   : > { %404 = vmatpush.bf16.msra.mxu0 %v1959_v56  ;;  %v2660_v18 = vld [vmem:[%s4025_s1 + $0x4] sm:$0xf0]  ;;  %v2659_v21 = vld [vmem:[%s4025_s1 + $0x4] sm:$0xf]  ;;  %v1936_v22 = vld [vmem:[%s4025_s1 + $0x8] sm:$0xf0]  ;;  %v2029_v24 = vor.u32 %v2677_v14, %v2026_v15 }
  0x20   : > { %417 = vmatpush.bf16.msra.mxu1 %v1963_v57  ;;  %541 = vmatpush.bf16.msra.mxu2 %v2041_v58  ;;  %v2016_v23 = vld [vmem:[%s4025_s1 + $0x80] sm:$0xf]  ;;  %v2676_v25 = vld [vmem:[%s4025_s1 + $0x84] sm:$0xf0]  ;;  %v2675_v26 = vld [vmem:[%s4025_s1 + $0x84] sm:$0xf]  ;;  %v1935_v31 = vor.u32 %v2660_v18, %v1934_v17  ;;  %v1939_v35 = vor.u32 %v2659_v21, %v1936_v22 }
  0x21   : > { %554 = vmatpush.bf16.msra.mxu3 %v2045_v62  ;;  %v2018_v27 = vld [vmem:[%s4025_s1 + $0x88] sm:$0xf0]  ;;  %v2154_v28 = vld [vmem:[%s4025_s1 + $0x170] sm:$0xf]  ;;  %v2706_v29 = vld [vmem:[%s4025_s1 + $0x174] sm:$0xf0]  ;;  %v2017_v36 = vor.u32 %v2676_v25, %v2016_v23 }
  0x22   : > { %v2705_v30 = vld [vmem:[%s4025_s1 + $0x174] sm:$0xf]  ;;  %v2156_v32 = vld [vmem:[%s4025_s1 + $0x178] sm:$0xf0]  ;;  %v2236_v33 = vld [vmem:[%s4025_s1 + $0x1f0] sm:$0xf]  ;;  %v2021_v39 = vor.u32 %v2675_v26, %v2018_v27  ;;  %v2155_v40 = vor.u32 %v2706_v29, %v2154_v28 }
  0x23   : > { %405 = vmatpush.bf16.msra.mxu0 %v1951_v4  ;;  %v2722_v34 = vld [vmem:[%s4025_s1 + $0x1f4] sm:$0xf0]  ;;  %v2721_v37 = vld [vmem:[%s4025_s1 + $0x1f4] sm:$0xf]  ;;  %v2238_v38 = vld [vmem:[%s4025_s1 + $0x1f8] sm:$0xf0]  ;;  %v2159_v41 = vor.u32 %v2705_v30, %v2156_v32 }
  0x24   : > { %418 = vmatpush.bf16.msra.mxu1 %v1955_v5  ;;  %542 = vmatpush.bf16.msra.mxu2 %v2033_v6  ;;  %v2237_v42 = vor.u32 %v2722_v34, %v2236_v33  ;;  %v2146_v43 = vld [vmem:[%s4025_s1 + $0x160] sm:$0xf]  ;;  %v2704_v44 = vld [vmem:[%s4025_s1 + $0x164] sm:$0xf0]  ;;  %v2703_v45 = vld [vmem:[%s4025_s1 + $0x164] sm:$0xf]  ;;  %v2241_v46 = vor.u32 %v2721_v37, %v2238_v38 }
  0x25   : > { %555 = vmatpush.bf16.msra.mxu3 %v2037_v10  ;;  %v2148_v47 = vld [vmem:[%s4025_s1 + $0x168] sm:$0xf0]  ;;  %v2228_v48 = vld [vmem:[%s4025_s1 + $0x1e0] sm:$0xf]  ;;  %v2720_v49 = vld [vmem:[%s4025_s1 + $0x1e4] sm:$0xf0]  ;;  %v2147_v52 = vor.u32 %v2704_v44, %v2146_v43 }
  0x26   : > { %v2719_v50 = vld [vmem:[%s4025_s1 + $0x1e4] sm:$0xf]  ;;  %v2230_v51 = vld [vmem:[%s4025_s1 + $0x1e8] sm:$0xf0]  ;;  %v2138_v53 = vld [vmem:[%s4025_s1 + $0x150] sm:$0xf]  ;;  %v2151_v54 = vor.u32 %v2703_v45, %v2148_v47  ;;  %v2229_v55 = vor.u32 %v2720_v49, %v2228_v48 }
  0x27   : > { %406 = vmatpush.bf16.msra.mxu0 %v1943_v16  ;;  %v2702_v56 = vld [vmem:[%s4025_s1 + $0x154] sm:$0xf0]  ;;  %v2701_v57 = vld [vmem:[%s4025_s1 + $0x154] sm:$0xf]  ;;  %v2140_v58 = vld [vmem:[%s4025_s1 + $0x158] sm:$0xf0]  ;;  %v2233_v59 = vor.u32 %v2719_v50, %v2230_v51 }
  0x28   : > { %419 = vmatpush.bf16.msra.mxu1 %v1947_v19  ;;  %543 = vmatpush.bf16.msra.mxu2 %v2025_v20  ;;  %v2220_v60 = vld [vmem:[%s4025_s1 + $0x1d0] sm:$0xf]  ;;  %v2718_v61 = vld [vmem:[%s4025_s1 + $0x1d4] sm:$0xf0]  ;;  %s4037_s10 = smov (!%p257_p4, %s1926_s10), 7  ;;  %v2139_v0 = vor.u32 %v2702_v56, %v2138_v53  ;;  %v2143_v3 = vor.u32 %v2701_v57, %v2140_v58  ;;  %vm575_vm0 = vcmask 1040384  }
  0x29   : > { %556 = vmatpush.bf16.msra.mxu3 %v2029_v24  ;;  %v2717_v62 = vld [vmem:[%s4025_s1 + $0x1d4] sm:$0xf]  ;;  %v2222_v63 = vld [vmem:[%s4025_s1 + $0x1d8] sm:$0xf0]  ;;  %v2130_v1 = vld [vmem:[%s4025_s1 + $0x140] sm:$0xf]  ;;  %v2221_v4 = vor.u32 %v2718_v61, %v2220_v60 }
  0x2a   : > { %v2700_v2 = vld [vmem:[%s4025_s1 + $0x144] sm:$0xf0]  ;;  %s2803_s11 = smul.u32 6, %s4037_s10  ;;  %v2699_v5 = vld [vmem:[%s4025_s1 + $0x144] sm:$0xf]  ;;  %v2225_v8 = vor.u32 %v2717_v62, %v2222_v63  ;;  %vm579_vm1 = vcmask 1042434  }
  0x2b   : > { %407 = vmatpush.bf16.msra.mxu0 %v1935_v31  ;;  %v2132_v6 = vld [vmem:[%s4025_s1 + $0x148] sm:$0xf0]  ;;  %v2212_v7 = vld [vmem:[%s4025_s1 + $0x1c0] sm:$0xf]  ;;  %v2716_v9 = vld [vmem:[%s4025_s1 + $0x1c4] sm:$0xf0]  ;;  %v2131_v16 = vor.u32 %v2700_v2, %v2130_v1 }
  0x2c   : > { %420 = vmatpush.bf16.msra.mxu1 %v1939_v35  ;;  %544 = vmatpush.bf16.msra.mxu2 %v2017_v36  ;;  %v2715_v10 = vld [vmem:[%s4025_s1 + $0x1c4] sm:$0xf]  ;;  %v2214_v11 = vld [vmem:[%s4025_s1 + $0x1c8] sm:$0xf0]  ;;  %s3194_s29 = scalar_lea.vmem %s4024_s0, %s2803_s11  ;;  %v2122_v14 = vld [vmem:[%s4025_s1 + $0x130] sm:$0xf]  ;;  %v2135_v21 = vor.u32 %v2699_v5, %v2132_v6  ;;  %v2213_v22 = vor.u32 %v2716_v9, %v2212_v7 }
  0x2d   : > { %557 = vmatpush.bf16.msra.mxu3 %v2021_v39  ;;  %v295_v12 = vld [vmem:[%s3194_s29] sm:$0x1]  ;;  %v296_v13 = vld [vmem:[%s3194_s29 + $0x2] sm:$0x1]  ;;  %v2698_v15 = vld [vmem:[%s4025_s1 + $0x134] sm:$0xf0]  ;;  %v2217_v26 = vor.u32 %v2715_v10, %v2214_v11 }
  0x2e   : > { %314 = vst [vmem:[#allocation1] ss:$9 sm:$0xff] %v295_v12  ;;  %v2697_v17 = vld [vmem:[%s4025_s1 + $0x134] sm:$0xf]  ;;  %v2124_v18 = vld [vmem:[%s4025_s1 + $0x138] sm:$0xf0]  ;;  %v2123_v33 = vor.u32 %v2698_v15, %v2122_v14 }
  0x2f   : > { %740 = vmatpush.bf16.msrb.mxu0 %v2155_v40  ;;  %v2204_v19 = vld [vmem:[%s4025_s1 + $0x1b0] sm:$0xf]  ;;  %v2714_v20 = vld [vmem:[%s4025_s1 + $0x1b4] sm:$0xf0]  ;;  %317 = vst [vmem:[#allocation1 + $0x1] ss:$9 sm:$0xff] %v296_v13  ;;  %v2127_v37 = vor.u32 %v2697_v17, %v2124_v18 }
  0x30   : > { %753 = vmatpush.bf16.msrb.mxu1 %v2159_v41  ;;  %877 = vmatpush.bf16.msrb.mxu2 %v2237_v42  ;;  %v2713_v23 = vld [vmem:[%s4025_s1 + $0x1b4] sm:$0xf]  ;;  %v2206_v24 = vld [vmem:[%s4025_s1 + $0x1b8] sm:$0xf0]  ;;  %v3225_v25 = vld [vmem:[%s4025_s1 + $0x120] sm:$0xf]  ;;  %v2205_v38 = vor.u32 %v2714_v20, %v2204_v19 }
  0x31   : > { %890 = vmatpush.bf16.msrb.mxu3 %v2241_v46  ;;  %v3230_v27 = vld [vmem:[%s4025_s1 + $0x124] sm:$0xf0]  ;;  %v3235_v28 = vld [vmem:[%s4025_s1 + $0x124] sm:$0xf]  ;;  %v3240_v29 = vld [vmem:[%s4025_s1 + $0x128] sm:$0xf0]  ;;  %v2209_v43 = vor.u32 %v2713_v23, %v2206_v24 }
  0x32   : > { %v3245_v30 = vld [vmem:[%s4025_s1 + $0x1a0] sm:$0xf]  ;;  %v3250_v31 = vld [vmem:[%s4025_s1 + $0x1a4] sm:$0xf0]  ;;  %v3255_v32 = vld [vmem:[%s4025_s1 + $0x1a4] sm:$0xf]  ;;  %v2115_v44 = vor.u32 %v3230_v27, %v3225_v25  ;;  %v2119_v45 = vor.u32 %v3235_v28, %v3240_v29 }
  0x33   : > { %741 = vmatpush.bf16.msrb.mxu0 %v2147_v52  ;;  %v3260_v34 = vld [vmem:[%s4025_s1 + $0x1a8] sm:$0xf0]  ;;  %v3265_v35 = vld [vmem:[%s4025_s1 + $0x110] sm:$0xf]  ;;  %v3270_v36 = vld [vmem:[%s4025_s1 + $0x114] sm:$0xf0]  ;;  %v2197_v46 = vor.u32 %v3250_v31, %v3245_v30 }
  0x34   : > { %754 = vmatpush.bf16.msrb.mxu1 %v2151_v54  ;;  %878 = vmatpush.bf16.msrb.mxu2 %v2229_v55  ;;  %v3275_v39 = vld [vmem:[%s4025_s1 + $0x114] sm:$0xf]  ;;  %v3280_v40 = vld [vmem:[%s4025_s1 + $0x118] sm:$0xf0]  ;;  %v1996_v41 = vld [vmem:[%s3194_s29 + $0x6] sm:$0x1]  ;;  %v2201_v47 = vor.u32 %v3255_v32, %v3260_v34  ;;  %v2107_v48 = vor.u32 %v3270_v36, %v3265_v35 }
  0x35   : > { %891 = vmatpush.bf16.msrb.mxu3 %v2233_v59  ;;  %v1997_v42 = vld [vmem:[%s3194_s29 + $0x8] sm:$0x1]  ;;  %vm583_vm2 = vcmask 1041408   ;;  %vm585_vm3 = vcmask 1041409   ;;  %v3297_v49 = vld [vmem:[%s4025_s1 + $0x190] sm:$0xf]  ;;  %v2111_v53 = vor.u32 %v3275_v39, %v3280_v40 }
  0x36   : > { %v3302_v50 = vld [vmem:[%s4025_s1 + $0x194] sm:$0xf0]  ;;  %v565_v51 = vld [vmem:[%s3194_s29] sm:$0x3]  ;;  %v566_v54 = vld [vmem:[%s3194_s29 + $0x2] sm:$0x3] }
  0x37   : > { %742 = vmatpush.bf16.msrb.mxu0 %v2139_v0  ;;  %v318_v52 = vld [vmem:[#allocation1] sm:$0xff]  ;;  %v569_v55 = vrot.slane %v565_v51, 1  ;;  %v570_v56 = vrot.slane %v565_v51, 2  ;;  %v571_v57 = vrot.slane %v565_v51, 3  ;;  %v572_v58 = vrot.slane %v566_v54, 1  ;;  %s4039_s18 = smov (!%p264_p5, %s2842_s18), 1 }
  0x38   : > { %755 = vmatpush.bf16.msrb.mxu1 %v2143_v3  ;;  %879 = vmatpush.bf16.msrb.mxu2 %v2221_v4  ;;  %451 = vst [vmem:[#allocation1] ss:$9 sm:$0xff] %v1996_v41  ;;  %v573_v59 = vrot.slane %v566_v54, 2  ;;  %v574_v60 = vrot.slane %v566_v54, 3  ;;  %vm587_vm4 = vcmask 1043459   ;;  %vm589_vm5 = vcmask 1042433  }
  0x39   : > { %892 = vmatpush.bf16.msrb.mxu3 %v2225_v8  ;;  %454 = vst [vmem:[#allocation1 + $0x1] ss:$9 sm:$0xff] %v1997_v42  ;;  %421 = vmatmul.bf16.vlgmr.msra.gmra.mxu1 %v318_v52  ;;  %v3311_v61 = vld [vmem:[%s4025_s1 + $0x194] sm:$0xf]  ;;  %v3316_v62 = vld [vmem:[%s4025_s1 + $0x198] sm:$0xf0]  ;;  %v578_v63 = vsel %vm575_vm0, %v565_v51, %v569_v55  ;;  %v582_v0 = vsel %vm579_vm1, %v570_v56, %v571_v57 }
  0x3a   : > { %v586_v1 = vsel %vm585_vm3, %v565_v51, %v569_v55  ;;  %408 = vmatmul.bf16.vlgmr.msra.gmra.mxu0 %v318_v52  ;;  %v2189_v2 = vor.u32 %v3302_v50, %v3297_v49  ;;  %v3326_v3 = vld [vmem:[%s4025_s1 + $0x100] sm:$0xf]  ;;  %v3331_v4 = vld [vmem:[%s4025_s1 + $0x104] sm:$0xf0]  ;;  %v3336_v5 = vld [vmem:[%s4025_s1 + $0x104] sm:$0xf]  ;;  %v588_v6 = vsel %vm587_vm4, %v570_v56, %v571_v57  ;;  %v595_v7 = vsel %vm575_vm0, %v566_v54, %v572_v58 }
  0x3b   : > { %743 = vmatpush.bf16.msrb.mxu0 %v2131_v16  ;;  %v598_v8 = vsel %vm579_vm1, %v573_v59, %v574_v60  ;;  %v3344_v9 = vld [vmem:[%s4025_s1 + $0x108] sm:$0xf0]  ;;  %v3349_v10 = vld [vmem:[%s4025_s1 + $0x180] sm:$0xf]  ;;  %v3354_v11 = vld [vmem:[%s4025_s1 + $0x184] sm:$0xf0]  ;;  %v3357_v12 = vsel %vm583_vm2, %v578_v63, %v582_v0  ;;  %v590_v13 = vsel %vm589_vm5, %v586_v1, %v588_v6  ;;  %v600_v14 = vsel %vm585_vm3, %v566_v54, %v572_v58 }
  0x3c   : > { %756 = vmatpush.bf16.msrb.mxu1 %v2135_v21  ;;  %880 = vmatpush.bf16.msrb.mxu2 %v2213_v22  ;;  %v601_v15 = vsel %vm587_vm4, %v573_v59, %v574_v60  ;;  %v3365_v16 = vld [vmem:[%s4025_s1 + $0x270] sm:$0xf]  ;;  %v2738_v17 = vld [vmem:[%s4025_s1 + $0x274] sm:$0xf0]  ;;  %v2737_v18 = vld [vmem:[%s4025_s1 + $0x274] sm:$0xf]  ;;  %v2193_v28 = vor.u32 %v3311_v61, %v3316_v62  ;;  %v2099_v29 = vor.u32 %v3331_v4, %v3326_v3 }
  0x3d   : > { %893 = vmatpush.bf16.msrb.mxu3 %v2217_v26  ;;  %v2320_v19 = vld [vmem:[%s4025_s1 + $0x278] sm:$0xf0]  ;;  %v592_v20 = vrot.slane %v590_v13, 1  ;;  %v602_v21 = vsel %vm589_vm5, %v600_v14, %v601_v15  ;;  %vm605_vm6 = vsmask.f32 256  ;;  %v599_v26 = vsel %vm583_vm2, %v595_v7, %v598_v8  ;;  %s1930_s12 = sshll.u32 %s4039_s18, 1 }
  0x3e   : > { %vm606_vm7 = vsmask.f32 1284  ;;  %v2707_v22 = vld [vmem:[%s4025_s1 + $0x184] sm:$0xf]  ;;  %v2182_v23 = vld [vmem:[%s4025_s1 + $0x188] sm:$0xf0]  ;;  %v2103_v31 = vor.u32 %v3336_v5, %v3344_v9  ;;  %v2181_v32 = vor.u32 %v3354_v11, %v3349_v10  ;;  %v2319_v41 = vor.u32 %v2738_v17, %v3365_v16  ;;  %s278_s14 = scalar_lea.vmem %s4028_s4, %s1930_s12 }
  0x3f   : > { %744 = vmatpush.bf16.msrb.mxu0 %v2123_v33  ;;  %v2402_v24 = vld [vmem:[%s4025_s1 + $0x2f0] sm:$0xf]  ;;  %v2754_v25 = vld [vmem:[%s4025_s1 + $0x2f4] sm:$0xf0]  ;;  %v604_v27 = vrot.slane %v602_v21, 1  ;;  %vm607_vm8 = vmor %vm605_vm6, %vm606_vm7  ;;  %v620_v34 = vshrl.u32 %v3357_v12, 16  ;;  %v2323_v42 = vor.u32 %v2737_v18, %v2320_v19  ;;  %v2185_v40 = vor.u32 %v2707_v22, %v2182_v23 }
  0x40   : > { %757 = vmatpush.bf16.msrb.mxu1 %v2127_v37  ;;  %881 = vmatpush.bf16.msrb.mxu2 %v2205_v38  ;;  %vm608_vm9 = vsmask.f32 2312  ;;  %vm610_vm10 = vsmask.f32 3340  ;;  %v2753_v30 = vld [vmem:[%s4025_s1 + $0x2f4] sm:$0xf] }
  0x41   : > { %894 = vmatpush.bf16.msrb.mxu3 %v2209_v43  ;;  %vm609_vm11 = vmor %vm607_vm8, %vm608_vm9  ;;  %vm612_vm12 = vsmask.f32 4368  ;;  %vm614_vm13 = vsmask.f32 5396  ;;  %v2404_v33 = vld [vmem:[%s4025_s1 + $0x2f8] sm:$0xf0] }
  0x42   : > { %vm611_vm14 = vmor %vm609_vm11, %vm610_vm10  ;;  %vm616_vm15 = vsmask.f32 6424  ;;  %v455_v37 = vld [vmem:[#allocation1] sm:$0xff]  ;;  %vm618_vm7 = vsmask.f32 7452  ;;  %v625_v35 = vshll.u32 %v592_v20, 16 }
  0x43   : > { %745 = vmatpush.bf16.msrb.mxu0 %v2115_v44  ;;  %vm613_vm6 = vmor %vm611_vm14, %vm612_vm12  ;;  %v628_v36 = vshrl.u32 %v599_v26, 16  ;;  %v633_v38 = vshll.u32 %v604_v27, 16  ;;  %545 = vmatmul.bf16.vlgmr.msra.gmra.mxu2 %v455_v37  ;;  %v2310_v43 = vld [vmem:[%s4025_s1 + $0x260] sm:$0xf]  ;;  %v2736_v39 = vld [vmem:[%s4025_s1 + $0x264] sm:$0xf0]  ;;  %v2403_v44 = vor.u32 %v2754_v25, %v2402_v24 }
  0x44   : > { %758 = vmatpush.bf16.msrb.mxu1 %v2119_v45  ;;  %882 = vmatpush.bf16.msrb.mxu2 %v2197_v46  ;;  %vm615_vm8 = vmor %vm613_vm6, %vm614_vm13  ;;  %v2735_v45 = vld [vmem:[%s4025_s1 + $0x264] sm:$0xf]  ;;  %v2312_v46 = vld [vmem:[%s4025_s1 + $0x268] sm:$0xf0]  ;;  %v2311_v55 = vor.u32 %v2736_v39, %v2310_v43 }
  0x45   : > { %895 = vmatpush.bf16.msrb.mxu3 %v2201_v47  ;;  %vm617_vm9 = vmor %vm615_vm8, %vm616_vm15  ;;  %v2407_v47 = vor.u32 %v2753_v30, %v2404_v33  ;;  %v2394_v49 = vld [vmem:[%s4025_s1 + $0x2e0] sm:$0xf]  ;;  %v2752_v50 = vld [vmem:[%s4025_s1 + $0x2e4] sm:$0xf0]  ;;  %v2315_v56 = vor.u32 %v2735_v45, %v2312_v46 }
  0x46   : > { %558 = vmatmul.bf16.vlgmr.msra.gmra.mxu3 %v455_v37  ;;  %vm3427_vm10 = vmor %vm617_vm9, %vm618_vm7  ;;  %v2396_v54 = vld [vmem:[%s4025_s1 + $0x2e8] sm:$0xf0]  ;;  %v2302_v57 = vld [vmem:[%s4025_s1 + $0x250] sm:$0xf]  ;;  %v2395_v59 = vor.u32 %v2752_v50, %v2394_v49 }
  0x47   : > { %746 = vmatpush.bf16.msrb.mxu0 %v2107_v48  ;;  %v627_v51 = vsel %vm3427_vm10, %v620_v34, %v625_v35  ;;  %v635_v52 = vsel %vm3427_vm10, %v628_v36, %v633_v38  ;;  %v2734_v58 = vld [vmem:[%s4025_s1 + $0x254] sm:$0xf0]  ;;  %v2733_v60 = vld [vmem:[%s4025_s1 + $0x254] sm:$0xf]  ;;  %v2304_v61 = vld [vmem:[%s4025_s1 + $0x258] sm:$0xf0] }
  0x48   : > { %759 = vmatpush.bf16.msrb.mxu1 %v2111_v53  ;;  %883 = vmatpush.bf16.msrb.mxu2 %v2189_v2  ;;  %v2751_v53 = vld [vmem:[%s4025_s1 + $0x2e4] sm:$0xf]  ;;  %654 = vst [vmem:[#allocation1] ss:$9 sm:$0xff] %v627_v51  ;;  %v2386_v63 = vld [vmem:[%s4025_s1 + $0x2d0] sm:$0xf]  ;;  %v2303_v3 = vor.u32 %v2734_v58, %v2302_v57  ;;  %v2307_v4 = vor.u32 %v2733_v60, %v2304_v61 }
  0x49   : > { %896 = vmatpush.bf16.msrb.mxu3 %v2193_v28  ;;  %657 = vst [vmem:[#allocation1 + $0x1] ss:$9 sm:$0xff] %v635_v52  ;;  %v2399_v62 = vor.u32 %v2751_v53, %v2396_v54  ;;  %v2750_v0 = vld [vmem:[%s4025_s1 + $0x2d4] sm:$0xf0]  ;;  %v2749_v1 = vld [vmem:[%s4025_s1 + $0x2d4] sm:$0xf] }
  0x4a   : > { %v2388_v2 = vld [vmem:[%s4025_s1 + $0x2d8] sm:$0xf0]  ;;  %v2294_v5 = vld [vmem:[%s4025_s1 + $0x240] sm:$0xf]  ;;  %v2732_v6 = vld [vmem:[%s4025_s1 + $0x244] sm:$0xf0]  ;;  %v2387_v11 = vor.u32 %v2750_v0, %v2386_v63 }
  0x4b   : > { %747 = vmatpush.bf16.msrb.mxu0 %v2099_v29  ;;  %v2731_v7 = vld [vmem:[%s4025_s1 + $0x244] sm:$0xf]  ;;  %v2296_v8 = vld [vmem:[%s4025_s1 + $0x248] sm:$0xf0]  ;;  %v2391_v12 = vor.u32 %v2749_v1, %v2388_v2  ;;  %v2378_v13 = vld [vmem:[%s4025_s1 + $0x2c0] sm:$0xf]  ;;  %v2295_v18 = vor.u32 %v2732_v6, %v2294_v5 }
  0x4c   : > { %760 = vmatpush.bf16.msrb.mxu1 %v2103_v31  ;;  %884 = vmatpush.bf16.msrb.mxu2 %v2181_v32  ;;  %v2160_v9 = vld [vmem:[%s3194_s29 + $0xc] sm:$0x1]  ;;  %v2161_v10 = vld [vmem:[%s3194_s29 + $0xe] sm:$0x1]  ;;  %v2748_v14 = vld [vmem:[%s4025_s1 + $0x2c4] sm:$0xf0]  ;;  %v2299_v19 = vor.u32 %v2731_v7, %v2296_v8 }
  0x4d   : > { %897 = vmatpush.bf16.msrb.mxu3 %v2185_v40  ;;  %v2747_v15 = vld [vmem:[%s4025_s1 + $0x2c4] sm:$0xf]  ;;  %v2380_v16 = vld [vmem:[%s4025_s1 + $0x2c8] sm:$0xf0]  ;;  %v2286_v20 = vld [vmem:[%s4025_s1 + $0x230] sm:$0xf]  ;;  %v2379_v24 = vor.u32 %v2748_v14, %v2378_v13 }
  0x4e   : > { %v2730_v21 = vld [vmem:[%s4025_s1 + $0x234] sm:$0xf0]  ;;  %v2729_v22 = vld [vmem:[%s4025_s1 + $0x234] sm:$0xf]  ;;  %v2288_v23 = vld [vmem:[%s4025_s1 + $0x238] sm:$0xf0]  ;;  %v2383_v25 = vor.u32 %v2747_v15, %v2380_v16 }
  0x4f   : > { %1014 = vmatpush.bf16.msra.mxu0 %v2319_v41  ;;  %v2370_v26 = vld [vmem:[%s4025_s1 + $0x2b0] sm:$0xf]  ;;  %v2746_v27 = vld [vmem:[%s4025_s1 + $0x2b4] sm:$0xf0]  ;;  %v2745_v28 = vld [vmem:[%s4025_s1 + $0x2b4] sm:$0xf]  ;;  %v2287_v33 = vor.u32 %v2730_v21, %v2286_v20  ;;  %v2291_v34 = vor.u32 %v2729_v22, %v2288_v23 }
  0x50   : > { %1027 = vmatpush.bf16.msra.mxu1 %v2323_v42  ;;  %1196 = vmatpush.bf16.msra.mxu2 %v2403_v44  ;;  %v658_v17 = vld [vmem:[#allocation1] sm:$0xff]  ;;  %v2372_v29 = vld [vmem:[%s4025_s1 + $0x2b8] sm:$0xf0]  ;;  %v2728_v31 = vld [vmem:[%s4025_s1 + $0x224] sm:$0xf0]  ;;  %v2371_v45 = vor.u32 %v2746_v27, %v2370_v26 }
  0x51   : > { %1209 = vmatpush.bf16.msra.mxu3 %v2407_v47  ;;  %791 = vst [vmem:[#allocation1] ss:$9 sm:$0xff] %v2160_v9  ;;  %761 = vmatmul.bf16.vlgmr.msrb.gmra.mxu1 %v658_v17  ;;  %v2278_v30 = vld [vmem:[%s4025_s1 + $0x220] sm:$0xf]  ;;  %v2727_v32 = vld [vmem:[%s4025_s1 + $0x224] sm:$0xf]  ;;  %v2375_v46 = vor.u32 %v2745_v28, %v2372_v29 }
  0x52   : > { %748 = vmatmul.bf16.vlgmr.msrb.gmra.mxu0 %v658_v17  ;;  %794 = vst [vmem:[#allocation1 + $0x1] ss:$9 sm:$0xff] %v2161_v10  ;;  %v2280_v37 = vld [vmem:[%s4025_s1 + $0x228] sm:$0xf0]  ;;  %v3536_v35 = vld [vmem:[%s4025_s1 + $0x2a0] sm:$0xf]  ;;  %v2279_v51 = vor.u32 %v2728_v31, %v2278_v30 }
  0x53   : > { %1015 = vmatpush.bf16.msra.mxu0 %v2311_v55  ;;  %v2744_v36 = vld [vmem:[%s4025_s1 + $0x2a4] sm:$0xf0]  ;;  %v2743_v38 = vld [vmem:[%s4025_s1 + $0x2a4] sm:$0xf]  ;;  %v2364_v41 = vld [vmem:[%s4025_s1 + $0x2a8] sm:$0xf0]  ;;  %v2283_v52 = vor.u32 %v2727_v32, %v2280_v37 }
  0x54   : > { %1028 = vmatpush.bf16.msra.mxu1 %v2315_v56  ;;  %1197 = vmatpush.bf16.msra.mxu2 %v2395_v59  ;;  %v3550_v42 = vld [vmem:[%s4025_s1 + $0x210] sm:$0xf]  ;;  %v3555_v43 = vld [vmem:[%s4025_s1 + $0x214] sm:$0xf0]  ;;  %v3560_v39 = vld [vmem:[%s4025_s1 + $0x214] sm:$0xf]  ;;  %v2363_v57 = vor.u32 %v2744_v36, %v3536_v35  ;;  %v2367_v60 = vor.u32 %v2743_v38, %v2364_v41 }
  0x55   : > { %1210 = vmatpush.bf16.msra.mxu3 %v2399_v62  ;;  %v2272_v40 = vld [vmem:[%s4025_s1 + $0x218] sm:$0xf0]  ;;  %v3568_v44 = vld [vmem:[%s4025_s1 + $0x290] sm:$0xf]  ;;  %v3573_v47 = vld [vmem:[%s4025_s1 + $0x294] sm:$0xf0]  ;;  %v2271_v61 = vor.u32 %v3555_v43, %v3550_v42 }
  0x56   : > { %v3578_v49 = vld [vmem:[%s4025_s1 + $0x294] sm:$0xf]  ;;  %v3583_v50 = vld [vmem:[%s4025_s1 + $0x298] sm:$0xf0]  ;;  %v3588_v53 = vld [vmem:[%s4025_s1 + $0x200] sm:$0xf]  ;;  %v2275_v62 = vor.u32 %v3560_v39, %v2272_v40  ;;  %v2355_v2 = vor.u32 %v3573_v47, %v3568_v44 }
  0x57   : > { %1016 = vmatpush.bf16.msra.mxu0 %v2303_v3  ;;  %v3593_v54 = vld [vmem:[%s4025_s1 + $0x204] sm:$0xf0]  ;;  %v3598_v55 = vld [vmem:[%s4025_s1 + $0x204] sm:$0xf]  ;;  %v3604_v58 = vld [vmem:[%s4025_s1 + $0x208] sm:$0xf0]  ;;  %v2359_v3 = vor.u32 %v3578_v49, %v3583_v50 }
  0x58   : > { %1029 = vmatpush.bf16.msra.mxu1 %v2307_v4  ;;  %1198 = vmatpush.bf16.msra.mxu2 %v2387_v11  ;;  %v3609_v59 = vld [vmem:[%s4025_s1 + $0x370] sm:$0xf]  ;;  %v3617_v63 = vld [vmem:[%s4025_s1 + $0x374] sm:$0xf0]  ;;  %v2243_v1 = vld [vmem:[%s3194_s29 + $0x14] sm:$0x1]  ;;  %v2263_v4 = vor.u32 %v3593_v54, %v3588_v53  ;;  %v2267_v11 = vor.u32 %v3598_v55, %v3604_v58 }
  0x59   : > { %1211 = vmatpush.bf16.msra.mxu3 %v2391_v12  ;;  %v795_v56 = vld [vmem:[#allocation1] sm:$0xff]  ;;  %v2242_v0 = vld [vmem:[%s3194_s29 + $0x12] sm:$0x1]  ;;  %v2324_v5 = vld [vmem:[%s3194_s29 + $0xc] sm:$0x3]  ;;  %v2485_v12 = vor.u32 %v3617_v63, %v3609_v59 }
  0x5a   : > { %885 = vmatmul.bf16.vlgmr.msrb.gmra.mxu2 %v795_v56  ;;  %898 = vmatmul.bf16.vlgmr.msrb.gmra.mxu3 %v795_v56  ;;  %928 = vst [vmem:[#allocation1] ss:$9 sm:$0xff] %v2242_v0  ;;  %v2325_v6 = vld [vmem:[%s3194_s29 + $0xe] sm:$0x3]  ;;  %v1046_v7 = vrot.slane %v2324_v5, 1  ;;  %v1047_v8 = vrot.slane %v2324_v5, 2 }
  0x5b   : > { %1017 = vmatpush.bf16.msra.mxu0 %v2295_v18  ;;  %931 = vst [vmem:[#allocation1 + $0x1] ss:$9 sm:$0xff] %v2243_v1  ;;  %v1048_v9 = vrot.slane %v2324_v5, 3  ;;  %v1049_v10 = vrot.slane %v2325_v6, 1  ;;  %v1050_v13 = vrot.slane %v2325_v6, 2  ;;  %v1051_v14 = vrot.slane %v2325_v6, 3 }
  0x5c   : > { %1030 = vmatpush.bf16.msra.mxu1 %v2299_v19  ;;  %1199 = vmatpush.bf16.msra.mxu2 %v2379_v24  ;;  %v2346_v15 = vld [vmem:[%s4025_s1 + $0x280] sm:$0xf]  ;;  %v2740_v16 = vld [vmem:[%s4025_s1 + $0x284] sm:$0xf0]  ;;  %v2769_v17 = vld [vmem:[%s4025_s1 + $0x374] sm:$0xf]  ;;  %v1054_v19 = vsel %vm575_vm0, %v2324_v5, %v1046_v7  ;;  %v1059_v21 = vsel %vm585_vm3, %v2324_v5, %v1046_v7 }
  0x5d   : > { %1212 = vmatpush.bf16.msra.mxu3 %v2383_v25  ;;  %v2486_v18 = vld [vmem:[%s4025_s1 + $0x378] sm:$0xf0]  ;;  %v1057_v20 = vsel %vm579_vm1, %v1047_v8, %v1048_v9  ;;  %v1060_v22 = vsel %vm587_vm4, %v1047_v8, %v1048_v9  ;;  %v2739_v23 = vld [vmem:[%s4025_s1 + $0x284] sm:$0xf]  ;;  %v2348_v24 = vld [vmem:[%s4025_s1 + $0x288] sm:$0xf0]  ;;  %v1066_v28 = vsel %vm575_vm0, %v2325_v6, %v1049_v10  ;;  %v1069_v32 = vsel %vm579_vm1, %v1050_v13, %v1051_v14 }
  0x5e   : > { %v2566_v25 = vld [vmem:[%s4025_s1 + $0x3f0] sm:$0xf]  ;;  %v1058_v26 = vsel %vm583_vm2, %v1054_v19, %v1057_v20  ;;  %v1061_v27 = vsel %vm589_vm5, %v1059_v21, %v1060_v22  ;;  %v2786_v29 = vld [vmem:[%s4025_s1 + $0x3f4] sm:$0xf0]  ;;  %v2785_v30 = vld [vmem:[%s4025_s1 + $0x3f4] sm:$0xf]  ;;  %v2489_v37 = vor.u32 %v2769_v17, %v2486_v18  ;;  %v1070_v36 = vsel %vm583_vm2, %v1066_v28, %v1069_v32 }
  0x5f   : > { %1018 = vmatpush.bf16.msra.mxu0 %v2287_v33  ;;  %v1063_v31 = vrot.slane %v1061_v27, 1  ;;  %v1071_v33 = vsel %vm585_vm3, %v2325_v6, %v1049_v10  ;;  %v2568_v35 = vld [vmem:[%s4025_s1 + $0x3f8] sm:$0xf0]  ;;  %v1076_v41 = vshrl.u32 %v1058_v26, 16  ;;  %v2476_v42 = vld [vmem:[%s4025_s1 + $0x360] sm:$0xf] }
  0x60   : > { %1031 = vmatpush.bf16.msra.mxu1 %v2291_v34  ;;  %1200 = vmatpush.bf16.msra.mxu2 %v2371_v45  ;;  %v1072_v34 = vsel %vm587_vm4, %v1050_v13, %v1051_v14  ;;  %v1084_v40 = vshrl.u32 %v1070_v36, 16  ;;  %v2768_v44 = vld [vmem:[%s4025_s1 + $0x364] sm:$0xf0]  ;;  %v2347_v45 = vor.u32 %v2740_v16, %v2346_v15  ;;  %v2767_v49 = vld [vmem:[%s4025_s1 + $0x364] sm:$0xf] }
  0x61   : > { %1213 = vmatpush.bf16.msra.mxu3 %v2375_v46  ;;  %v1073_v38 = vsel %vm589_vm5, %v1071_v33, %v1072_v34  ;;  %v1081_v39 = vshll.u32 %v1063_v31, 16  ;;  %v2351_v46 = vor.u32 %v2739_v23, %v2348_v24  ;;  %v2478_v50 = vld [vmem:[%s4025_s1 + $0x368] sm:$0xf0]  ;;  %v2558_v55 = vld [vmem:[%s4025_s1 + $0x3e0] sm:$0xf] }
  0x62   : > { %v1075_v43 = vrot.slane %v1073_v38, 1  ;;  %v932_v47 = vld [vmem:[#allocation1] sm:$0xff]  ;;  %v2784_v56 = vld [vmem:[%s4025_s1 + $0x3e4] sm:$0xf0]  ;;  %v2560_v58 = vld [vmem:[%s4025_s1 + $0x3e8] sm:$0xf0] }
  0x63   : > { %1019 = vmatpush.bf16.msra.mxu0 %v2279_v51  ;;  %v2567_v51 = vor.u32 %v2786_v29, %v2566_v25  ;;  %v1083_v53 = vsel %vm3427_vm10, %v1076_v41, %v1081_v39  ;;  %v2766_v63 = vld [vmem:[%s4025_s1 + $0x354] sm:$0xf0]  ;;  %v2765_v0 = vld [vmem:[%s4025_s1 + $0x354] sm:$0xf]  ;;  %v2470_v1 = vld [vmem:[%s4025_s1 + $0x358] sm:$0xf0] }
  0x64   : > { %1032 = vmatpush.bf16.msra.mxu1 %v2283_v52  ;;  %1201 = vmatpush.bf16.msra.mxu2 %v2363_v57  ;;  %v2571_v52 = vor.u32 %v2785_v30, %v2568_v35  ;;  %v1089_v54 = vshll.u32 %v1075_v43, 16  ;;  %1110 = vst [vmem:[#allocation1] ss:$9 sm:$0xff] %v1083_v53  ;;  %v2783_v57 = vld [vmem:[%s4025_s1 + $0x3e4] sm:$0xf]  ;;  %v2473_v10 = vor.u32 %v2765_v0, %v2470_v1 }
  0x65   : > { %1214 = vmatpush.bf16.msra.mxu3 %v2367_v60  ;;  %v2477_v60 = vor.u32 %v2768_v44, %v2476_v42  ;;  %v2782_v5 = vld [vmem:[%s4025_s1 + $0x3d4] sm:$0xf0]  ;;  %v2781_v6 = vld [vmem:[%s4025_s1 + $0x3d4] sm:$0xf]  ;;  %v2552_v7 = vld [vmem:[%s4025_s1 + $0x3d8] sm:$0xf0] }
  0x66   : > { %v1091_v59 = vsel %vm3427_vm10, %v1084_v40, %v1089_v54  ;;  %v2408_v8 = vld [vmem:[%s3194_s29 + $0x2] sm:$0x1]  ;;  %v2764_v13 = vld [vmem:[%s4025_s1 + $0x344] sm:$0xf0]  ;;  %v2763_v14 = vld [vmem:[%s4025_s1 + $0x344] sm:$0xf]  ;;  %v2555_v17 = vor.u32 %v2781_v6, %v2552_v7 }
  0x67   : > { %1020 = vmatpush.bf16.msra.mxu0 %v2271_v61  ;;  %v2481_v61 = vor.u32 %v2767_v49, %v2478_v50  ;;  %1113 = vst [vmem:[#allocation1 + $0x1] ss:$9 sm:$0xff] %v1091_v59  ;;  %v2462_v15 = vld [vmem:[%s4025_s1 + $0x348] sm:$0xf0]  ;;  %v2542_v18 = vld [vmem:[%s4025_s1 + $0x3c0] sm:$0xf] }
  0x68   : > { %1033 = vmatpush.bf16.msra.mxu1 %v2275_v62  ;;  %1202 = vmatpush.bf16.msra.mxu2 %v2355_v2  ;;  %v2468_v62 = vld [vmem:[%s4025_s1 + $0x350] sm:$0xf]  ;;  %v2559_v2 = vor.u32 %v2784_v56, %v2558_v55  ;;  %v2780_v19 = vld [vmem:[%s4025_s1 + $0x3c4] sm:$0xf0]  ;;  %v2779_v20 = vld [vmem:[%s4025_s1 + $0x3c4] sm:$0xf]  ;;  %v2465_v26 = vor.u32 %v2763_v14, %v2462_v15 }
  0x69   : > { %1215 = vmatpush.bf16.msra.mxu3 %v2359_v3  ;;  %v2563_v3 = vor.u32 %v2783_v57, %v2560_v58  ;;  %v2469_v9 = vor.u32 %v2766_v63, %v2468_v62  ;;  %v2544_v21 = vld [vmem:[%s4025_s1 + $0x3c8] sm:$0xf0]  ;;  %v2452_v22 = vld [vmem:[%s4025_s1 + $0x330] sm:$0xf]  ;;  %v2762_v23 = vld [vmem:[%s4025_s1 + $0x334] sm:$0xf0]  ;;  %v2543_v32 = vor.u32 %v2780_v19, %v2542_v18 }
  0x6a   : > { %v2761_v27 = vld [vmem:[%s4025_s1 + $0x334] sm:$0xf]  ;;  %v2454_v28 = vld [vmem:[%s4025_s1 + $0x338] sm:$0xf0]  ;;  %v2534_v29 = vld [vmem:[%s4025_s1 + $0x3b0] sm:$0xf]  ;;  %v2547_v33 = vor.u32 %v2779_v20, %v2544_v21  ;;  %v2453_v41 = vor.u32 %v2762_v23, %v2452_v22 }
  0x6b   : > { %1021 = vmatpush.bf16.msra.mxu0 %v2263_v4  ;;  %v2550_v4 = vld [vmem:[%s4025_s1 + $0x3d0] sm:$0xf]  ;;  %v2778_v30 = vld [vmem:[%s4025_s1 + $0x3b4] sm:$0xf0]  ;;  %v2777_v31 = vld [vmem:[%s4025_s1 + $0x3b4] sm:$0xf]  ;;  %v2457_v42 = vor.u32 %v2761_v27, %v2454_v28 }
  0x6c   : > { %1034 = vmatpush.bf16.msra.mxu1 %v2267_v11  ;;  %1203 = vmatpush.bf16.msra.mxu2 %v2347_v45  ;;  %v2460_v11 = vld [vmem:[%s4025_s1 + $0x340] sm:$0xf]  ;;  %v2551_v16 = vor.u32 %v2782_v5, %v2550_v4  ;;  %v2536_v34 = vld [vmem:[%s4025_s1 + $0x3b8] sm:$0xf0]  ;;  %v2760_v35 = vld [vmem:[%s4025_s1 + $0x324] sm:$0xf0] }
  0x6d   : > { %1216 = vmatpush.bf16.msra.mxu3 %v2351_v46  ;;  %v2461_v25 = vor.u32 %v2764_v13, %v2460_v11  ;;  %v2759_v36 = vld [vmem:[%s4025_s1 + $0x324] sm:$0xf]  ;;  %v2446_v38 = vld [vmem:[%s4025_s1 + $0x328] sm:$0xf0]  ;;  %v3792_v43 = vld [vmem:[%s4025_s1 + $0x3a0] sm:$0xf]  ;;  %v2539_v49 = vor.u32 %v2777_v31, %v2536_v34 }
  0x6e   : > { %1022 = vmatmul.bf16.vlgmr.msra.gmra.mxu0 %v932_v47  ;;  %v1114_v24 = vld [vmem:[#allocation1] sm:$0xff]  ;;  %v2776_v39 = vld [vmem:[%s4025_s1 + $0x3a4] sm:$0xf0]  ;;  %v2528_v44 = vld [vmem:[%s4025_s1 + $0x3a8] sm:$0xf0]  ;;  %v2449_v53 = vor.u32 %v2759_v36, %v2446_v38 }
  0x6f   : > { %1333 = vmatpush.bf16.msrb.mxu0 %v2485_v12  ;;  %1035 = vmatmul.bf16.vlgmr.msra.gmra.mxu1 %v932_v47  ;;  %v2409_v12 = vld [vmem:[%s3194_s29 + $0x4] sm:$0x1]  ;;  %1247 = vst [vmem:[#allocation1] ss:$9 sm:$0xff] %v2408_v8  ;;  %v3806_v45 = vld [vmem:[%s4025_s1 + $0x310] sm:$0xf]  ;;  %v2535_v47 = vor.u32 %v2778_v30, %v2534_v29  ;;  %v2527_v57 = vor.u32 %v2776_v39, %v3792_v43 }
  0x70   : > { %1346 = vmatpush.bf16.msrb.mxu1 %v2489_v37  ;;  %1470 = vmatpush.bf16.msrb.mxu2 %v2567_v51  ;;  %1250 = vst [vmem:[#allocation1 + $0x1] ss:$9 sm:$0xff] %v2409_v12  ;;  %v2444_v37 = vld [vmem:[%s4025_s1 + $0x320] sm:$0xf]  ;;  %v2775_v40 = vld [vmem:[%s4025_s1 + $0x3a4] sm:$0xf] }
  0x71   : > { %1483 = vmatpush.bf16.msrb.mxu3 %v2571_v52  ;;  %1204 = vmatmul.bf16.vlgmr.msra.gmra.mxu2 %v1114_v24  ;;  %v3811_v46 = vld [vmem:[%s4025_s1 + $0x314] sm:$0xf0]  ;;  %v3816_v50 = vld [vmem:[%s4025_s1 + $0x314] sm:$0xf]  ;;  %v3821_v51 = vld [vmem:[%s4025_s1 + $0x318] sm:$0xf0]  ;;  %v2445_v52 = vor.u32 %v2760_v35, %v2444_v37  ;;  %v2531_v58 = vor.u32 %v2775_v40, %v2528_v44 }
  0x72   : > { %1217 = vmatmul.bf16.vlgmr.msra.gmra.mxu3 %v1114_v24  ;;  %v3826_v54 = vld [vmem:[%s4025_s1 + $0x390] sm:$0xf]  ;;  %v3831_v55 = vld [vmem:[%s4025_s1 + $0x394] sm:$0xf0]  ;;  %v2490_v56 = vld [vmem:[%s3194_s29 + $0x8] sm:$0x1]  ;;  %v2437_v59 = vor.u32 %v3811_v46, %v3806_v45  ;;  %v2441_v4 = vor.u32 %v3816_v50, %v3821_v51 }
  0x73   : > { %1334 = vmatpush.bf16.msrb.mxu0 %v2477_v60  ;;  %v2491_v60 = vld [vmem:[%s3194_s29 + $0xa] sm:$0x1]  ;;  %v2573_v62 = vld [vmem:[%s3194_s29 + $0x4] sm:$0x3]  ;;  %v2519_v5 = vor.u32 %v3831_v55, %v3826_v54  ;;  %v2773_v6 = vld [vmem:[%s4025_s1 + $0x394] sm:$0xf] }
  0x74   : > { %1347 = vmatpush.bf16.msrb.mxu1 %v2481_v61  ;;  %1471 = vmatpush.bf16.msrb.mxu2 %v2559_v2  ;;  %v2572_v61 = vld [vmem:[%s3194_s29 + $0x2] sm:$0x3]  ;;  %v1506_v7 = vrot.slane %v2573_v62, 2  ;;  %v1507_v8 = vrot.slane %v2573_v62, 3  ;;  %v2756_v15 = vld [vmem:[%s4025_s1 + $0x304] sm:$0xf0] }
  0x75   : > { %1484 = vmatpush.bf16.msrb.mxu3 %v2563_v3  ;;  %v1502_v0 = vrot.slane %v2572_v61, 1  ;;  %v1503_v1 = vrot.slane %v2572_v61, 2  ;;  %v1504_v2 = vrot.slane %v2572_v61, 3  ;;  %v1505_v3 = vrot.slane %v2573_v62, 1  ;;  %v2510_v21 = vld [vmem:[%s4025_s1 + $0x380] sm:$0xf] }
  0x76   : > { %v2772_v22 = vld [vmem:[%s4025_s1 + $0x384] sm:$0xf0]  ;;  %v2771_v23 = vld [vmem:[%s4025_s1 + $0x384] sm:$0xf]  ;;  %v2650_v24 = vld [vmem:[%s4025_s1 + $0x470] sm:$0xf]  ;;  %v1525_v27 = vsel %vm579_vm1, %v1506_v7, %v1507_v8  ;;  %v1528_v29 = vsel %vm587_vm4, %v1506_v7, %v1507_v8 }
  0x77   : > { %1335 = vmatpush.bf16.msrb.mxu0 %v2469_v9  ;;  %v3840_v63 = vld [vmem:[#allocation1] sm:$0xff]  ;;  %v2520_v9 = vld [vmem:[%s4025_s1 + $0x398] sm:$0xf0]  ;;  %v1510_v11 = vsel %vm575_vm0, %v2572_v61, %v1502_v0  ;;  %v1513_v12 = vsel %vm579_vm1, %v1503_v1, %v1504_v2  ;;  %v1515_v13 = vsel %vm585_vm3, %v2572_v61, %v1502_v0  ;;  %v1516_v14 = vsel %vm587_vm4, %v1503_v1, %v1504_v2  ;;  %v2801_v31 = vld [vmem:[%s4025_s1 + $0x474] sm:$0xf]  ;;  %s2658_s29 = sshll.u32 %s4039_s18, 3  ;;  %s284_s18 = scalar_lea.vmem %s4029_s5, %s1930_s12 }
  0x78   : > { %1348 = vmatpush.bf16.msrb.mxu1 %v2473_v10  ;;  %1472 = vmatpush.bf16.msrb.mxu2 %v2551_v16  ;;  %1384 = vst [vmem:[#allocation1] ss:$9 sm:$0xff] %v2490_v56  ;;  %v2428_v10 = vld [vmem:[%s4025_s1 + $0x300] sm:$0xf]  ;;  %v2755_v16 = vld [vmem:[%s4025_s1 + $0x304] sm:$0xf]  ;;  %v1514_v18 = vsel %vm583_vm2, %v1510_v11, %v1513_v12  ;;  %v1517_v19 = vsel %vm589_vm5, %v1515_v13, %v1516_v14  ;;  %s272_s9 = scalar_lea.vmem %s4027_s3, %s2658_s29 }
  0x79   : > { %1485 = vmatpush.bf16.msrb.mxu3 %v2555_v17  ;;  %1387 = vst [vmem:[#allocation1 + $0x1] ss:$9 sm:$0xff] %v2491_v60  ;;  %v2430_v17 = vld [vmem:[%s4025_s1 + $0x308] sm:$0xf0]  ;;  %v1522_v20 = vsel %vm575_vm0, %v2573_v62, %v1505_v3  ;;  %v1527_v28 = vsel %vm585_vm3, %v2573_v62, %v1505_v3  ;;  %v2523_v30 = vor.u32 %v2773_v6, %v2520_v9  ;;  %v1532_v37 = vshrl.u32 %v1514_v18, 16 }
  0x7a   : > { %v1529_v34 = vsel %vm589_vm5, %v1527_v28, %v1528_v29  ;;  %v2512_v35 = vld [vmem:[%s4025_s1 + $0x388] sm:$0xf0]  ;;  %v2433_v43 = vor.u32 %v2755_v16, %v2430_v17  ;;  %v2511_v46 = vor.u32 %v2772_v22, %v2510_v21  ;;  %v2642_v50 = vld [vmem:[%s4025_s1 + $0x460] sm:$0xf]  ;;  %v2800_v51 = vld [vmem:[%s4025_s1 + $0x464] sm:$0xf0] }
  0x7b   : > { %1336 = vmatpush.bf16.msrb.mxu0 %v2461_v25  ;;  %v2802_v25 = vld [vmem:[%s4025_s1 + $0x474] sm:$0xf0]  ;;  %v1531_v36 = vrot.slane %v1529_v34, 1  ;;  %v2644_v54 = vld [vmem:[%s4025_s1 + $0x468] sm:$0xf0]  ;;  %v2643_v55 = vor.u32 %v2800_v51, %v2642_v50  ;;  %vm1697_vm1 = vcmask 1043456  }
  0x7c   : > { %1349 = vmatpush.bf16.msrb.mxu1 %v2465_v26  ;;  %1473 = vmatpush.bf16.msrb.mxu2 %v2543_v32  ;;  %v1519_v26 = vrot.slane %v1517_v19, 1  ;;  %v2652_v32 = vld [vmem:[%s4025_s1 + $0x478] sm:$0xf0]  ;;  %v2651_v39 = vor.u32 %v2802_v25, %v2650_v24  ;;  %v2634_v48 = vld [vmem:[%s4025_s1 + $0x450] sm:$0xf]  ;;  %vm1690_vm5 = vcmask 1043458  }
  0x7d   : > { %1486 = vmatpush.bf16.msrb.mxu3 %v2547_v33  ;;  %v1526_v33 = vsel %vm583_vm2, %v1522_v20, %v1525_v27  ;;  %v2655_v40 = vor.u32 %v2801_v31, %v2652_v32  ;;  %v1545_v45 = vshll.u32 %v1531_v36, 16  ;;  %v2626_v62 = vld [vmem:[%s4025_s1 + $0x440] sm:$0xf]  ;;  %v2795_v0 = vld [vmem:[%s4025_s1 + $0x444] sm:$0xf] }
  0x7e   : > { %v1537_v38 = vshll.u32 %v1519_v26, 16  ;;  %v2628_v1 = vld [vmem:[%s4025_s1 + $0x448] sm:$0xf0]  ;;  %v2793_v6 = vld [vmem:[%s4025_s1 + $0x434] sm:$0xf] }
  0x7f   : > { %1337 = vmatpush.bf16.msrb.mxu0 %v2453_v41  ;;  %v1540_v41 = vshrl.u32 %v1526_v33, 16  ;;  %v2631_v3 = vor.u32 %v2795_v0, %v2628_v1  ;;  %v2620_v7 = vld [vmem:[%s4025_s1 + $0x438] sm:$0xf0]  ;;  %v2792_v11 = vld [vmem:[%s4025_s1 + $0x424] sm:$0xf0] }
  0x80   : > { %1350 = vmatpush.bf16.msrb.mxu1 %v2457_v42  ;;  %1474 = vmatpush.bf16.msrb.mxu2 %v2535_v47  ;;  %v2429_v42 = vor.u32 %v2756_v15, %v2428_v10  ;;  %v1539_v44 = vsel %vm3427_vm10, %v1532_v37, %v1537_v38  ;;  %v2515_v47 = vor.u32 %v2771_v23, %v2512_v35  ;;  %v2610_v10 = vld [vmem:[%s4025_s1 + $0x420] sm:$0xf]  ;;  %v2791_v12 = vld [vmem:[%s4025_s1 + $0x424] sm:$0xf]  ;;  %v2612_v13 = vld [vmem:[%s4025_s1 + $0x428] sm:$0xf0] }
  0x81   : > { %1487 = vmatpush.bf16.msrb.mxu3 %v2539_v49  ;;  %v1388_v49 = vld [vmem:[#allocation1] sm:$0xff]  ;;  %v2623_v9 = vor.u32 %v2793_v6, %v2620_v7  ;;  %v2611_v14 = vor.u32 %v2792_v11, %v2610_v10  ;;  %v2615_v15 = vor.u32 %v2791_v12, %v2612_v13  ;;  %v2602_v16 = vld [vmem:[%s4025_s1 + $0x410] sm:$0xf]  ;;  %v2790_v17 = vld [vmem:[%s4025_s1 + $0x414] sm:$0xf0] }
  0x82   : > { %1566 = vst [vmem:[#allocation1] ss:$9 sm:$0xff] %v1539_v44  ;;  %v2789_v18 = vld [vmem:[%s4025_s1 + $0x414] sm:$0xf]  ;;  %v2604_v19 = vld [vmem:[%s4025_s1 + $0x418] sm:$0xf0]  ;;  %v2603_v20 = vor.u32 %v2790_v17, %v2602_v16 }
  0x83   : > { %1338 = vmatpush.bf16.msrb.mxu0 %v2445_v52  ;;  %v1547_v52 = vsel %vm3427_vm10, %v1540_v41, %v1545_v45  ;;  %v2607_v21 = vor.u32 %v2789_v18, %v2604_v19  ;;  %v2594_v22 = vld [vmem:[%s4025_s1 + $0x400] sm:$0xf]  ;;  %v2788_v23 = vld [vmem:[%s4025_s1 + $0x404] sm:$0xf0]  ;;  %v2787_v24 = vld [vmem:[%s4025_s1 + $0x404] sm:$0xf] }
  0x84   : > { %1351 = vmatpush.bf16.msrb.mxu1 %v2449_v53  ;;  %1475 = vmatpush.bf16.msrb.mxu2 %v2527_v57  ;;  %v2799_v53 = vld [vmem:[%s4025_s1 + $0x464] sm:$0xf]  ;;  %1569 = vst [vmem:[#allocation1 + $0x1] ss:$9 sm:$0xff] %v1547_v52  ;;  %v2798_v57 = vld [vmem:[%s4025_s1 + $0x454] sm:$0xf0]  ;;  %v2595_v26 = vor.u32 %v2788_v23, %v2594_v22 }
  0x85   : > { %1488 = vmatpush.bf16.msrb.mxu3 %v2531_v58  ;;  %v2647_v56 = vor.u32 %v2799_v53, %v2644_v54  ;;  %v2797_v58 = vld [vmem:[%s4025_s1 + $0x454] sm:$0xf]  ;;  %v2635_v60 = vor.u32 %v2798_v57, %v2634_v48  ;;  %v2596_v25 = vld [vmem:[%s4025_s1 + $0x408] sm:$0xf0]  ;;  %v287_v31 = vld [vmem:[%s4026_s2] sm:$0x3] }
  0x86   : > { %v2599_v27 = vor.u32 %v2787_v24, %v2596_v25  ;;  %v290_v32 = vperm.slane %v287_v31, 1  ;;  %v289_v33 = vperm.slane %v287_v31, 0 }
  0x87   : > { %1339 = vmatpush.bf16.msrb.mxu0 %v2437_v59  ;;  %v2636_v59 = vld [vmem:[%s4025_s1 + $0x458] sm:$0xf0] }
  0x88   : > { %1352 = vmatpush.bf16.msrb.mxu1 %v2441_v4  ;;  %1476 = vmatpush.bf16.msrb.mxu2 %v2519_v5  ;;  %v2639_v61 = vor.u32 %v2797_v58, %v2636_v59  ;;  %v2618_v4 = vld [vmem:[%s4025_s1 + $0x430] sm:$0xf]  ;;  %v2794_v5 = vld [vmem:[%s4025_s1 + $0x434] sm:$0xf0] }
  0x89   : > { %1489 = vmatpush.bf16.msrb.mxu3 %v2523_v30  ;;  %v2619_v8 = vor.u32 %v2794_v5, %v2618_v4 }
  0x8b   : > { %1340 = vmatpush.bf16.msrb.mxu0 %v2429_v42  ;;  %v1570_v28 = vld [vmem:[#allocation1] sm:$0xff] }
  0x8c   : > { %1353 = vmatpush.bf16.msrb.mxu1 %v2433_v43  ;;  %1477 = vmatpush.bf16.msrb.mxu2 %v2511_v46 }
  0x8d   : > { %1490 = vmatpush.bf16.msrb.mxu3 %v2515_v47 }
  0x8e   : > { %1341 = vmatmul.bf16.vlgmr.msrb.gmra.mxu0 %v3840_v63 }
  0x8f   : > { %1652 = vmatpush.bf16.msra.mxu0 %v2651_v39  ;;  %1354 = vmatmul.bf16.vlgmr.msrb.gmra.mxu1 %v3840_v63  ;;  %v2796_v63 = vld [vmem:[%s4025_s1 + $0x444] sm:$0xf0] }
  0x90   : > { %1665 = vmatpush.bf16.msra.mxu1 %v2655_v40  ;;  %1478 = vmatmul.bf16.vlgmr.msrb.gmra.mxu2 %v1388_v49  ;;  %v2627_v2 = vor.u32 %v2796_v63, %v2626_v62 }
  0x91   : > { %1491 = vmatmul.bf16.vlgmr.msrb.gmra.mxu3 %v1388_v49 }
  0x93   : > { %1653 = vmatpush.bf16.msra.mxu0 %v2643_v55 }
  0x94   : > { %1666 = vmatpush.bf16.msra.mxu1 %v2647_v56 }
  0x97   : > { %1654 = vmatpush.bf16.msra.mxu0 %v2635_v60 }
  0x98   : > { %1667 = vmatpush.bf16.msra.mxu1 %v2639_v61 }
  0x9b   : > { %1655 = vmatpush.bf16.msra.mxu0 %v2627_v2 }
  0x9c   : > { %1668 = vmatpush.bf16.msra.mxu1 %v2631_v3 }
  0x9f   : > { %1656 = vmatpush.bf16.msra.mxu0 %v2619_v8 }
  0xa0   : > { %1669 = vmatpush.bf16.msra.mxu1 %v2623_v9 }
  0xa3   : > { %1657 = vmatpush.bf16.msra.mxu0 %v2611_v14 }
  0xa4   : > { %1670 = vmatpush.bf16.msra.mxu1 %v2615_v15 }
  0xa7   : > { %1658 = vmatpush.bf16.msra.mxu0 %v2603_v20 }
  0xa8   : > { %1671 = vmatpush.bf16.msra.mxu1 %v2607_v21 }
  0xab   : > { %1659 = vmatpush.bf16.msra.mxu0 %v2595_v26 }
  0xac   : > { %1672 = vmatpush.bf16.msra.mxu1 %v2599_v27 }
  0xae   : > { %1660 = vmatmul.bf16.vlgmr.msra.gmra.mxu0 %v1570_v28 }
  0xaf   : > { %1673 = vmatmul.bf16.vlgmr.msra.gmra.mxu1 %v1570_v28 }
  0xb6   : > { %v422_v29 = vpop.f32.mrf.mxu1 }
  0xb7   : > { %v409_v30 = vpop.f32.mrf.mxu0  ;;  %v427_v35 = vadd.f32 %v422_v29, %v290_v32 }
  0xb8   : > { %v426_v36 = vadd.f32 %v409_v30, %v289_v33 }
  0xbe   : > { %v424_v34 = vpop.f32.mrf.mxu1 }
  0xbf   : > { %v411_v37 = vpop.f32.mrf.mxu0 }
  0xc6   : > { %v546_v38 = vpop.f32.mrf.mxu2 }
  0xc7   : > { %v563_v42 = vadd.f32 %v546_v38, %v426_v36 }
  0xc9   : > { %v559_v41 = vpop.f32.mrf.mxu3 }
  0xca   : > { %v564_v43 = vadd.f32 %v559_v41, %v427_v35 }
  0xce   : > { %v762_v39 = vpop.f32.mrf.mxu1  ;;  %v548_v44 = vpop.f32.mrf.mxu2 }
  0xcf   : > { %v749_v40 = vpop.f32.mrf.mxu0  ;;  %v767_v46 = vadd.f32 %v762_v39, %v564_v43 }
  0xd0   : > { %v766_v47 = vadd.f32 %v749_v40, %v563_v42 }
  0xd1   : > { %v561_v45 = vpop.f32.mrf.mxu3 }
  0xd6   : > { %v764_v50 = vpop.f32.mrf.mxu1 }
  0xd7   : > { %v751_v49 = vpop.f32.mrf.mxu0  ;;  %v1717_v50 = vlaneseq }
  0xdd   : > { %v886_v51 = vpop.f32.mrf.mxu2  ;;  %v899_v52 = vpop.f32.mrf.mxu3 }
  0xde   : > { %v903_v6 = vadd.f32 %v886_v51, %v766_v47  ;;  %v904_v7 = vadd.f32 %v899_v52, %v767_v46 }
  0xe5   : > { %v888_v53 = vpop.f32.mrf.mxu2  ;;  %v901_v54 = vpop.f32.mrf.mxu3 }
  0xeb   : > { %v1023_v55 = vpop.f32.mrf.mxu0 }
  0xec   : > { %v1036_v56 = vpop.f32.mrf.mxu1  ;;  %v1040_v8 = vadd.f32 %v1023_v55, %v903_v6 }
  0xed   : > { %v1041_v9 = vadd.f32 %v1036_v56, %v904_v7 }
  0xf3   : > { %v1025_v48 = vpop.f32.mrf.mxu0 }
  0xf4   : > { %v1038_v57 = vpop.f32.mrf.mxu1  ;;  %v1205_v58 = vpop.f32.mrf.mxu2 }
  0xf5   : > { %v1218_v59 = vpop.f32.mrf.mxu3  ;;  %v1222_v10 = vadd.f32 %v1205_v58, %v1040_v8 }
  0xf6   : > { %v1223_v11 = vadd.f32 %v1218_v59, %v1041_v9 }
  0xfc   : > { %v1207_v60 = vpop.f32.mrf.mxu2 }
  0xfd   : > { %v1220_v61 = vpop.f32.mrf.mxu3 }
 0x10b   : > { %v1342_v62 = vpop.f32.mrf.mxu0 }
 0x10c   : > { %v1355_v63 = vpop.f32.mrf.mxu1  ;;  %v1359_v12 = vadd.f32 %v1342_v62, %v1222_v10 }
 0x10d   : > { %v1360_v13 = vadd.f32 %v1355_v63, %v1223_v11 }
 0x113   : > { %v1479_v0 = vpop.f32.mrf.mxu2  ;;  %v1344_v3 = vpop.f32.mrf.mxu0 }
 0x114   : > { %v1492_v1 = vpop.f32.mrf.mxu3  ;;  %v1357_v2 = vpop.f32.mrf.mxu1  ;;  %v1496_v14 = vadd.f32 %v1479_v0, %v1359_v12 }
 0x115   : > { %v1497_v15 = vadd.f32 %v1492_v1, %v1360_v13 }
 0x11b   : > { %v1481_v5 = vpop.f32.mrf.mxu2 }
 0x11c   : > { %v1494_v4 = vpop.f32.mrf.mxu3 }
 0x12b   : > { %v1661_v16 = vpop.f32.mrf.mxu0 }
 0x12c   : > { %v1674_v17 = vpop.f32.mrf.mxu1  ;;  %v1678_v18 = vadd.f32 %v1661_v16, %v1496_v14 }
 0x12d   : > { %v1679_v19 = vadd.f32 %v1674_v17, %v1497_v15 }
 0x12e   : > { %vm1680_vm3 = vcmp.ge.f32.partialorder %v1678_v18, 0.0  ;;  %v1682_v20 = vmul.f32 0.2, %v1678_v18 }
 0x12f   : > { %vm1681_vm4 = vcmp.ge.f32.partialorder %v1679_v19, 0.0  ;;  %v1683_v21 = vmul.f32 0.2, %v1679_v19 }
 0x130   : > { %v1684_v22 = vsel %vm1680_vm3, %v1678_v18, %v1682_v20 }
 0x131   : > { %v1685_v23 = vsel %vm1681_vm4, %v1679_v19, %v1683_v21  ;;  %v1698_v24 = vsel %vm1697_vm1, %v1684_v22, 0.0  ;;  %v1722_v25 = vmul.f32 %v1684_v22, %v1684_v22 }
 0x132   : > { %v1688_v26 = vrot.slane %v1685_v23, 6  ;;  %v1705_v27 = vsel %vm1697_vm1, %v1685_v23, 0.0  ;;  %v1699_v28 = vrot.slane %v1698_v24, 4  ;;  %v1723_v30 = vmul.f32 %v1685_v23, %v1685_v23 }
 0x133   : > { %v1706_v29 = vrot.slane %v1705_v27, 4  ;;  %v1724_v31 = vsel %vm1697_vm1, %v1722_v25, 0.0  ;;  %v1663_v34 = vpop.f32.mrf.mxu0 }
 0x134   : > { %v1689_v32 = vsel %vm583_vm2, %v1684_v22, %v1688_v26  ;;  %v1691_v33 = vsel %vm1690_vm5, %v1684_v22, %v1688_v26  ;;  %v1676_v37 = vpop.f32.mrf.mxu1  ;;  %v1700_v35 = vadd.f32 %v1699_v28, %v1698_v24  ;;  %v1725_v36 = vrot.slane %v1724_v31, 4 }
 0x135   : > { %v1692_v38 = vrot.slane %v1691_v33, 2  ;;  %1695 = vst [vmem:[%s272_s9] sm:$0xf] %v1689_v32  ;;  %v1707_v41 = vadd.f32 %v1706_v29, %v1705_v27  ;;  %v1731_v42 = vsel %vm1697_vm1, %v1723_v30, 0.0  ;;  %vm1719_vm2 = vcmp.lt.s32.totalorder %v1717_v50, 256 }
 0x136   : > { %v1701_v43 = vrot.slane %v1700_v35, 2  ;;  %v1726_v39 = vadd.f32 %v1725_v36, %v1724_v31  ;;  %v1732_v44 = vrot.slane %v1731_v42, 4 }
 0x137   : > { %1696 = vst [vmem:[%s272_s9 + $0x4] sm:$0xf] %v1692_v38  ;;  %v1708_v40 = vrot.slane %v1707_v41, 2 }
 0x138   : > { %v1702_v45 = vadd.f32 %v1701_v43, %v1700_v35  ;;  %v1727_v46 = vrot.slane %v1726_v39, 2  ;;  %v1733_v49 = vadd.f32 %v1732_v44, %v1731_v42 }
 0x139   : > { %v1709_v47 = vadd.f32 %v1708_v40, %v1707_v41 }
 0x13a   : > { %v1703_v51 = vrot.slane %v1702_v45, 1  ;;  %v1728_v52 = vadd.f32 %v1727_v46, %v1726_v39  ;;  %v1734_v54 = vrot.slane %v1733_v49, 2 }
 0x13b   : > { %v1710_v53 = vrot.slane %v1709_v47, 1 }
 0x13c   : > { %v1735_v56 = vadd.f32 %v1734_v54, %v1733_v49  ;;  %v1704_v48 = vadd.f32 %v1703_v51, %v1702_v45  ;;  %v1729_v57 = vrot.slane %v1728_v52, 1 }
 0x13d   : > { %v1711_v55 = vadd.f32 %v1710_v53, %v1709_v47 }
 0x13e   : > { %v1736_v59 = vrot.slane %v1735_v56, 1  ;;  %v1730_v62 = vadd.f32 %v1729_v57, %v1728_v52 }
 0x13f   : > { %v1714_v58 = vrot.slane %v1711_v55, 7 }
 0x140   : > { %v1737_v61 = vadd.f32 %v1736_v59, %v1735_v56 }
 0x141   : > { %v1715_v60 = vsel %vm575_vm0, %v1704_v48, %v1714_v58 }
 0x142   : > { %1721 = vst.msk [vmem:[%s278_s14] sm:$0x3] %vm1719_vm2, %v1715_v60  ;;  %v1740_v63 = vrot.slane %v1737_v61, 7 }
 0x144   : > { %v1741_v0 = vsel %vm575_vm0, %v1730_v62, %v1740_v63 }
 0x145   : > { %1743 = vst.msk [vmem:[%s284_s18] sm:$0x3] %vm1719_vm2, %v1741_v0 }
 0x146 PF: > { %s16_s20 = sadd.s32 1, %s2850_s20   ;;  %s4032_s18 = smov %s2846_s19 }
 0x147   : > { %p13_p6 = scmp.ge.s32.totalorder %s16_s20, 4   ;;  %s4033_s19 = smov %s4035_s21 }
 0x149   :  { %15 = sbr.rel (!%p13_p6) target bundleno = 2 (0x2), region = 109 }

// kernel: discriminator_forward.8
= control target key start
LH: loop header
LB: loop body
LE: loop exit
PB: predicated region body
PF: predicated region fallthrough
CT: control target
= control target key end

     0   :  { %s8543_s18 = smov 0   ;;  %s8545_s19 = smov 0   ;;  %s12234_s0 = inlined_call_operand.vmem [shape: bf16[8,2,2,256], index: 0, kind: input, shape index: {}]   ;;  %s12235_s1 = inlined_call_operand.vmem [shape: bf16[9,256,512], index: 1, kind: input, shape index: {}]   ;;  %s12236_s2 = inlined_call_operand.vmem [shape: f32[1,512], index: 2, kind: input, shape index: {}]   ;;  %s12237_s3 = inlined_call_operand.vmem [shape: f32[2,1,1,512], index: 3, kind: output, shape index: {0}]   ;;  %s12238_s4 = inlined_call_operand.vmem [shape: f32[2,1,512], index: 4, kind: output, shape index: {1}]   ;;  %s12239_s5 = inlined_call_operand.vmem [shape: f32[2,1,512], index: 5, kind: output, shape index: {2}]  }
   0x1   :  { %s8547_s20 = smov 0  }
   0x2 LB: > { %s28_s21 = sadd.s32 1, %s8507_s19  ;;  %p5058_p0 = scmp.ge.s32.totalorder %s8511_s20, 1  ;;  %s8511_s20 = sphi %s8547_s20, %s16_s20   ;;  %s8507_s19 = sphi %s8545_s19, %s12241_s19   ;;  %s8503_s18 = sphi %s8543_s18, %s12240_s18  }
   0x3   : > { %p30_p1 = scmp.ge.s32.totalorder %s28_s21, 2  ;;  %p211_p2 = scmp.lt.s32.totalorder %s8511_s20, 3 }
   0x5   : > { %s12243_s21 = smov (%p30_p1, %s28_s21), 0  ;;  %p212_p3 = pnand %p5058_p0, %p211_p2 }
   0x6   : > { %s5059_s10 = sshll.u32 (!%p212_p3), %s8503_s18, 2  ;;  %p258_p5 = scmp.lt.s32.totalorder (!%p212_p3), %s8503_s18, 1 }
   0x7   : > { %215 = sbr.rel (%p212_p3) target bundleno = 738 (0x2e2), region = 32  ;;  %p253_p4 = scmp.lt.s32.totalorder (!%p212_p3), %s5059_s10, 7 }
   0xc   : > { %v5178_v0 = vld [vmem:[%s12235_s1 + $0xe0] sm:$0xf]  ;;  %v7919_v1 = vld [vmem:[%s12235_s1 + $0xec] sm:$0xf0]  ;;  %v7917_v5 = vld [vmem:[%s12235_s1 + $0xe4] sm:$0xf] }
   0xd   : > { %v5306_v2 = vld [vmem:[%s12235_s1 + $0x1e0] sm:$0xf]  ;;  %v5179_v3 = vor.u32 %v7919_v1, %v5178_v0  ;;  %v7951_v4 = vld [vmem:[%s12235_s1 + $0x1ec] sm:$0xf0]  ;;  %v5180_v6 = vld [vmem:[%s12235_s1 + $0xf0] sm:$0xf0] }
   0xe   : > { %v5307_v7 = vor.u32 %v7951_v4, %v5306_v2  ;;  %v5183_v8 = vor.u32 %v7917_v5, %v5180_v6  ;;  %v7949_v9 = vld [vmem:[%s12235_s1 + $0x1e4] sm:$0xf]  ;;  %v5308_v10 = vld [vmem:[%s12235_s1 + $0x1f0] sm:$0xf0]  ;;  %v5162_v11 = vld [vmem:[%s12235_s1 + $0xc0] sm:$0xf] }
   0xf   : > { %672 = vmatpush.bf16.msra.mxu0 %v5179_v3  ;;  %v5311_v12 = vor.u32 %v7949_v9, %v5308_v10  ;;  %v7915_v13 = vld [vmem:[%s12235_s1 + $0xcc] sm:$0xf0]  ;;  %v5290_v14 = vld [vmem:[%s12235_s1 + $0x1c0] sm:$0xf]  ;;  %v7913_v18 = vld [vmem:[%s12235_s1 + $0xc4] sm:$0xf] }
  0x10   : > { %v7947_v15 = vld [vmem:[%s12235_s1 + $0x1cc] sm:$0xf0]  ;;  %685 = vmatpush.bf16.msra.mxu1 %v5307_v7  ;;  %698 = vmatpush.bf16.msra.mxu2 %v5183_v8  ;;  %v5163_v16 = vor.u32 %v7915_v13, %v5162_v11  ;;  %v5164_v19 = vld [vmem:[%s12235_s1 + $0xd0] sm:$0xf0]  ;;  %v7945_v20 = vld [vmem:[%s12235_s1 + $0x1c4] sm:$0xf] }
  0x11   : > { %v5291_v17 = vor.u32 %v7947_v15, %v5290_v14  ;;  %711 = vmatpush.bf16.msra.mxu3 %v5311_v12  ;;  %v5167_v21 = vor.u32 %v7913_v18, %v5164_v19  ;;  %v5292_v22 = vld [vmem:[%s12235_s1 + $0x1d0] sm:$0xf0]  ;;  %v5146_v23 = vld [vmem:[%s12235_s1 + $0xa0] sm:$0xf]  ;;  %v7911_v24 = vld [vmem:[%s12235_s1 + $0xac] sm:$0xf0] }
  0x12   : > { %v5295_v25 = vor.u32 %v7945_v20, %v5292_v22  ;;  %v5274_v26 = vld [vmem:[%s12235_s1 + $0x1a0] sm:$0xf]  ;;  %v7943_v27 = vld [vmem:[%s12235_s1 + $0x1ac] sm:$0xf0]  ;;  %v7909_v28 = vld [vmem:[%s12235_s1 + $0xa4] sm:$0xf]  ;;  %v5147_v29 = vor.u32 %v7911_v24, %v5146_v23 }
  0x13   : > { %673 = vmatpush.bf16.msra.mxu0 %v5163_v16  ;;  %v5148_v30 = vld [vmem:[%s12235_s1 + $0xb0] sm:$0xf0]  ;;  %v7941_v31 = vld [vmem:[%s12235_s1 + $0x1a4] sm:$0xf]  ;;  %v5275_v33 = vor.u32 %v7943_v27, %v5274_v26  ;;  %v5130_v35 = vld [vmem:[%s12235_s1 + $0x80] sm:$0xf] }
  0x14   : > { %v5276_v32 = vld [vmem:[%s12235_s1 + $0x1b0] sm:$0xf0]  ;;  %686 = vmatpush.bf16.msra.mxu1 %v5291_v17  ;;  %699 = vmatpush.bf16.msra.mxu2 %v5167_v21  ;;  %v5151_v34 = vor.u32 %v7909_v28, %v5148_v30  ;;  %v7907_v36 = vld [vmem:[%s12235_s1 + $0x8c] sm:$0xf0]  ;;  %v5258_v37 = vld [vmem:[%s12235_s1 + $0x180] sm:$0xf] }
  0x15   : > { %712 = vmatpush.bf16.msra.mxu3 %v5295_v25  ;;  %v5279_v38 = vor.u32 %v7941_v31, %v5276_v32  ;;  %v7939_v39 = vld [vmem:[%s12235_s1 + $0x18c] sm:$0xf0]  ;;  %v7905_v40 = vld [vmem:[%s12235_s1 + $0x84] sm:$0xf]  ;;  %v5132_v41 = vld [vmem:[%s12235_s1 + $0x90] sm:$0xf0]  ;;  %v5131_v44 = vor.u32 %v7907_v36, %v5130_v35 }
  0x16   : > { %v7937_v42 = vld [vmem:[%s12235_s1 + $0x184] sm:$0xf]  ;;  %v5260_v43 = vld [vmem:[%s12235_s1 + $0x190] sm:$0xf0]  ;;  %v5259_v45 = vor.u32 %v7939_v39, %v5258_v37  ;;  %v5135_v46 = vor.u32 %v7905_v40, %v5132_v41  ;;  %v5114_v47 = vld [vmem:[%s12235_s1 + $0x60] sm:$0xf] }
  0x17   : > { %674 = vmatpush.bf16.msra.mxu0 %v5147_v29  ;;  %v7903_v48 = vld [vmem:[%s12235_s1 + $0x6c] sm:$0xf0]  ;;  %v5242_v49 = vld [vmem:[%s12235_s1 + $0x160] sm:$0xf]  ;;  %v5263_v50 = vor.u32 %v7937_v42, %v5260_v43  ;;  %v7901_v52 = vld [vmem:[%s12235_s1 + $0x64] sm:$0xf] }
  0x18   : > { %687 = vmatpush.bf16.msra.mxu1 %v5275_v33  ;;  %700 = vmatpush.bf16.msra.mxu2 %v5151_v34  ;;  %v7935_v51 = vld [vmem:[%s12235_s1 + $0x16c] sm:$0xf0]  ;;  %v5116_v53 = vld [vmem:[%s12235_s1 + $0x70] sm:$0xf0]  ;;  %v7933_v54 = vld [vmem:[%s12235_s1 + $0x164] sm:$0xf]  ;;  %v5115_v56 = vor.u32 %v7903_v48, %v5114_v47 }
  0x19   : > { %713 = vmatpush.bf16.msra.mxu3 %v5279_v38  ;;  %v5244_v55 = vld [vmem:[%s12235_s1 + $0x170] sm:$0xf0]  ;;  %v5243_v57 = vor.u32 %v7935_v51, %v5242_v49  ;;  %v5119_v58 = vor.u32 %v7901_v52, %v5116_v53  ;;  %v5098_v59 = vld [vmem:[%s12235_s1 + $0x40] sm:$0xf]  ;;  %v7899_v60 = vld [vmem:[%s12235_s1 + $0x4c] sm:$0xf0] }
  0x1a   : > { %v5226_v61 = vld [vmem:[%s12235_s1 + $0x140] sm:$0xf]  ;;  %v5247_v62 = vor.u32 %v7933_v54, %v5244_v55  ;;  %v7931_v63 = vld [vmem:[%s12235_s1 + $0x14c] sm:$0xf0]  ;;  %v7897_v0 = vld [vmem:[%s12235_s1 + $0x44] sm:$0xf]  ;;  %v5099_v4 = vor.u32 %v7899_v60, %v5098_v59 }
  0x1b   : > { %675 = vmatpush.bf16.msra.mxu0 %v5131_v44  ;;  %v5100_v1 = vld [vmem:[%s12235_s1 + $0x50] sm:$0xf0]  ;;  %v7929_v2 = vld [vmem:[%s12235_s1 + $0x144] sm:$0xf]  ;;  %v5227_v5 = vor.u32 %v7931_v63, %v5226_v61  ;;  %v5082_v7 = vld [vmem:[%s12235_s1 + $0x20] sm:$0xf] }
  0x1c   : > { %688 = vmatpush.bf16.msra.mxu1 %v5259_v45  ;;  %701 = vmatpush.bf16.msra.mxu2 %v5135_v46  ;;  %v5228_v3 = vld [vmem:[%s12235_s1 + $0x150] sm:$0xf0]  ;;  %v5103_v6 = vor.u32 %v7897_v0, %v5100_v1  ;;  %v7895_v8 = vld [vmem:[%s12235_s1 + $0x2c] sm:$0xf0]  ;;  %v5210_v9 = vld [vmem:[%s12235_s1 + $0x120] sm:$0xf] }
  0x1d   : > { %714 = vmatpush.bf16.msra.mxu3 %v5263_v50  ;;  %v5231_v10 = vor.u32 %v7929_v2, %v5228_v3  ;;  %v7927_v11 = vld [vmem:[%s12235_s1 + $0x12c] sm:$0xf0]  ;;  %v7893_v12 = vld [vmem:[%s12235_s1 + $0x24] sm:$0xf]  ;;  %v5084_v13 = vld [vmem:[%s12235_s1 + $0x30] sm:$0xf0]  ;;  %v5083_v16 = vor.u32 %v7895_v8, %v5082_v7 }
  0x1e   : > { %v7925_v14 = vld [vmem:[%s12235_s1 + $0x124] sm:$0xf]  ;;  %v5212_v15 = vld [vmem:[%s12235_s1 + $0x130] sm:$0xf0]  ;;  %v5066_v17 = vld [vmem:[%s12235_s1] sm:$0xf]  ;;  %v5211_v19 = vor.u32 %v7927_v11, %v5210_v9  ;;  %v5087_v20 = vor.u32 %v7893_v12, %v5084_v13 }
  0x1f   : > { %676 = vmatpush.bf16.msra.mxu0 %v5115_v56  ;;  %v7891_v18 = vld [vmem:[%s12235_s1 + $0xc] sm:$0xf0]  ;;  %v5194_v21 = vld [vmem:[%s12235_s1 + $0x100] sm:$0xf]  ;;  %v7889_v23 = vld [vmem:[%s12235_s1 + $0x4] sm:$0xf]  ;;  %v5215_v24 = vor.u32 %v7925_v14, %v5212_v15 }
  0x20   : > { %689 = vmatpush.bf16.msra.mxu1 %v5243_v57  ;;  %702 = vmatpush.bf16.msra.mxu2 %v5119_v58  ;;  %v7923_v22 = vld [vmem:[%s12235_s1 + $0x10c] sm:$0xf0]  ;;  %v5068_v25 = vld [vmem:[%s12235_s1 + $0x10] sm:$0xf0]  ;;  %v7921_v26 = vld [vmem:[%s12235_s1 + $0x104] sm:$0xf]  ;;  %v5067_v31 = vor.u32 %v7891_v18, %v5066_v17 }
  0x21   : > { %715 = vmatpush.bf16.msra.mxu3 %v5247_v62  ;;  %v5196_v27 = vld [vmem:[%s12235_s1 + $0x110] sm:$0xf0]  ;;  %v5186_v28 = vld [vmem:[%s12235_s1 + $0xe8] sm:$0xf]  ;;  %v7920_v29 = vld [vmem:[%s12235_s1 + $0xf4] sm:$0xf0]  ;;  %v5195_v35 = vor.u32 %v7923_v22, %v5194_v21  ;;  %v5071_v36 = vor.u32 %v7889_v23, %v5068_v25 }
  0x22   : > { %v5314_v30 = vld [vmem:[%s12235_s1 + $0x1e8] sm:$0xf]  ;;  %v7952_v32 = vld [vmem:[%s12235_s1 + $0x1f4] sm:$0xf0]  ;;  %v7918_v33 = vld [vmem:[%s12235_s1 + $0xec] sm:$0xf]  ;;  %v5199_v39 = vor.u32 %v7921_v26, %v5196_v27  ;;  %v5187_v40 = vor.u32 %v7920_v29, %v5186_v28 }
  0x23   : > { %677 = vmatpush.bf16.msra.mxu0 %v5099_v4  ;;  %v5188_v34 = vld [vmem:[%s12235_s1 + $0xf8] sm:$0xf0]  ;;  %v7950_v37 = vld [vmem:[%s12235_s1 + $0x1ec] sm:$0xf]  ;;  %v5315_v41 = vor.u32 %v7952_v32, %v5314_v30  ;;  %v5170_v43 = vld [vmem:[%s12235_s1 + $0xc8] sm:$0xf] }
  0x24   : > { %690 = vmatpush.bf16.msra.mxu1 %v5227_v5  ;;  %703 = vmatpush.bf16.msra.mxu2 %v5103_v6  ;;  %v5316_v38 = vld [vmem:[%s12235_s1 + $0x1f8] sm:$0xf0]  ;;  %v5191_v42 = vor.u32 %v7918_v33, %v5188_v34  ;;  %v7916_v44 = vld [vmem:[%s12235_s1 + $0xd4] sm:$0xf0]  ;;  %v5298_v45 = vld [vmem:[%s12235_s1 + $0x1c8] sm:$0xf] }
  0x25   : > { %716 = vmatpush.bf16.msra.mxu3 %v5231_v10  ;;  %v5319_v46 = vor.u32 %v7950_v37, %v5316_v38  ;;  %v7948_v47 = vld [vmem:[%s12235_s1 + $0x1d4] sm:$0xf0]  ;;  %v7914_v48 = vld [vmem:[%s12235_s1 + $0xcc] sm:$0xf]  ;;  %v5172_v49 = vld [vmem:[%s12235_s1 + $0xd8] sm:$0xf0]  ;;  %v5171_v52 = vor.u32 %v7916_v44, %v5170_v43 }
  0x26   : > { %v7946_v50 = vld [vmem:[%s12235_s1 + $0x1cc] sm:$0xf]  ;;  %v5300_v51 = vld [vmem:[%s12235_s1 + $0x1d8] sm:$0xf0]  ;;  %v5154_v53 = vld [vmem:[%s12235_s1 + $0xa8] sm:$0xf]  ;;  %v5299_v54 = vor.u32 %v7948_v47, %v5298_v45  ;;  %v5175_v55 = vor.u32 %v7914_v48, %v5172_v49 }
  0x27   : > { %678 = vmatpush.bf16.msra.mxu0 %v5083_v16  ;;  %v7912_v56 = vld [vmem:[%s12235_s1 + $0xb4] sm:$0xf0]  ;;  %v5282_v57 = vld [vmem:[%s12235_s1 + $0x1a8] sm:$0xf]  ;;  %v5303_v59 = vor.u32 %v7946_v50, %v5300_v51  ;;  %v7910_v60 = vld [vmem:[%s12235_s1 + $0xac] sm:$0xf] }
  0x28   : > { %691 = vmatpush.bf16.msra.mxu1 %v5211_v19  ;;  %704 = vmatpush.bf16.msra.mxu2 %v5087_v20  ;;  %v7944_v58 = vld [vmem:[%s12235_s1 + $0x1b4] sm:$0xf0]  ;;  %v5156_v61 = vld [vmem:[%s12235_s1 + $0xb8] sm:$0xf0]  ;;  %s12245_s10 = smov (!%p253_p4, %s5059_s10), 7  ;;  %v5155_v0 = vor.u32 %v7912_v56, %v5154_v53  ;;  %vm783_vm0 = vcmask 1040384  }
  0x29   : > { %717 = vmatpush.bf16.msra.mxu3 %v5215_v24  ;;  %v7942_v62 = vld [vmem:[%s12235_s1 + $0x1ac] sm:$0xf]  ;;  %v5284_v63 = vld [vmem:[%s12235_s1 + $0x1b8] sm:$0xf0]  ;;  %v5138_v1 = vld [vmem:[%s12235_s1 + $0x88] sm:$0xf]  ;;  %v5283_v2 = vor.u32 %v7944_v58, %v5282_v57  ;;  %v5159_v3 = vor.u32 %v7910_v60, %v5156_v61 }
  0x2a   : > { %s5060_s8 = sshll.u32 %s12245_s10, 2  ;;  %v7908_v4 = vld [vmem:[%s12235_s1 + $0x94] sm:$0xf0]  ;;  %v5266_v5 = vld [vmem:[%s12235_s1 + $0x188] sm:$0xf]  ;;  %v5287_v7 = vor.u32 %v7942_v62, %v5284_v63  ;;  %vm785_vm1 = vcmask 1042434  }
  0x2b   : > { %679 = vmatpush.bf16.msra.mxu0 %v5067_v31  ;;  %v7940_v6 = vld [vmem:[%s12235_s1 + $0x194] sm:$0xf0]  ;;  %s8843_s10 = scalar_lea.vmem %s12234_s0, %s5060_s8  ;;  %v7906_v8 = vld [vmem:[%s12235_s1 + $0x8c] sm:$0xf]  ;;  %v5140_v9 = vld [vmem:[%s12235_s1 + $0x98] sm:$0xf0]  ;;  %v5139_v13 = vor.u32 %v7908_v4, %v5138_v1 }
  0x2c   : > { %692 = vmatpush.bf16.msra.mxu1 %v5195_v35  ;;  %705 = vmatpush.bf16.msra.mxu2 %v5071_v36  ;;  %v281_v10 = vld [vmem:[%s8843_s10] sm:$0x3]  ;;  %v7938_v11 = vld [vmem:[%s12235_s1 + $0x18c] sm:$0xf]  ;;  %v5268_v12 = vld [vmem:[%s12235_s1 + $0x198] sm:$0xf0]  ;;  %v5267_v14 = vor.u32 %v7940_v6, %v5266_v5  ;;  %v5143_v15 = vor.u32 %v7906_v8, %v5140_v9 }
  0x2d   : > { %718 = vmatpush.bf16.msra.mxu3 %v5199_v39  ;;  %347 = vst [vmem:[#allocation1] ss:$9 sm:$0xff] %v281_v10  ;;  %v5122_v16 = vld [vmem:[%s12235_s1 + $0x68] sm:$0xf]  ;;  %v7904_v17 = vld [vmem:[%s12235_s1 + $0x74] sm:$0xf0]  ;;  %v5271_v19 = vor.u32 %v7938_v11, %v5268_v12 }
  0x2e   : > { %v5250_v18 = vld [vmem:[%s12235_s1 + $0x168] sm:$0xf]  ;;  %v7936_v20 = vld [vmem:[%s12235_s1 + $0x174] sm:$0xf0]  ;;  %v7902_v21 = vld [vmem:[%s12235_s1 + $0x6c] sm:$0xf]  ;;  %v5123_v25 = vor.u32 %v7904_v17, %v5122_v16 }
  0x2f   : > { %724 = vmatpush.bf16.msrb.mxu0 %v5187_v40  ;;  %v5124_v22 = vld [vmem:[%s12235_s1 + $0x78] sm:$0xf0]  ;;  %v7934_v23 = vld [vmem:[%s12235_s1 + $0x16c] sm:$0xf]  ;;  %v5106_v26 = vld [vmem:[%s12235_s1 + $0x48] sm:$0xf]  ;;  %v5251_v28 = vor.u32 %v7936_v20, %v5250_v18 }
  0x30   : > { %737 = vmatpush.bf16.msrb.mxu1 %v5315_v41  ;;  %750 = vmatpush.bf16.msrb.mxu2 %v5191_v42  ;;  %v5252_v24 = vld [vmem:[%s12235_s1 + $0x178] sm:$0xf0]  ;;  %v7900_v27 = vld [vmem:[%s12235_s1 + $0x54] sm:$0xf0]  ;;  %v5127_v29 = vor.u32 %v7902_v21, %v5124_v22  ;;  %v5234_v30 = vld [vmem:[%s12235_s1 + $0x148] sm:$0xf] }
  0x31   : > { %763 = vmatpush.bf16.msrb.mxu3 %v5319_v46  ;;  %v7932_v31 = vld [vmem:[%s12235_s1 + $0x154] sm:$0xf0]  ;;  %v7898_v32 = vld [vmem:[%s12235_s1 + $0x4c] sm:$0xf]  ;;  %v5255_v35 = vor.u32 %v7934_v23, %v5252_v24  ;;  %v5108_v36 = vld [vmem:[%s12235_s1 + $0x58] sm:$0xf0]  ;;  %v5107_v39 = vor.u32 %v7900_v27, %v5106_v26 }
  0x32   : > { %v7930_v37 = vld [vmem:[%s12235_s1 + $0x14c] sm:$0xf]  ;;  %v5236_v38 = vld [vmem:[%s12235_s1 + $0x158] sm:$0xf0]  ;;  %v5235_v40 = vor.u32 %v7932_v31, %v5234_v30  ;;  %v5111_v41 = vor.u32 %v7898_v32, %v5108_v36  ;;  %v5090_v42 = vld [vmem:[%s12235_s1 + $0x28] sm:$0xf] }
  0x33   : > { %725 = vmatpush.bf16.msrb.mxu0 %v5171_v52  ;;  %v7896_v43 = vld [vmem:[%s12235_s1 + $0x34] sm:$0xf0]  ;;  %v5218_v44 = vld [vmem:[%s12235_s1 + $0x128] sm:$0xf]  ;;  %v5239_v45 = vor.u32 %v7930_v37, %v5236_v38  ;;  %v7894_v47 = vld [vmem:[%s12235_s1 + $0x2c] sm:$0xf] }
  0x34   : > { %738 = vmatpush.bf16.msrb.mxu1 %v5299_v54  ;;  %751 = vmatpush.bf16.msrb.mxu2 %v5175_v55  ;;  %v8897_v33 = vld [vmem:[#allocation1] sm:$0xff]  ;;  %v8899_v34 = vld [vmem:[#allocation1 + $0x9] sm:$0xff]  ;;  %v7928_v46 = vld [vmem:[%s12235_s1 + $0x134] sm:$0xf0]  ;;  %v5091_v51 = vor.u32 %v7896_v43, %v5090_v42  ;;  %vm787_vm2 = vcmask 1041408   ;;  %s12247_s18 = smov (!%p258_p5, %s8503_s18), 1 }
  0x35   : > { %764 = vmatpush.bf16.msrb.mxu3 %v5303_v59  ;;  %706 = vmatmul.bf16.vlgmr.msra.gmra.mxu2 %v8897_v33  ;;  %v5092_v48 = vld [vmem:[%s12235_s1 + $0x38] sm:$0xf0]  ;;  %v7926_v49 = vld [vmem:[%s12235_s1 + $0x12c] sm:$0xf]  ;;  %v5074_v52 = vld [vmem:[%s12235_s1 + $0x8] sm:$0xf]  ;;  %v5219_v54 = vor.u32 %v7928_v46, %v5218_v44 }
  0x36   : > { %719 = vmatmul.bf16.vlgmr.msra.gmra.mxu3 %v8899_v34  ;;  %693 = vmatmul.bf16.vlgmr.msra.gmra.mxu1 %v8899_v34  ;;  %v5220_v50 = vld [vmem:[%s12235_s1 + $0x138] sm:$0xf0]  ;;  %v7892_v53 = vld [vmem:[%s12235_s1 + $0x14] sm:$0xf0]  ;;  %v5095_v55 = vor.u32 %v7894_v47, %v5092_v48  ;;  %v5202_v56 = vld [vmem:[%s12235_s1 + $0x108] sm:$0xf] }
  0x37   : > { %726 = vmatpush.bf16.msrb.mxu0 %v5155_v0  ;;  %v7924_v57 = vld [vmem:[%s12235_s1 + $0x114] sm:$0xf0]  ;;  %v7890_v58 = vld [vmem:[%s12235_s1 + $0xc] sm:$0xf]  ;;  %v5223_v59 = vor.u32 %v7926_v49, %v5220_v50  ;;  %v5076_v60 = vld [vmem:[%s12235_s1 + $0x18] sm:$0xf0] }
  0x38   : > { %739 = vmatpush.bf16.msrb.mxu1 %v5283_v2  ;;  %752 = vmatpush.bf16.msrb.mxu2 %v5159_v3  ;;  %v7922_v61 = vld [vmem:[%s12235_s1 + $0x10c] sm:$0xf]  ;;  %v5204_v62 = vld [vmem:[%s12235_s1 + $0x118] sm:$0xf0]  ;;  %v5499_v63 = vld [vmem:[%s12235_s1 + $0x2e0] sm:$0xf]  ;;  %v5075_v2 = vor.u32 %v7892_v53, %v5074_v52  ;;  %v5203_v6 = vor.u32 %v7924_v57, %v5202_v56 }
  0x39   : > { %765 = vmatpush.bf16.msrb.mxu3 %v5287_v7  ;;  %680 = vmatmul.bf16.vlgmr.msra.gmra.mxu0 %v8897_v33  ;;  %v7983_v0 = vld [vmem:[%s12235_s1 + $0x2ec] sm:$0xf0]  ;;  %v5627_v1 = vld [vmem:[%s12235_s1 + $0x3e0] sm:$0xf]  ;;  %v7981_v4 = vld [vmem:[%s12235_s1 + $0x2e4] sm:$0xf]  ;;  %v5079_v7 = vor.u32 %v7890_v58, %v5076_v60  ;;  %v5207_v10 = vor.u32 %v7922_v61, %v5204_v62 }
  0x3a   : > { %v8015_v3 = vld [vmem:[%s12235_s1 + $0x3ec] sm:$0xf0]  ;;  %v5501_v5 = vld [vmem:[%s12235_s1 + $0x2f0] sm:$0xf0]  ;;  %v8013_v8 = vld [vmem:[%s12235_s1 + $0x3e4] sm:$0xf]  ;;  %v5500_v11 = vor.u32 %v7983_v0, %v5499_v63 }
  0x3b   : > { %727 = vmatpush.bf16.msrb.mxu0 %v5139_v13  ;;  %v5629_v9 = vld [vmem:[%s12235_s1 + $0x3f0] sm:$0xf0]  ;;  %v5628_v12 = vor.u32 %v8015_v3, %v5627_v1  ;;  %v5504_v13 = vor.u32 %v7981_v4, %v5501_v5  ;;  %v5611_v16 = vld [vmem:[%s12235_s1 + $0x3c0] sm:$0xf]  ;;  %v8011_v18 = vld [vmem:[%s12235_s1 + $0x3cc] sm:$0xf0] }
  0x3c   : > { %740 = vmatpush.bf16.msrb.mxu1 %v5267_v14  ;;  %753 = vmatpush.bf16.msrb.mxu2 %v5143_v15  ;;  %v5483_v14 = vld [vmem:[%s12235_s1 + $0x2c0] sm:$0xf]  ;;  %v7979_v15 = vld [vmem:[%s12235_s1 + $0x2cc] sm:$0xf0]  ;;  %v5632_v17 = vor.u32 %v8013_v8, %v5629_v9  ;;  %v5485_v20 = vld [vmem:[%s12235_s1 + $0x2d0] sm:$0xf0]  ;;  %v5612_v24 = vor.u32 %v8011_v18, %v5611_v16 }
  0x3d   : > { %766 = vmatpush.bf16.msrb.mxu3 %v5271_v19  ;;  %v7977_v19 = vld [vmem:[%s12235_s1 + $0x2c4] sm:$0xf]  ;;  %v5613_v22 = vld [vmem:[%s12235_s1 + $0x3d0] sm:$0xf0]  ;;  %v5484_v23 = vor.u32 %v7979_v15, %v5483_v14  ;;  %v5467_v26 = vld [vmem:[%s12235_s1 + $0x2a0] sm:$0xf] }
  0x3e   : > { %v8009_v21 = vld [vmem:[%s12235_s1 + $0x3c4] sm:$0xf]  ;;  %v7975_v27 = vld [vmem:[%s12235_s1 + $0x2ac] sm:$0xf0]  ;;  %v5469_v32 = vld [vmem:[%s12235_s1 + $0x2b0] sm:$0xf0] }
  0x3f   : > { %728 = vmatpush.bf16.msrb.mxu0 %v5123_v25  ;;  %v5488_v25 = vor.u32 %v7977_v19, %v5485_v20  ;;  %v8007_v30 = vld [vmem:[%s12235_s1 + $0x3ac] sm:$0xf0]  ;;  %v7973_v31 = vld [vmem:[%s12235_s1 + $0x2a4] sm:$0xf]  ;;  %v5597_v36 = vld [vmem:[%s12235_s1 + $0x3b0] sm:$0xf0]  ;;  %v5468_v37 = vor.u32 %v7975_v27, %v5467_v26 }
  0x40   : > { %741 = vmatpush.bf16.msrb.mxu1 %v5251_v28  ;;  %754 = vmatpush.bf16.msrb.mxu2 %v5127_v29  ;;  %v5595_v28 = vld [vmem:[%s12235_s1 + $0x3a0] sm:$0xf]  ;;  %v5616_v29 = vor.u32 %v8009_v21, %v5613_v22  ;;  %v8003_v43 = vld [vmem:[%s12235_s1 + $0x38c] sm:$0xf0]  ;;  %v7969_v44 = vld [vmem:[%s12235_s1 + $0x284] sm:$0xf] }
  0x41   : > { %767 = vmatpush.bf16.msrb.mxu3 %v5255_v35  ;;  %v8005_v35 = vld [vmem:[%s12235_s1 + $0x3a4] sm:$0xf]  ;;  %v5596_v38 = vor.u32 %v8007_v30, %v5595_v28  ;;  %v5435_v50 = vld [vmem:[%s12235_s1 + $0x260] sm:$0xf]  ;;  %v5437_v56 = vld [vmem:[%s12235_s1 + $0x270] sm:$0xf0] }
  0x42   : > { %v5600_v42 = vor.u32 %v8005_v35, %v5597_v36  ;;  %v8001_v46 = vld [vmem:[%s12235_s1 + $0x384] sm:$0xf]  ;;  %v5563_v52 = vld [vmem:[%s12235_s1 + $0x360] sm:$0xf]  ;;  %v5565_v58 = vld [vmem:[%s12235_s1 + $0x370] sm:$0xf0] }
  0x43   : > { %729 = vmatpush.bf16.msrb.mxu0 %v5107_v39  ;;  %v5472_v39 = vor.u32 %v7973_v31, %v5469_v32  ;;  %v7997_v57 = vld [vmem:[%s12235_s1 + $0x364] sm:$0xf]  ;;  %v5419_v60 = vld [vmem:[%s12235_s1 + $0x240] sm:$0xf]  ;;  %v7963_v63 = vld [vmem:[%s12235_s1 + $0x24c] sm:$0xf0] }
  0x44   : > { %742 = vmatpush.bf16.msrb.mxu1 %v5235_v40  ;;  %755 = vmatpush.bf16.msrb.mxu2 %v5111_v41  ;;  %v5451_v40 = vld [vmem:[%s12235_s1 + $0x280] sm:$0xf]  ;;  %v7995_v1 = vld [vmem:[%s12235_s1 + $0x34c] sm:$0xf0]  ;;  %v7961_v3 = vld [vmem:[%s12235_s1 + $0x244] sm:$0xf]  ;;  %v5420_v8 = vor.u32 %v7963_v63, %v5419_v60 }
  0x45   : > { %768 = vmatpush.bf16.msrb.mxu3 %v5239_v45  ;;  %v5579_v41 = vld [vmem:[%s12235_s1 + $0x380] sm:$0xf]  ;;  %v5453_v45 = vld [vmem:[%s12235_s1 + $0x290] sm:$0xf0]  ;;  %v5320_v5 = vld [vmem:[%s8843_s10 + $0x4] sm:$0x3] }
  0x46   : > { %v5580_v48 = vor.u32 %v8003_v43, %v5579_v41  ;;  %v5456_v49 = vor.u32 %v7969_v44, %v5453_v45  ;;  %v5547_v0 = vld [vmem:[%s12235_s1 + $0x340] sm:$0xf]  ;;  %v5421_v4 = vld [vmem:[%s12235_s1 + $0x250] sm:$0xf0]  ;;  %860 = vst [vmem:[#allocation1] ss:$9 sm:$0xff] %v5320_v5 }
  0x47   : > { %730 = vmatpush.bf16.msrb.mxu0 %v5091_v51  ;;  %v7967_v51 = vld [vmem:[%s12235_s1 + $0x26c] sm:$0xf0]  ;;  %v5548_v9 = vor.u32 %v7995_v1, %v5547_v0  ;;  %v7957_v16 = vld [vmem:[%s12235_s1 + $0x224] sm:$0xf]  ;;  %v5533_v19 = vld [vmem:[%s12235_s1 + $0x330] sm:$0xf0] }
  0x48   : > { %743 = vmatpush.bf16.msrb.mxu1 %v5219_v54  ;;  %756 = vmatpush.bf16.msrb.mxu2 %v5095_v55  ;;  %v7999_v54 = vld [vmem:[%s12235_s1 + $0x36c] sm:$0xf0]  ;;  %v7965_v55 = vld [vmem:[%s12235_s1 + $0x264] sm:$0xf]  ;;  %v5387_v21 = vld [vmem:[%s12235_s1 + $0x200] sm:$0xf] }
  0x49   : > { %769 = vmatpush.bf16.msrb.mxu3 %v5223_v59  ;;  %v5436_v59 = vor.u32 %v7967_v51, %v5435_v50  ;;  %v5564_v61 = vor.u32 %v7999_v54, %v5563_v52  ;;  %v5440_v62 = vor.u32 %v7965_v55, %v5437_v56  ;;  %v7991_v15 = vld [vmem:[%s12235_s1 + $0x32c] sm:$0xf0]  ;;  %v7989_v18 = vld [vmem:[%s12235_s1 + $0x324] sm:$0xf]  ;;  %v5517_v31 = vld [vmem:[%s12235_s1 + $0x310] sm:$0xf0] }
  0x4a   : > { %v7955_v22 = vld [vmem:[%s12235_s1 + $0x20c] sm:$0xf0]  ;;  %v7953_v27 = vld [vmem:[%s12235_s1 + $0x204] sm:$0xf]  ;;  %v5536_v28 = vor.u32 %v7989_v18, %v5533_v19  ;;  %v5507_v32 = vld [vmem:[%s12235_s1 + $0x2e8] sm:$0xf] }
  0x4b   : > { %731 = vmatpush.bf16.msrb.mxu0 %v5075_v2  ;;  %v5568_v2 = vor.u32 %v7997_v57, %v5565_v58  ;;  %v7987_v26 = vld [vmem:[%s12235_s1 + $0x30c] sm:$0xf0]  ;;  %v7985_v30 = vld [vmem:[%s12235_s1 + $0x304] sm:$0xf]  ;;  %v7984_v35 = vld [vmem:[%s12235_s1 + $0x2f4] sm:$0xf0] }
  0x4c   : > { %744 = vmatpush.bf16.msrb.mxu1 %v5203_v6  ;;  %757 = vmatpush.bf16.msrb.mxu2 %v5079_v7  ;;  %v7993_v6 = vld [vmem:[%s12235_s1 + $0x344] sm:$0xf]  ;;  %v5549_v7 = vld [vmem:[%s12235_s1 + $0x350] sm:$0xf0]  ;;  %v5635_v36 = vld [vmem:[%s12235_s1 + $0x3e8] sm:$0xf]  ;;  %v5520_v44 = vor.u32 %v7985_v30, %v5517_v31  ;;  %v5508_v45 = vor.u32 %v7984_v35, %v5507_v32 }
  0x4d   : > { %770 = vmatpush.bf16.msrb.mxu3 %v5207_v10  ;;  %v5424_v10 = vor.u32 %v7961_v3, %v5421_v4  ;;  %v5552_v14 = vor.u32 %v7993_v6, %v5549_v7  ;;  %v5637_v43 = vld [vmem:[%s12235_s1 + $0x3f8] sm:$0xf0]  ;;  %v8012_v51 = vld [vmem:[%s12235_s1 + $0x3d4] sm:$0xf0]  ;;  %v7978_v52 = vld [vmem:[%s12235_s1 + $0x2cc] sm:$0xf] }
  0x4e   : > { %732 = vmatmul.bf16.vlgmr.msrb.gmra.mxu0 %v8897_v33  ;;  %v8010_v54 = vld [vmem:[%s12235_s1 + $0x3cc] sm:$0xf]  ;;  %v5621_v55 = vld [vmem:[%s12235_s1 + $0x3d8] sm:$0xf0]  ;;  %v9207_v56 = vld [vmem:[#allocation1] sm:$0xff]  ;;  %s5061_s23 = sshll.u32 %s12247_s18, 2 }
  0x4f   : > { %1185 = vmatpush.bf16.msra.mxu0 %v5500_v11  ;;  %758 = vmatmul.bf16.vlgmr.msrb.gmra.mxu2 %v8897_v33  ;;  %v5581_v33 = vld [vmem:[%s12235_s1 + $0x390] sm:$0xf0]  ;;  %v5403_v11 = vld [vmem:[%s12235_s1 + $0x220] sm:$0xf]  ;;  %v9209_v58 = vld [vmem:[#allocation1 + $0x9] sm:$0xff]  ;;  %v5624_v0 = vor.u32 %v8010_v54, %v5621_v55  ;;  %s265_s26 = scalar_lea.vmem %s12237_s3, %s5061_s23  ;;  %s270_s29 = scalar_lea.vmem %s12238_s4, %s5061_s23 }
  0x50   : > { %1198 = vmatpush.bf16.msra.mxu1 %v5628_v12  ;;  %1211 = vmatpush.bf16.msra.mxu2 %v5504_v13  ;;  %v5584_v53 = vor.u32 %v8001_v46, %v5581_v33  ;;  %v7959_v12 = vld [vmem:[%s12235_s1 + $0x22c] sm:$0xf0]  ;;  %v5531_v13 = vld [vmem:[%s12235_s1 + $0x320] sm:$0xf]  ;;  %v5603_v63 = vld [vmem:[%s12235_s1 + $0x3a8] sm:$0xf]  ;;  %s276_s18 = scalar_lea.vmem %s12239_s5, %s5061_s23 }
  0x51   : > { %1224 = vmatpush.bf16.msra.mxu3 %v5632_v17  ;;  %745 = vmatmul.bf16.vlgmr.msrb.gmra.mxu1 %v8899_v34  ;;  %v5405_v17 = vld [vmem:[%s12235_s1 + $0x230] sm:$0xf0]  ;;  %v5404_v20 = vor.u32 %v7959_v12, %v5403_v11  ;;  %v8008_v1 = vld [vmem:[%s12235_s1 + $0x3b4] sm:$0xf0]  ;;  %v5477_v3 = vld [vmem:[%s12235_s1 + $0x2b8] sm:$0xf0] }
  0x52   : > { %771 = vmatmul.bf16.vlgmr.msrb.gmra.mxu3 %v8899_v34  ;;  %v7971_v34 = vld [vmem:[%s12235_s1 + $0x28c] sm:$0xf0]  ;;  %v8006_v4 = vld [vmem:[%s12235_s1 + $0x3ac] sm:$0xf]  ;;  %v5605_v5 = vld [vmem:[%s12235_s1 + $0x3b8] sm:$0xf0]  ;;  %v5604_v7 = vor.u32 %v8008_v1, %v5603_v63 }
  0x53   : > { %1186 = vmatpush.bf16.msra.mxu0 %v5484_v23  ;;  %v5452_v47 = vor.u32 %v7971_v34, %v5451_v40  ;;  %v5532_v23 = vor.u32 %v7991_v15, %v5531_v13  ;;  %v5509_v40 = vld [vmem:[%s12235_s1 + $0x2f8] sm:$0xf0]  ;;  %v5587_v11 = vld [vmem:[%s12235_s1 + $0x388] sm:$0xf]  ;;  %v5608_v12 = vor.u32 %v8006_v4, %v5605_v5  ;;  %v8004_v13 = vld [vmem:[%s12235_s1 + $0x394] sm:$0xf0] }
  0x54   : > { %1199 = vmatpush.bf16.msra.mxu1 %v5612_v24  ;;  %1212 = vmatpush.bf16.msra.mxu2 %v5488_v25  ;;  %v5408_v24 = vor.u32 %v7957_v16, %v5405_v17  ;;  %v5515_v25 = vld [vmem:[%s12235_s1 + $0x300] sm:$0xf]  ;;  %v5461_v15 = vld [vmem:[%s12235_s1 + $0x298] sm:$0xf0]  ;;  %v8002_v16 = vld [vmem:[%s12235_s1 + $0x38c] sm:$0xf]  ;;  %v5588_v19 = vor.u32 %v8004_v13, %v5587_v11 }
  0x55   : > { %1225 = vmatpush.bf16.msra.mxu3 %v5616_v29  ;;  %v5389_v29 = vld [vmem:[%s12235_s1 + $0x210] sm:$0xf0]  ;;  %v5516_v34 = vor.u32 %v7987_v26, %v5515_v25  ;;  %v5589_v17 = vld [vmem:[%s12235_s1 + $0x398] sm:$0xf0]  ;;  %v8000_v25 = vld [vmem:[%s12235_s1 + $0x374] sm:$0xf0] }
  0x56   : > { %v5392_v41 = vor.u32 %v7953_v27, %v5389_v29  ;;  %v7966_v26 = vld [vmem:[%s12235_s1 + $0x26c] sm:$0xf]  ;;  %v5445_v27 = vld [vmem:[%s12235_s1 + $0x278] sm:$0xf0]  ;;  %v5427_v35 = vld [vmem:[%s12235_s1 + $0x248] sm:$0xf] }
  0x57   : > { %1187 = vmatpush.bf16.msra.mxu0 %v5468_v37  ;;  %v5388_v37 = vor.u32 %v7955_v22, %v5387_v21  ;;  %v5443_v21 = vld [vmem:[%s12235_s1 + $0x268] sm:$0xf]  ;;  %v7968_v22 = vld [vmem:[%s12235_s1 + $0x274] sm:$0xf0]  ;;  %v5573_v29 = vld [vmem:[%s12235_s1 + $0x378] sm:$0xf0]  ;;  %v5448_v32 = vor.u32 %v7966_v26, %v5445_v27 }
  0x58   : > { %1200 = vmatpush.bf16.msra.mxu1 %v5596_v38  ;;  %1213 = vmatpush.bf16.msra.mxu2 %v5472_v39  ;;  %v8016_v38 = vld [vmem:[%s12235_s1 + $0x3f4] sm:$0xf0]  ;;  %v7982_v39 = vld [vmem:[%s12235_s1 + $0x2ec] sm:$0xf]  ;;  %v5444_v30 = vor.u32 %v7968_v22, %v5443_v21  ;;  %v5395_v55 = vld [vmem:[%s12235_s1 + $0x208] sm:$0xf] }
  0x59   : > { %1226 = vmatpush.bf16.msra.mxu3 %v5600_v42  ;;  %v8014_v42 = vld [vmem:[%s12235_s1 + $0x3ec] sm:$0xf]  ;;  %v5636_v46 = vor.u32 %v8016_v38, %v5635_v36  ;;  %v5512_v33 = vor.u32 %v7982_v39, %v5509_v40  ;;  %v7964_v36 = vld [vmem:[%s12235_s1 + $0x254] sm:$0xf0]  ;;  %v5397_v1 = vld [vmem:[%s12235_s1 + $0x218] sm:$0xf0] }
  0x5a   : > { %v5640_v50 = vor.u32 %v8014_v42, %v5637_v43  ;;  %v7996_v39 = vld [vmem:[%s12235_s1 + $0x354] sm:$0xf0]  ;;  %v7962_v40 = vld [vmem:[%s12235_s1 + $0x24c] sm:$0xf]  ;;  %v5557_v42 = vld [vmem:[%s12235_s1 + $0x358] sm:$0xf0]  ;;  %v5428_v43 = vor.u32 %v7964_v36, %v5427_v35 }
  0x5b   : > { %1188 = vmatpush.bf16.msra.mxu0 %v5452_v47  ;;  %v5491_v47 = vld [vmem:[%s12235_s1 + $0x2c8] sm:$0xf]  ;;  %v7954_v63 = vld [vmem:[%s12235_s1 + $0x20c] sm:$0xf]  ;;  %v5819_v4 = vld [vmem:[%s12235_s1 + $0x4e0] sm:$0xf] }
  0x5c   : > { %1201 = vmatpush.bf16.msra.mxu1 %v5580_v48  ;;  %1214 = vmatpush.bf16.msra.mxu2 %v5456_v49  ;;  %v7980_v48 = vld [vmem:[%s12235_s1 + $0x2d4] sm:$0xf0]  ;;  %v5619_v49 = vld [vmem:[%s12235_s1 + $0x3c8] sm:$0xf]  ;;  %v8047_v5 = vld [vmem:[%s12235_s1 + $0x4ec] sm:$0xf0] }
  0x5d   : > { %1227 = vmatpush.bf16.msra.mxu3 %v5584_v53  ;;  %v5493_v53 = vld [vmem:[%s12235_s1 + $0x2d8] sm:$0xf0]  ;;  %v5492_v57 = vor.u32 %v7980_v48, %v5491_v47  ;;  %v5539_v47 = vld [vmem:[%s12235_s1 + $0x328] sm:$0xf]  ;;  %v8077_v13 = vld [vmem:[%s12235_s1 + $0x5e4] sm:$0xf] }
  0x5e   : > { %v5496_v60 = vor.u32 %v7978_v52, %v5493_v53  ;;  %v7990_v52 = vld [vmem:[%s12235_s1 + $0x32c] sm:$0xf]  ;;  %v5541_v53 = vld [vmem:[%s12235_s1 + $0x338] sm:$0xf0]  ;;  %v5931_v21 = vld [vmem:[%s12235_s1 + $0x5c0] sm:$0xf] }
  0x5f   : > { %1189 = vmatpush.bf16.msra.mxu0 %v5436_v59  ;;  %v5620_v59 = vor.u32 %v8012_v51, %v5619_v49  ;;  %v7992_v49 = vld [vmem:[%s12235_s1 + $0x334] sm:$0xf0]  ;;  %v5413_v51 = vld [vmem:[%s12235_s1 + $0x238] sm:$0xf0]  ;;  %v8073_v26 = vld [vmem:[%s12235_s1 + $0x5c4] sm:$0xf] }
  0x60   : > { %1202 = vmatpush.bf16.msra.mxu1 %v5564_v61  ;;  %1215 = vmatpush.bf16.msra.mxu2 %v5440_v62  ;;  %v5475_v61 = vld [vmem:[%s12235_s1 + $0x2a8] sm:$0xf]  ;;  %v7976_v62 = vld [vmem:[%s12235_s1 + $0x2b4] sm:$0xf0]  ;;  %v5933_v27 = vld [vmem:[%s12235_s1 + $0x5d0] sm:$0xf0] }
  0x61   : > { %1228 = vmatpush.bf16.msra.mxu3 %v5568_v2  ;;  %v7974_v2 = vld [vmem:[%s12235_s1 + $0x2ac] sm:$0xf]  ;;  %v5476_v6 = vor.u32 %v7976_v62, %v5475_v61  ;;  %v5523_v61 = vld [vmem:[%s12235_s1 + $0x308] sm:$0xf]  ;;  %v7988_v62 = vld [vmem:[%s12235_s1 + $0x314] sm:$0xf0]  ;;  %v5936_v36 = vor.u32 %v8073_v26, %v5933_v27 }
  0x62   : > { %v5524_v11 = vor.u32 %v7988_v62, %v5523_v61  ;;  %v5915_v35 = vld [vmem:[%s12235_s1 + $0x5a0] sm:$0xf]  ;;  %v8029_v61 = vld [vmem:[%s12235_s1 + $0x464] sm:$0xf]  ;;  %v5757_v62 = vld [vmem:[%s12235_s1 + $0x470] sm:$0xf0] }
  0x63   : > { %1190 = vmatpush.bf16.msra.mxu0 %v5420_v8  ;;  %v5480_v8 = vor.u32 %v7974_v2, %v5477_v3  ;;  %v7986_v2 = vld [vmem:[%s12235_s1 + $0x30c] sm:$0xf]  ;;  %v5525_v3 = vld [vmem:[%s12235_s1 + $0x318] sm:$0xf0]  ;;  %v8053_v26 = vld [vmem:[%s12235_s1 + $0x524] sm:$0xf] }
  0x64   : > { %1203 = vmatpush.bf16.msra.mxu1 %v5548_v9  ;;  %1216 = vmatpush.bf16.msra.mxu2 %v5424_v10  ;;  %v5459_v9 = vld [vmem:[%s12235_s1 + $0x288] sm:$0xf]  ;;  %v7972_v10 = vld [vmem:[%s12235_s1 + $0x294] sm:$0xf0]  ;;  %v5853_v27 = vld [vmem:[%s12235_s1 + $0x530] sm:$0xf0] }
  0x65   : > { %1229 = vmatpush.bf16.msra.mxu3 %v5552_v14  ;;  %v7970_v14 = vld [vmem:[%s12235_s1 + $0x28c] sm:$0xf]  ;;  %v5460_v18 = vor.u32 %v7972_v10, %v5459_v9  ;;  %v8045_v9 = vld [vmem:[%s12235_s1 + $0x4e4] sm:$0xf]  ;;  %v5821_v10 = vld [vmem:[%s12235_s1 + $0x4f0] sm:$0xf0] }
  0x67   : > { %1191 = vmatpush.bf16.msra.mxu0 %v5404_v20  ;;  %v5464_v20 = vor.u32 %v7970_v14, %v5461_v15  ;;  %v5949_v14 = vld [vmem:[%s12235_s1 + $0x5f0] sm:$0xf0]  ;;  %v5528_v15 = vor.u32 %v7986_v2, %v5525_v3  ;;  %v5739_v2 = vld [vmem:[%s12235_s1 + $0x440] sm:$0xf]  ;;  %v8027_v3 = vld [vmem:[%s12235_s1 + $0x44c] sm:$0xf0] }
  0x68   : > { %1204 = vmatpush.bf16.msra.mxu1 %v5532_v23  ;;  %1217 = vmatpush.bf16.msra.mxu2 %v5408_v24  ;;  %v5571_v23 = vld [vmem:[%s12235_s1 + $0x368] sm:$0xf]  ;;  %v5592_v24 = vor.u32 %v8002_v16, %v5589_v17  ;;  %v5820_v16 = vor.u32 %v8047_v5, %v5819_v4  ;;  %v5952_v22 = vor.u32 %v8077_v13, %v5949_v14  ;;  %v8057_v14 = vld [vmem:[%s12235_s1 + $0x544] sm:$0xf] }
  0x69   : > { %1230 = vmatpush.bf16.msra.mxu3 %v5536_v28  ;;  %v7998_v28 = vld [vmem:[%s12235_s1 + $0x36c] sm:$0xf]  ;;  %v5572_v31 = vor.u32 %v8000_v25, %v5571_v23  ;;  %v8075_v23 = vld [vmem:[%s12235_s1 + $0x5cc] sm:$0xf0]  ;;  %v5805_v25 = vld [vmem:[%s12235_s1 + $0x4d0] sm:$0xf0] }
  0x6a   : > { %v5576_v38 = vor.u32 %v7998_v28, %v5573_v29  ;;  %v5932_v29 = vor.u32 %v8075_v23, %v5931_v21  ;;  %v5961_v4 = vld [vmem:[%s8843_s10 + $0x8] sm:$0x3]  ;;  %v5851_v21 = vld [vmem:[%s12235_s1 + $0x520] sm:$0xf]  ;;  %v8055_v23 = vld [vmem:[%s12235_s1 + $0x52c] sm:$0xf0] }
  0x6b   : > { %1192 = vmatpush.bf16.msra.mxu0 %v5388_v37  ;;  %v5555_v37 = vld [vmem:[%s12235_s1 + $0x348] sm:$0xf] }
  0x6c   : > { %1205 = vmatpush.bf16.msra.mxu1 %v5516_v34  ;;  %1218 = vmatpush.bf16.msra.mxu2 %v5392_v41  ;;  %v5429_v34 = vld [vmem:[%s12235_s1 + $0x258] sm:$0xf0]  ;;  %v7994_v41 = vld [vmem:[%s12235_s1 + $0x34c] sm:$0xf] }
  0x6d   : > { %1231 = vmatpush.bf16.msra.mxu3 %v5520_v44  ;;  %v5556_v44 = vor.u32 %v7996_v39, %v5555_v37  ;;  %v5560_v48 = vor.u32 %v7994_v41, %v5557_v42  ;;  %v8071_v37 = vld [vmem:[%s12235_s1 + $0x5ac] sm:$0xf0]  ;;  %v5789_v39 = vld [vmem:[%s12235_s1 + $0x4b0] sm:$0xf0]  ;;  %v1301_v42 = vld [vmem:[%s8843_s10] sm:$0x3] }
  0x6e   : > { %1193 = vmatmul.bf16.vlgmr.msra.gmra.mxu0 %v9207_v56  ;;  %1368 = vst [vmem:[#allocation1] ss:$9 sm:$0xff] %v1301_v42  ;;  %v8048_v42 = vld [vmem:[%s12235_s1 + $0x4f4] sm:$0xf0] }
  0x6f   : > { %1237 = vmatpush.bf16.msrb.mxu0 %v5508_v45  ;;  %1219 = vmatmul.bf16.vlgmr.msra.gmra.mxu2 %v9207_v56  ;;  %v5432_v45 = vor.u32 %v7962_v40, %v5429_v34  ;;  %v8069_v40 = vld [vmem:[%s12235_s1 + $0x5a4] sm:$0xf]  ;;  %v5917_v34 = vld [vmem:[%s12235_s1 + $0x5b0] sm:$0xf0] }
  0x70   : > { %1250 = vmatpush.bf16.msrb.mxu1 %v5636_v46  ;;  %1263 = vmatpush.bf16.msrb.mxu2 %v5512_v33  ;;  %v5411_v46 = vld [vmem:[%s12235_s1 + $0x228] sm:$0xf]  ;;  %v7960_v33 = vld [vmem:[%s12235_s1 + $0x234] sm:$0xf0] }
  0x71   : > { %1276 = vmatpush.bf16.msrb.mxu3 %v5640_v50  ;;  %1206 = vmatmul.bf16.vlgmr.msra.gmra.mxu1 %v9209_v58  ;;  %v7958_v50 = vld [vmem:[%s12235_s1 + $0x22c] sm:$0xf]  ;;  %v5412_v54 = vor.u32 %v7960_v33, %v5411_v46  ;;  %v5899_v46 = vld [vmem:[%s12235_s1 + $0x580] sm:$0xf]  ;;  %v8067_v33 = vld [vmem:[%s12235_s1 + $0x58c] sm:$0xf0] }
  0x72   : > { %1232 = vmatmul.bf16.vlgmr.msra.gmra.mxu3 %v9209_v58 }
  0x73   : > { %1238 = vmatpush.bf16.msrb.mxu0 %v5492_v57  ;;  %v7956_v57 = vld [vmem:[%s12235_s1 + $0x214] sm:$0xf0] }
  0x74   : > { %1251 = vmatpush.bf16.msrb.mxu1 %v5620_v59  ;;  %1264 = vmatpush.bf16.msrb.mxu2 %v5496_v60  ;;  %v5540_v59 = vor.u32 %v7992_v49, %v5539_v47  ;;  %v5416_v60 = vor.u32 %v7958_v50, %v5413_v51  ;;  %v8033_v47 = vld [vmem:[%s12235_s1 + $0x484] sm:$0xf]  ;;  %v5901_v50 = vld [vmem:[%s12235_s1 + $0x590] sm:$0xf0] }
  0x75   : > { %1277 = vmatpush.bf16.msrb.mxu3 %v5624_v0  ;;  %v5544_v0 = vor.u32 %v7990_v52, %v5541_v53  ;;  %v8065_v49 = vld [vmem:[%s12235_s1 + $0x584] sm:$0xf]  ;;  %v5900_v52 = vor.u32 %v8067_v33, %v5899_v46  ;;  %v9505_v13 = vld [vmem:[#allocation1 + $0x9] sm:$0xff]  ;;  %v5829_v46 = vld [vmem:[%s12235_s1 + $0x4f8] sm:$0xf0] }
  0x77   : > { %1239 = vmatpush.bf16.msrb.mxu0 %v5476_v6  ;;  %v5947_v6 = vld [vmem:[%s12235_s1 + $0x5e0] sm:$0xf] }
  0x78   : > { %1252 = vmatpush.bf16.msrb.mxu1 %v5604_v7  ;;  %1265 = vmatpush.bf16.msrb.mxu2 %v5480_v8  ;;  %v5396_v7 = vor.u32 %v7956_v57, %v5395_v55  ;;  %v8079_v8 = vld [vmem:[%s12235_s1 + $0x5ec] sm:$0xf0]  ;;  %v5883_v57 = vld [vmem:[%s12235_s1 + $0x560] sm:$0xf] }
  0x79   : > { %1278 = vmatpush.bf16.msrb.mxu3 %v5608_v12  ;;  %v5400_v12 = vor.u32 %v7954_v63, %v5397_v1  ;;  %v5948_v17 = vor.u32 %v8079_v8, %v5947_v6  ;;  %v8031_v55 = vld [vmem:[%s12235_s1 + $0x46c] sm:$0xf0]  ;;  %v8061_v63 = vld [vmem:[%s12235_s1 + $0x564] sm:$0xf]  ;;  %v5760_v6 = vor.u32 %v8029_v61, %v5757_v62  ;;  %v5813_v61 = vld [vmem:[%s12235_s1 + $0x4d8] sm:$0xf0] }
  0x7a   : > { %v8059_v8 = vld [vmem:[%s12235_s1 + $0x54c] sm:$0xf0] }
  0x7b   : > { %1240 = vmatpush.bf16.msrb.mxu0 %v5460_v18  ;;  %v5824_v18 = vor.u32 %v8045_v9, %v5821_v10  ;;  %v8025_v9 = vld [vmem:[%s12235_s1 + $0x444] sm:$0xf] }
  0x7c   : > { %1253 = vmatpush.bf16.msrb.mxu1 %v5588_v19  ;;  %1266 = vmatpush.bf16.msrb.mxu2 %v5464_v20  ;;  %v5803_v19 = vld [vmem:[%s12235_s1 + $0x4c0] sm:$0xf]  ;;  %v8043_v20 = vld [vmem:[%s12235_s1 + $0x4cc] sm:$0xf0] }
  0x7d   : > { %1279 = vmatpush.bf16.msrb.mxu3 %v5592_v24  ;;  %v8041_v24 = vld [vmem:[%s12235_s1 + $0x4c4] sm:$0xf]  ;;  %v5804_v28 = vor.u32 %v8043_v20, %v5803_v19  ;;  %v5723_v19 = vld [vmem:[%s12235_s1 + $0x420] sm:$0xf]  ;;  %v8023_v20 = vld [vmem:[%s12235_s1 + $0x42c] sm:$0xf0] }
  0x7f   : > { %1241 = vmatpush.bf16.msrb.mxu0 %v5444_v30  ;;  %v5808_v30 = vor.u32 %v8041_v24, %v5805_v25  ;;  %v8021_v24 = vld [vmem:[%s12235_s1 + $0x424] sm:$0xf]  ;;  %v5725_v25 = vld [vmem:[%s12235_s1 + $0x430] sm:$0xf0] }
  0x80   : > { %1254 = vmatpush.bf16.msrb.mxu1 %v5572_v31  ;;  %1267 = vmatpush.bf16.msrb.mxu2 %v5448_v32  ;;  %v5787_v31 = vld [vmem:[%s12235_s1 + $0x4a0] sm:$0xf]  ;;  %v8039_v32 = vld [vmem:[%s12235_s1 + $0x4ac] sm:$0xf0] }
  0x81   : > { %1280 = vmatpush.bf16.msrb.mxu3 %v5576_v38  ;;  %v8037_v38 = vld [vmem:[%s12235_s1 + $0x4a4] sm:$0xf]  ;;  %v5788_v41 = vor.u32 %v8039_v32, %v5787_v31  ;;  %v5852_v31 = vor.u32 %v8055_v23, %v5851_v21  ;;  %v5728_v32 = vor.u32 %v8021_v24, %v5725_v25  ;;  %v8068_v21 = vld [vmem:[%s12235_s1 + $0x594] sm:$0xf0]  ;;  %v5781_v23 = vld [vmem:[%s12235_s1 + $0x498] sm:$0xf0] }
  0x82   : > { %v8066_v24 = vld [vmem:[%s12235_s1 + $0x58c] sm:$0xf]  ;;  %v5909_v25 = vld [vmem:[%s12235_s1 + $0x598] sm:$0xf0] }
  0x83   : > { %1242 = vmatpush.bf16.msrb.mxu0 %v5428_v43  ;;  %v5916_v43 = vor.u32 %v8071_v37, %v5915_v35  ;;  %v5835_v35 = vld [vmem:[%s12235_s1 + $0x500] sm:$0xf]  ;;  %v8017_v37 = vld [vmem:[%s12235_s1 + $0x404] sm:$0xf] }
  0x84   : > { %1255 = vmatpush.bf16.msrb.mxu1 %v5556_v44  ;;  %1268 = vmatpush.bf16.msrb.mxu2 %v5432_v45  ;;  %v5792_v44 = vor.u32 %v8037_v38, %v5789_v39  ;;  %v8035_v45 = vld [vmem:[%s12235_s1 + $0x48c] sm:$0xf0]  ;;  %v5856_v38 = vor.u32 %v8053_v26, %v5853_v27  ;;  %v5709_v39 = vld [vmem:[%s12235_s1 + $0x410] sm:$0xf0] }
  0x85   : > { %1281 = vmatpush.bf16.msrb.mxu3 %v5560_v48  ;;  %v5773_v48 = vld [vmem:[%s12235_s1 + $0x490] sm:$0xf0]  ;;  %v5712_v33 = vor.u32 %v8017_v37, %v5709_v39  ;;  %v5765_v37 = vld [vmem:[%s12235_s1 + $0x478] sm:$0xf0] }
  0x86   : > { %v5776_v53 = vor.u32 %v8033_v47, %v5773_v48  ;;  %v8078_v47 = vld [vmem:[%s12235_s1 + $0x5ec] sm:$0xf]  ;;  %v5957_v48 = vld [vmem:[%s12235_s1 + $0x5f8] sm:$0xf0] }
  0x87   : > { %1243 = vmatpush.bf16.msrb.mxu0 %v5412_v54  ;;  %v5755_v54 = vld [vmem:[%s12235_s1 + $0x460] sm:$0xf]  ;;  %v5893_v39 = vld [vmem:[%s12235_s1 + $0x578] sm:$0xf0] }
  0x88   : > { %1256 = vmatpush.bf16.msrb.mxu1 %v5540_v59  ;;  %1269 = vmatpush.bf16.msrb.mxu2 %v5416_v60  ;;  %v5904_v59 = vor.u32 %v8065_v49, %v5901_v50  ;;  %v8063_v60 = vld [vmem:[%s12235_s1 + $0x56c] sm:$0xf0]  ;;  %v5756_v1 = vor.u32 %v8031_v55, %v5755_v54  ;;  %v8044_v54 = vld [vmem:[%s12235_s1 + $0x4d4] sm:$0xf0]  ;;  %v5939_v55 = vld [vmem:[%s12235_s1 + $0x5c8] sm:$0xf] }
  0x89   : > { %1282 = vmatpush.bf16.msrb.mxu3 %v5544_v0  ;;  %v5885_v0 = vld [vmem:[%s12235_s1 + $0x570] sm:$0xf0]  ;;  %v5884_v5 = vor.u32 %v8063_v60, %v5883_v57  ;;  %v8076_v57 = vld [vmem:[%s12235_s1 + $0x5d4] sm:$0xf0]  ;;  %v8042_v60 = vld [vmem:[%s12235_s1 + $0x4cc] sm:$0xf] }
  0x8a   : > { %v5888_v10 = vor.u32 %v8061_v63, %v5885_v0  ;;  %v8074_v63 = vld [vmem:[%s12235_s1 + $0x5cc] sm:$0xf]  ;;  %v5941_v0 = vld [vmem:[%s12235_s1 + $0x5d8] sm:$0xf0] }
  0x8b   : > { %1244 = vmatpush.bf16.msrb.mxu0 %v5396_v7  ;;  %v5867_v7 = vld [vmem:[%s12235_s1 + $0x540] sm:$0xf] }
  0x8c   : > { %1257 = vmatpush.bf16.msrb.mxu1 %v5524_v11  ;;  %1270 = vmatpush.bf16.msrb.mxu2 %v5400_v12  ;;  %v5741_v11 = vld [vmem:[%s12235_s1 + $0x450] sm:$0xf0]  ;;  %v9503_v12 = vld [vmem:[#allocation1] sm:$0xff] }
  0x8d   : > { %1283 = vmatpush.bf16.msrb.mxu3 %v5528_v15  ;;  %v5869_v15 = vld [vmem:[%s12235_s1 + $0x550] sm:$0xf0]  ;;  %1882 = vst [vmem:[#allocation1] ss:$9 sm:$0xff] %v5961_v4  ;;  %v9604_v62 = vshrl.u32 %v9503_v12, 16  ;;  %v5816_v4 = vor.u32 %v8042_v60, %v5813_v61 }
  0x8e   : > { %1245 = vmatmul.bf16.vlgmr.msrb.gmra.mxu0 %v9207_v56  ;;  %v8070_v12 = vld [vmem:[%s12235_s1 + $0x5ac] sm:$0xf]  ;;  %v5861_v61 = vld [vmem:[%s12235_s1 + $0x538] sm:$0xf0] }
  0x8f   : > { %1697 = vmatpush.bf16.msra.mxu0 %v5820_v16  ;;  %1271 = vmatmul.bf16.vlgmr.msrb.gmra.mxu2 %v9207_v56  ;;  %v5771_v56 = vld [vmem:[%s12235_s1 + $0x480] sm:$0xf]  ;;  %v5740_v16 = vor.u32 %v8027_v3, %v5739_v2  ;;  %v5940_v3 = vor.u32 %v8076_v57, %v5939_v55  ;;  %v8056_v55 = vld [vmem:[%s12235_s1 + $0x534] sm:$0xf0]  ;;  %v8022_v57 = vld [vmem:[%s12235_s1 + $0x42c] sm:$0xf] }
  0x90   : > { %1710 = vmatpush.bf16.msra.mxu1 %v5948_v17  ;;  %1723 = vmatpush.bf16.msra.mxu2 %v5824_v18  ;;  %v5772_v51 = vor.u32 %v8035_v45, %v5771_v56  ;;  %v5868_v17 = vor.u32 %v8059_v8, %v5867_v7  ;;  %v5744_v18 = vor.u32 %v8025_v9, %v5741_v11  ;;  %v8080_v56 = vld [vmem:[%s12235_s1 + $0x5f4] sm:$0xf0]  ;;  %v8046_v45 = vld [vmem:[%s12235_s1 + $0x4ec] sm:$0xf]  ;;  %v5923_v7 = vld [vmem:[%s12235_s1 + $0x5a8] sm:$0xf] }
  0x91   : > { %1736 = vmatpush.bf16.msra.mxu3 %v5952_v22  ;;  %1258 = vmatmul.bf16.vlgmr.msrb.gmra.mxu1 %v9209_v58  ;;  %v5872_v22 = vor.u32 %v8057_v14, %v5869_v15  ;;  %v5944_v8 = vor.u32 %v8074_v63, %v5941_v0  ;;  %v8072_v9 = vld [vmem:[%s12235_s1 + $0x5b4] sm:$0xf0]  ;;  %v5797_v11 = vld [vmem:[%s12235_s1 + $0x4b8] sm:$0xf0]  ;;  %v8054_v60 = vld [vmem:[%s12235_s1 + $0x52c] sm:$0xf] }
  0x92   : > { %1284 = vmatmul.bf16.vlgmr.msrb.gmra.mxu3 %v9209_v58  ;;  %v5920_v58 = vor.u32 %v8069_v40, %v5917_v34  ;;  %v8049_v40 = vld [vmem:[%s12235_s1 + $0x504] sm:$0xf]  ;;  %v5837_v34 = vld [vmem:[%s12235_s1 + $0x510] sm:$0xf0]  ;;  %v5924_v15 = vor.u32 %v8072_v9, %v5923_v7  ;;  %v5715_v0 = vld [vmem:[%s12235_s1 + $0x408] sm:$0xf]  ;;  %v5864_v9 = vor.u32 %v8054_v60, %v5861_v61 }
  0x93   : > { %1698 = vmatpush.bf16.msra.mxu0 %v5804_v28  ;;  %v5724_v28 = vor.u32 %v8023_v20, %v5723_v19  ;;  %v5840_v49 = vor.u32 %v8049_v40, %v5837_v34  ;;  %v5907_v19 = vld [vmem:[%s12235_s1 + $0x588] sm:$0xf]  ;;  %v8018_v7 = vld [vmem:[%s12235_s1 + $0x40c] sm:$0xf] }
  0x94   : > { %1711 = vmatpush.bf16.msra.mxu1 %v5932_v29  ;;  %1724 = vmatpush.bf16.msra.mxu2 %v5808_v30  ;;  %v5707_v29 = vld [vmem:[%s12235_s1 + $0x400] sm:$0xf]  ;;  %v8019_v30 = vld [vmem:[%s12235_s1 + $0x40c] sm:$0xf0]  ;;  %v5908_v27 = vor.u32 %v8068_v21, %v5907_v19  ;;  %v8109_v19 = vld [vmem:[%s12235_s1 + $0x6e4] sm:$0xf] }
  0x95   : > { %1737 = vmatpush.bf16.msra.mxu3 %v5936_v36  ;;  %v8051_v36 = vld [vmem:[%s12235_s1 + $0x50c] sm:$0xf0] }
  0x97   : > { %1699 = vmatpush.bf16.msra.mxu0 %v5788_v41  ;;  %v5827_v41 = vld [vmem:[%s12235_s1 + $0x4e8] sm:$0xf] }
  0x98   : > { %1712 = vmatpush.bf16.msra.mxu1 %v5916_v43  ;;  %1725 = vmatpush.bf16.msra.mxu2 %v5792_v44  ;;  %v5955_v43 = vld [vmem:[%s12235_s1 + $0x5e8] sm:$0xf]  ;;  %v5708_v44 = vor.u32 %v8019_v30, %v5707_v29  ;;  %v5828_v50 = vor.u32 %v8048_v42, %v5827_v41  ;;  %v8032_v30 = vld [vmem:[%s12235_s1 + $0x474] sm:$0xf0] }
  0x99   : > { %1738 = vmatpush.bf16.msra.mxu3 %v5920_v58  ;;  %v5836_v58 = vor.u32 %v8051_v36, %v5835_v35  ;;  %v5763_v29 = vld [vmem:[%s12235_s1 + $0x468] sm:$0xf]  ;;  %v8064_v35 = vld [vmem:[%s12235_s1 + $0x574] sm:$0xf0]  ;;  %v8030_v36 = vld [vmem:[%s12235_s1 + $0x46c] sm:$0xf] }
  0x9a   : > { %v5764_v40 = vor.u32 %v8032_v30, %v5763_v29  ;;  %v5768_v41 = vor.u32 %v8030_v36, %v5765_v37  ;;  %v5747_v42 = vld [vmem:[%s12235_s1 + $0x448] sm:$0xf]  ;;  %v8107_v36 = vld [vmem:[%s12235_s1 + $0x6cc] sm:$0xf0]  ;;  %v6252_v37 = vld [vmem:[%s12235_s1 + $0x7c0] sm:$0xf] }
  0x9b   : > { %1700 = vmatpush.bf16.msra.mxu0 %v5772_v51  ;;  %v5811_v51 = vld [vmem:[%s12235_s1 + $0x4c8] sm:$0xf] }
  0x9c   : > { %1713 = vmatpush.bf16.msra.mxu1 %v5900_v52  ;;  %1726 = vmatpush.bf16.msra.mxu2 %v5776_v53  ;;  %v5956_v52 = vor.u32 %v8080_v56, %v5955_v43  ;;  %v5832_v53 = vor.u32 %v8046_v45, %v5829_v46  ;;  %v5812_v2 = vor.u32 %v8044_v54, %v5811_v51  ;;  %v8028_v43 = vld [vmem:[%s12235_s1 + $0x454] sm:$0xf0]  ;;  %v8026_v46 = vld [vmem:[%s12235_s1 + $0x44c] sm:$0xf]  ;;  %v5731_v51 = vld [vmem:[%s12235_s1 + $0x428] sm:$0xf] }
  0x9d   : > { %1739 = vmatpush.bf16.msra.mxu3 %v5904_v59  ;;  %v5960_v59 = vor.u32 %v8078_v47, %v5957_v48  ;;  %v8060_v45 = vld [vmem:[%s12235_s1 + $0x554] sm:$0xf0]  ;;  %v5877_v47 = vld [vmem:[%s12235_s1 + $0x558] sm:$0xf0]  ;;  %v5748_v48 = vor.u32 %v8028_v43, %v5747_v42  ;;  %v8137_v42 = vld [vmem:[%s12235_s1 + $0x7c4] sm:$0xf] }
  0x9e   : > { %v6254_v43 = vld [vmem:[%s12235_s1 + $0x7d0] sm:$0xf0] }
  0x9f   : > { %1701 = vmatpush.bf16.msra.mxu0 %v5756_v1  ;;  %v9613_v1 = vshrl.u32 %v9505_v13, 16  ;;  %v5925_v13 = vld [vmem:[%s12235_s1 + $0x5b8] sm:$0xf0] }
  0xa0   : > { %1714 = vmatpush.bf16.msra.mxu1 %v5884_v5  ;;  %1727 = vmatpush.bf16.msra.mxu2 %v5760_v6  ;;  %v5795_v5 = vld [vmem:[%s12235_s1 + $0x4a8] sm:$0xf]  ;;  %v8040_v6 = vld [vmem:[%s12235_s1 + $0x4b4] sm:$0xf0]  ;;  %v5928_v20 = vor.u32 %v8070_v12, %v5925_v13  ;;  %v5845_v12 = vld [vmem:[%s12235_s1 + $0x518] sm:$0xf0] }
  0xa1   : > { %1740 = vmatpush.bf16.msra.mxu3 %v5888_v10  ;;  %v8038_v10 = vld [vmem:[%s12235_s1 + $0x4ac] sm:$0xf]  ;;  %v5796_v14 = vor.u32 %v8040_v6, %v5795_v5  ;;  %v5843_v5 = vld [vmem:[%s12235_s1 + $0x508] sm:$0xf]  ;;  %v8052_v6 = vld [vmem:[%s12235_s1 + $0x514] sm:$0xf0] }
  0xa2   : > { %v6140_v13 = vld [vmem:[%s12235_s1 + $0x6e0] sm:$0xf] }
  0xa3   : > { %1702 = vmatpush.bf16.msra.mxu0 %v5740_v16  ;;  %v5800_v16 = vor.u32 %v8038_v10, %v5797_v11  ;;  %v5717_v10 = vld [vmem:[%s12235_s1 + $0x418] sm:$0xf0]  ;;  %v8050_v11 = vld [vmem:[%s12235_s1 + $0x50c] sm:$0xf] }
  0xa4   : > { %1715 = vmatpush.bf16.msra.mxu1 %v5868_v17  ;;  %1728 = vmatpush.bf16.msra.mxu2 %v5744_v18  ;;  %v5779_v17 = vld [vmem:[%s12235_s1 + $0x488] sm:$0xf]  ;;  %v8036_v18 = vld [vmem:[%s12235_s1 + $0x494] sm:$0xf0] }
  0xa5   : > { %1741 = vmatpush.bf16.msra.mxu3 %v5872_v22  ;;  %v8034_v22 = vld [vmem:[%s12235_s1 + $0x48c] sm:$0xf]  ;;  %v5780_v26 = vor.u32 %v8036_v18, %v5779_v17  ;;  %v8143_v18 = vld [vmem:[%s12235_s1 + $0x7ec] sm:$0xf0] }
  0xa7   : > { %1703 = vmatpush.bf16.msra.mxu0 %v5724_v28  ;;  %v5784_v28 = vor.u32 %v8034_v22, %v5781_v23  ;;  %v5844_v22 = vor.u32 %v8052_v6, %v5843_v5  ;;  %v5720_v23 = vor.u32 %v8018_v7, %v5717_v10  ;;  %v6094_v5 = vld [vmem:[%s12235_s1 + $0x690] sm:$0xf0]  ;;  %v8129_v6 = vld [vmem:[%s12235_s1 + $0x784] sm:$0xf] }
  0xa8   : > { %1716 = vmatpush.bf16.msra.mxu1 %v5852_v31  ;;  %1729 = vmatpush.bf16.msra.mxu2 %v5728_v32  ;;  %v5891_v31 = vld [vmem:[%s12235_s1 + $0x568] sm:$0xf]  ;;  %v5912_v32 = vor.u32 %v8066_v24, %v5909_v25  ;;  %v8141_v24 = vld [vmem:[%s12235_s1 + $0x7e4] sm:$0xf]  ;;  %v6270_v25 = vld [vmem:[%s12235_s1 + $0x7f0] sm:$0xf0] }
  0xa9   : > { %1742 = vmatpush.bf16.msra.mxu3 %v5856_v38  ;;  %v8062_v38 = vld [vmem:[%s12235_s1 + $0x56c] sm:$0xf]  ;;  %v5892_v34 = vor.u32 %v8064_v35, %v5891_v31  ;;  %v6124_v35 = vld [vmem:[%s12235_s1 + $0x6c0] sm:$0xf]  ;;  %v6222_v7 = vld [vmem:[%s12235_s1 + $0x790] sm:$0xf0] }
  0xaa   : > { %v5896_v56 = vor.u32 %v8062_v38, %v5893_v39  ;;  %v6273_v38 = vor.u32 %v8141_v24, %v6270_v25  ;;  %v8139_v39 = vld [vmem:[%s12235_s1 + $0x7cc] sm:$0xf0]  ;;  %v9893_v25 = vld [vmem:[#allocation1] sm:$0xff] }
  0xab   : > { %1704 = vmatpush.bf16.msra.mxu0 %v5708_v44  ;;  %v5875_v44 = vld [vmem:[%s12235_s1 + $0x548] sm:$0xf] }
  0xac   : > { %1717 = vmatpush.bf16.msra.mxu1 %v5836_v58  ;;  %1730 = vmatpush.bf16.msra.mxu2 %v5712_v33  ;;  %v5749_v58 = vld [vmem:[%s12235_s1 + $0x458] sm:$0xf0]  ;;  %v8058_v33 = vld [vmem:[%s12235_s1 + $0x54c] sm:$0xf] }
  0xad   : > { %1743 = vmatpush.bf16.msra.mxu3 %v5840_v49  ;;  %v5876_v49 = vor.u32 %v8060_v45, %v5875_v44  ;;  %v5880_v54 = vor.u32 %v8058_v33, %v5877_v47  ;;  %v6108_v33 = vld [vmem:[%s12235_s1 + $0x6a0] sm:$0xf]  ;;  %v8103_v47 = vld [vmem:[%s12235_s1 + $0x6ac] sm:$0xf0] }
  0xae   : > { %1705 = vmatmul.bf16.vlgmr.msra.gmra.mxu0 %v9604_v62 }
  0xaf   : > { %1749 = vmatpush.bf16.msrb.mxu0 %v5828_v50  ;;  %1731 = vmatmul.bf16.vlgmr.msra.gmra.mxu2 %v9604_v62  ;;  %v5752_v50 = vor.u32 %v8026_v46, %v5749_v58  ;;  %v6253_v46 = vor.u32 %v8139_v39, %v6252_v37  ;;  %v8123_v37 = vld [vmem:[%s12235_s1 + $0x74c] sm:$0xf0]  ;;  %v6062_v39 = vld [vmem:[%s12235_s1 + $0x650] sm:$0xf0] }
  0xb0   : > { %1762 = vmatpush.bf16.msrb.mxu1 %v5956_v52  ;;  %1775 = vmatpush.bf16.msrb.mxu2 %v5832_v53  ;;  %v8024_v52 = vld [vmem:[%s12235_s1 + $0x434] sm:$0xf0]  ;;  %v5859_v53 = vld [vmem:[%s12235_s1 + $0x528] sm:$0xf] }
  0xb1   : > { %1788 = vmatpush.bf16.msrb.mxu3 %v5960_v59  ;;  %1718 = vmatmul.bf16.vlgmr.msra.gmra.mxu1 %v9613_v1  ;;  %v5733_v59 = vld [vmem:[%s12235_s1 + $0x438] sm:$0xf0]  ;;  %v5732_v63 = vor.u32 %v8024_v52, %v5731_v51  ;;  %v8135_v51 = vld [vmem:[%s12235_s1 + $0x7ac] sm:$0xf0]  ;;  %v8101_v52 = vld [vmem:[%s12235_s1 + $0x6a4] sm:$0xf] }
  0xb2   : > { %1744 = vmatmul.bf16.vlgmr.msra.gmra.mxu3 %v9613_v1 }
  0xb3   : > { %1750 = vmatpush.bf16.msrb.mxu0 %v5812_v2  ;;  %v8020_v2 = vld [vmem:[%s12235_s1 + $0x414] sm:$0xf0] }
  0xb4   : > { %1763 = vmatpush.bf16.msrb.mxu1 %v5940_v3  ;;  %1776 = vmatpush.bf16.msrb.mxu2 %v5816_v4  ;;  %v5860_v3 = vor.u32 %v8056_v55, %v5859_v53  ;;  %v5736_v4 = vor.u32 %v8022_v57, %v5733_v59  ;;  %v5716_v17 = vor.u32 %v8020_v2, %v5715_v0  ;;  %v6110_v53 = vld [vmem:[%s12235_s1 + $0x6b0] sm:$0xf0]  ;;  %v8099_v0 = vld [vmem:[%s12235_s1 + $0x68c] sm:$0xf0]  ;;  %v6220_v2 = vld [vmem:[%s12235_s1 + $0x780] sm:$0xf] }
  0xb5   : > { %1789 = vmatpush.bf16.msrb.mxu3 %v5944_v8  ;;  %v694_v8 = vpop.f32.mrf.mxu1  ;;  %v6238_v55 = vld [vmem:[%s12235_s1 + $0x7b0] sm:$0xf0]  ;;  %v6109_v57 = vor.u32 %v8103_v47, %v6108_v33  ;;  %v8087_v47 = vld [vmem:[%s12235_s1 + $0x62c] sm:$0xf0] }
  0xb7   : > { %1751 = vmatpush.bf16.msrb.mxu0 %v5796_v14  ;;  %v8111_v14 = vld [vmem:[%s12235_s1 + $0x6ec] sm:$0xf0] }
  0xb8   : > { %1764 = vmatpush.bf16.msrb.mxu1 %v5924_v15  ;;  %1777 = vmatpush.bf16.msrb.mxu2 %v5800_v16  ;;  %v6268_v15 = vld [vmem:[%s12235_s1 + $0x7e0] sm:$0xf]  ;;  %v681_v16 = vpop.f32.mrf.mxu0 }
  0xb9   : > { %1790 = vmatpush.bf16.msrb.mxu3 %v5928_v20  ;;  %v6142_v20 = vld [vmem:[%s12235_s1 + $0x6f0] sm:$0xf0]  ;;  %v695_v21 = vadd.f32 %v694_v8, %v681_v16  ;;  %v720_v29 = vpop.f32.mrf.mxu3  ;;  %v6269_v30 = vor.u32 %v8143_v18, %v6268_v15  ;;  %v6225_v15 = vor.u32 %v8129_v6, %v6222_v7  ;;  %v8127_v16 = vld [vmem:[%s12235_s1 + $0x76c] sm:$0xf0]  ;;  %v8113_v6 = vld [vmem:[%s12235_s1 + $0x704] sm:$0xf] }
  0xba   : > { %v6145_v31 = vor.u32 %v8109_v19, %v6142_v20  ;;  %v6078_v18 = vld [vmem:[%s12235_s1 + $0x670] sm:$0xf0]  ;;  %v8125_v19 = vld [vmem:[%s12235_s1 + $0x764] sm:$0xf] }
  0xbb   : > { %1752 = vmatpush.bf16.msrb.mxu0 %v5780_v26  ;;  %v5848_v26 = vor.u32 %v8050_v11, %v5845_v12  ;;  %v6076_v12 = vld [vmem:[%s12235_s1 + $0x660] sm:$0xf]  ;;  %v6206_v20 = vld [vmem:[%s12235_s1 + $0x770] sm:$0xf0] }
  0xbc   : > { %1765 = vmatpush.bf16.msrb.mxu1 %v5908_v27  ;;  %1778 = vmatpush.bf16.msrb.mxu2 %v5784_v28  ;;  %v6141_v27 = vor.u32 %v8111_v14, %v6140_v13  ;;  %v707_v28 = vpop.f32.mrf.mxu2  ;;  %v8095_v13 = vld [vmem:[%s12235_s1 + $0x66c] sm:$0xf0]  ;;  %v6204_v14 = vld [vmem:[%s12235_s1 + $0x760] sm:$0xf]  ;;  %v6158_v7 = vld [vmem:[%s12235_s1 + $0x710] sm:$0xf0] }
  0xbd   : > { %1791 = vmatpush.bf16.msrb.mxu3 %v5912_v32  ;;  %v721_v32 = vadd.f32 %v720_v29, %v707_v28  ;;  %v696_v44 = vpop.f32.mrf.mxu1  ;;  %v6205_v28 = vor.u32 %v8127_v16, %v6204_v14  ;;  %v8110_v14 = vld [vmem:[%s12235_s1 + $0x6ec] sm:$0xf] }
  0xbe   : > { %v6044_v44 = vld [vmem:[%s12235_s1 + $0x620] sm:$0xf] }
  0xbf   : > { %1753 = vmatpush.bf16.msrb.mxu0 %v5764_v40  ;;  %v8105_v40 = vld [vmem:[%s12235_s1 + $0x6c4] sm:$0xf] }
  0xc0   : > { %1766 = vmatpush.bf16.msrb.mxu1 %v5892_v34  ;;  %1779 = vmatpush.bf16.msrb.mxu2 %v5768_v41  ;;  %v6126_v34 = vld [vmem:[%s12235_s1 + $0x6d0] sm:$0xf0]  ;;  %v780_v41 = vrot.slane %v721_v32, 7  ;;  %v6188_v32 = vld [vmem:[%s12235_s1 + $0x740] sm:$0xf] }
  0xc1   : > { %1792 = vmatpush.bf16.msrb.mxu3 %v5896_v56  ;;  %v6125_v56 = vor.u32 %v8107_v36, %v6124_v35  ;;  %v6129_v58 = vor.u32 %v8105_v40, %v6126_v34  ;;  %v722_v60 = vpop.f32.mrf.mxu3  ;;  %v6209_v35 = vor.u32 %v8125_v19, %v6206_v20  ;;  %v6278_v19 = vld [vmem:[%s12235_s1 + $0x7f8] sm:$0xf0]  ;;  %v6161_v20 = vor.u32 %v8113_v6, %v6158_v7  ;;  %v8094_v6 = vld [vmem:[%s12235_s1 + $0x66c] sm:$0xf] }
  0xc2   : > { %v9812_v45 = vsel %vm783_vm0, %v695_v21, %v780_v41  ;;  %v8121_v41 = vld [vmem:[%s12235_s1 + $0x744] sm:$0xf]  ;;  %v6045_v60 = vor.u32 %v8087_v47, %v6044_v44  ;;  %v8102_v44 = vld [vmem:[%s12235_s1 + $0x6ac] sm:$0xf]  ;;  %v6086_v7 = vld [vmem:[%s12235_s1 + $0x678] sm:$0xf0] }
  0xc3   : > { %1754 = vmatpush.bf16.msrb.mxu0 %v5748_v48  ;;  %v6236_v48 = vld [vmem:[%s12235_s1 + $0x7a0] sm:$0xf] }
  0xc4   : > { %1767 = vmatpush.bf16.msrb.mxu1 %v5876_v49  ;;  %1780 = vmatpush.bf16.msrb.mxu2 %v5752_v50  ;;  %v683_v49 = vpop.f32.mrf.mxu0  ;;  %v6257_v50 = vor.u32 %v8137_v42, %v6254_v43  ;;  %v709_v59 = vpop.f32.mrf.mxu2  ;;  %v6237_v61 = vor.u32 %v8135_v51, %v6236_v48  ;;  %v6190_v42 = vld [vmem:[%s12235_s1 + $0x750] sm:$0xf0]  ;;  %v6172_v48 = vld [vmem:[%s12235_s1 + $0x720] sm:$0xf]  ;;  %v8085_v51 = vld [vmem:[%s12235_s1 + $0x624] sm:$0xf] }
  0xc5   : > { %1793 = vmatpush.bf16.msrb.mxu3 %v5880_v54  ;;  %v8133_v54 = vld [vmem:[%s12235_s1 + $0x7a4] sm:$0xf]  ;;  %v6193_v49 = vor.u32 %v8121_v41, %v6190_v42  ;;  %v6244_v41 = vld [vmem:[%s12235_s1 + $0x7a8] sm:$0xf] }
  0xc7   : > { %1755 = vmatpush.bf16.msrb.mxu0 %v5732_v63  ;;  %v6113_v63 = vor.u32 %v8101_v52, %v6110_v53  ;;  %v6046_v52 = vld [vmem:[%s12235_s1 + $0x630] sm:$0xf0] }
  0xc8   : > { %1768 = vmatpush.bf16.msrb.mxu1 %v5860_v3  ;;  %1781 = vmatpush.bf16.msrb.mxu2 %v5736_v4  ;;  %v8131_v3 = vld [vmem:[%s12235_s1 + $0x78c] sm:$0xf0]  ;;  %v8097_v4 = vld [vmem:[%s12235_s1 + $0x684] sm:$0xf] }
  0xc9   : > { %1794 = vmatpush.bf16.msrb.mxu3 %v5864_v9  ;;  %v6221_v10 = vor.u32 %v8131_v3, %v6220_v2  ;;  %v6097_v11 = vor.u32 %v8097_v4, %v6094_v5  ;;  %v6156_v2 = vld [vmem:[%s12235_s1 + $0x700] sm:$0xf]  ;;  %v6030_v5 = vld [vmem:[%s12235_s1 + $0x610] sm:$0xf0] }
  0xcb   : > { %1756 = vmatpush.bf16.msrb.mxu0 %v5716_v17  ;;  %v8093_v17 = vld [vmem:[%s12235_s1 + $0x664] sm:$0xf] }
  0xcc   : > { %1769 = vmatpush.bf16.msrb.mxu1 %v5844_v22  ;;  %1782 = vmatpush.bf16.msrb.mxu2 %v5720_v23  ;;  %v733_v21 = vpop.f32.mrf.mxu0  ;;  %v6060_v22 = vld [vmem:[%s12235_s1 + $0x640] sm:$0xf]  ;;  %v6077_v23 = vor.u32 %v8095_v13, %v6076_v12  ;;  %v6081_v29 = vor.u32 %v8093_v17, %v6078_v18  ;;  %v8144_v13 = vld [vmem:[%s12235_s1 + $0x7f4] sm:$0xf0]  ;;  %v8142_v18 = vld [vmem:[%s12235_s1 + $0x7ec] sm:$0xf] }
  0xcd   : > { %1795 = vmatpush.bf16.msrb.mxu3 %v5848_v26  ;;  %v9895_v26 = vld [vmem:[#allocation1 + $0x9] sm:$0xff] }
  0xce   : > { %1757 = vmatmul.bf16.vlgmr.msrb.gmra.mxu0 %v9604_v62  ;;  %v746_v9 = vpop.f32.mrf.mxu1 }
  0xcf   : > { %2207 = vmatpush.bf16.msra.mxu0 %v6141_v27  ;;  %1783 = vmatmul.bf16.vlgmr.msrb.gmra.mxu2 %v9604_v62  ;;  %v6092_v62 = vld [vmem:[%s12235_s1 + $0x680] sm:$0xf]  ;;  %v747_v24 = vadd.f32 %v746_v9, %v733_v21  ;;  %v6282_v27 = vld [vmem:[%s8843_s10 + $0xc] sm:$0x3]  ;;  %v6148_v9 = vld [vmem:[%s12235_s1 + $0x6e8] sm:$0xf] }
  0xd0   : > { %2220 = vmatpush.bf16.msra.mxu1 %v6269_v30  ;;  %2233 = vmatpush.bf16.msra.mxu2 %v6145_v31  ;;  %v6093_v8 = vor.u32 %v8099_v0, %v6092_v62  ;;  %v8091_v31 = vld [vmem:[%s12235_s1 + $0x64c] sm:$0xf0]  ;;  %2392 = vst [vmem:[#allocation1] ss:$9 sm:$0xff] %v6282_v27  ;;  %v6049_v0 = vor.u32 %v8085_v51, %v6046_v52  ;;  %v8108_v27 = vld [vmem:[%s12235_s1 + $0x6d4] sm:$0xf0] }
  0xd1   : > { %2246 = vmatpush.bf16.msra.mxu3 %v6273_v38  ;;  %1770 = vmatmul.bf16.vlgmr.msrb.gmra.mxu1 %v9613_v1  ;;  %v8089_v38 = vld [vmem:[%s12235_s1 + $0x644] sm:$0xf]  ;;  %v781_v40 = vrot.slane %v747_v24, 6  ;;  %v6061_v43 = vor.u32 %v8091_v31, %v6060_v22  ;;  %v6132_v24 = vld [vmem:[%s12235_s1 + $0x6c8] sm:$0xf] }
  0xd2   : > { %1796 = vmatmul.bf16.vlgmr.msrb.gmra.mxu3 %v9613_v1  ;;  %v6241_v1 = vor.u32 %v8133_v54, %v6238_v55  ;;  %v759_v30 = vpop.f32.mrf.mxu2  ;;  %v6065_v33 = vor.u32 %v8089_v38, %v6062_v39  ;;  %v8117_v54 = vld [vmem:[%s12235_s1 + $0x724] sm:$0xf]  ;;  %v6174_v55 = vld [vmem:[%s12235_s1 + $0x730] sm:$0xf0]  ;;  %v8106_v31 = vld [vmem:[%s12235_s1 + $0x6cc] sm:$0xf] }
  0xd3   : > { %2208 = vmatpush.bf16.msra.mxu0 %v6125_v56  ;;  %v6177_v4 = vor.u32 %v8117_v54, %v6174_v55  ;;  %v6228_v51 = vld [vmem:[%s12235_s1 + $0x788] sm:$0xf]  ;;  %v8098_v54 = vld [vmem:[%s12235_s1 + $0x68c] sm:$0xf]  ;;  %v6102_v55 = vld [vmem:[%s12235_s1 + $0x698] sm:$0xf0] }
  0xd4   : > { %2221 = vmatpush.bf16.msra.mxu1 %v6253_v46  ;;  %2234 = vmatpush.bf16.msra.mxu2 %v6129_v58  ;;  %v6189_v58 = vor.u32 %v8123_v37, %v6188_v32  ;;  %v6134_v32 = vld [vmem:[%s12235_s1 + $0x6d8] sm:$0xf0]  ;;  %v6133_v37 = vor.u32 %v8108_v27, %v6132_v24 }
  0xd5   : > { %2247 = vmatpush.bf16.msra.mxu3 %v6257_v50  ;;  %v772_v36 = vpop.f32.mrf.mxu3  ;;  %v8119_v50 = vld [vmem:[%s12235_s1 + $0x72c] sm:$0xf0]  ;;  %v6137_v39 = vor.u32 %v8106_v31, %v6134_v32  ;;  %v6198_v24 = vld [vmem:[%s12235_s1 + $0x758] sm:$0xf0] }
  0xd6   : > { %v773_v34 = vadd.f32 %v772_v36, %v759_v30  ;;  %v748_v56 = vpop.f32.mrf.mxu1  ;;  %v6173_v62 = vor.u32 %v8119_v50, %v6172_v48  ;;  %v8140_v30 = vld [vmem:[%s12235_s1 + $0x7d4] sm:$0xf0]  ;;  %v6262_v36 = vld [vmem:[%s12235_s1 + $0x7d8] sm:$0xf0] }
  0xd7   : > { %2209 = vmatpush.bf16.msra.mxu0 %v6109_v57  ;;  %v735_v57 = vpop.f32.mrf.mxu0  ;;  %v6118_v56 = vld [vmem:[%s12235_s1 + $0x6b8] sm:$0xf0]  ;;  %v8100_v50 = vld [vmem:[%s12235_s1 + $0x694] sm:$0xf0] }
  0xd8   : > { %2222 = vmatpush.bf16.msra.mxu1 %v6237_v61  ;;  %2235 = vmatpush.bf16.msra.mxu2 %v6113_v63  ;;  %v782_v46 = vrot.slane %v773_v34, 5  ;;  %v6028_v61 = vld [vmem:[%s12235_s1 + $0x600] sm:$0xf]  ;;  %v8083_v63 = vld [vmem:[%s12235_s1 + $0x60c] sm:$0xf0]  ;;  %v6121_v48 = vor.u32 %v8102_v44, %v6118_v56 }
  0xd9   : > { %2248 = vmatpush.bf16.msra.mxu3 %v6241_v1  ;;  %v8081_v1 = vld [vmem:[%s12235_s1 + $0x604] sm:$0xf]  ;;  %v6029_v12 = vor.u32 %v8083_v63, %v6028_v61  ;;  %v8104_v34 = vld [vmem:[%s12235_s1 + $0x6b4] sm:$0xf0]  ;;  %v8130_v57 = vld [vmem:[%s12235_s1 + $0x78c] sm:$0xf] }
  0xda   : > { %v786_v53 = vsel %vm785_vm1, %v781_v40, %v782_v46  ;;  %v761_v3 = vpop.f32.mrf.mxu2  ;;  %v6033_v17 = vor.u32 %v8081_v1, %v6030_v5  ;;  %v6116_v40 = vld [vmem:[%s12235_s1 + $0x6a8] sm:$0xf]  ;;  %v8134_v46 = vld [vmem:[%s12235_s1 + $0x7ac] sm:$0xf]  ;;  %v8128_v5 = vld [vmem:[%s12235_s1 + $0x774] sm:$0xf0] }
  0xdb   : > { %2210 = vmatpush.bf16.msra.mxu0 %v6093_v8  ;;  %v9946_v59 = vsel %vm787_vm2, %v9812_v45, %v786_v53  ;;  %v8115_v45 = vld [vmem:[%s12235_s1 + $0x70c] sm:$0xf0]  ;;  %v8132_v53 = vld [vmem:[%s12235_s1 + $0x794] sm:$0xf0]  ;;  %v6212_v1 = vld [vmem:[%s12235_s1 + $0x768] sm:$0xf] }
  0xdc   : > { %2223 = vmatpush.bf16.msra.mxu1 %v6221_v10  ;;  %2236 = vmatpush.bf16.msra.mxu2 %v6097_v11  ;;  %v8112_v10 = vld [vmem:[%s12235_s1 + $0x6f4] sm:$0xf0]  ;;  %v6276_v11 = vld [vmem:[%s12235_s1 + $0x7e8] sm:$0xf]  ;;  %v6157_v16 = vor.u32 %v8115_v45, %v6156_v2 }
  0xdd   : > { %2249 = vmatpush.bf16.msra.mxu3 %v6225_v15  ;;  %v774_v8 = vpop.f32.mrf.mxu3  ;;  %v6150_v15 = vld [vmem:[%s12235_s1 + $0x6f8] sm:$0xf0]  ;;  %v6149_v21 = vor.u32 %v8112_v10, %v6148_v9  ;;  %v6277_v22 = vor.u32 %v8144_v13, %v6276_v11  ;;  %v6084_v2 = vld [vmem:[%s12235_s1 + $0x668] sm:$0xf]  ;;  %v8096_v45 = vld [vmem:[%s12235_s1 + $0x674] sm:$0xf0]  ;;  %v6089_v13 = vor.u32 %v8094_v6, %v6086_v7 }
  0xde   : > { %v8126_v9 = vld [vmem:[%s12235_s1 + $0x76c] sm:$0xf]  ;;  %v6214_v10 = vld [vmem:[%s12235_s1 + $0x778] sm:$0xf0]  ;;  %v6085_v11 = vor.u32 %v8096_v45, %v6084_v2  ;;  %v8173_v2 = vld [vmem:[%s12235_s1 + $0x8e4] sm:$0xf] }
  0xdf   : > { %2211 = vmatpush.bf16.msra.mxu0 %v6077_v23  ;;  %v6153_v23 = vor.u32 %v8110_v14, %v6150_v15  ;;  %v6068_v14 = vld [vmem:[%s12235_s1 + $0x648] sm:$0xf]  ;;  %v8092_v15 = vld [vmem:[%s12235_s1 + $0x654] sm:$0xf0]  ;;  %v6463_v45 = vld [vmem:[%s12235_s1 + $0x8f0] sm:$0xf0] }
  0xe0   : > { %2224 = vmatpush.bf16.msra.mxu1 %v6205_v28  ;;  %2237 = vmatpush.bf16.msra.mxu2 %v6081_v29  ;;  %v6260_v28 = vld [vmem:[%s12235_s1 + $0x7c8] sm:$0xf]  ;;  %v6281_v29 = vor.u32 %v8142_v18, %v6278_v19  ;;  %v6217_v18 = vor.u32 %v8126_v9, %v6214_v10  ;;  %v8124_v19 = vld [vmem:[%s12235_s1 + $0x754] sm:$0xf0]  ;;  %v6466_v9 = vor.u32 %v8173_v2, %v6463_v45  ;;  %v6445_v10 = vld [vmem:[%s12235_s1 + $0x8c0] sm:$0xf] }
  0xe1   : > { %2250 = vmatpush.bf16.msra.mxu3 %v6209_v35  ;;  %v8138_v35 = vld [vmem:[%s12235_s1 + $0x7cc] sm:$0xf]  ;;  %v6261_v38 = vor.u32 %v8140_v30, %v6260_v28  ;;  %v6069_v28 = vor.u32 %v8092_v15, %v6068_v14  ;;  %v8203_v14 = vld [vmem:[%s12235_s1 + $0x9cc] sm:$0xf0]  ;;  %v8169_v15 = vld [vmem:[%s12235_s1 + $0x8c4] sm:$0xf] }
  0xe2   : > { %v6265_v42 = vor.u32 %v8138_v35, %v6262_v36  ;;  %v8088_v35 = vld [vmem:[%s12235_s1 + $0x634] sm:$0xf0]  ;;  %v6180_v36 = vld [vmem:[%s12235_s1 + $0x728] sm:$0xf]  ;;  %v6381_v2 = vld [vmem:[%s12235_s1 + $0x840] sm:$0xf] }
  0xe3   : > { %2212 = vmatpush.bf16.msra.mxu0 %v6061_v43  ;;  %v8136_v43 = vld [vmem:[%s12235_s1 + $0x7b4] sm:$0xf0]  ;;  %v8155_v45 = vld [vmem:[%s12235_s1 + $0x84c] sm:$0xf0] }
  0xe4   : > { %2225 = vmatpush.bf16.msra.mxu1 %v6189_v58  ;;  %2238 = vmatpush.bf16.msra.mxu2 %v6065_v33  ;;  %v6246_v58 = vld [vmem:[%s12235_s1 + $0x7b8] sm:$0xf0]  ;;  %v6117_v33 = vor.u32 %v8104_v34, %v6116_v40  ;;  %v6245_v47 = vor.u32 %v8136_v43, %v6244_v41  ;;  %v8120_v40 = vld [vmem:[%s12235_s1 + $0x734] sm:$0xf0]  ;;  %v8086_v34 = vld [vmem:[%s12235_s1 + $0x62c] sm:$0xf] }
  0xe5   : > { %2251 = vmatpush.bf16.msra.mxu3 %v6193_v49  ;;  %v6100_v49 = vld [vmem:[%s12235_s1 + $0x688] sm:$0xf]  ;;  %v6249_v52 = vor.u32 %v8134_v46, %v6246_v58  ;;  %v6054_v41 = vld [vmem:[%s12235_s1 + $0x638] sm:$0xf0]  ;;  %v8084_v58 = vld [vmem:[%s12235_s1 + $0x614] sm:$0xf0] }
  0xe6   : > { %v6101_v61 = vor.u32 %v8100_v50, %v6100_v49  ;;  %v6182_v43 = vld [vmem:[%s12235_s1 + $0x738] sm:$0xf0]  ;;  %v6036_v46 = vld [vmem:[%s12235_s1 + $0x608] sm:$0xf]  ;;  %v8116_v49 = vld [vmem:[%s12235_s1 + $0x714] sm:$0xf0] }
  0xe7   : > { %2213 = vmatpush.bf16.msra.mxu0 %v6045_v60  ;;  %v6230_v60 = vld [vmem:[%s12235_s1 + $0x798] sm:$0xf0]  ;;  %v8082_v50 = vld [vmem:[%s12235_s1 + $0x60c] sm:$0xf] }
  0xe8   : > { %2226 = vmatpush.bf16.msra.mxu1 %v6173_v62  ;;  %2239 = vmatpush.bf16.msra.mxu2 %v6049_v0  ;;  %v6229_v62 = vor.u32 %v8132_v53, %v6228_v51  ;;  %v6105_v0 = vor.u32 %v8098_v54, %v6102_v55  ;;  %v6038_v53 = vld [vmem:[%s12235_s1 + $0x618] sm:$0xf0]  ;;  %v8114_v54 = vld [vmem:[%s12235_s1 + $0x70c] sm:$0xf] }
  0xe9   : > { %2252 = vmatpush.bf16.msra.mxu3 %v6177_v4  ;;  %v6233_v4 = vor.u32 %v8130_v57, %v6230_v60  ;;  %v6166_v55 = vld [vmem:[%s12235_s1 + $0x718] sm:$0xf0]  ;;  %v6461_v60 = vld [vmem:[%s12235_s1 + $0x8e0] sm:$0xf] }
  0xea   : > { %v6169_v6 = vor.u32 %v8114_v54, %v6166_v55  ;;  %v6399_v54 = vld [vmem:[%s12235_s1 + $0x870] sm:$0xf0] }
  0xeb   : > { %2214 = vmatpush.bf16.msra.mxu0 %v6029_v12  ;;  %v1194_v63 = vpop.f32.mrf.mxu0  ;;  %v6213_v12 = vor.u32 %v8128_v5, %v6212_v1  ;;  %v6591_v5 = vld [vmem:[%s12235_s1 + $0x9f0] sm:$0xf0] }
  0xec   : > { %2227 = vmatpush.bf16.msra.mxu1 %v6157_v16  ;;  %2240 = vmatpush.bf16.msra.mxu2 %v6033_v17  ;;  %v6196_v16 = vld [vmem:[%s12235_s1 + $0x748] sm:$0xf] }
  0xed   : > { %2253 = vmatpush.bf16.msra.mxu3 %v6161_v20  ;;  %v8090_v20 = vld [vmem:[%s12235_s1 + $0x64c] sm:$0xf]  ;;  %v6197_v31 = vor.u32 %v8124_v19, %v6196_v16  ;;  %v6447_v16 = vld [vmem:[%s12235_s1 + $0x8d0] sm:$0xf0] }
  0xee   : > { %2215 = vmatmul.bf16.vlgmr.msra.gmra.mxu0 %v9893_v25  ;;  %v1207_v3 = vpop.f32.mrf.mxu1 }
  0xef   : > { %2259 = vmatpush.bf16.msrb.mxu0 %v6149_v21  ;;  %2241 = vmatmul.bf16.vlgmr.msra.gmra.mxu2 %v9893_v25  ;;  %v1208_v8 = vadd.f32 %v1207_v3, %v1194_v63  ;;  %v6070_v21 = vld [vmem:[%s12235_s1 + $0x658] sm:$0xf0]  ;;  %v6589_v63 = vld [vmem:[%s12235_s1 + $0x9e0] sm:$0xf]  ;;  %v6041_v3 = vor.u32 %v8082_v50, %v6038_v53  ;;  %v8157_v53 = vld [vmem:[%s12235_s1 + $0x864] sm:$0xf] }
  0xf0   : > { %2272 = vmatpush.bf16.msrb.mxu1 %v6277_v22  ;;  %2285 = vmatpush.bf16.msrb.mxu2 %v6153_v23  ;;  %v8122_v23 = vld [vmem:[%s12235_s1 + $0x74c] sm:$0xf]  ;;  %v6073_v32 = vor.u32 %v8090_v20, %v6070_v21  ;;  %v6450_v21 = vor.u32 %v8169_v15, %v6447_v16 }
  0xf1   : > { %2298 = vmatpush.bf16.msrb.mxu3 %v6281_v29  ;;  %2228 = vmatmul.bf16.vlgmr.msra.gmra.mxu1 %v9895_v26  ;;  %v6052_v29 = vld [vmem:[%s12235_s1 + $0x628] sm:$0xf] }
  0xf2   : > { %2254 = vmatmul.bf16.vlgmr.msra.gmra.mxu3 %v9895_v26  ;;  %v1220_v17 = vpop.f32.mrf.mxu2  ;;  %v6053_v56 = vor.u32 %v8088_v35, %v6052_v29  ;;  %v8165_v29 = vld [vmem:[%s12235_s1 + $0x8a4] sm:$0xf] }
  0xf3   : > { %2260 = vmatpush.bf16.msrb.mxu0 %v6133_v37  ;;  %v1196_v30 = vpop.f32.mrf.mxu0 }
  0xf4   : > { %2273 = vmatpush.bf16.msrb.mxu1 %v6261_v38  ;;  %2286 = vmatpush.bf16.msrb.mxu2 %v6137_v39  ;;  %v6201_v39 = vor.u32 %v8122_v23, %v6198_v24  ;;  %v8167_v23 = vld [vmem:[%s12235_s1 + $0x8ac] sm:$0xf0]  ;;  %v6557_v24 = vld [vmem:[%s12235_s1 + $0x9a0] sm:$0xf]  ;;  %v6431_v30 = vld [vmem:[%s12235_s1 + $0x8b0] sm:$0xf0] }
  0xf5   : > { %2299 = vmatpush.bf16.msrb.mxu3 %v6265_v42  ;;  %v1233_v22 = vpop.f32.mrf.mxu3  ;;  %v8118_v42 = vld [vmem:[%s12235_s1 + $0x72c] sm:$0xf] }
  0xf6   : > { %v1234_v27 = vadd.f32 %v1233_v22, %v1220_v17  ;;  %v1209_v38 = vpop.f32.mrf.mxu1  ;;  %v8201_v17 = vld [vmem:[%s12235_s1 + $0x9c4] sm:$0xf]  ;;  %v6429_v22 = vld [vmem:[%s12235_s1 + $0x8a0] sm:$0xf] }
  0xf7   : > { %2261 = vmatpush.bf16.msrb.mxu0 %v6117_v33  ;;  %v6181_v33 = vor.u32 %v8120_v40, %v6180_v36  ;;  %v6430_v35 = vor.u32 %v8167_v23, %v6429_v22  ;;  %v8163_v38 = vld [vmem:[%s12235_s1 + $0x88c] sm:$0xf0] }
  0xf8   : > { %2274 = vmatpush.bf16.msrb.mxu1 %v6245_v47  ;;  %2287 = vmatpush.bf16.msrb.mxu2 %v6121_v48  ;;  %v1293_v37 = vrot.slane %v1234_v27, 7  ;;  %v6057_v47 = vor.u32 %v8086_v34, %v6054_v41  ;;  %v6164_v48 = vld [vmem:[%s12235_s1 + $0x708] sm:$0xf]  ;;  %v8161_v34 = vld [vmem:[%s12235_s1 + $0x884] sm:$0xf] }
  0xf9   : > { %2300 = vmatpush.bf16.msrb.mxu3 %v6249_v52  ;;  %v6185_v52 = vor.u32 %v8118_v42, %v6182_v43  ;;  %v6165_v1 = vor.u32 %v8116_v49, %v6164_v48  ;;  %v6415_v41 = vld [vmem:[%s12235_s1 + $0x890] sm:$0xf0]  ;;  %v8193_v42 = vld [vmem:[%s12235_s1 + $0x984] sm:$0xf]  ;;  %v8159_v48 = vld [vmem:[%s12235_s1 + $0x86c] sm:$0xf0] }
  0xfa   : > { %v10145_v44 = vsel %vm783_vm0, %v1208_v8, %v1293_v37  ;;  %v1222_v51 = vpop.f32.mrf.mxu2  ;;  %v6434_v37 = vor.u32 %v8165_v29, %v6431_v30  ;;  %v6543_v43 = vld [vmem:[%s12235_s1 + $0x990] sm:$0xf0]  ;;  %v6525_v49 = vld [vmem:[%s12235_s1 + $0x960] sm:$0xf]  ;;  %v8183_v23 = vld [vmem:[%s12235_s1 + $0x92c] sm:$0xf0] }
  0xfb   : > { %2262 = vmatpush.bf16.msrb.mxu0 %v6101_v61  ;;  %v8175_v61 = vld [vmem:[%s12235_s1 + $0x8ec] sm:$0xf0]  ;;  %v6546_v51 = vor.u32 %v8193_v42, %v6543_v43  ;;  %v8181_v30 = vld [vmem:[%s12235_s1 + $0x924] sm:$0xf]  ;;  %v6479_v43 = vld [vmem:[%s12235_s1 + $0x910] sm:$0xf0] }
  0xfc   : > { %2275 = vmatpush.bf16.msrb.mxu1 %v6229_v62  ;;  %2288 = vmatpush.bf16.msrb.mxu2 %v6105_v0  ;;  %v6037_v62 = vor.u32 %v8084_v58, %v6036_v46  ;;  %v8207_v0 = vld [vmem:[%s12235_s1 + $0x9ec] sm:$0xf0]  ;;  %v6462_v7 = vor.u32 %v8175_v61, %v6461_v60  ;;  %v6527_v60 = vld [vmem:[%s12235_s1 + $0x970] sm:$0xf0]  ;;  %v8177_v42 = vld [vmem:[%s12235_s1 + $0x904] sm:$0xf] }
  0xfd   : > { %2301 = vmatpush.bf16.msrb.mxu3 %v6233_v4  ;;  %v1235_v57 = vpop.f32.mrf.mxu3  ;;  %v8205_v4 = vld [vmem:[%s12235_s1 + $0x9e4] sm:$0xf]  ;;  %v6590_v8 = vor.u32 %v8207_v0, %v6589_v63 }
  0xfe   : > { %v8189_v57 = vld [vmem:[%s12235_s1 + $0x964] sm:$0xf] }
  0xff   : > { %2263 = vmatpush.bf16.msrb.mxu0 %v6085_v11  ;;  %v8171_v11 = vld [vmem:[%s12235_s1 + $0x8cc] sm:$0xf0] }
 0x100   : > { %2276 = vmatpush.bf16.msrb.mxu1 %v6213_v12  ;;  %2289 = vmatpush.bf16.msrb.mxu2 %v6089_v13  ;;  %v6573_v12 = vld [vmem:[%s12235_s1 + $0x9c0] sm:$0xf]  ;;  %v6594_v13 = vor.u32 %v8205_v4, %v6591_v5  ;;  %v6446_v19 = vor.u32 %v8171_v11, %v6445_v10  ;;  %v8187_v5 = vld [vmem:[%s12235_s1 + $0x94c] sm:$0xf0]  ;;  %v8185_v10 = vld [vmem:[%s12235_s1 + $0x944] sm:$0xf] }
 0x101   : > { %2302 = vmatpush.bf16.msrb.mxu3 %v6217_v18  ;;  %v6575_v18 = vld [vmem:[%s12235_s1 + $0x9d0] sm:$0xf0]  ;;  %v6574_v20 = vor.u32 %v8203_v14, %v6573_v12  ;;  %v278_v12 = vld [vmem:[%s12236_s2] sm:$0xf] }
 0x102   : > { %v6578_v27 = vor.u32 %v8201_v17, %v6575_v18  ;;  %v6511_v11 = vld [vmem:[%s12235_s1 + $0x950] sm:$0xf0]  ;;  %v6365_v14 = vld [vmem:[%s12235_s1 + $0x820] sm:$0xf] }
 0x103   : > { %2264 = vmatpush.bf16.msrb.mxu0 %v6069_v28  ;;  %v8199_v28 = vld [vmem:[%s12235_s1 + $0x9ac] sm:$0xf0]  ;;  %v6514_v22 = vor.u32 %v8185_v10, %v6511_v11  ;;  %v6437_v11 = vld [vmem:[%s12235_s1 + $0x8a8] sm:$0xf] }
 0x104   : > { %2277 = vmatpush.bf16.msrb.mxu1 %v6197_v31  ;;  %2290 = vmatpush.bf16.msrb.mxu2 %v6073_v32  ;;  %v8197_v31 = vld [vmem:[%s12235_s1 + $0x9a4] sm:$0xf]  ;;  %v6559_v32 = vld [vmem:[%s12235_s1 + $0x9b0] sm:$0xf0]  ;;  %v6558_v36 = vor.u32 %v8199_v28, %v6557_v24  ;;  %v790_v28 = vadd.f32 %v9946_v59, %v278_v12  ;;  %v8147_v59 = vld [vmem:[%s12235_s1 + $0x80c] sm:$0xf0] }
 0x105   : > { %2303 = vmatpush.bf16.msrb.mxu3 %v6201_v39  ;;  %v6541_v39 = vld [vmem:[%s12235_s1 + $0x980] sm:$0xf]  ;;  %v6562_v40 = vor.u32 %v8197_v31, %v6559_v32  ;;  %v8149_v24 = vld [vmem:[%s12235_s1 + $0x824] sm:$0xf]  ;;  %v6495_v31 = vld [vmem:[%s12235_s1 + $0x930] sm:$0xf0] }
 0x106   : > { %v8168_v12 = vld [vmem:[%s12235_s1 + $0x8b4] sm:$0xf0] }
 0x107   : > { %2265 = vmatpush.bf16.msrb.mxu0 %v6053_v56 }
 0x108   : > { %2278 = vmatpush.bf16.msrb.mxu1 %v6181_v33  ;;  %2291 = vmatpush.bf16.msrb.mxu2 %v6057_v47  ;;  %v6418_v33 = vor.u32 %v8161_v34, %v6415_v41  ;;  %v6397_v47 = vld [vmem:[%s12235_s1 + $0x860] sm:$0xf]  ;;  %v6498_v34 = vor.u32 %v8181_v30, %v6495_v31  ;;  %v6351_v41 = vld [vmem:[%s12235_s1 + $0x810] sm:$0xf0]  ;;  %v8162_v30 = vld [vmem:[%s12235_s1 + $0x88c] sm:$0xf] }
 0x109   : > { %2304 = vmatpush.bf16.msrb.mxu3 %v6185_v52  ;;  %v8191_v52 = vld [vmem:[%s12235_s1 + $0x96c] sm:$0xf0]  ;;  %v6398_v61 = vor.u32 %v8159_v48, %v6397_v47  ;;  %v8208_v48 = vld [vmem:[%s12235_s1 + $0x9f4] sm:$0xf0]  ;;  %v6423_v31 = vld [vmem:[%s12235_s1 + $0x898] sm:$0xf0] }
 0x10a   : > { %v6526_v63 = vor.u32 %v8191_v52, %v6525_v49  ;;  %v8174_v49 = vld [vmem:[%s12235_s1 + $0x8ec] sm:$0xf] }
 0x10b   : > { %2266 = vmatpush.bf16.msrb.mxu0 %v6037_v62  ;;  %v1246_v46 = vpop.f32.mrf.mxu0  ;;  %v6402_v62 = vor.u32 %v8157_v53, %v6399_v54  ;;  %v8206_v53 = vld [vmem:[%s12235_s1 + $0x9ec] sm:$0xf]  ;;  %v6599_v54 = vld [vmem:[%s12235_s1 + $0x9f8] sm:$0xf0] }
 0x10c   : > { %2279 = vmatpush.bf16.msrb.mxu1 %v6165_v1  ;;  %2292 = vmatpush.bf16.msrb.mxu2 %v6041_v3  ;;  %v6509_v1 = vld [vmem:[%s12235_s1 + $0x940] sm:$0xf]  ;;  %v6530_v3 = vor.u32 %v8189_v57, %v6527_v60 }
 0x10d   : > { %2305 = vmatpush.bf16.msrb.mxu3 %v6169_v6  ;;  %v8153_v6 = vld [vmem:[%s12235_s1 + $0x844] sm:$0xf]  ;;  %v6510_v17 = vor.u32 %v8187_v5, %v6509_v1  ;;  %v8170_v1 = vld [vmem:[%s12235_s1 + $0x8cc] sm:$0xf]  ;;  %v6583_v5 = vld [vmem:[%s12235_s1 + $0x9d8] sm:$0xf0] }
 0x10e   : > { %2267 = vmatmul.bf16.vlgmr.msrb.gmra.mxu0 %v9893_v25  ;;  %v1259_v50 = vpop.f32.mrf.mxu1 }
 0x10f   : > { %2717 = vmatpush.bf16.msra.mxu0 %v6462_v7  ;;  %2293 = vmatmul.bf16.vlgmr.msrb.gmra.mxu2 %v9893_v25  ;;  %v6413_v25 = vld [vmem:[%s12235_s1 + $0x880] sm:$0xf]  ;;  %v1260_v55 = vadd.f32 %v1259_v50, %v1246_v46  ;;  %v6383_v7 = vld [vmem:[%s12235_s1 + $0x850] sm:$0xf0]  ;;  %v6469_v46 = vld [vmem:[%s12235_s1 + $0x8e8] sm:$0xf] }
 0x110   : > { %2730 = vmatpush.bf16.msra.mxu1 %v6590_v8  ;;  %2743 = vmatpush.bf16.msra.mxu2 %v6466_v9  ;;  %v6414_v56 = vor.u32 %v8163_v38, %v6413_v25  ;;  %v6386_v18 = vor.u32 %v8153_v6, %v6383_v7  ;;  %v6471_v50 = vld [vmem:[%s12235_s1 + $0x8f8] sm:$0xf0]  ;;  %v10424_v6 = vld [vmem:[#allocation1] sm:$0xff] }
 0x111   : > { %2756 = vmatpush.bf16.msra.mxu3 %v6594_v13  ;;  %2280 = vmatmul.bf16.vlgmr.msrb.gmra.mxu1 %v9895_v26  ;;  %v1294_v8 = vrot.slane %v1260_v55, 6  ;;  %v6382_v13 = vor.u32 %v8155_v45, %v6381_v2  ;;  %v6482_v55 = vor.u32 %v8177_v42, %v6479_v43  ;;  %v6602_v2 = vor.u32 %v8206_v53, %v6599_v54  ;;  %v8204_v45 = vld [vmem:[%s12235_s1 + $0x9d4] sm:$0xf0]  ;;  %v8158_v42 = vld [vmem:[%s12235_s1 + $0x86c] sm:$0xf] }
 0x112   : > { %2306 = vmatmul.bf16.vlgmr.msrb.gmra.mxu3 %v9895_v26  ;;  %v8195_v26 = vld [vmem:[%s12235_s1 + $0x98c] sm:$0xf0]  ;;  %v1272_v0 = vpop.f32.mrf.mxu2  ;;  %v6407_v43 = vld [vmem:[%s12235_s1 + $0x878] sm:$0xf0]  ;;  %v8188_v54 = vld [vmem:[%s12235_s1 + $0x954] sm:$0xf0] }
 0x113   : > { %2718 = vmatpush.bf16.msra.mxu0 %v6446_v19  ;;  %v6542_v58 = vor.u32 %v8195_v26, %v6541_v39  ;;  %v1248_v15 = vpop.f32.mrf.mxu0  ;;  %v8151_v19 = vld [vmem:[%s12235_s1 + $0x82c] sm:$0xf0] }
 0x114   : > { %2731 = vmatpush.bf16.msra.mxu1 %v6574_v20  ;;  %2744 = vmatpush.bf16.msra.mxu2 %v6450_v21  ;;  %v6493_v20 = vld [vmem:[%s12235_s1 + $0x920] sm:$0xf]  ;;  %v8179_v39 = vld [vmem:[%s12235_s1 + $0x90c] sm:$0xf0]  ;;  %v8200_v15 = vld [vmem:[%s12235_s1 + $0x9b4] sm:$0xf0] }
 0x115   : > { %2757 = vmatpush.bf16.msra.mxu3 %v6578_v27  ;;  %v1285_v4 = vpop.f32.mrf.mxu3  ;;  %v6367_v27 = vld [vmem:[%s12235_s1 + $0x830] sm:$0xf0]  ;;  %v6494_v25 = vor.u32 %v8183_v23, %v6493_v20  ;;  %v6438_v20 = vor.u32 %v8168_v12, %v6437_v11  ;;  %v6421_v23 = vld [vmem:[%s12235_s1 + $0x888] sm:$0xf]  ;;  %v8184_v11 = vld [vmem:[%s12235_s1 + $0x934] sm:$0xf0] }
 0x116   : > { %v1286_v9 = vadd.f32 %v1285_v4, %v1272_v0  ;;  %v1261_v21 = vpop.f32.mrf.mxu1  ;;  %v6370_v38 = vor.u32 %v8149_v24, %v6367_v27  ;;  %v6581_v0 = vld [vmem:[%s12235_s1 + $0x9c8] sm:$0xf]  ;;  %v8202_v4 = vld [vmem:[%s12235_s1 + $0x9cc] sm:$0xf]  ;;  %v8164_v24 = vld [vmem:[%s12235_s1 + $0x894] sm:$0xf0] }
 0x117   : > { %2719 = vmatpush.bf16.msra.mxu0 %v6430_v35  ;;  %v6366_v35 = vor.u32 %v8151_v19, %v6365_v14  ;;  %v6586_v14 = vor.u32 %v8202_v4, %v6583_v5  ;;  %v6567_v19 = vld [vmem:[%s12235_s1 + $0x9b8] sm:$0xf0]  ;;  %v6549_v27 = vld [vmem:[%s12235_s1 + $0x988] sm:$0xf]  ;;  %v8152_v4 = vld [vmem:[%s12235_s1 + $0x834] sm:$0xf0] }
 0x118   : > { %2732 = vmatpush.bf16.msra.mxu1 %v6558_v36  ;;  %2745 = vmatpush.bf16.msra.mxu2 %v6434_v37  ;;  %v1295_v16 = vrot.slane %v1286_v9, 5  ;;  %v6349_v36 = vld [vmem:[%s12235_s1 + $0x800] sm:$0xf]  ;;  %v6582_v9 = vor.u32 %v8204_v45, %v6581_v0  ;;  %v6501_v5 = vld [vmem:[%s12235_s1 + $0x928] sm:$0xf] }
 0x119   : > { %2758 = vmatpush.bf16.msra.mxu3 %v6562_v40  ;;  %v8145_v40 = vld [vmem:[%s12235_s1 + $0x804] sm:$0xf]  ;;  %v6350_v47 = vor.u32 %v8147_v59, %v6349_v36  ;;  %v6422_v36 = vor.u32 %v8164_v24, %v6421_v23  ;;  %v8150_v12 = vld [vmem:[%s12235_s1 + $0x82c] sm:$0xf]  ;;  %v8180_v23 = vld [vmem:[%s12235_s1 + $0x914] sm:$0xf0] }
 0x11a   : > { %v1297_v29 = vsel %vm785_vm1, %v1294_v8, %v1295_v16  ;;  %v1274_v26 = vpop.f32.mrf.mxu2  ;;  %v6354_v52 = vor.u32 %v8145_v40, %v6351_v41  ;;  %v10426_v8 = vld [vmem:[#allocation1 + $0x9] sm:$0xff]  ;;  %v8192_v41 = vld [vmem:[%s12235_s1 + $0x974] sm:$0xf0] }
 0x11b   : > { %2720 = vmatpush.bf16.msra.mxu0 %v6414_v56  ;;  %v1298_v32 = vsel %vm787_vm2, %v10145_v44, %v1297_v29  ;;  %v6477_v44 = vld [vmem:[%s12235_s1 + $0x900] sm:$0xf]  ;;  %v8166_v16 = vld [vmem:[%s12235_s1 + $0x8ac] sm:$0xf]  ;;  %v8196_v29 = vld [vmem:[%s12235_s1 + $0x994] sm:$0xf0] }
 0x11c   : > { %2733 = vmatpush.bf16.msra.mxu1 %v6542_v58  ;;  %2746 = vmatpush.bf16.msra.mxu2 %v6418_v33  ;;  %v10356_v37 = vadd.f32 %v1298_v32, %v790_v28  ;;  %v8176_v58 = vld [vmem:[%s12235_s1 + $0x8f4] sm:$0xf0]  ;;  %v6597_v33 = vld [vmem:[%s12235_s1 + $0x9e8] sm:$0xf]  ;;  %v8194_v32 = vld [vmem:[%s12235_s1 + $0x98c] sm:$0xf] }
 0x11d   : > { %2759 = vmatpush.bf16.msra.mxu3 %v6546_v51  ;;  %v1287_v56 = vpop.f32.mrf.mxu3  ;;  %v6478_v51 = vor.u32 %v8179_v39, %v6477_v44  ;;  %v6470_v57 = vor.u32 %v8176_v58, %v6469_v46  ;;  %v6598_v60 = vor.u32 %v8208_v48, %v6597_v33  ;;  %v6405_v44 = vld [vmem:[%s12235_s1 + $0x868] sm:$0xf]  ;;  %v8160_v39 = vld [vmem:[%s12235_s1 + $0x874] sm:$0xf0]  ;;  %v8190_v46 = vld [vmem:[%s12235_s1 + $0x96c] sm:$0xf]  ;;  %v6410_v48 = vor.u32 %v8158_v42, %v6407_v43 }
 0x11e   : > { %v6533_v40 = vld [vmem:[%s12235_s1 + $0x968] sm:$0xf]  ;;  %v6535_v58 = vld [vmem:[%s12235_s1 + $0x978] sm:$0xf0]  ;;  %v6406_v33 = vor.u32 %v8160_v39, %v6405_v44  ;;  %v8146_v24 = vld [vmem:[%s12235_s1 + $0x80c] sm:$0xf] }
 0x11f   : > { %2721 = vmatpush.bf16.msra.mxu0 %v6398_v61  ;;  %v6474_v61 = vor.u32 %v8174_v49, %v6471_v50  ;;  %v6389_v49 = vld [vmem:[%s12235_s1 + $0x848] sm:$0xf]  ;;  %v8156_v50 = vld [vmem:[%s12235_s1 + $0x854] sm:$0xf0]  ;;  %v6538_v53 = vor.u32 %v8190_v46, %v6535_v58  ;;  %v8237_v44 = vld [vmem:[%s12235_s1 + $0xae4] sm:$0xf] }
 0x120   : > { %2734 = vmatpush.bf16.msra.mxu1 %v6526_v63  ;;  %2747 = vmatpush.bf16.msra.mxu2 %v6402_v62  ;;  %v6453_v63 = vld [vmem:[%s12235_s1 + $0x8c8] sm:$0xf]  ;;  %v8172_v62 = vld [vmem:[%s12235_s1 + $0x8d4] sm:$0xf0]  ;;  %v6390_v0 = vor.u32 %v8156_v50, %v6389_v49  ;;  %v6784_v39 = vld [vmem:[%s12235_s1 + $0xaf0] sm:$0xf0] }
 0x121   : > { %2760 = vmatpush.bf16.msra.mxu3 %v6530_v3  ;;  %v6455_v3 = vld [vmem:[%s12235_s1 + $0x8d8] sm:$0xf0]  ;;  %v6454_v7 = vor.u32 %v8172_v62, %v6453_v63  ;;  %v6787_v46 = vor.u32 %v8237_v44, %v6784_v39  ;;  %v6766_v58 = vld [vmem:[%s12235_s1 + $0xac0] sm:$0xf]  ;;  %v8267_v49 = vld [vmem:[%s12235_s1 + $0xbcc] sm:$0xf0] }
 0x122   : > { %v6458_v10 = vor.u32 %v8170_v1, %v6455_v3  ;;  %v6519_v63 = vld [vmem:[%s12235_s1 + $0x958] sm:$0xf0]  ;;  %v8233_v50 = vld [vmem:[%s12235_s1 + $0xac4] sm:$0xf]  ;;  %v6702_v39 = vld [vmem:[%s12235_s1 + $0xa40] sm:$0xf] }
 0x123   : > { %2722 = vmatpush.bf16.msra.mxu0 %v6382_v13  ;;  %v6565_v13 = vld [vmem:[%s12235_s1 + $0x9a8] sm:$0xf] }
 0x124   : > { %2735 = vmatpush.bf16.msra.mxu1 %v6510_v17  ;;  %2748 = vmatpush.bf16.msra.mxu2 %v6386_v18  ;;  %v6439_v17 = vld [vmem:[%s12235_s1 + $0x8b8] sm:$0xf0]  ;;  %v8198_v18 = vld [vmem:[%s12235_s1 + $0x9ac] sm:$0xf]  ;;  %v6566_v21 = vor.u32 %v8200_v15, %v6565_v13 }
 0x125   : > { %2761 = vmatpush.bf16.msra.mxu3 %v6514_v22  ;;  %v6442_v22 = vor.u32 %v8166_v16, %v6439_v17  ;;  %v6570_v28 = vor.u32 %v8198_v18, %v6567_v19  ;;  %v6375_v13 = vld [vmem:[%s12235_s1 + $0x838] sm:$0xf0]  ;;  %v6357_v18 = vld [vmem:[%s12235_s1 + $0x808] sm:$0xf]  ;;  %v8148_v19 = vld [vmem:[%s12235_s1 + $0x814] sm:$0xf0] }
 0x126   : > { %v6503_v15 = vld [vmem:[%s12235_s1 + $0x938] sm:$0xf0] }
 0x127   : > { %2723 = vmatpush.bf16.msra.mxu0 %v6366_v35  ;;  %v6551_v35 = vld [vmem:[%s12235_s1 + $0x998] sm:$0xf0] }
 0x128   : > { %2736 = vmatpush.bf16.msra.mxu1 %v6494_v25  ;;  %2749 = vmatpush.bf16.msra.mxu2 %v6370_v38  ;;  %v6550_v25 = vor.u32 %v8196_v29, %v6549_v27  ;;  %v6426_v38 = vor.u32 %v8162_v30, %v6423_v31  ;;  %v6359_v29 = vld [vmem:[%s12235_s1 + $0x818] sm:$0xf0]  ;;  %v8178_v30 = vld [vmem:[%s12235_s1 + $0x90c] sm:$0xf] }
 0x129   : > { %2762 = vmatpush.bf16.msra.mxu3 %v6498_v34  ;;  %v6554_v34 = vor.u32 %v8194_v32, %v6551_v35  ;;  %v6487_v31 = vld [vmem:[%s12235_s1 + $0x918] sm:$0xf0]  ;;  %v6782_v35 = vld [vmem:[%s12235_s1 + $0xae0] sm:$0xf] }
 0x12a   : > { %v6490_v42 = vor.u32 %v8178_v30, %v6487_v31  ;;  %v8221_v30 = vld [vmem:[%s12235_s1 + $0xa64] sm:$0xf]  ;;  %v6720_v31 = vld [vmem:[%s12235_s1 + $0xa70] sm:$0xf0] }
 0x12b   : > { %2724 = vmatpush.bf16.msra.mxu0 %v6350_v47  ;;  %v1706_v59 = vpop.f32.mrf.mxu0  ;;  %v6534_v47 = vor.u32 %v8192_v41, %v6533_v40  ;;  %v6912_v41 = vld [vmem:[%s12235_s1 + $0xbf0] sm:$0xf0] }
 0x12c   : > { %2737 = vmatpush.bf16.msra.mxu1 %v6478_v51  ;;  %2750 = vmatpush.bf16.msra.mxu2 %v6354_v52  ;;  %v6517_v51 = vld [vmem:[%s12235_s1 + $0x948] sm:$0xf] }
 0x12d   : > { %2763 = vmatpush.bf16.msra.mxu3 %v6482_v55  ;;  %v8154_v55 = vld [vmem:[%s12235_s1 + $0x84c] sm:$0xf]  ;;  %v6518_v1 = vor.u32 %v8188_v54, %v6517_v51  ;;  %v6768_v51 = vld [vmem:[%s12235_s1 + $0xad0] sm:$0xf0] }
 0x12e   : > { %2725 = vmatmul.bf16.vlgmr.msra.gmra.mxu0 %v10424_v6  ;;  %v1719_v26 = vpop.f32.mrf.mxu1 }
 0x12f   : > { %2769 = vmatpush.bf16.msrb.mxu0 %v6470_v57  ;;  %2751 = vmatmul.bf16.vlgmr.msra.gmra.mxu2 %v10424_v6  ;;  %v1720_v56 = vadd.f32 %v1719_v26, %v1706_v59  ;;  %v6391_v57 = vld [vmem:[%s12235_s1 + $0x858] sm:$0xf0]  ;;  %v6910_v59 = vld [vmem:[%s12235_s1 + $0xbe0] sm:$0xf]  ;;  %v6362_v26 = vor.u32 %v8146_v24, %v6359_v29  ;;  %v8255_v29 = vld [vmem:[%s12235_s1 + $0xb6c] sm:$0xf0] }
 0x130   : > { %2782 = vmatpush.bf16.msrb.mxu1 %v6598_v60  ;;  %2795 = vmatpush.bf16.msrb.mxu2 %v6474_v61  ;;  %v8186_v61 = vld [vmem:[%s12235_s1 + $0x94c] sm:$0xf]  ;;  %v6394_v3 = vor.u32 %v8154_v55, %v6391_v57  ;;  %v6771_v57 = vor.u32 %v8233_v50, %v6768_v51  ;;  %v6846_v24 = vld [vmem:[%s12235_s1 + $0xb60] sm:$0xf] }
 0x131   : > { %2808 = vmatpush.bf16.msrb.mxu3 %v6602_v2  ;;  %2738 = vmatmul.bf16.vlgmr.msra.gmra.mxu1 %v10426_v8  ;;  %v6373_v2 = vld [vmem:[%s12235_s1 + $0x828] sm:$0xf] }
 0x132   : > { %2764 = vmatmul.bf16.vlgmr.msra.gmra.mxu3 %v10426_v8  ;;  %v1732_v52 = vpop.f32.mrf.mxu2  ;;  %v6374_v17 = vor.u32 %v8152_v4, %v6373_v2  ;;  %v8229_v2 = vld [vmem:[%s12235_s1 + $0xaa4] sm:$0xf] }
 0x133   : > { %2770 = vmatpush.bf16.msrb.mxu0 %v6454_v7  ;;  %v1708_v45 = vpop.f32.mrf.mxu0 }
 0x134   : > { %2783 = vmatpush.bf16.msrb.mxu1 %v6582_v9  ;;  %2796 = vmatpush.bf16.msrb.mxu2 %v6458_v10  ;;  %v6522_v10 = vor.u32 %v8186_v61, %v6519_v63  ;;  %v8231_v61 = vld [vmem:[%s12235_s1 + $0xaac] sm:$0xf0]  ;;  %v6878_v63 = vld [vmem:[%s12235_s1 + $0xba0] sm:$0xf]  ;;  %v6752_v45 = vld [vmem:[%s12235_s1 + $0xab0] sm:$0xf0] }
 0x135   : > { %2809 = vmatpush.bf16.msrb.mxu3 %v6586_v14  ;;  %v1745_v60 = vpop.f32.mrf.mxu3  ;;  %v8182_v14 = vld [vmem:[%s12235_s1 + $0x92c] sm:$0xf] }
 0x136   : > { %v1746_v62 = vadd.f32 %v1745_v60, %v1732_v52  ;;  %v1721_v9 = vpop.f32.mrf.mxu1  ;;  %v8265_v52 = vld [vmem:[%s12235_s1 + $0xbc4] sm:$0xf]  ;;  %v6750_v60 = vld [vmem:[%s12235_s1 + $0xaa0] sm:$0xf] }
 0x137   : > { %2771 = vmatpush.bf16.msrb.mxu0 %v6438_v20  ;;  %v6502_v20 = vor.u32 %v8184_v11, %v6501_v5  ;;  %v6751_v4 = vor.u32 %v8231_v61, %v6750_v60  ;;  %v6603_v5 = vld [vmem:[%s8843_s10 + $0x8] sm:$0x3]  ;;  %v6755_v9 = vor.u32 %v8229_v2, %v6752_v45  ;;  %v6862_v11 = vld [vmem:[%s12235_s1 + $0xb80] sm:$0xf]  ;;  %v8247_v61 = vld [vmem:[%s12235_s1 + $0xb2c] sm:$0xf0] }
 0x138   : > { %2784 = vmatpush.bf16.msrb.mxu1 %v6566_v21  ;;  %2797 = vmatpush.bf16.msrb.mxu2 %v6442_v22  ;;  %v1805_v7 = vrot.slane %v1746_v62, 7  ;;  %v6378_v21 = vor.u32 %v8150_v12, %v6375_v13  ;;  %v6485_v22 = vld [vmem:[%s12235_s1 + $0x908] sm:$0xf]  ;;  %v8259_v12 = vld [vmem:[%s12235_s1 + $0xb8c] sm:$0xf0] }
 0x139   : > { %2810 = vmatpush.bf16.msrb.mxu3 %v6570_v28  ;;  %v6506_v28 = vor.u32 %v8182_v14, %v6503_v15  ;;  %v6486_v40 = vor.u32 %v8180_v23, %v6485_v22  ;;  %v8225_v13 = vld [vmem:[%s12235_s1 + $0xa84] sm:$0xf]  ;;  %v6736_v14 = vld [vmem:[%s12235_s1 + $0xa90] sm:$0xf0]  ;;  %2900 = vst [vmem:[#allocation1] ss:$9 sm:$0xff] %v6603_v5 }
 0x13a   : > { %v10553_v16 = vsel %vm783_vm0, %v1720_v56, %v1805_v7  ;;  %v1734_v27 = vpop.f32.mrf.mxu2  ;;  %v8257_v15 = vld [vmem:[%s12235_s1 + $0xb84] sm:$0xf]  ;;  %v6718_v22 = vld [vmem:[%s12235_s1 + $0xa60] sm:$0xf]  ;;  %v8223_v23 = vld [vmem:[%s12235_s1 + $0xa6c] sm:$0xf0] }
 0x13b   : > { %2772 = vmatpush.bf16.msrb.mxu0 %v6422_v36  ;;  %v8239_v36 = vld [vmem:[%s12235_s1 + $0xaec] sm:$0xf0]  ;;  %v8245_v2 = vld [vmem:[%s12235_s1 + $0xb24] sm:$0xf]  ;;  %v6816_v45 = vld [vmem:[%s12235_s1 + $0xb30] sm:$0xf0] }
 0x13c   : > { %2785 = vmatpush.bf16.msrb.mxu1 %v6550_v25  ;;  %2798 = vmatpush.bf16.msrb.mxu2 %v6426_v38  ;;  %v6358_v25 = vor.u32 %v8148_v19, %v6357_v18  ;;  %v8271_v38 = vld [vmem:[%s12235_s1 + $0xbec] sm:$0xf0]  ;;  %v6783_v43 = vor.u32 %v8239_v36, %v6782_v35  ;;  %v8253_v35 = vld [vmem:[%s12235_s1 + $0xb64] sm:$0xf]  ;;  %v6848_v36 = vld [vmem:[%s12235_s1 + $0xb70] sm:$0xf0] }
 0x13d   : > { %2811 = vmatpush.bf16.msrb.mxu3 %v6554_v34  ;;  %v1747_v32 = vpop.f32.mrf.mxu3  ;;  %v8269_v34 = vld [vmem:[%s12235_s1 + $0xbe4] sm:$0xf]  ;;  %v6911_v56 = vor.u32 %v8271_v38, %v6910_v59  ;;  %v6719_v59 = vor.u32 %v8223_v23, %v6718_v22  ;;  %v6723_v38 = vor.u32 %v8221_v30, %v6720_v31  ;;  %v8211_v5 = vld [vmem:[%s12235_s1 + $0xa0c] sm:$0xf0]  ;;  %v8238_v22 = vld [vmem:[%s12235_s1 + $0xaec] sm:$0xf] }
 0x13e   : > { %v6792_v23 = vld [vmem:[%s12235_s1 + $0xaf8] sm:$0xf0] }
 0x13f   : > { %2773 = vmatpush.bf16.msrb.mxu0 %v6406_v33  ;;  %v8235_v33 = vld [vmem:[%s12235_s1 + $0xacc] sm:$0xf0] }
 0x140   : > { %2786 = vmatpush.bf16.msrb.mxu1 %v6534_v47  ;;  %2799 = vmatpush.bf16.msrb.mxu2 %v6410_v48  ;;  %v6894_v47 = vld [vmem:[%s12235_s1 + $0xbc0] sm:$0xf]  ;;  %v6915_v48 = vor.u32 %v8269_v34, %v6912_v41  ;;  %v6767_v54 = vor.u32 %v8235_v33, %v6766_v58  ;;  %v6851_v34 = vor.u32 %v8253_v35, %v6848_v36  ;;  %v8249_v33 = vld [vmem:[%s12235_s1 + $0xb44] sm:$0xf]  ;;  %v6774_v35 = vld [vmem:[%s12235_s1 + $0xac8] sm:$0xf] }
 0x141   : > { %2812 = vmatpush.bf16.msrb.mxu3 %v6538_v53  ;;  %v6896_v53 = vld [vmem:[%s12235_s1 + $0xbd0] sm:$0xf0]  ;;  %v6895_v55 = vor.u32 %v8267_v49, %v6894_v47  ;;  %v6686_v49 = vld [vmem:[%s12235_s1 + $0xa20] sm:$0xf]  ;;  %v2902_v36 = vld [vmem:[#allocation1 + $0x9] sm:$0xff] }
 0x142   : > { %v6899_v62 = vor.u32 %v8265_v52, %v6896_v53  ;;  %v6832_v47 = vld [vmem:[%s12235_s1 + $0xb50] sm:$0xf0]  ;;  %v2901_v30 = vld [vmem:[#allocation1] sm:$0xff] }
 0x143   : > { %2774 = vmatpush.bf16.msrb.mxu0 %v6390_v0  ;;  %v8263_v0 = vld [vmem:[%s12235_s1 + $0xbac] sm:$0xf0]  ;;  %v6835_v60 = vor.u32 %v8249_v33, %v6832_v47  ;;  %v6758_v47 = vld [vmem:[%s12235_s1 + $0xaa8] sm:$0xf] }
 0x144   : > { %2787 = vmatpush.bf16.msrb.mxu1 %v6518_v1  ;;  %2800 = vmatpush.bf16.msrb.mxu2 %v6394_v3  ;;  %v8261_v1 = vld [vmem:[%s12235_s1 + $0xba4] sm:$0xf]  ;;  %v6880_v3 = vld [vmem:[%s12235_s1 + $0xbb0] sm:$0xf0]  ;;  %v6879_v7 = vor.u32 %v8263_v0, %v6878_v63 }
 0x145   : > { %2813 = vmatpush.bf16.msrb.mxu3 %v6522_v10  ;;  %v8227_v10 = vld [vmem:[%s12235_s1 + $0xa8c] sm:$0xf0]  ;;  %v8213_v63 = vld [vmem:[%s12235_s1 + $0xa24] sm:$0xf] }
 0x147   : > { %2775 = vmatpush.bf16.msrb.mxu0 %v6374_v17  ;;  %v6864_v17 = vld [vmem:[%s12235_s1 + $0xb90] sm:$0xf0] }
 0x148   : > { %2788 = vmatpush.bf16.msrb.mxu1 %v6502_v20  ;;  %2801 = vmatpush.bf16.msrb.mxu2 %v6378_v21  ;;  %v6863_v20 = vor.u32 %v8259_v12, %v6862_v11  ;;  %v6739_v21 = vor.u32 %v8225_v13, %v6736_v14  ;;  %v8209_v11 = vld [vmem:[%s12235_s1 + $0xa04] sm:$0xf]  ;;  %v6672_v12 = vld [vmem:[%s12235_s1 + $0xa10] sm:$0xf0] }
 0x149   : > { %2814 = vmatpush.bf16.msrb.mxu3 %v6506_v28  ;;  %v6867_v28 = vor.u32 %v8257_v15, %v6864_v17  ;;  %v8241_v13 = vld [vmem:[%s12235_s1 + $0xb04] sm:$0xf]  ;;  %v6800_v14 = vld [vmem:[%s12235_s1 + $0xb10] sm:$0xf0]  ;;  %v6790_v17 = vld [vmem:[%s12235_s1 + $0xae8] sm:$0xf] }
 0x14a   : > { %v6803_v31 = vor.u32 %v8241_v13, %v6800_v14  ;;  %v8256_v14 = vld [vmem:[%s12235_s1 + $0xb74] sm:$0xf0] }
 0x14b   : > { %2776 = vmatpush.bf16.msrb.mxu0 %v6358_v25  ;;  %v1758_v19 = vpop.f32.mrf.mxu0  ;;  %v6847_v25 = vor.u32 %v8255_v29, %v6846_v24  ;;  %v6920_v29 = vld [vmem:[%s12235_s1 + $0xbf8] sm:$0xf0] }
 0x14c   : > { %2789 = vmatpush.bf16.msrb.mxu1 %v6486_v40  ;;  %2802 = vmatpush.bf16.msrb.mxu2 %v6362_v26  ;;  %v8219_v40 = vld [vmem:[%s12235_s1 + $0xa4c] sm:$0xf0]  ;;  %v6830_v26 = vld [vmem:[%s12235_s1 + $0xb40] sm:$0xf] }
 0x14d   : > { %2815 = vmatpush.bf16.msrb.mxu3 %v6490_v42  ;;  %v8251_v42 = vld [vmem:[%s12235_s1 + $0xb4c] sm:$0xf0] }
 0x14e   : > { %2777 = vmatmul.bf16.vlgmr.msrb.gmra.mxu0 %v10424_v6  ;;  %v1771_v27 = vpop.f32.mrf.mxu1  ;;  %v6831_v52 = vor.u32 %v8251_v42, %v6830_v26  ;;  %v8234_v26 = vld [vmem:[%s12235_s1 + $0xacc] sm:$0xf] }
 0x14f   : > { %3229 = vmatpush.bf16.msra.mxu0 %v6783_v43  ;;  %2803 = vmatmul.bf16.vlgmr.msrb.gmra.mxu2 %v10424_v6  ;;  %v6734_v6 = vld [vmem:[%s12235_s1 + $0xa80] sm:$0xf]  ;;  %v1772_v32 = vadd.f32 %v1771_v27, %v1758_v19  ;;  %v8217_v43 = vld [vmem:[%s12235_s1 + $0xa44] sm:$0xf]  ;;  %v6918_v19 = vld [vmem:[%s12235_s1 + $0xbe8] sm:$0xf]  ;;  %v6675_v27 = vor.u32 %v8209_v11, %v6672_v12 }
 0x150   : > { %3242 = vmatpush.bf16.msra.mxu1 %v6911_v56  ;;  %3255 = vmatpush.bf16.msra.mxu2 %v6787_v46  ;;  %v6735_v18 = vor.u32 %v8227_v10, %v6734_v6  ;;  %v6704_v56 = vld [vmem:[%s12235_s1 + $0xa50] sm:$0xf0]  ;;  %v8243_v10 = vld [vmem:[%s12235_s1 + $0xb0c] sm:$0xf0]  ;;  %v8266_v42 = vld [vmem:[%s12235_s1 + $0xbcc] sm:$0xf] }
 0x151   : > { %3268 = vmatpush.bf16.msra.mxu3 %v6915_v48  ;;  %2790 = vmatmul.bf16.vlgmr.msrb.gmra.mxu1 %v10426_v8  ;;  %v1806_v46 = vrot.slane %v1772_v32, 6  ;;  %v6703_v48 = vor.u32 %v8219_v40, %v6702_v39  ;;  %v6707_v53 = vor.u32 %v8217_v43, %v6704_v56  ;;  %v8268_v39 = vld [vmem:[%s12235_s1 + $0xbd4] sm:$0xf0]  ;;  %v6904_v43 = vld [vmem:[%s12235_s1 + $0xbd8] sm:$0xf0]  ;;  %v10832_v56 = vshrl.u32 %v2902_v36, 16 }
 0x152   : > { %2816 = vmatmul.bf16.vlgmr.msrb.gmra.mxu3 %v10426_v8  ;;  %v6883_v8 = vor.u32 %v8261_v1, %v6880_v3  ;;  %v1784_v44 = vpop.f32.mrf.mxu2  ;;  %v6726_v11 = vld [vmem:[%s12235_s1 + $0xa68] sm:$0xf] }
 0x153   : > { %3230 = vmatpush.bf16.msra.mxu0 %v6767_v54  ;;  %v1760_v50 = vpop.f32.mrf.mxu0  ;;  %v8215_v54 = vld [vmem:[%s12235_s1 + $0xa2c] sm:$0xf0] }
 0x154   : > { %3243 = vmatpush.bf16.msra.mxu1 %v6895_v55  ;;  %3256 = vmatpush.bf16.msra.mxu2 %v6771_v57  ;;  %v6814_v55 = vld [vmem:[%s12235_s1 + $0xb20] sm:$0xf]  ;;  %v6687_v3 = vor.u32 %v8215_v54, %v6686_v49  ;;  %v6886_v49 = vld [vmem:[%s12235_s1 + $0xba8] sm:$0xf]  ;;  %v6907_v50 = vor.u32 %v8266_v42, %v6904_v43  ;;  %v8262_v54 = vld [vmem:[%s12235_s1 + $0xbac] sm:$0xf] }
 0x155   : > { %3269 = vmatpush.bf16.msra.mxu3 %v6899_v62  ;;  %v1797_v41 = vpop.f32.mrf.mxu3  ;;  %v6688_v62 = vld [vmem:[%s12235_s1 + $0xa30] sm:$0xf0]  ;;  %v8216_v42 = vld [vmem:[%s12235_s1 + $0xa34] sm:$0xf0]  ;;  %v6822_v43 = vld [vmem:[%s12235_s1 + $0xb28] sm:$0xf] }
 0x156   : > { %v1798_v58 = vadd.f32 %v1797_v41, %v1784_v44  ;;  %v1773_v57 = vpop.f32.mrf.mxu1  ;;  %v6691_v6 = vor.u32 %v8213_v63, %v6688_v62  ;;  %v6902_v44 = vld [vmem:[%s12235_s1 + $0xbc8] sm:$0xf]  ;;  %v10824_v41 = vshrl.u32 %v2901_v30, 16  ;;  %v8228_v62 = vld [vmem:[%s12235_s1 + $0xa94] sm:$0xf0] }
 0x157   : > { %3231 = vmatpush.bf16.msra.mxu0 %v6751_v4  ;;  %v6670_v4 = vld [vmem:[%s12235_s1 + $0xa00] sm:$0xf]  ;;  %v6742_v63 = vld [vmem:[%s12235_s1 + $0xa88] sm:$0xf] }
 0x158   : > { %3244 = vmatpush.bf16.msra.mxu1 %v6879_v7  ;;  %3257 = vmatpush.bf16.msra.mxu2 %v6755_v9  ;;  %v1807_v51 = vrot.slane %v1798_v58, 5  ;;  %v6815_v9 = vor.u32 %v8247_v61, %v6814_v55  ;;  %v6903_v58 = vor.u32 %v8268_v39, %v6902_v44  ;;  %v6888_v55 = vld [vmem:[%s12235_s1 + $0xbb8] sm:$0xf0]  ;;  %v6694_v39 = vld [vmem:[%s12235_s1 + $0xa28] sm:$0xf] }
 0x159   : > { %3270 = vmatpush.bf16.msra.mxu3 %v6883_v8 }
 0x15a   : > { %v1809_v0 = vsel %vm785_vm1, %v1806_v46, %v1807_v51  ;;  %v1786_v8 = vpop.f32.mrf.mxu2  ;;  %v8264_v51 = vld [vmem:[%s12235_s1 + $0xbb4] sm:$0xf0] }
 0x15b   : > { %3232 = vmatpush.bf16.msra.mxu0 %v6735_v18  ;;  %v1810_v1 = vsel %vm787_vm2, %v10553_v16, %v1809_v0  ;;  %v6798_v16 = vld [vmem:[%s12235_s1 + $0xb00] sm:$0xf]  ;;  %v8240_v18 = vld [vmem:[%s12235_s1 + $0xaf4] sm:$0xf0]  ;;  %v6870_v0 = vld [vmem:[%s12235_s1 + $0xb88] sm:$0xf] }
 0x15c   : > { %3245 = vmatpush.bf16.msra.mxu1 %v6863_v20  ;;  %3258 = vmatpush.bf16.msra.mxu2 %v6739_v21  ;;  %v10762_v7 = vadd.f32 %v1810_v1, %v10356_v37  ;;  %v6819_v37 = vor.u32 %v8245_v2, %v6816_v45  ;;  %v6671_v20 = vor.u32 %v8211_v5, %v6670_v4  ;;  %v8272_v21 = vld [vmem:[%s12235_s1 + $0xbf4] sm:$0xf0]  ;;  %v8226_v1 = vld [vmem:[%s12235_s1 + $0xa8c] sm:$0xf]  ;;  %v6872_v5 = vld [vmem:[%s12235_s1 + $0xb98] sm:$0xf0] }
 0x15d   : > { %3271 = vmatpush.bf16.msra.mxu3 %v6867_v28  ;;  %v1799_v15 = vpop.f32.mrf.mxu3  ;;  %v6799_v24 = vor.u32 %v8243_v10, %v6798_v16  ;;  %v8270_v28 = vld [vmem:[%s12235_s1 + $0xbec] sm:$0xf]  ;;  %v6791_v32 = vor.u32 %v8240_v18, %v6790_v17  ;;  %v6891_v2 = vor.u32 %v8262_v54, %v6888_v55  ;;  %v8260_v45 = vld [vmem:[%s12235_s1 + $0xb94] sm:$0xf0]  ;;  %v6728_v17 = vld [vmem:[%s12235_s1 + $0xa78] sm:$0xf0] }
 0x15e   : > { %v6923_v40 = vor.u32 %v8270_v28, %v6920_v29  ;;  %v8258_v4 = vld [vmem:[%s12235_s1 + $0xb8c] sm:$0xf]  ;;  %v6871_v16 = vor.u32 %v8260_v45, %v6870_v0  ;;  %v8224_v8 = vld [vmem:[%s12235_s1 + $0xa74] sm:$0xf0]  ;;  %v6838_v28 = vld [vmem:[%s12235_s1 + $0xb48] sm:$0xf] }
 0x15f   : > { %3233 = vmatpush.bf16.msra.mxu0 %v6719_v59  ;;  %v6919_v59 = vor.u32 %v8272_v21, %v6918_v19  ;;  %v6875_v13 = vor.u32 %v8258_v4, %v6872_v5  ;;  %v8222_v15 = vld [vmem:[%s12235_s1 + $0xa6c] sm:$0xf]  ;;  %v6727_v21 = vor.u32 %v8224_v8, %v6726_v11  ;;  %v6678_v54 = vld [vmem:[%s12235_s1 + $0xa08] sm:$0xf]  ;;  %v8212_v55 = vld [vmem:[%s12235_s1 + $0xa14] sm:$0xf0] }
 0x160   : > { %3246 = vmatpush.bf16.msra.mxu1 %v6847_v25  ;;  %3259 = vmatpush.bf16.msra.mxu2 %v6723_v38  ;;  %v6795_v25 = vor.u32 %v8238_v22, %v6792_v23  ;;  %v8236_v38 = vld [vmem:[%s12235_s1 + $0xad4] sm:$0xf0]  ;;  %v8254_v19 = vld [vmem:[%s12235_s1 + $0xb6c] sm:$0xf]  ;;  %v6731_v23 = vor.u32 %v8222_v15, %v6728_v17  ;;  %v6680_v45 = vld [vmem:[%s12235_s1 + $0xa18] sm:$0xf0] }
 0x161   : > { %3272 = vmatpush.bf16.msra.mxu3 %v6851_v34  ;;  %v6776_v34 = vld [vmem:[%s12235_s1 + $0xad8] sm:$0xf0]  ;;  %v6775_v46 = vor.u32 %v8236_v38, %v6774_v35  ;;  %v7103_v5 = vld [vmem:[%s12235_s1 + $0xce0] sm:$0xf]  ;;  %v8301_v11 = vld [vmem:[%s12235_s1 + $0xce4] sm:$0xf] }
 0x162   : > { %v6779_v33 = vor.u32 %v8234_v26, %v6776_v34  ;;  %v6712_v35 = vld [vmem:[%s12235_s1 + $0xa58] sm:$0xf0]  ;;  %v7105_v8 = vld [vmem:[%s12235_s1 + $0xcf0] sm:$0xf0] }
 0x163   : > { %3234 = vmatpush.bf16.msra.mxu0 %v6703_v48  ;;  %v8232_v48 = vld [vmem:[%s12235_s1 + $0xab4] sm:$0xf0] }
 0x164   : > { %3247 = vmatpush.bf16.msra.mxu1 %v6831_v52  ;;  %3260 = vmatpush.bf16.msra.mxu2 %v6707_v53  ;;  %v8230_v52 = vld [vmem:[%s12235_s1 + $0xaac] sm:$0xf]  ;;  %v6760_v53 = vld [vmem:[%s12235_s1 + $0xab8] sm:$0xf0]  ;;  %v6759_v57 = vor.u32 %v8232_v48, %v6758_v47  ;;  %v8248_v47 = vld [vmem:[%s12235_s1 + $0xb34] sm:$0xf0] }
 0x165   : > { %3273 = vmatpush.bf16.msra.mxu3 %v6835_v60  ;;  %v6887_v60 = vor.u32 %v8264_v51, %v6886_v49  ;;  %v6763_v61 = vor.u32 %v8230_v52, %v6760_v53  ;;  %v8214_v48 = vld [vmem:[%s12235_s1 + $0xa2c] sm:$0xf]  ;;  %v6696_v49 = vld [vmem:[%s12235_s1 + $0xa38] sm:$0xf0]  ;;  %v6695_v53 = vor.u32 %v8216_v42, %v6694_v39  ;;  %v8293_v39 = vld [vmem:[%s12235_s1 + $0xca4] sm:$0xf] }
 0x166   : > { %v6824_v51 = vld [vmem:[%s12235_s1 + $0xb38] sm:$0xf0] }
 0x167   : > { %3235 = vmatpush.bf16.msra.mxu0 %v6687_v3  ;;  %v6744_v3 = vld [vmem:[%s12235_s1 + $0xa98] sm:$0xf0] }
 0x168   : > { %3248 = vmatpush.bf16.msra.mxu1 %v6815_v9  ;;  %3261 = vmatpush.bf16.msra.mxu2 %v6691_v6  ;;  %v6743_v9 = vor.u32 %v8228_v62, %v6742_v63  ;;  %v6747_v10 = vor.u32 %v8226_v1, %v6744_v3  ;;  %v8244_v63 = vld [vmem:[%s12235_s1 + $0xb14] sm:$0xf0]  ;;  %v8210_v62 = vld [vmem:[%s12235_s1 + $0xa0c] sm:$0xf]  ;;  %v6808_v3 = vld [vmem:[%s12235_s1 + $0xb18] sm:$0xf0] }
 0x169   : > { %3274 = vmatpush.bf16.msra.mxu3 %v6819_v37  ;;  %v6854_v37 = vld [vmem:[%s12235_s1 + $0xb68] sm:$0xf]  ;;  %v8242_v1 = vld [vmem:[%s12235_s1 + $0xb0c] sm:$0xf] }
 0x16a   : > { %v6855_v22 = vor.u32 %v8256_v14, %v6854_v37  ;;  %v7233_v14 = vld [vmem:[%s12235_s1 + $0xdf0] sm:$0xf0]  ;;  %v6811_v15 = vor.u32 %v8242_v1, %v6808_v3  ;;  %v8285_v1 = vld [vmem:[%s12235_s1 + $0xc64] sm:$0xf] }
 0x16b   : > { %3236 = vmatpush.bf16.msra.mxu0 %v6671_v20  ;;  %v2216_v6 = vpop.f32.mrf.mxu0  ;;  %v6856_v20 = vld [vmem:[%s12235_s1 + $0xb78] sm:$0xf0]  ;;  %v7041_v3 = vld [vmem:[%s12235_s1 + $0xc70] sm:$0xf0] }
 0x16c   : > { %3249 = vmatpush.bf16.msra.mxu1 %v6799_v24  ;;  %3262 = vmatpush.bf16.msra.mxu2 %v6675_v27  ;;  %v6710_v24 = vld [vmem:[%s12235_s1 + $0xa48] sm:$0xf]  ;;  %v8220_v27 = vld [vmem:[%s12235_s1 + $0xa54] sm:$0xf0]  ;;  %v6859_v30 = vor.u32 %v8254_v19, %v6856_v20  ;;  %v7108_v19 = vor.u32 %v8301_v11, %v7105_v8  ;;  %v7087_v20 = vld [vmem:[%s12235_s1 + $0xcc0] sm:$0xf] }
 0x16d   : > { %3275 = vmatpush.bf16.msra.mxu3 %v6803_v31  ;;  %v8252_v31 = vld [vmem:[%s12235_s1 + $0xb54] sm:$0xf0]  ;;  %v6711_v44 = vor.u32 %v8220_v27, %v6710_v24  ;;  %v8331_v24 = vld [vmem:[%s12235_s1 + $0xdcc] sm:$0xf0]  ;;  %v8297_v27 = vld [vmem:[%s12235_s1 + $0xcc4] sm:$0xf] }
 0x16e   : > { %3237 = vmatmul.bf16.vlgmr.msra.gmra.mxu0 %v10824_v41  ;;  %v2229_v12 = vpop.f32.mrf.mxu1  ;;  %v6839_v26 = vor.u32 %v8252_v31, %v6838_v28  ;;  %v7089_v28 = vld [vmem:[%s12235_s1 + $0xcd0] sm:$0xf0]  ;;  %v7023_v8 = vld [vmem:[%s12235_s1 + $0xc40] sm:$0xf] }
 0x16f   : > { %3281 = vmatpush.bf16.msrb.mxu0 %v6791_v32  ;;  %3263 = vmatmul.bf16.vlgmr.msra.gmra.mxu2 %v10824_v41  ;;  %v2230_v18 = vadd.f32 %v2229_v12, %v2216_v6  ;;  %v8218_v32 = vld [vmem:[%s12235_s1 + $0xa4c] sm:$0xf]  ;;  %v7231_v6 = vld [vmem:[%s12235_s1 + $0xde0] sm:$0xf]  ;;  %v6683_v12 = vor.u32 %v8210_v62, %v6680_v45  ;;  %v8319_v45 = vld [vmem:[%s12235_s1 + $0xd6c] sm:$0xf0] }
 0x170   : > { %3294 = vmatpush.bf16.msrb.mxu1 %v6919_v59  ;;  %3307 = vmatpush.bf16.msrb.mxu2 %v6795_v25  ;;  %v8250_v59 = vld [vmem:[%s12235_s1 + $0xb4c] sm:$0xf]  ;;  %v6840_v25 = vld [vmem:[%s12235_s1 + $0xb58] sm:$0xf0]  ;;  %v6715_v34 = vor.u32 %v8218_v32, %v6712_v35  ;;  %v7092_v35 = vor.u32 %v8297_v27, %v7089_v28  ;;  %v7167_v62 = vld [vmem:[%s12235_s1 + $0xd60] sm:$0xf] }
 0x171   : > { %3320 = vmatpush.bf16.msrb.mxu3 %v6923_v40  ;;  %3250 = vmatmul.bf16.vlgmr.msra.gmra.mxu1 %v10832_v56 }
 0x172   : > { %3276 = vmatmul.bf16.vlgmr.msra.gmra.mxu3 %v10832_v56  ;;  %v2242_v29 = vpop.f32.mrf.mxu2 }
 0x173   : > { %3282 = vmatpush.bf16.msrb.mxu0 %v6775_v46  ;;  %v2218_v40 = vpop.f32.mrf.mxu0 }
 0x174   : > { %3295 = vmatpush.bf16.msrb.mxu1 %v6903_v58  ;;  %3308 = vmatpush.bf16.msrb.mxu2 %v6779_v33  ;;  %v6843_v33 = vor.u32 %v8250_v59, %v6840_v25  ;;  %v8295_v59 = vld [vmem:[%s12235_s1 + $0xcac] sm:$0xf0]  ;;  %v7199_v25 = vld [vmem:[%s12235_s1 + $0xda0] sm:$0xf]  ;;  %v7073_v40 = vld [vmem:[%s12235_s1 + $0xcb0] sm:$0xf0] }
 0x175   : > { %3321 = vmatpush.bf16.msrb.mxu3 %v6907_v50  ;;  %v2255_v36 = vpop.f32.mrf.mxu3  ;;  %v8246_v50 = vld [vmem:[%s12235_s1 + $0xb2c] sm:$0xf] }
 0x176   : > { %v2256_v38 = vadd.f32 %v2255_v36, %v2242_v29  ;;  %v2231_v58 = vpop.f32.mrf.mxu1  ;;  %v8329_v29 = vld [vmem:[%s12235_s1 + $0xdc4] sm:$0xf]  ;;  %v7071_v36 = vld [vmem:[%s12235_s1 + $0xca0] sm:$0xf] }
 0x177   : > { %3283 = vmatpush.bf16.msrb.mxu0 %v6759_v57  ;;  %v6823_v57 = vor.u32 %v8248_v47, %v6822_v43  ;;  %v7072_v42 = vor.u32 %v8295_v59, %v7071_v36  ;;  %v8291_v58 = vld [vmem:[%s12235_s1 + $0xc8c] sm:$0xf0] }
 0x178   : > { %3296 = vmatpush.bf16.msrb.mxu1 %v6887_v60  ;;  %3309 = vmatpush.bf16.msrb.mxu2 %v6763_v61  ;;  %v2315_v46 = vrot.slane %v2256_v38, 7  ;;  %v6699_v60 = vor.u32 %v8214_v48, %v6696_v49  ;;  %v6806_v61 = vld [vmem:[%s12235_s1 + $0xb08] sm:$0xf]  ;;  %v8323_v47 = vld [vmem:[%s12235_s1 + $0xd8c] sm:$0xf0] }
 0x179   : > { %3322 = vmatpush.bf16.msrb.mxu3 %v6891_v2  ;;  %v6827_v2 = vor.u32 %v8246_v50, %v6824_v51  ;;  %v6807_v37 = vor.u32 %v8244_v63, %v6806_v61  ;;  %v8289_v48 = vld [vmem:[%s12235_s1 + $0xc84] sm:$0xf]  ;;  %v7057_v49 = vld [vmem:[%s12235_s1 + $0xc90] sm:$0xf0]  ;;  %v7039_v61 = vld [vmem:[%s12235_s1 + $0xc60] sm:$0xf] }
 0x17a   : > { %v10959_v52 = vsel %vm783_vm0, %v2230_v18, %v2315_v46  ;;  %v2244_v0 = vpop.f32.mrf.mxu2  ;;  %v7076_v46 = vor.u32 %v8293_v39, %v7073_v40  ;;  %v8321_v50 = vld [vmem:[%s12235_s1 + $0xd84] sm:$0xf]  ;;  %v7185_v51 = vld [vmem:[%s12235_s1 + $0xd90] sm:$0xf0]  ;;  %v8287_v63 = vld [vmem:[%s12235_s1 + $0xc6c] sm:$0xf0] }
 0x17b   : > { %3284 = vmatpush.bf16.msrb.mxu0 %v6743_v9  ;;  %v8303_v9 = vld [vmem:[%s12235_s1 + $0xcec] sm:$0xf0]  ;;  %v8309_v39 = vld [vmem:[%s12235_s1 + $0xd24] sm:$0xf]  ;;  %v7137_v40 = vld [vmem:[%s12235_s1 + $0xd30] sm:$0xf0] }
 0x17c   : > { %3297 = vmatpush.bf16.msrb.mxu1 %v6871_v16  ;;  %3310 = vmatpush.bf16.msrb.mxu2 %v6747_v10  ;;  %v6679_v16 = vor.u32 %v8212_v55, %v6678_v54  ;;  %v8335_v10 = vld [vmem:[%s12235_s1 + $0xdec] sm:$0xf0]  ;;  %v7104_v17 = vor.u32 %v8303_v9, %v7103_v5  ;;  %v8317_v5 = vld [vmem:[%s12235_s1 + $0xd64] sm:$0xf]  ;;  %v7169_v9 = vld [vmem:[%s12235_s1 + $0xd70] sm:$0xf0] }
 0x17d   : > { %3323 = vmatpush.bf16.msrb.mxu3 %v6875_v13  ;;  %v2257_v4 = vpop.f32.mrf.mxu3  ;;  %v8333_v13 = vld [vmem:[%s12235_s1 + $0xde4] sm:$0xf]  ;;  %v7232_v18 = vor.u32 %v8335_v10, %v7231_v6  ;;  %v7040_v6 = vor.u32 %v8287_v63, %v7039_v61  ;;  %v7044_v10 = vor.u32 %v8285_v1, %v7041_v3  ;;  %v8311_v59 = vld [vmem:[%s12235_s1 + $0xd2c] sm:$0xf0]  ;;  %v8302_v61 = vld [vmem:[%s12235_s1 + $0xcec] sm:$0xf] }
 0x17e   : > { %v7113_v63 = vld [vmem:[%s12235_s1 + $0xcf8] sm:$0xf0] }
 0x17f   : > { %3285 = vmatpush.bf16.msrb.mxu0 %v6727_v21  ;;  %v8299_v21 = vld [vmem:[%s12235_s1 + $0xccc] sm:$0xf0] }
 0x180   : > { %3298 = vmatpush.bf16.msrb.mxu1 %v6855_v22  ;;  %3311 = vmatpush.bf16.msrb.mxu2 %v6731_v23  ;;  %v7215_v22 = vld [vmem:[%s12235_s1 + $0xdc0] sm:$0xf]  ;;  %v7236_v23 = vor.u32 %v8333_v13, %v7233_v14  ;;  %v7088_v31 = vor.u32 %v8299_v21, %v7087_v20  ;;  %v7172_v13 = vor.u32 %v8317_v5, %v7169_v9  ;;  %v8313_v21 = vld [vmem:[%s12235_s1 + $0xd44] sm:$0xf]  ;;  %v7095_v9 = vld [vmem:[%s12235_s1 + $0xcc8] sm:$0xf] }
 0x181   : > { %3324 = vmatpush.bf16.msrb.mxu3 %v6859_v30  ;;  %v7217_v30 = vld [vmem:[%s12235_s1 + $0xdd0] sm:$0xf0]  ;;  %v7216_v32 = vor.u32 %v8331_v24, %v7215_v22  ;;  %v7007_v24 = vld [vmem:[%s12235_s1 + $0xc20] sm:$0xf]  ;;  %v7116_v5 = vor.u32 %v8302_v61, %v7113_v63  ;;  %v7031_v61 = vld [vmem:[%s12235_s1 + $0xc48] sm:$0xf] }
 0x182   : > { %v7220_v38 = vor.u32 %v8329_v29, %v7217_v30  ;;  %v7153_v22 = vld [vmem:[%s12235_s1 + $0xd50] sm:$0xf0]  ;;  %v8284_v63 = vld [vmem:[%s12235_s1 + $0xc54] sm:$0xf0] }
 0x183   : > { %3286 = vmatpush.bf16.msrb.mxu0 %v6711_v44  ;;  %v8327_v44 = vld [vmem:[%s12235_s1 + $0xdac] sm:$0xf0]  ;;  %v7156_v36 = vor.u32 %v8313_v21, %v7153_v22  ;;  %v8296_v21 = vld [vmem:[%s12235_s1 + $0xcb4] sm:$0xf0]  ;;  %v7207_v22 = vld [vmem:[%s12235_s1 + $0xda8] sm:$0xf] }
 0x184   : > { %3299 = vmatpush.bf16.msrb.mxu1 %v6839_v26  ;;  %3312 = vmatpush.bf16.msrb.mxu2 %v6715_v34  ;;  %v8325_v26 = vld [vmem:[%s12235_s1 + $0xda4] sm:$0xf]  ;;  %v7201_v34 = vld [vmem:[%s12235_s1 + $0xdb0] sm:$0xf0]  ;;  %v7200_v43 = vor.u32 %v8327_v44, %v7199_v25 }
 0x185   : > { %3325 = vmatpush.bf16.msrb.mxu3 %v6843_v33  ;;  %v7183_v33 = vld [vmem:[%s12235_s1 + $0xd80] sm:$0xf]  ;;  %v8277_v25 = vld [vmem:[%s12235_s1 + $0xc24] sm:$0xf] }
 0x187   : > { %3287 = vmatpush.bf16.msrb.mxu0 %v6695_v53  ;;  %v6924_v53 = vld [vmem:[%s8843_s10 + $0x2] sm:$0x3] }
 0x188   : > { %3300 = vmatpush.bf16.msrb.mxu1 %v6823_v57  ;;  %3313 = vmatpush.bf16.msrb.mxu2 %v6699_v60  ;;  %3415 = vst [vmem:[#allocation1] ss:$9 sm:$0xff] %v6924_v53  ;;  %v7184_v57 = vor.u32 %v8323_v47, %v7183_v33  ;;  %v7060_v60 = vor.u32 %v8289_v48, %v7057_v49  ;;  %v8307_v33 = vld [vmem:[%s12235_s1 + $0xd0c] sm:$0xf0]  ;;  %v6993_v48 = vld [vmem:[%s12235_s1 + $0xc10] sm:$0xf0] }
 0x189   : > { %3326 = vmatpush.bf16.msrb.mxu3 %v6827_v2  ;;  %v7188_v2 = vor.u32 %v8321_v50, %v7185_v51  ;;  %v8305_v49 = vld [vmem:[%s12235_s1 + $0xd04] sm:$0xf]  ;;  %v7121_v50 = vld [vmem:[%s12235_s1 + $0xd10] sm:$0xf0]  ;;  %v7111_v53 = vld [vmem:[%s12235_s1 + $0xce8] sm:$0xf] }
 0x18a   : > { %v7124_v1 = vor.u32 %v8305_v49, %v7121_v50  ;;  %v8286_v49 = vld [vmem:[%s12235_s1 + $0xc6c] sm:$0xf]  ;;  %v7049_v50 = vld [vmem:[%s12235_s1 + $0xc78] sm:$0xf0] }
 0x18b   : > { %3288 = vmatpush.bf16.msrb.mxu0 %v6679_v16  ;;  %v2268_v55 = vpop.f32.mrf.mxu0  ;;  %v7168_v16 = vor.u32 %v8319_v45, %v7167_v62  ;;  %v7241_v45 = vld [vmem:[%s12235_s1 + $0xdf8] sm:$0xf0] }
 0x18c   : > { %3301 = vmatpush.bf16.msrb.mxu1 %v6807_v37  ;;  %3314 = vmatpush.bf16.msrb.mxu2 %v6683_v12  ;;  %v8283_v37 = vld [vmem:[%s12235_s1 + $0xc4c] sm:$0xf0]  ;;  %v7151_v12 = vld [vmem:[%s12235_s1 + $0xd40] sm:$0xf] }
 0x18d   : > { %3327 = vmatpush.bf16.msrb.mxu3 %v6811_v15  ;;  %v8315_v15 = vld [vmem:[%s12235_s1 + $0xd4c] sm:$0xf0] }
 0x18e   : > { %3289 = vmatmul.bf16.vlgmr.msrb.gmra.mxu0 %v10824_v41  ;;  %v2281_v0 = vpop.f32.mrf.mxu1  ;;  %v7152_v29 = vor.u32 %v8315_v15, %v7151_v12  ;;  %v8330_v12 = vld [vmem:[%s12235_s1 + $0xdcc] sm:$0xf] }
 0x18f   : > { %3740 = vmatpush.bf16.msra.mxu0 %v7104_v17  ;;  %3315 = vmatmul.bf16.vlgmr.msrb.gmra.mxu2 %v10824_v41  ;;  %v7055_v41 = vld [vmem:[%s12235_s1 + $0xc80] sm:$0xf]  ;;  %v2282_v4 = vadd.f32 %v2281_v0, %v2268_v55  ;;  %v8281_v17 = vld [vmem:[%s12235_s1 + $0xc44] sm:$0xf]  ;;  %v7239_v55 = vld [vmem:[%s12235_s1 + $0xde8] sm:$0xf] }
 0x190   : > { %3753 = vmatpush.bf16.msra.mxu1 %v7232_v18  ;;  %3766 = vmatpush.bf16.msra.mxu2 %v7108_v19  ;;  %v7056_v54 = vor.u32 %v8291_v58, %v7055_v41  ;;  %v7025_v18 = vld [vmem:[%s12235_s1 + $0xc50] sm:$0xf0] }
 0x191   : > { %3779 = vmatpush.bf16.msra.mxu3 %v7236_v23  ;;  %3302 = vmatmul.bf16.vlgmr.msrb.gmra.mxu1 %v10832_v56  ;;  %v2316_v19 = vrot.slane %v2282_v4, 6  ;;  %v7024_v23 = vor.u32 %v8283_v37, %v7023_v8  ;;  %v7028_v30 = vor.u32 %v8281_v17, %v7025_v18  ;;  %v8298_v8 = vld [vmem:[%s12235_s1 + $0xccc] sm:$0xf]  ;;  %v7097_v37 = vld [vmem:[%s12235_s1 + $0xcd8] sm:$0xf0] }
 0x192   : > { %3328 = vmatmul.bf16.vlgmr.msrb.gmra.mxu3 %v10832_v56  ;;  %v7204_v56 = vor.u32 %v8325_v26, %v7201_v34  ;;  %v2294_v11 = vpop.f32.mrf.mxu2  ;;  %v11238_v17 = vld [vmem:[#allocation1 + $0x9] sm:$0xff] }
 0x193   : > { %3741 = vmatpush.bf16.msra.mxu0 %v7088_v31  ;;  %v2270_v27 = vpop.f32.mrf.mxu0  ;;  %v8279_v31 = vld [vmem:[%s12235_s1 + $0xc2c] sm:$0xf0] }
 0x194   : > { %3754 = vmatpush.bf16.msra.mxu1 %v7216_v32  ;;  %3767 = vmatpush.bf16.msra.mxu2 %v7092_v35  ;;  %v7135_v32 = vld [vmem:[%s12235_s1 + $0xd20] sm:$0xf]  ;;  %v7008_v34 = vor.u32 %v8279_v31, %v7007_v24  ;;  %v8328_v24 = vld [vmem:[%s12235_s1 + $0xdb4] sm:$0xf0]  ;;  %v8294_v27 = vld [vmem:[%s12235_s1 + $0xcac] sm:$0xf] }
 0x195   : > { %3780 = vmatpush.bf16.msra.mxu3 %v7220_v38  ;;  %v2307_v14 = vpop.f32.mrf.mxu3  ;;  %v7009_v38 = vld [vmem:[%s12235_s1 + $0xc30] sm:$0xf0]  ;;  %v7136_v41 = vor.u32 %v8311_v59, %v7135_v32  ;;  %v7208_v32 = vor.u32 %v8328_v24, %v7207_v22  ;;  %v8292_v59 = vld [vmem:[%s12235_s1 + $0xc94] sm:$0xf0]  ;;  %v7017_v22 = vld [vmem:[%s12235_s1 + $0xc38] sm:$0xf0] }
 0x196   : > { %v2308_v20 = vadd.f32 %v2307_v14, %v2294_v11  ;;  %v2283_v35 = vpop.f32.mrf.mxu1  ;;  %v7012_v58 = vor.u32 %v8277_v25, %v7009_v38  ;;  %v8332_v11 = vld [vmem:[%s12235_s1 + $0xdd4] sm:$0xf0]  ;;  %v11236_v14 = vld [vmem:[#allocation1] sm:$0xff]  ;;  %v7191_v25 = vld [vmem:[%s12235_s1 + $0xd88] sm:$0xf] }
 0x197   : > { %3742 = vmatpush.bf16.msra.mxu0 %v7072_v42  ;;  %v6991_v42 = vld [vmem:[%s12235_s1 + $0xc00] sm:$0xf]  ;;  %v7145_v24 = vld [vmem:[%s12235_s1 + $0xd38] sm:$0xf0] }
 0x198   : > { %3755 = vmatpush.bf16.msra.mxu1 %v7200_v43  ;;  %3768 = vmatpush.bf16.msra.mxu2 %v7076_v46  ;;  %v2317_v28 = vrot.slane %v2308_v20, 5  ;;  %v8275_v43 = vld [vmem:[%s12235_s1 + $0xc0c] sm:$0xf0]  ;;  %v7079_v20 = vld [vmem:[%s12235_s1 + $0xca8] sm:$0xf] }
 0x199   : > { %3781 = vmatpush.bf16.msra.mxu3 %v7204_v56  ;;  %v8273_v56 = vld [vmem:[%s12235_s1 + $0xc04] sm:$0xf]  ;;  %v7080_v31 = vor.u32 %v8296_v21, %v7079_v20  ;;  %v8312_v20 = vld [vmem:[%s12235_s1 + $0xd34] sm:$0xf0]  ;;  %v8278_v21 = vld [vmem:[%s12235_s1 + $0xc2c] sm:$0xf] }
 0x19a   : > { %v2319_v44 = vsel %vm785_vm1, %v2316_v19, %v2317_v28  ;;  %v2296_v47 = vpop.f32.mrf.mxu2  ;;  %v6996_v0 = vor.u32 %v8273_v56, %v6993_v48  ;;  %v7100_v19 = vor.u32 %v8298_v8, %v7097_v37  ;;  %v7081_v28 = vld [vmem:[%s12235_s1 + $0xcb8] sm:$0xf0]  ;;  %v7175_v56 = vld [vmem:[%s12235_s1 + $0xd68] sm:$0xf]  ;;  %v8320_v48 = vld [vmem:[%s12235_s1 + $0xd74] sm:$0xf0] }
 0x19b   : > { %3743 = vmatpush.bf16.msra.mxu0 %v7056_v54  ;;  %v2320_v26 = vsel %vm787_vm2, %v10959_v52, %v2319_v44  ;;  %v7119_v52 = vld [vmem:[%s12235_s1 + $0xd00] sm:$0xf]  ;;  %v8304_v54 = vld [vmem:[%s12235_s1 + $0xcf4] sm:$0xf0]  ;;  %v7084_v35 = vor.u32 %v8294_v27, %v7081_v28 }
 0x19c   : > { %3756 = vmatpush.bf16.msra.mxu1 %v7184_v57  ;;  %3769 = vmatpush.bf16.msra.mxu2 %v7060_v60  ;;  %v11168_v46 = vadd.f32 %v2320_v26, %v10762_v7  ;;  %v7140_v7 = vor.u32 %v8309_v39, %v7137_v40  ;;  %v6992_v57 = vor.u32 %v8275_v43, %v6991_v42  ;;  %v8336_v60 = vld [vmem:[%s12235_s1 + $0xdf4] sm:$0xf0]  ;;  %v8290_v39 = vld [vmem:[%s12235_s1 + $0xc8c] sm:$0xf]  ;;  %v7065_v40 = vld [vmem:[%s12235_s1 + $0xc98] sm:$0xf0] }
 0x19d   : > { %3782 = vmatpush.bf16.msra.mxu3 %v7188_v2  ;;  %v2309_v51 = vpop.f32.mrf.mxu3  ;;  %v7120_v62 = vor.u32 %v8307_v33, %v7119_v52  ;;  %v8334_v2 = vld [vmem:[%s12235_s1 + $0xdec] sm:$0xf]  ;;  %v7112_v3 = vor.u32 %v8304_v54, %v7111_v53  ;;  %v7240_v4 = vor.u32 %v8336_v60, %v7239_v55  ;;  %v8324_v44 = vld [vmem:[%s12235_s1 + $0xd94] sm:$0xf0]  ;;  %v7047_v52 = vld [vmem:[%s12235_s1 + $0xc68] sm:$0xf]  ;;  %v7052_v60 = vor.u32 %v8286_v49, %v7049_v50 }
 0x19e   : > { %v8322_v26 = vld [vmem:[%s12235_s1 + $0xd8c] sm:$0xf]  ;;  %v8288_v33 = vld [vmem:[%s12235_s1 + $0xc74] sm:$0xf0]  ;;  %v7177_v54 = vld [vmem:[%s12235_s1 + $0xd78] sm:$0xf0] }
 0x19f   : > { %3744 = vmatpush.bf16.msra.mxu0 %v7040_v6  ;;  %v8300_v6 = vld [vmem:[%s12235_s1 + $0xcd4] sm:$0xf0]  ;;  %v8318_v53 = vld [vmem:[%s12235_s1 + $0xd6c] sm:$0xf]  ;;  %v7048_v55 = vor.u32 %v8288_v33, %v7047_v52  ;;  %v8365_v52 = vld [vmem:[%s12235_s1 + $0xee4] sm:$0xf] }
 0x1a0   : > { %3757 = vmatpush.bf16.msra.mxu1 %v7168_v16  ;;  %3770 = vmatpush.bf16.msra.mxu2 %v7044_v10  ;;  %v7223_v16 = vld [vmem:[%s12235_s1 + $0xdc8] sm:$0xf]  ;;  %v7244_v10 = vor.u32 %v8334_v2, %v7241_v45  ;;  %v7096_v15 = vor.u32 %v8300_v6, %v7095_v9  ;;  %v7180_v2 = vor.u32 %v8318_v53, %v7177_v54  ;;  %v8316_v45 = vld [vmem:[%s12235_s1 + $0xd54] sm:$0xf0]  ;;  %v7161_v9 = vld [vmem:[%s12235_s1 + $0xd58] sm:$0xf0] }
 0x1a1   : > { %3783 = vmatpush.bf16.msra.mxu3 %v7172_v13  ;;  %v7225_v13 = vld [vmem:[%s12235_s1 + $0xdd8] sm:$0xf0]  ;;  %v7224_v18 = vor.u32 %v8332_v11, %v7223_v16  ;;  %v7032_v16 = vor.u32 %v8284_v63, %v7031_v61  ;;  %v7426_v33 = vld [vmem:[%s12235_s1 + $0xef0] sm:$0xf0]  ;;  %v7408_v54 = vld [vmem:[%s12235_s1 + $0xec0] sm:$0xf] }
 0x1a2   : > { %v7429_v53 = vor.u32 %v8365_v52, %v7426_v33  ;;  %v8395_v61 = vld [vmem:[%s12235_s1 + $0xfcc] sm:$0xf0]  ;;  %v8361_v63 = vld [vmem:[%s12235_s1 + $0xec4] sm:$0xf] }
 0x1a3   : > { %3745 = vmatpush.bf16.msra.mxu0 %v7024_v23  ;;  %v7228_v23 = vor.u32 %v8330_v12, %v7225_v13  ;;  %v8280_v12 = vld [vmem:[%s12235_s1 + $0xc34] sm:$0xf0]  ;;  %v7143_v13 = vld [vmem:[%s12235_s1 + $0xd28] sm:$0xf] }
 0x1a4   : > { %3758 = vmatpush.bf16.msra.mxu1 %v7152_v29  ;;  %3771 = vmatpush.bf16.msra.mxu2 %v7028_v30  ;;  %v8326_v29 = vld [vmem:[%s12235_s1 + $0xdac] sm:$0xf]  ;;  %v7209_v30 = vld [vmem:[%s12235_s1 + $0xdb8] sm:$0xf0] }
 0x1a5   : > { %3784 = vmatpush.bf16.msra.mxu3 %v7156_v36  ;;  %v7063_v36 = vld [vmem:[%s12235_s1 + $0xc88] sm:$0xf]  ;;  %v7212_v38 = vor.u32 %v8326_v29, %v7209_v30  ;;  %v8276_v30 = vld [vmem:[%s12235_s1 + $0xc14] sm:$0xf0] }
 0x1a6   : > { %v7064_v42 = vor.u32 %v8292_v59, %v7063_v36  ;;  %v6999_v29 = vld [vmem:[%s12235_s1 + $0xc08] sm:$0xf]  ;;  %v8308_v36 = vld [vmem:[%s12235_s1 + $0xd14] sm:$0xf0]  ;;  %v8274_v59 = vld [vmem:[%s12235_s1 + $0xc0c] sm:$0xf] }
 0x1a7   : > { %3746 = vmatpush.bf16.msra.mxu0 %v7008_v34  ;;  %v7193_v34 = vld [vmem:[%s12235_s1 + $0xd98] sm:$0xf0] }
 0x1a8   : > { %3759 = vmatpush.bf16.msra.mxu1 %v7136_v41  ;;  %3772 = vmatpush.bf16.msra.mxu2 %v7012_v58  ;;  %v7192_v41 = vor.u32 %v8324_v44, %v7191_v25  ;;  %v7068_v58 = vor.u32 %v8290_v39, %v7065_v40  ;;  %v7001_v44 = vld [vmem:[%s12235_s1 + $0xc18] sm:$0xf0]  ;;  %v8306_v39 = vld [vmem:[%s12235_s1 + $0xd0c] sm:$0xf] }
 0x1a9   : > { %3785 = vmatpush.bf16.msra.mxu3 %v7140_v7  ;;  %v7196_v7 = vor.u32 %v8322_v26, %v7193_v34  ;;  %v7129_v40 = vld [vmem:[%s12235_s1 + $0xd18] sm:$0xf0]  ;;  %v7424_v34 = vld [vmem:[%s12235_s1 + $0xee0] sm:$0xf] }
 0x1aa   : > { %v7132_v49 = vor.u32 %v8306_v39, %v7129_v40  ;;  %v8349_v39 = vld [vmem:[%s12235_s1 + $0xe64] sm:$0xf]  ;;  %v7362_v40 = vld [vmem:[%s12235_s1 + $0xe70] sm:$0xf0] }
 0x1ab   : > { %3747 = vmatpush.bf16.msra.mxu0 %v6992_v57  ;;  %v2726_v43 = vpop.f32.mrf.mxu0  ;;  %v7176_v57 = vor.u32 %v8320_v48, %v7175_v56  ;;  %v7554_v48 = vld [vmem:[%s12235_s1 + $0xff0] sm:$0xf0]  ;;  %v7365_v33 = vor.u32 %v8349_v39, %v7362_v40  ;;  %v8398_v40 = vld [vmem:[%s12235_s1 + $0xfec] sm:$0xf] }
 0x1ac   : > { %3760 = vmatpush.bf16.msra.mxu1 %v7120_v62  ;;  %3773 = vmatpush.bf16.msra.mxu2 %v6996_v0  ;;  %v7159_v62 = vld [vmem:[%s12235_s1 + $0xd48] sm:$0xf] }
 0x1ad   : > { %3786 = vmatpush.bf16.msra.mxu3 %v7124_v1  ;;  %v8282_v1 = vld [vmem:[%s12235_s1 + $0xc4c] sm:$0xf]  ;;  %v7160_v8 = vor.u32 %v8316_v45, %v7159_v62  ;;  %v7410_v62 = vld [vmem:[%s12235_s1 + $0xed0] sm:$0xf0] }
 0x1ae   : > { %3748 = vmatmul.bf16.vlgmr.msra.gmra.mxu0 %v11236_v14  ;;  %v2739_v47 = vpop.f32.mrf.mxu1 }
 0x1af   : > { %3792 = vmatpush.bf16.msrb.mxu0 %v7112_v3  ;;  %3774 = vmatmul.bf16.vlgmr.msra.gmra.mxu2 %v11236_v14  ;;  %v2740_v51 = vadd.f32 %v2739_v47, %v2726_v43  ;;  %v7033_v3 = vld [vmem:[%s12235_s1 + $0xc58] sm:$0xf0]  ;;  %v7552_v43 = vld [vmem:[%s12235_s1 + $0xfe0] sm:$0xf]  ;;  %v7004_v47 = vor.u32 %v8274_v59, %v7001_v44  ;;  %v8383_v44 = vld [vmem:[%s12235_s1 + $0xf6c] sm:$0xf0] }
 0x1b0   : > { %3805 = vmatpush.bf16.msrb.mxu1 %v7240_v4  ;;  %3818 = vmatpush.bf16.msrb.mxu2 %v7116_v5  ;;  %v8314_v5 = vld [vmem:[%s12235_s1 + $0xd4c] sm:$0xf]  ;;  %v7036_v37 = vor.u32 %v8282_v1, %v7033_v3  ;;  %v7413_v3 = vor.u32 %v8361_v63, %v7410_v62  ;;  %v7488_v59 = vld [vmem:[%s12235_s1 + $0xf60] sm:$0xf] }
 0x1b1   : > { %3831 = vmatpush.bf16.msrb.mxu3 %v7244_v10  ;;  %3761 = vmatmul.bf16.vlgmr.msra.gmra.mxu1 %v11238_v17  ;;  %v7015_v10 = vld [vmem:[%s12235_s1 + $0xc28] sm:$0xf]  ;;  %v7489_v52 = vor.u32 %v8383_v44, %v7488_v59  ;;  %v8400_v59 = vld [vmem:[%s12235_s1 + $0xff4] sm:$0xf0] }
 0x1b2   : > { %3787 = vmatmul.bf16.vlgmr.msra.gmra.mxu3 %v11238_v17  ;;  %v2752_v0 = vpop.f32.mrf.mxu2  ;;  %v7016_v28 = vor.u32 %v8280_v12, %v7015_v10  ;;  %v8357_v10 = vld [vmem:[%s12235_s1 + $0xea4] sm:$0xf] }
 0x1b3   : > { %3793 = vmatpush.bf16.msrb.mxu0 %v7096_v15  ;;  %v2728_v11 = vpop.f32.mrf.mxu0 }
 0x1b4   : > { %3806 = vmatpush.bf16.msrb.mxu1 %v7224_v18  ;;  %3819 = vmatpush.bf16.msrb.mxu2 %v7100_v19  ;;  %v7164_v19 = vor.u32 %v8314_v5, %v7161_v9  ;;  %v8359_v5 = vld [vmem:[%s12235_s1 + $0xeac] sm:$0xf0]  ;;  %v7520_v9 = vld [vmem:[%s12235_s1 + $0xfa0] sm:$0xf]  ;;  %v7394_v11 = vld [vmem:[%s12235_s1 + $0xeb0] sm:$0xf0] }
 0x1b5   : > { %3832 = vmatpush.bf16.msrb.mxu3 %v7228_v23  ;;  %v2765_v4 = vpop.f32.mrf.mxu3  ;;  %v8310_v23 = vld [vmem:[%s12235_s1 + $0xd2c] sm:$0xf] }
 0x1b6   : > { %v2766_v6 = vadd.f32 %v2765_v4, %v2752_v0  ;;  %v2741_v18 = vpop.f32.mrf.mxu1  ;;  %v8393_v0 = vld [vmem:[%s12235_s1 + $0xfc4] sm:$0xf]  ;;  %v7392_v4 = vld [vmem:[%s12235_s1 + $0xea0] sm:$0xf] }
 0x1b7   : > { %3794 = vmatpush.bf16.msrb.mxu0 %v7080_v31  ;;  %v7144_v31 = vor.u32 %v8312_v20, %v7143_v13  ;;  %v7393_v12 = vor.u32 %v8359_v5, %v7392_v4  ;;  %v8355_v18 = vld [vmem:[%s12235_s1 + $0xe8c] sm:$0xf0]  ;;  %v7456_v5 = vld [vmem:[%s12235_s1 + $0xf20] sm:$0xf] }
 0x1b8   : > { %3807 = vmatpush.bf16.msrb.mxu1 %v7208_v32  ;;  %3820 = vmatpush.bf16.msrb.mxu2 %v7084_v35  ;;  %v2825_v15 = vrot.slane %v2766_v6, 7  ;;  %v7020_v32 = vor.u32 %v8278_v21, %v7017_v22  ;;  %v7127_v35 = vld [vmem:[%s12235_s1 + $0xd08] sm:$0xf]  ;;  %v8387_v20 = vld [vmem:[%s12235_s1 + $0xf8c] sm:$0xf0] }
 0x1b9   : > { %3833 = vmatpush.bf16.msrb.mxu3 %v7212_v38  ;;  %v7148_v38 = vor.u32 %v8310_v23, %v7145_v24  ;;  %v7128_v56 = vor.u32 %v8308_v36, %v7127_v35  ;;  %v8353_v21 = vld [vmem:[%s12235_s1 + $0xe84] sm:$0xf]  ;;  %v7378_v22 = vld [vmem:[%s12235_s1 + $0xe90] sm:$0xf0]  ;;  %v7360_v35 = vld [vmem:[%s12235_s1 + $0xe60] sm:$0xf] }
 0x1ba   : > { %v11365_v27 = vsel %vm783_vm0, %v2740_v51, %v2825_v15  ;;  %v2754_v25 = vpop.f32.mrf.mxu2  ;;  %v7397_v15 = vor.u32 %v8357_v10, %v7394_v11  ;;  %v8385_v23 = vld [vmem:[%s12235_s1 + $0xf84] sm:$0xf]  ;;  %v7506_v24 = vld [vmem:[%s12235_s1 + $0xf90] sm:$0xf0]  ;;  %v8351_v36 = vld [vmem:[%s12235_s1 + $0xe6c] sm:$0xf0] }
 0x1bb   : > { %3795 = vmatpush.bf16.msrb.mxu0 %v7064_v42  ;;  %v8367_v42 = vld [vmem:[%s12235_s1 + $0xeec] sm:$0xf0]  ;;  %v8341_v10 = vld [vmem:[%s12235_s1 + $0xe24] sm:$0xf]  ;;  %v7330_v11 = vld [vmem:[%s12235_s1 + $0xe30] sm:$0xf0] }
 0x1bc   : > { %3808 = vmatpush.bf16.msrb.mxu1 %v7192_v41  ;;  %3821 = vmatpush.bf16.msrb.mxu2 %v7068_v58  ;;  %v7000_v41 = vor.u32 %v8276_v30, %v6999_v29  ;;  %v8399_v58 = vld [vmem:[%s12235_s1 + $0xfec] sm:$0xf0]  ;;  %v7425_v50 = vor.u32 %v8367_v42, %v7424_v34  ;;  %v8381_v34 = vld [vmem:[%s12235_s1 + $0xf64] sm:$0xf]  ;;  %v7490_v42 = vld [vmem:[%s12235_s1 + $0xf70] sm:$0xf0] }
 0x1bd   : > { %3834 = vmatpush.bf16.msrb.mxu3 %v7196_v7  ;;  %v2767_v26 = vpop.f32.mrf.mxu3  ;;  %v8397_v7 = vld [vmem:[%s12235_s1 + $0xfe4] sm:$0xf]  ;;  %v7553_v51 = vor.u32 %v8399_v58, %v7552_v43  ;;  %v7566_v43 = vld [vmem:[%s8843_s10 + $0x2] sm:$0x3]  ;;  %v8343_v4 = vld [vmem:[%s12235_s1 + $0xe2c] sm:$0xf0] }
 0x1be   : > { %v7344_v58 = vld [vmem:[%s12235_s1 + $0xe40] sm:$0xf] }
 0x1bf   : > { %3796 = vmatpush.bf16.msrb.mxu0 %v7048_v55  ;;  %v8363_v55 = vld [vmem:[%s12235_s1 + $0xecc] sm:$0xf0] }
 0x1c0   : > { %3809 = vmatpush.bf16.msrb.mxu1 %v7176_v57  ;;  %3822 = vmatpush.bf16.msrb.mxu2 %v7052_v60  ;;  %v7536_v57 = vld [vmem:[%s12235_s1 + $0xfc0] sm:$0xf]  ;;  %v7557_v60 = vor.u32 %v8397_v7, %v7554_v48  ;;  %v7409_v45 = vor.u32 %v8363_v55, %v7408_v54  ;;  %v8379_v48 = vld [vmem:[%s12235_s1 + $0xf4c] sm:$0xf0]  ;;  %v8377_v54 = vld [vmem:[%s12235_s1 + $0xf44] sm:$0xf] }
 0x1c1   : > { %3835 = vmatpush.bf16.msrb.mxu3 %v7180_v2  ;;  %v7538_v2 = vld [vmem:[%s12235_s1 + $0xfd0] sm:$0xf0]  ;;  %v7537_v1 = vor.u32 %v8395_v61, %v7536_v57  ;;  %v7472_v7 = vld [vmem:[%s12235_s1 + $0xf40] sm:$0xf] }
 0x1c2   : > { %v7541_v6 = vor.u32 %v8393_v0, %v7538_v2  ;;  %v7328_v0 = vld [vmem:[%s12235_s1 + $0xe20] sm:$0xf] }
 0x1c3   : > { %3797 = vmatpush.bf16.msrb.mxu0 %v7032_v16  ;;  %v8391_v16 = vld [vmem:[%s12235_s1 + $0xfac] sm:$0xf0] }
 0x1c4   : > { %3810 = vmatpush.bf16.msrb.mxu1 %v7160_v8  ;;  %3823 = vmatpush.bf16.msrb.mxu2 %v7036_v37  ;;  %v8389_v8 = vld [vmem:[%s12235_s1 + $0xfa4] sm:$0xf]  ;;  %v7522_v37 = vld [vmem:[%s12235_s1 + $0xfb0] sm:$0xf0]  ;;  %v7521_v13 = vor.u32 %v8391_v16, %v7520_v9  ;;  %v8375_v16 = vld [vmem:[%s12235_s1 + $0xf2c] sm:$0xf0] }
 0x1c5   : > { %3836 = vmatpush.bf16.msrb.mxu3 %v7164_v19  ;;  %v7504_v19 = vld [vmem:[%s12235_s1 + $0xf80] sm:$0xf] }
 0x1c7   : > { %3798 = vmatpush.bf16.msrb.mxu0 %v7016_v28  ;;  %v7245_v28 = vld [vmem:[%s8843_s10 + $0x6] sm:$0x3] }
 0x1c8   : > { %3811 = vmatpush.bf16.msrb.mxu1 %v7144_v31  ;;  %3824 = vmatpush.bf16.msrb.mxu2 %v7020_v32  ;;  %3925 = vst [vmem:[#allocation1] ss:$9 sm:$0xff] %v7245_v28  ;;  %v7505_v31 = vor.u32 %v8387_v20, %v7504_v19  ;;  %v7381_v32 = vor.u32 %v8353_v21, %v7378_v22  ;;  %v8371_v21 = vld [vmem:[%s12235_s1 + $0xf0c] sm:$0xf0]  ;;  %v8337_v22 = vld [vmem:[%s12235_s1 + $0xe04] sm:$0xf] }
 0x1c9   : > { %3837 = vmatpush.bf16.msrb.mxu3 %v7148_v38  ;;  %v7509_v38 = vor.u32 %v8385_v23, %v7506_v24  ;;  %v7333_v20 = vor.u32 %v8341_v10, %v7330_v11  ;;  %v7314_v24 = vld [vmem:[%s12235_s1 + $0xe10] sm:$0xf0]  ;;  %v8369_v28 = vld [vmem:[%s12235_s1 + $0xf04] sm:$0xf]  ;;  %v7512_v10 = vld [vmem:[%s12235_s1 + $0xf88] sm:$0xf] }
 0x1ca   : > { %v7317_v39 = vor.u32 %v8337_v22, %v7314_v24  ;;  %v7496_v22 = vld [vmem:[%s12235_s1 + $0xf68] sm:$0xf]  ;;  %v8384_v24 = vld [vmem:[%s12235_s1 + $0xf74] sm:$0xf0] }
 0x1cb   : > { %3799 = vmatpush.bf16.msrb.mxu0 %v7000_v41  ;;  %v2778_v30 = vpop.f32.mrf.mxu0  ;;  %v7361_v41 = vor.u32 %v8351_v36, %v7360_v35  ;;  %v7560_v35 = vld [vmem:[%s12235_s1 + $0xfe8] sm:$0xf] }
 0x1cc   : > { %3812 = vmatpush.bf16.msrb.mxu1 %v7128_v56  ;;  %3825 = vmatpush.bf16.msrb.mxu2 %v7004_v47  ;;  %v8347_v47 = vld [vmem:[%s12235_s1 + $0xe4c] sm:$0xf0] }
 0x1cd   : > { %3838 = vmatpush.bf16.msrb.mxu3 %v7132_v49  ;;  %v7493_v49 = vor.u32 %v8381_v34, %v7490_v42  ;;  %v7345_v62 = vor.u32 %v8347_v47, %v7344_v58  ;;  %v7416_v58 = vld [vmem:[%s12235_s1 + $0xec8] sm:$0xf]  ;;  %v8396_v47 = vld [vmem:[%s12235_s1 + $0xfd4] sm:$0xf0] }
 0x1ce   : > { %3800 = vmatmul.bf16.vlgmr.msrb.gmra.mxu0 %v11236_v14  ;;  %v2791_v25 = vpop.f32.mrf.mxu1 }
 0x1cf   : > { %4250 = vmatpush.bf16.msra.mxu0 %v7425_v50  ;;  %3826 = vmatmul.bf16.vlgmr.msrb.gmra.mxu2 %v11236_v14  ;;  %v7376_v14 = vld [vmem:[%s12235_s1 + $0xe80] sm:$0xf]  ;;  %v2792_v26 = vadd.f32 %v2791_v25, %v2778_v30  ;;  %v11543_v63 = vld [vmem:[#allocation1 + $0x9] sm:$0xff] }
 0x1d0   : > { %4263 = vmatpush.bf16.msra.mxu1 %v7553_v51  ;;  %4276 = vmatpush.bf16.msra.mxu2 %v7429_v53  ;;  %v7377_v29 = vor.u32 %v8355_v18, %v7376_v14  ;;  %v8345_v51 = vld [vmem:[%s12235_s1 + $0xe44] sm:$0xf]  ;;  %v7346_v53 = vld [vmem:[%s12235_s1 + $0xe50] sm:$0xf0]  ;;  %v7312_v14 = vld [vmem:[%s12235_s1 + $0xe00] sm:$0xf] }
 0x1d1   : > { %4289 = vmatpush.bf16.msra.mxu3 %v7557_v60  ;;  %3813 = vmatmul.bf16.vlgmr.msrb.gmra.mxu1 %v11238_v17  ;;  %v2826_v55 = vrot.slane %v2792_v26, 6  ;;  %v7474_v60 = vld [vmem:[%s12235_s1 + $0xf50] sm:$0xf0]  ;;  %v11541_v61 = vld [vmem:[#allocation1] sm:$0xff]  ;;  %v8339_v18 = vld [vmem:[%s12235_s1 + $0xe0c] sm:$0xf0] }
 0x1d2   : > { %3839 = vmatmul.bf16.vlgmr.msrb.gmra.mxu3 %v11238_v17  ;;  %v7525_v17 = vor.u32 %v8389_v8, %v7522_v37  ;;  %v2804_v56 = vpop.f32.mrf.mxu2  ;;  %4433 = vst [vmem:[#allocation1] ss:$9 sm:$0xff] %v7566_v43  ;;  %v8373_v37 = vld [vmem:[%s12235_s1 + $0xf24] sm:$0xf]  ;;  %v7313_v36 = vor.u32 %v8339_v18, %v7312_v14  ;;  %v8366_v25 = vld [vmem:[%s12235_s1 + $0xeec] sm:$0xf]  ;;  %v7561_v43 = vor.u32 %v8400_v59, %v7560_v35 }
 0x1d3   : > { %4251 = vmatpush.bf16.msra.mxu0 %v7409_v45  ;;  %v2780_v2 = vpop.f32.mrf.mxu0  ;;  %v7562_v26 = vld [vmem:[%s12235_s1 + $0xff8] sm:$0xf0] }
 0x1d4   : > { %4264 = vmatpush.bf16.msra.mxu1 %v7537_v1  ;;  %4277 = vmatpush.bf16.msra.mxu2 %v7413_v3  ;;  %v7473_v1 = vor.u32 %v8379_v48, %v7472_v7  ;;  %v7349_v3 = vor.u32 %v8345_v51, %v7346_v53  ;;  %v8362_v7 = vld [vmem:[%s12235_s1 + $0xecc] sm:$0xf]  ;;  %v7418_v48 = vld [vmem:[%s12235_s1 + $0xed8] sm:$0xf0] }
 0x1d5   : > { %4290 = vmatpush.bf16.msra.mxu3 %v7541_v6  ;;  %v2817_v50 = vpop.f32.mrf.mxu3  ;;  %v7477_v6 = vor.u32 %v8377_v54, %v7474_v60  ;;  %v7421_v54 = vor.u32 %v8362_v7, %v7418_v48  ;;  %v7528_v60 = vld [vmem:[%s12235_s1 + $0xfa8] sm:$0xf]  ;;  %v8358_v2 = vld [vmem:[%s12235_s1 + $0xeac] sm:$0xf] }
 0x1d6   : > { %v2818_v57 = vadd.f32 %v2817_v50, %v2804_v56  ;;  %v2793_v9 = vpop.f32.mrf.mxu1  ;;  %v7565_v56 = vor.u32 %v8398_v40, %v7562_v26  ;;  %v7546_v50 = vld [vmem:[%s12235_s1 + $0xfd8] sm:$0xf0]  ;;  %v8380_v26 = vld [vmem:[%s12235_s1 + $0xf54] sm:$0xf0] }
 0x1d7   : > { %4252 = vmatpush.bf16.msra.mxu0 %v7393_v12  ;;  %v7458_v12 = vld [vmem:[%s12235_s1 + $0xf30] sm:$0xf0] }
 0x1d8   : > { %4265 = vmatpush.bf16.msra.mxu1 %v7521_v13  ;;  %4278 = vmatpush.bf16.msra.mxu2 %v7397_v15  ;;  %v2827_v45 = vrot.slane %v2818_v57, 5  ;;  %v7329_v15 = vor.u32 %v8343_v4, %v7328_v0  ;;  %v8360_v57 = vld [vmem:[%s12235_s1 + $0xeb4] sm:$0xf0] }
 0x1d9   : > { %4291 = vmatpush.bf16.msra.mxu3 %v7525_v17  ;;  %v7457_v17 = vor.u32 %v8375_v16, %v7456_v5  ;;  %v8392_v0 = vld [vmem:[%s12235_s1 + $0xfb4] sm:$0xf0] }
 0x1da   : > { %v2829_v8 = vsel %vm785_vm1, %v2826_v55, %v2827_v45  ;;  %v2806_v23 = vpop.f32.mrf.mxu2  ;;  %v7400_v55 = vld [vmem:[%s12235_s1 + $0xea8] sm:$0xf]  ;;  %v7402_v45 = vld [vmem:[%s12235_s1 + $0xeb8] sm:$0xf0]  ;;  %v7529_v5 = vor.u32 %v8392_v0, %v7528_v60  ;;  %v8356_v16 = vld [vmem:[%s12235_s1 + $0xe94] sm:$0xf0] }
 0x1db   : > { %4253 = vmatpush.bf16.msra.mxu0 %v7377_v29  ;;  %v2830_v13 = vsel %vm787_vm2, %v11365_v27, %v2829_v8  ;;  %v7440_v27 = vld [vmem:[%s12235_s1 + $0xf00] sm:$0xf]  ;;  %v7442_v29 = vld [vmem:[%s12235_s1 + $0xf10] sm:$0xf0]  ;;  %v7401_v4 = vor.u32 %v8360_v57, %v7400_v55  ;;  %v7405_v9 = vor.u32 %v8358_v2, %v7402_v45  ;;  %v8388_v8 = vld [vmem:[%s12235_s1 + $0xf94] sm:$0xf0] }
 0x1dc   : > { %4266 = vmatpush.bf16.msra.mxu1 %v7505_v31  ;;  %4279 = vmatpush.bf16.msra.mxu2 %v7381_v32  ;;  %v11579_v19 = vadd.f32 %v2830_v13, %v11168_v46  ;;  %v7461_v46 = vor.u32 %v8373_v37, %v7458_v12  ;;  %v7432_v31 = vld [vmem:[%s12235_s1 + $0xee8] sm:$0xf]  ;;  %v8368_v32 = vld [vmem:[%s12235_s1 + $0xef4] sm:$0xf0]  ;;  %v7441_v44 = vor.u32 %v8371_v21, %v7440_v27  ;;  %v8354_v37 = vld [vmem:[%s12235_s1 + $0xe8c] sm:$0xf] }
 0x1dd   : > { %4292 = vmatpush.bf16.msra.mxu3 %v7509_v38  ;;  %v2819_v30 = vpop.f32.mrf.mxu3  ;;  %v7434_v38 = vld [vmem:[%s12235_s1 + $0xef8] sm:$0xf0]  ;;  %v7445_v34 = vor.u32 %v8369_v28, %v7442_v29  ;;  %v7433_v42 = vor.u32 %v8368_v32, %v7432_v31  ;;  %v8386_v13 = vld [vmem:[%s12235_s1 + $0xf8c] sm:$0xf]  ;;  %v7368_v27 = vld [vmem:[%s12235_s1 + $0xe68] sm:$0xf] }
 0x1de   : > { %v7386_v12 = vld [vmem:[%s12235_s1 + $0xe98] sm:$0xf0]  ;;  %v8352_v21 = vld [vmem:[%s12235_s1 + $0xe74] sm:$0xf0]  ;;  %v8350_v28 = vld [vmem:[%s12235_s1 + $0xe6c] sm:$0xf] }
 0x1df   : > { %4254 = vmatpush.bf16.msra.mxu0 %v7361_v41  ;;  %v7437_v41 = vor.u32 %v8366_v25, %v7434_v38  ;;  %v7370_v29 = vld [vmem:[%s12235_s1 + $0xe78] sm:$0xf0]  ;;  %v8382_v31 = vld [vmem:[%s12235_s1 + $0xf6c] sm:$0xf]  ;;  %v7369_v35 = vor.u32 %v8352_v21, %v7368_v27  ;;  %v7352_v25 = vld [vmem:[%s12235_s1 + $0xe48] sm:$0xf] }
 0x1e0   : > { %4267 = vmatpush.bf16.msra.mxu1 %v7489_v52  ;;  %4280 = vmatpush.bf16.msra.mxu2 %v7365_v33  ;;  %v8364_v52 = vld [vmem:[%s12235_s1 + $0xed4] sm:$0xf0]  ;;  %v7544_v33 = vld [vmem:[%s12235_s1 + $0xfc8] sm:$0xf]  ;;  %v7498_v32 = vld [vmem:[%s12235_s1 + $0xf78] sm:$0xf0]  ;;  %v7373_v59 = vor.u32 %v8350_v28, %v7370_v29 }
 0x1e1   : > { %4293 = vmatpush.bf16.msra.mxu3 %v7493_v49  ;;  %v8394_v49 = vld [vmem:[%s12235_s1 + $0xfcc] sm:$0xf]  ;;  %v7417_v51 = vor.u32 %v8364_v52, %v7416_v58  ;;  %v7545_v53 = vor.u32 %v8396_v47, %v7544_v33  ;;  %v8348_v38 = vld [vmem:[%s12235_s1 + $0xe54] sm:$0xf0]  ;;  %v7501_v40 = vor.u32 %v8382_v31, %v7498_v32  ;;  %v7482_v58 = vld [vmem:[%s12235_s1 + $0xf58] sm:$0xf0] }
 0x1e2   : > { %v7353_v33 = vor.u32 %v8348_v38, %v7352_v25  ;;  %v8376_v55 = vld [vmem:[%s12235_s1 + $0xf34] sm:$0xf0]  ;;  %v8342_v57 = vld [vmem:[%s12235_s1 + $0xe2c] sm:$0xf]  ;;  %v7338_v60 = vld [vmem:[%s12235_s1 + $0xe38] sm:$0xf0] }
 0x1e3   : > { %4255 = vmatpush.bf16.msra.mxu0 %v7345_v62  ;;  %v7549_v62 = vor.u32 %v8394_v49, %v7546_v50  ;;  %v8344_v49 = vld [vmem:[%s12235_s1 + $0xe34] sm:$0xf0]  ;;  %v7464_v50 = vld [vmem:[%s12235_s1 + $0xf28] sm:$0xf]  ;;  %v7466_v0 = vld [vmem:[%s12235_s1 + $0xf38] sm:$0xf0] }
 0x1e4   : > { %4268 = vmatpush.bf16.msra.mxu1 %v7473_v1  ;;  %4281 = vmatpush.bf16.msra.mxu2 %v7349_v3  ;;  %v8390_v1 = vld [vmem:[%s12235_s1 + $0xfac] sm:$0xf]  ;;  %v7530_v3 = vld [vmem:[%s12235_s1 + $0xfb8] sm:$0xf0]  ;;  %v8429_v27 = vld [vmem:[%s12235_s1 + $0x10e4] sm:$0xf] }
 0x1e5   : > { %4294 = vmatpush.bf16.msra.mxu3 %v7477_v6  ;;  %v7384_v6 = vld [vmem:[%s12235_s1 + $0xe88] sm:$0xf]  ;;  %v7533_v11 = vor.u32 %v8390_v1, %v7530_v3  ;;  %v8340_v3 = vld [vmem:[%s12235_s1 + $0xe14] sm:$0xf0]  ;;  %v7747_v21 = vld [vmem:[%s12235_s1 + $0x10f0] sm:$0xf0] }
 0x1e6   : > { %v7385_v14 = vor.u32 %v8356_v16, %v7384_v6  ;;  %v7320_v1 = vld [vmem:[%s12235_s1 + $0xe08] sm:$0xf]  ;;  %v8372_v6 = vld [vmem:[%s12235_s1 + $0xf14] sm:$0xf0]  ;;  %v8338_v16 = vld [vmem:[%s12235_s1 + $0xe0c] sm:$0xf]  ;;  %v7750_v31 = vor.u32 %v8429_v27, %v7747_v21 }
 0x1e7   : > { %4256 = vmatpush.bf16.msra.mxu0 %v7329_v15  ;;  %v7514_v15 = vld [vmem:[%s12235_s1 + $0xf98] sm:$0xf0]  ;;  %v7729_v32 = vld [vmem:[%s12235_s1 + $0x10c0] sm:$0xf]  ;;  %v8459_v25 = vld [vmem:[%s12235_s1 + $0x11cc] sm:$0xf0] }
 0x1e8   : > { %4269 = vmatpush.bf16.msra.mxu1 %v7457_v17  ;;  %4282 = vmatpush.bf16.msra.mxu2 %v7333_v20  ;;  %v7513_v17 = vor.u32 %v8388_v8, %v7512_v10  ;;  %v7389_v20 = vor.u32 %v8354_v37, %v7386_v12  ;;  %v7322_v8 = vld [vmem:[%s12235_s1 + $0xe18] sm:$0xf0]  ;;  %v8370_v37 = vld [vmem:[%s12235_s1 + $0xf0c] sm:$0xf]  ;;  %v8425_v38 = vld [vmem:[%s12235_s1 + $0x10c4] sm:$0xf] }
 0x1e9   : > { %4295 = vmatpush.bf16.msra.mxu3 %v7461_v46  ;;  %v7517_v46 = vor.u32 %v8386_v13, %v7514_v15  ;;  %v7450_v12 = vld [vmem:[%s12235_s1 + $0xf18] sm:$0xf0]  ;;  %v7745_v15 = vld [vmem:[%s12235_s1 + $0x10e0] sm:$0xf]  ;;  %v8411_v21 = vld [vmem:[%s12235_s1 + $0x104c] sm:$0xf0] }
 0x1ea   : > { %v7453_v28 = vor.u32 %v8370_v37, %v7450_v12  ;;  %v7683_v37 = vld [vmem:[%s12235_s1 + $0x1070] sm:$0xf0]  ;;  %v7665_v27 = vld [vmem:[%s12235_s1 + $0x1040] sm:$0xf] }
 0x1eb   : > { %4257 = vmatpush.bf16.msra.mxu0 %v7313_v36  ;;  %v3238_v18 = vpop.f32.mrf.mxu0  ;;  %v7497_v36 = vor.u32 %v8384_v24, %v7496_v22  ;;  %v7875_v24 = vld [vmem:[%s12235_s1 + $0x11f0] sm:$0xf0] }
 0x1ec   : > { %4270 = vmatpush.bf16.msra.mxu1 %v7441_v44  ;;  %4283 = vmatpush.bf16.msra.mxu2 %v7317_v39  ;;  %v7480_v44 = vld [vmem:[%s12235_s1 + $0xf48] sm:$0xf] }
 0x1ed   : > { %4296 = vmatpush.bf16.msra.mxu3 %v7445_v34  ;;  %v8346_v34 = vld [vmem:[%s12235_s1 + $0xe4c] sm:$0xf]  ;;  %v7481_v7 = vor.u32 %v8380_v26, %v7480_v44  ;;  %v7731_v44 = vld [vmem:[%s12235_s1 + $0x10d0] sm:$0xf0] }
 0x1ee   : > { %4258 = vmatmul.bf16.vlgmr.msra.gmra.mxu0 %v11541_v61  ;;  %v3251_v23 = vpop.f32.mrf.mxu1 }
 0x1ef   : > { %4302 = vmatpush.bf16.msrb.mxu0 %v7433_v42  ;;  %4284 = vmatmul.bf16.vlgmr.msra.gmra.mxu2 %v11541_v61  ;;  %v3252_v30 = vadd.f32 %v3251_v23, %v3238_v18  ;;  %v7354_v42 = vld [vmem:[%s12235_s1 + $0xe58] sm:$0xf0]  ;;  %v7873_v18 = vld [vmem:[%s12235_s1 + $0x11e0] sm:$0xf]  ;;  %v7325_v23 = vor.u32 %v8338_v16, %v7322_v8  ;;  %v8413_v8 = vld [vmem:[%s12235_s1 + $0x1064] sm:$0xf] }
 0x1f0   : > { %4315 = vmatpush.bf16.msrb.mxu1 %v7561_v43  ;;  %4328 = vmatpush.bf16.msrb.mxu2 %v7437_v41  ;;  %v8378_v41 = vld [vmem:[%s12235_s1 + $0xf4c] sm:$0xf]  ;;  %v7357_v48 = vor.u32 %v8346_v34, %v7354_v42  ;;  %v7734_v42 = vor.u32 %v8425_v38, %v7731_v44 }
 0x1f1   : > { %4341 = vmatpush.bf16.msrb.mxu3 %v7565_v56  ;;  %4271 = vmatmul.bf16.vlgmr.msra.gmra.mxu1 %v11543_v63  ;;  %v7336_v56 = vld [vmem:[%s12235_s1 + $0xe28] sm:$0xf] }
 0x1f2   : > { %4297 = vmatmul.bf16.vlgmr.msra.gmra.mxu3 %v11543_v63  ;;  %v3264_v39 = vpop.f32.mrf.mxu2  ;;  %v7337_v45 = vor.u32 %v8344_v49, %v7336_v56  ;;  %v8421_v56 = vld [vmem:[%s12235_s1 + $0x10a4] sm:$0xf] }
 0x1f3   : > { %4303 = vmatpush.bf16.msrb.mxu0 %v7417_v51  ;;  %v3240_v47 = vpop.f32.mrf.mxu0 }
 0x1f4   : > { %4316 = vmatpush.bf16.msrb.mxu1 %v7545_v53  ;;  %4329 = vmatpush.bf16.msrb.mxu2 %v7421_v54  ;;  %v7485_v54 = vor.u32 %v8378_v41, %v7482_v58  ;;  %v8423_v41 = vld [vmem:[%s12235_s1 + $0x10ac] sm:$0xf0]  ;;  %v7841_v58 = vld [vmem:[%s12235_s1 + $0x11a0] sm:$0xf]  ;;  %v7715_v47 = vld [vmem:[%s12235_s1 + $0x10b0] sm:$0xf0] }
 0x1f5   : > { %4342 = vmatpush.bf16.msrb.mxu3 %v7549_v62  ;;  %v3277_v43 = vpop.f32.mrf.mxu3  ;;  %v8374_v62 = vld [vmem:[%s12235_s1 + $0xf2c] sm:$0xf] }
 0x1f6   : > { %v3278_v52 = vadd.f32 %v3277_v43, %v3264_v39  ;;  %v3253_v53 = vpop.f32.mrf.mxu1  ;;  %v8457_v39 = vld [vmem:[%s12235_s1 + $0x11c4] sm:$0xf]  ;;  %v7713_v43 = vld [vmem:[%s12235_s1 + $0x10a0] sm:$0xf] }
 0x1f7   : > { %4304 = vmatpush.bf16.msrb.mxu0 %v7401_v4  ;;  %v7465_v4 = vor.u32 %v8376_v55, %v7464_v50  ;;  %v7714_v49 = vor.u32 %v8423_v41, %v7713_v43  ;;  %v8419_v53 = vld [vmem:[%s12235_s1 + $0x108c] sm:$0xf0]  ;;  %v8405_v41 = vld [vmem:[%s12235_s1 + $0x1024] sm:$0xf] }
 0x1f8   : > { %4317 = vmatpush.bf16.msrb.mxu1 %v7529_v5  ;;  %4330 = vmatpush.bf16.msrb.mxu2 %v7405_v9  ;;  %v3337_v51 = vrot.slane %v3278_v52, 7  ;;  %v7341_v5 = vor.u32 %v8342_v57, %v7338_v60  ;;  %v7448_v9 = vld [vmem:[%s12235_s1 + $0xf08] sm:$0xf]  ;;  %v8417_v57 = vld [vmem:[%s12235_s1 + $0x1084] sm:$0xf] }
 0x1f9   : > { %4343 = vmatpush.bf16.msrb.mxu3 %v7533_v11  ;;  %v7469_v11 = vor.u32 %v8374_v62, %v7466_v0  ;;  %v7449_v22 = vor.u32 %v8372_v6, %v7448_v9  ;;  %v7699_v60 = vld [vmem:[%s12235_s1 + $0x1090] sm:$0xf0]  ;;  %v8449_v62 = vld [vmem:[%s12235_s1 + $0x1184] sm:$0xf]  ;;  %v8415_v9 = vld [vmem:[%s12235_s1 + $0x106c] sm:$0xf0] }
 0x1fa   : > { %v11772_v2 = vsel %vm783_vm0, %v3252_v30, %v3337_v51  ;;  %v3266_v10 = vpop.f32.mrf.mxu2  ;;  %v7718_v51 = vor.u32 %v8421_v56, %v7715_v47  ;;  %v7827_v0 = vld [vmem:[%s12235_s1 + $0x1190] sm:$0xf0]  ;;  %v7809_v6 = vld [vmem:[%s12235_s1 + $0x1160] sm:$0xf]  ;;  %v8439_v43 = vld [vmem:[%s12235_s1 + $0x112c] sm:$0xf0] }
 0x1fb   : > { %4305 = vmatpush.bf16.msrb.mxu0 %v7385_v14  ;;  %v8431_v14 = vld [vmem:[%s12235_s1 + $0x10ec] sm:$0xf0]  ;;  %v7830_v10 = vor.u32 %v8449_v62, %v7827_v0  ;;  %v7779_v56 = vld [vmem:[%s12235_s1 + $0x1130] sm:$0xf0]  ;;  %v7753_v0 = vld [vmem:[%s12235_s1 + $0x10e8] sm:$0xf] }
 0x1fc   : > { %4318 = vmatpush.bf16.msrb.mxu1 %v7513_v17  ;;  %4331 = vmatpush.bf16.msrb.mxu2 %v7389_v20  ;;  %v7321_v17 = vor.u32 %v8340_v3, %v7320_v1  ;;  %v8463_v20 = vld [vmem:[%s12235_s1 + $0x11ec] sm:$0xf0]  ;;  %v7746_v29 = vor.u32 %v8431_v14, %v7745_v15  ;;  %v7811_v15 = vld [vmem:[%s12235_s1 + $0x1170] sm:$0xf0] }
 0x1fd   : > { %4344 = vmatpush.bf16.msrb.mxu3 %v7517_v46  ;;  %v3279_v13 = vpop.f32.mrf.mxu3  ;;  %v8461_v46 = vld [vmem:[%s12235_s1 + $0x11e4] sm:$0xf]  ;;  %v7874_v30 = vor.u32 %v8463_v20, %v7873_v18 }
 0x1fe   : > { %v8445_v13 = vld [vmem:[%s12235_s1 + $0x1164] sm:$0xf] }
 0x1ff   : > { %4306 = vmatpush.bf16.msrb.mxu0 %v7369_v35  ;;  %v8427_v35 = vld [vmem:[%s12235_s1 + $0x10cc] sm:$0xf0] }
 0x200   : > { %4319 = vmatpush.bf16.msrb.mxu1 %v7497_v36  ;;  %4332 = vmatpush.bf16.msrb.mxu2 %v7373_v59  ;;  %v7857_v36 = vld [vmem:[%s12235_s1 + $0x11c0] sm:$0xf]  ;;  %v7878_v59 = vor.u32 %v8461_v46, %v7875_v24  ;;  %v7730_v26 = vor.u32 %v8427_v35, %v7729_v32  ;;  %v8443_v24 = vld [vmem:[%s12235_s1 + $0x114c] sm:$0xf0]  ;;  %v8441_v32 = vld [vmem:[%s12235_s1 + $0x1144] sm:$0xf] }
 0x201   : > { %4345 = vmatpush.bf16.msrb.mxu3 %v7501_v40  ;;  %v7859_v40 = vld [vmem:[%s12235_s1 + $0x11d0] sm:$0xf0]  ;;  %v7858_v34 = vor.u32 %v8459_v25, %v7857_v36  ;;  %v7666_v36 = vor.u32 %v8411_v21, %v7665_v27  ;;  %v8460_v27 = vld [vmem:[%s12235_s1 + $0x11d4] sm:$0xf0] }
 0x202   : > { %v7862_v52 = vor.u32 %v8457_v39, %v7859_v40  ;;  %v7795_v35 = vld [vmem:[%s12235_s1 + $0x1150] sm:$0xf0]  ;;  %v8407_v40 = vld [vmem:[%s12235_s1 + $0x102c] sm:$0xf0] }
 0x203   : > { %4307 = vmatpush.bf16.msrb.mxu0 %v7353_v33  ;;  %v8455_v33 = vld [vmem:[%s12235_s1 + $0x11ac] sm:$0xf0] }
 0x204   : > { %4320 = vmatpush.bf16.msrb.mxu1 %v7481_v7  ;;  %4333 = vmatpush.bf16.msrb.mxu2 %v7357_v48  ;;  %v8453_v7 = vld [vmem:[%s12235_s1 + $0x11a4] sm:$0xf]  ;;  %v7843_v48 = vld [vmem:[%s12235_s1 + $0x11b0] sm:$0xf0]  ;;  %v7842_v50 = vor.u32 %v8455_v33, %v7841_v58 }
 0x205   : > { %4346 = vmatpush.bf16.msrb.mxu3 %v7485_v54  ;;  %v7825_v54 = vld [vmem:[%s12235_s1 + $0x1180] sm:$0xf]  ;;  %v7846_v55 = vor.u32 %v8453_v7, %v7843_v48  ;;  %v7651_v58 = vld [vmem:[%s12235_s1 + $0x1030] sm:$0xf0]  ;;  %v8437_v33 = vld [vmem:[%s12235_s1 + $0x1124] sm:$0xf] }
 0x206   : > { %v7633_v48 = vld [vmem:[%s12235_s1 + $0x1000] sm:$0xf] }
 0x207   : > { %4308 = vmatpush.bf16.msrb.mxu0 %v7337_v45 }
 0x208   : > { %4321 = vmatpush.bf16.msrb.mxu1 %v7465_v4  ;;  %4334 = vmatpush.bf16.msrb.mxu2 %v7341_v5  ;;  %v7702_v4 = vor.u32 %v8417_v57, %v7699_v60  ;;  %v7681_v5 = vld [vmem:[%s12235_s1 + $0x1060] sm:$0xf]  ;;  %v8433_v57 = vld [vmem:[%s12235_s1 + $0x1104] sm:$0xf]  ;;  %v7763_v60 = vld [vmem:[%s12235_s1 + $0x1110] sm:$0xf0] }
 0x209   : > { %4347 = vmatpush.bf16.msrb.mxu3 %v7469_v11  ;;  %v8447_v11 = vld [vmem:[%s12235_s1 + $0x116c] sm:$0xf0]  ;;  %v7682_v14 = vor.u32 %v8415_v9, %v7681_v5  ;;  %v8430_v5 = vld [vmem:[%s12235_s1 + $0x10ec] sm:$0xf]  ;;  %v7755_v9 = vld [vmem:[%s12235_s1 + $0x10f8] sm:$0xf0] }
 0x20a   : > { %v7810_v18 = vor.u32 %v8447_v11, %v7809_v6  ;;  %v7883_v11 = vld [vmem:[%s12235_s1 + $0x11f8] sm:$0xf0] }
 0x20b   : > { %4309 = vmatpush.bf16.msrb.mxu0 %v7321_v17  ;;  %v3290_v1 = vpop.f32.mrf.mxu0  ;;  %v7686_v17 = vor.u32 %v8413_v8, %v7683_v37  ;;  %v4434_v8 = vld [vmem:[#allocation1] sm:$0xff]  ;;  %v7766_v37 = vor.u32 %v8433_v57, %v7763_v60  ;;  %v8448_v60 = vld [vmem:[%s12235_s1 + $0x1174] sm:$0xf0] }
 0x20c   : > { %4322 = vmatpush.bf16.msrb.mxu1 %v7449_v22  ;;  %4335 = vmatpush.bf16.msrb.mxu2 %v7325_v23  ;;  %v7793_v22 = vld [vmem:[%s12235_s1 + $0x1140] sm:$0xf]  ;;  %v7814_v23 = vor.u32 %v8445_v13, %v7811_v15  ;;  %v7737_v13 = vld [vmem:[%s12235_s1 + $0x10c8] sm:$0xf] }
 0x20d   : > { %4348 = vmatpush.bf16.msrb.mxu3 %v7453_v28  ;;  %v8409_v28 = vld [vmem:[%s12235_s1 + $0x1044] sm:$0xf]  ;;  %v7794_v44 = vor.u32 %v8443_v24, %v7793_v22  ;;  %v4435_v15 = vld [vmem:[#allocation1 + $0x9] sm:$0xff] }
 0x20e   : > { %4310 = vmatmul.bf16.vlgmr.msrb.gmra.mxu0 %v11541_v61  ;;  %v3303_v16 = vpop.f32.mrf.mxu1  ;;  %v8426_v22 = vld [vmem:[%s12235_s1 + $0x10cc] sm:$0xf] }
 0x20f   : > { %4762 = vmatpush.bf16.msra.mxu0 %v7746_v29  ;;  %4336 = vmatmul.bf16.vlgmr.msrb.gmra.mxu2 %v11541_v61  ;;  %v7697_v61 = vld [vmem:[%s12235_s1 + $0x1080] sm:$0xf]  ;;  %v3304_v12 = vadd.f32 %v3303_v16, %v3290_v1  ;;  %v7667_v29 = vld [vmem:[%s12235_s1 + $0x1050] sm:$0xf0]  ;;  %v7881_v1 = vld [vmem:[%s12235_s1 + $0x11e8] sm:$0xf] }
 0x210   : > { %4775 = vmatpush.bf16.msra.mxu1 %v7874_v30  ;;  %4788 = vmatpush.bf16.msra.mxu2 %v7750_v31  ;;  %v7698_v45 = vor.u32 %v8419_v53, %v7697_v61  ;;  %v7670_v39 = vor.u32 %v8409_v28, %v7667_v29  ;;  %v7654_v61 = vor.u32 %v8405_v41, %v7651_v58  ;;  %v8435_v53 = vld [vmem:[%s12235_s1 + $0x110c] sm:$0xf0]  ;;  %v8458_v24 = vld [vmem:[%s12235_s1 + $0x11cc] sm:$0xf]  ;;  %v7867_v28 = vld [vmem:[%s12235_s1 + $0x11d8] sm:$0xf0] }
 0x211   : > { %4801 = vmatpush.bf16.msra.mxu3 %v7878_v59  ;;  %4323 = vmatmul.bf16.vlgmr.msrb.gmra.mxu1 %v11543_v63  ;;  %v3338_v30 = vrot.slane %v3304_v12, 6  ;;  %v7649_v59 = vld [vmem:[%s12235_s1 + $0x1020] sm:$0xf]  ;;  %v12050_v29 = vshrl.u32 %v4435_v15, 16  ;;  %v7705_v41 = vld [vmem:[%s12235_s1 + $0x1088] sm:$0xf] }
 0x212   : > { %4349 = vmatmul.bf16.vlgmr.msrb.gmra.mxu3 %v11543_v63  ;;  %v8451_v63 = vld [vmem:[%s12235_s1 + $0x118c] sm:$0xf0]  ;;  %v3316_v20 = vpop.f32.mrf.mxu2  ;;  %v7650_v7 = vor.u32 %v8407_v40, %v7649_v59  ;;  %v7849_v59 = vld [vmem:[%s12235_s1 + $0x11a8] sm:$0xf]  ;;  %v8454_v40 = vld [vmem:[%s12235_s1 + $0x11ac] sm:$0xf] }
 0x213   : > { %4763 = vmatpush.bf16.msra.mxu0 %v7730_v26  ;;  %v7826_v3 = vor.u32 %v8451_v63, %v7825_v54  ;;  %v3292_v25 = vpop.f32.mrf.mxu0  ;;  %v7777_v26 = vld [vmem:[%s12235_s1 + $0x1120] sm:$0xf]  ;;  %v8401_v54 = vld [vmem:[%s12235_s1 + $0x1004] sm:$0xf]  ;;  %v7635_v63 = vld [vmem:[%s12235_s1 + $0x1010] sm:$0xf0] }
 0x214   : > { %4776 = vmatpush.bf16.msra.mxu1 %v7858_v34  ;;  %4789 = vmatpush.bf16.msra.mxu2 %v7734_v42  ;;  %v7798_v42 = vor.u32 %v8441_v32, %v7795_v35  ;;  %v7638_v16 = vor.u32 %v8401_v54, %v7635_v63  ;;  %v7721_v35 = vld [vmem:[%s12235_s1 + $0x10a8] sm:$0xf]  ;;  %v7870_v25 = vor.u32 %v8458_v24, %v7867_v28  ;;  %v8420_v58 = vld [vmem:[%s12235_s1 + $0x1094] sm:$0xf0] }
 0x215   : > { %4802 = vmatpush.bf16.msra.mxu3 %v7862_v52  ;;  %v3329_v46 = vpop.f32.mrf.mxu3  ;;  %v7689_v54 = vld [vmem:[%s12235_s1 + $0x1068] sm:$0xf]  ;;  %v8408_v24 = vld [vmem:[%s12235_s1 + $0x1034] sm:$0xf0] }
 0x216   : > { %v3330_v31 = vadd.f32 %v3329_v46, %v3316_v20  ;;  %v3305_v34 = vpop.f32.mrf.mxu1  ;;  %v7865_v20 = vld [vmem:[%s12235_s1 + $0x11c8] sm:$0xf]  ;;  %v12042_v46 = vshrl.u32 %v4434_v8, 16 }
 0x217   : > { %4764 = vmatpush.bf16.msra.mxu0 %v7714_v49  ;;  %v8403_v49 = vld [vmem:[%s12235_s1 + $0x100c] sm:$0xf0]  ;;  %v7785_v28 = vld [vmem:[%s12235_s1 + $0x1128] sm:$0xf] }
 0x218   : > { %4777 = vmatpush.bf16.msra.mxu1 %v7842_v50  ;;  %4790 = vmatpush.bf16.msra.mxu2 %v7718_v51  ;;  %v3339_v38 = vrot.slane %v3330_v31, 5  ;;  %v7778_v51 = vor.u32 %v8439_v43, %v7777_v26  ;;  %v7866_v31 = vor.u32 %v8460_v27, %v7865_v20  ;;  %v7851_v26 = vld [vmem:[%s12235_s1 + $0x11b8] sm:$0xf0]  ;;  %v7657_v27 = vld [vmem:[%s12235_s1 + $0x1028] sm:$0xf] }
 0x219   : > { %4803 = vmatpush.bf16.msra.mxu3 %v7846_v55 }
 0x21a   : > { %v3341_v52 = vsel %vm785_vm1, %v3338_v30, %v3339_v38  ;;  %v3318_v55 = vpop.f32.mrf.mxu2  ;;  %v8456_v38 = vld [vmem:[%s12235_s1 + $0x11b4] sm:$0xf0] }
 0x21b   : > { %4765 = vmatpush.bf16.msra.mxu0 %v7698_v45  ;;  %v3342_v47 = vsel %vm787_vm2, %v11772_v2, %v3341_v52  ;;  %v7761_v2 = vld [vmem:[%s12235_s1 + $0x1100] sm:$0xf]  ;;  %v8432_v45 = vld [vmem:[%s12235_s1 + $0x10f4] sm:$0xf0]  ;;  %v7833_v52 = vld [vmem:[%s12235_s1 + $0x1188] sm:$0xf] }
 0x21c   : > { %4778 = vmatpush.bf16.msra.mxu1 %v7826_v3  ;;  %4791 = vmatpush.bf16.msra.mxu2 %v7702_v4  ;;  %v11980_v50 = vadd.f32 %v3342_v47, %v11579_v19  ;;  %v7782_v19 = vor.u32 %v8437_v33, %v7779_v56  ;;  %v7634_v3 = vor.u32 %v8403_v49, %v7633_v48  ;;  %v8464_v4 = vld [vmem:[%s12235_s1 + $0x11f4] sm:$0xf0]  ;;  %v8418_v47 = vld [vmem:[%s12235_s1 + $0x108c] sm:$0xf]  ;;  %v7835_v49 = vld [vmem:[%s12235_s1 + $0x1198] sm:$0xf0] }
 0x21d   : > { %4804 = vmatpush.bf16.msra.mxu3 %v7830_v10  ;;  %v3331_v62 = vpop.f32.mrf.mxu3  ;;  %v7762_v6 = vor.u32 %v8435_v53, %v7761_v2  ;;  %v8462_v10 = vld [vmem:[%s12235_s1 + $0x11ec] sm:$0xf]  ;;  %v7754_v12 = vor.u32 %v8432_v45, %v7753_v0  ;;  %v7854_v33 = vor.u32 %v8454_v40, %v7851_v26  ;;  %v8452_v56 = vld [vmem:[%s12235_s1 + $0x1194] sm:$0xf0]  ;;  %v7691_v0 = vld [vmem:[%s12235_s1 + $0x1078] sm:$0xf0] }
 0x21e   : > { %v7886_v21 = vor.u32 %v8462_v10, %v7883_v11  ;;  %v8450_v48 = vld [vmem:[%s12235_s1 + $0x118c] sm:$0xf]  ;;  %v7834_v2 = vor.u32 %v8452_v56, %v7833_v52  ;;  %v8416_v55 = vld [vmem:[%s12235_s1 + $0x1074] sm:$0xf0]  ;;  %v7801_v10 = vld [vmem:[%s12235_s1 + $0x1148] sm:$0xf] }
 0x21f   : > { %4766 = vmatpush.bf16.msra.mxu0 %v7682_v14  ;;  %v7882_v14 = vor.u32 %v8464_v4, %v7881_v1  ;;  %v7838_v57 = vor.u32 %v8450_v48, %v7835_v49  ;;  %v8414_v62 = vld [vmem:[%s12235_s1 + $0x106c] sm:$0xf]  ;;  %v7690_v4 = vor.u32 %v8416_v55, %v7689_v54  ;;  %v8436_v52 = vld [vmem:[%s12235_s1 + $0x1114] sm:$0xf0]  ;;  %v7643_v56 = vld [vmem:[%s12235_s1 + $0x1018] sm:$0xf0] }
 0x220   : > { %4779 = vmatpush.bf16.msra.mxu1 %v7810_v18  ;;  %4792 = vmatpush.bf16.msra.mxu2 %v7686_v17  ;;  %v7758_v18 = vor.u32 %v8430_v5, %v7755_v9  ;;  %v8428_v17 = vld [vmem:[%s12235_s1 + $0x10d4] sm:$0xf0]  ;;  %v8446_v1 = vld [vmem:[%s12235_s1 + $0x116c] sm:$0xf]  ;;  %v7694_v9 = vor.u32 %v8414_v62, %v7691_v0  ;;  %v7771_v48 = vld [vmem:[%s12235_s1 + $0x1118] sm:$0xf0] }
 0x221   : > { %4805 = vmatpush.bf16.msra.mxu3 %v7814_v23  ;;  %v7739_v23 = vld [vmem:[%s12235_s1 + $0x10d8] sm:$0xf0]  ;;  %v7738_v30 = vor.u32 %v8428_v17, %v7737_v13 }
 0x222   : > { %v7742_v32 = vor.u32 %v8426_v22, %v7739_v23  ;;  %v7675_v13 = vld [vmem:[%s12235_s1 + $0x1058] sm:$0xf0] }
 0x223   : > { %4767 = vmatpush.bf16.msra.mxu0 %v7666_v36  ;;  %v8424_v36 = vld [vmem:[%s12235_s1 + $0x10b4] sm:$0xf0] }
 0x224   : > { %4780 = vmatpush.bf16.msra.mxu1 %v7794_v44  ;;  %4793 = vmatpush.bf16.msra.mxu2 %v7670_v39  ;;  %v8422_v44 = vld [vmem:[%s12235_s1 + $0x10ac] sm:$0xf]  ;;  %v7723_v39 = vld [vmem:[%s12235_s1 + $0x10b8] sm:$0xf0]  ;;  %v7722_v34 = vor.u32 %v8424_v36, %v7721_v35  ;;  %v8440_v35 = vld [vmem:[%s12235_s1 + $0x1134] sm:$0xf0] }
 0x225   : > { %4806 = vmatpush.bf16.msra.mxu3 %v7798_v42  ;;  %v7850_v42 = vor.u32 %v8456_v38, %v7849_v59  ;;  %v7726_v43 = vor.u32 %v8422_v44, %v7723_v39  ;;  %v8406_v36 = vld [vmem:[%s12235_s1 + $0x102c] sm:$0xf]  ;;  %v7659_v59 = vld [vmem:[%s12235_s1 + $0x1038] sm:$0xf0]  ;;  %v7658_v39 = vor.u32 %v8408_v24, %v7657_v27  ;;  %v7786_v40 = vor.u32 %v8440_v35, %v7785_v28 }
 0x226   : > { %v7787_v38 = vld [vmem:[%s12235_s1 + $0x1138] sm:$0xf0]  ;;  %v7662_v26 = vor.u32 %v8406_v36, %v7659_v59 }
 0x227   : > { %4768 = vmatpush.bf16.msra.mxu0 %v7650_v7  ;;  %v7707_v7 = vld [vmem:[%s12235_s1 + $0x1098] sm:$0xf0] }
 0x228   : > { %4781 = vmatpush.bf16.msra.mxu1 %v7778_v51  ;;  %4794 = vmatpush.bf16.msra.mxu2 %v7654_v61  ;;  %v7706_v51 = vor.u32 %v8420_v58, %v7705_v41  ;;  %v7710_v53 = vor.u32 %v8418_v47, %v7707_v7  ;;  %v8434_v7 = vld [vmem:[%s12235_s1 + $0x110c] sm:$0xf] }
 0x229   : > { %4807 = vmatpush.bf16.msra.mxu3 %v7782_v19  ;;  %v7817_v19 = vld [vmem:[%s12235_s1 + $0x1168] sm:$0xf] }
 0x22a   : > { %v7818_v5 = vor.u32 %v8448_v60, %v7817_v19 }
 0x22b   : > { %4769 = vmatpush.bf16.msra.mxu0 %v7634_v3  ;;  %v3749_v61 = vpop.f32.mrf.mxu0  ;;  %v7819_v3 = vld [vmem:[%s12235_s1 + $0x1178] sm:$0xf0] }
 0x22c   : > { %4782 = vmatpush.bf16.msra.mxu1 %v7762_v6  ;;  %4795 = vmatpush.bf16.msra.mxu2 %v7638_v16  ;;  %v7673_v6 = vld [vmem:[%s12235_s1 + $0x1048] sm:$0xf]  ;;  %v8412_v16 = vld [vmem:[%s12235_s1 + $0x1054] sm:$0xf0]  ;;  %v7822_v8 = vor.u32 %v8446_v1, %v7819_v3 }
 0x22d   : > { %4808 = vmatpush.bf16.msra.mxu3 %v7766_v37  ;;  %v8444_v37 = vld [vmem:[%s12235_s1 + $0x1154] sm:$0xf0]  ;;  %v7674_v20 = vor.u32 %v8412_v16, %v7673_v6 }
 0x22e   : > { %4770 = vmatmul.bf16.vlgmr.msra.gmra.mxu0 %v12042_v46  ;;  %v3762_v63 = vpop.f32.mrf.mxu1  ;;  %v7802_v22 = vor.u32 %v8444_v37, %v7801_v10 }
 0x22f   : > { %4814 = vmatpush.bf16.msrb.mxu0 %v7754_v12  ;;  %4796 = vmatmul.bf16.vlgmr.msra.gmra.mxu2 %v12042_v46  ;;  %v3763_v45 = vadd.f32 %v3762_v63, %v3749_v61  ;;  %v8410_v12 = vld [vmem:[%s12235_s1 + $0x104c] sm:$0xf] }
 0x230   : > { %4827 = vmatpush.bf16.msrb.mxu1 %v7882_v14  ;;  %4840 = vmatpush.bf16.msrb.mxu2 %v7758_v18  ;;  %v8442_v14 = vld [vmem:[%s12235_s1 + $0x114c] sm:$0xf]  ;;  %v7803_v18 = vld [vmem:[%s12235_s1 + $0x1158] sm:$0xf0]  ;;  %v7678_v23 = vor.u32 %v8410_v12, %v7675_v13 }
 0x231   : > { %4853 = vmatpush.bf16.msrb.mxu3 %v7886_v21  ;;  %4783 = vmatmul.bf16.vlgmr.msra.gmra.mxu1 %v12050_v29 }
 0x232   : > { %4809 = vmatmul.bf16.vlgmr.msra.gmra.mxu3 %v12050_v29  ;;  %v3775_v11 = vpop.f32.mrf.mxu2 }
 0x233   : > { %4815 = vmatpush.bf16.msrb.mxu0 %v7738_v30  ;;  %v3751_v21 = vpop.f32.mrf.mxu0 }
 0x234   : > { %4828 = vmatpush.bf16.msrb.mxu1 %v7866_v31  ;;  %4841 = vmatpush.bf16.msrb.mxu2 %v7742_v32  ;;  %v7806_v32 = vor.u32 %v8442_v14, %v7803_v18 }
 0x235   : > { %4854 = vmatpush.bf16.msrb.mxu3 %v7870_v25  ;;  %v3788_v15 = vpop.f32.mrf.mxu3  ;;  %v8438_v25 = vld [vmem:[%s12235_s1 + $0x112c] sm:$0xf] }
 0x236   : > { %v3789_v17 = vadd.f32 %v3788_v15, %v3775_v11  ;;  %v3764_v31 = vpop.f32.mrf.mxu1  ;;  %v7790_v58 = vor.u32 %v8438_v25, %v7787_v38 }
 0x237   : > { %4816 = vmatpush.bf16.msrb.mxu0 %v7722_v34  ;;  %v7641_v34 = vld [vmem:[%s12235_s1 + $0x1008] sm:$0xf] }
 0x238   : > { %4829 = vmatpush.bf16.msrb.mxu1 %v7850_v42  ;;  %4842 = vmatpush.bf16.msrb.mxu2 %v7726_v43  ;;  %v3848_v30 = vrot.slane %v3789_v17, 7  ;;  %v8404_v42 = vld [vmem:[%s12235_s1 + $0x1014] sm:$0xf0]  ;;  %v7769_v43 = vld [vmem:[%s12235_s1 + $0x1108] sm:$0xf] }
 0x239   : > { %4855 = vmatpush.bf16.msrb.mxu3 %v7854_v33  ;;  %v8402_v33 = vld [vmem:[%s12235_s1 + $0x100c] sm:$0xf]  ;;  %v7642_v49 = vor.u32 %v8404_v42, %v7641_v34 }
 0x23a   : > { %v3851_v44 = vsel %vm783_vm0, %v3763_v45, %v3848_v30  ;;  %v3777_v41 = vpop.f32.mrf.mxu2  ;;  %v7646_v61 = vor.u32 %v8402_v33, %v7643_v56 }
 0x23b   : > { %4817 = vmatpush.bf16.msrb.mxu0 %v7706_v51  ;;  %v7770_v51 = vor.u32 %v8436_v52, %v7769_v43 }
 0x23c   : > { %4830 = vmatpush.bf16.msrb.mxu1 %v7834_v2  ;;  %4843 = vmatpush.bf16.msrb.mxu2 %v7710_v53  ;;  %v7774_v2 = vor.u32 %v8434_v7, %v7771_v48 }
 0x23d   : > { %4856 = vmatpush.bf16.msrb.mxu3 %v7838_v57  ;;  %v3790_v47 = vpop.f32.mrf.mxu3 }
 0x23f   : > { %4818 = vmatpush.bf16.msrb.mxu0 %v7690_v4 }
 0x240   : > { %4831 = vmatpush.bf16.msrb.mxu1 %v7818_v5  ;;  %4844 = vmatpush.bf16.msrb.mxu2 %v7694_v9 }
 0x241   : > { %4857 = vmatpush.bf16.msrb.mxu3 %v7822_v8 }
 0x243   : > { %4819 = vmatpush.bf16.msrb.mxu0 %v7674_v20 }
 0x244   : > { %4832 = vmatpush.bf16.msrb.mxu1 %v7802_v22  ;;  %4845 = vmatpush.bf16.msrb.mxu2 %v7678_v23 }
 0x245   : > { %4858 = vmatpush.bf16.msrb.mxu3 %v7806_v32 }
 0x247   : > { %4820 = vmatpush.bf16.msrb.mxu0 %v7658_v39 }
 0x248   : > { %4833 = vmatpush.bf16.msrb.mxu1 %v7786_v40  ;;  %4846 = vmatpush.bf16.msrb.mxu2 %v7662_v26 }
 0x249   : > { %4859 = vmatpush.bf16.msrb.mxu3 %v7790_v58 }
 0x24b   : > { %4821 = vmatpush.bf16.msrb.mxu0 %v7642_v49  ;;  %v3801_v53 = vpop.f32.mrf.mxu0 }
 0x24c   : > { %4834 = vmatpush.bf16.msrb.mxu1 %v7770_v51  ;;  %4847 = vmatpush.bf16.msrb.mxu2 %v7646_v61 }
 0x24d   : > { %4860 = vmatpush.bf16.msrb.mxu3 %v7774_v2 }
 0x24e   : > { %4822 = vmatmul.bf16.vlgmr.msrb.gmra.mxu0 %v12042_v46  ;;  %v3814_v54 = vpop.f32.mrf.mxu1 }
 0x24f   : > { %4835 = vmatmul.bf16.vlgmr.msrb.gmra.mxu1 %v12050_v29  ;;  %4848 = vmatmul.bf16.vlgmr.msrb.gmra.mxu2 %v12042_v46  ;;  %v3815_v55 = vadd.f32 %v3814_v54, %v3801_v53  ;;  %v4881_v54 = vlaneseq }
 0x250   : > { %4861 = vmatmul.bf16.vlgmr.msrb.gmra.mxu3 %v12050_v29 }
 0x251   : > { %v3849_v57 = vrot.slane %v3815_v55, 6  ;;  %vm4883_vm4 = vcmp.lt.s32.totalorder %v4881_v54, 512 }
 0x252   : > { %v3827_v19 = vpop.f32.mrf.mxu2 }
 0x253   : > { %v3803_v62 = vpop.f32.mrf.mxu0 }
 0x255   : > { %v3840_v63 = vpop.f32.mrf.mxu3 }
 0x256   : > { %v3841_v60 = vadd.f32 %v3840_v63, %v3827_v19  ;;  %v3816_v45 = vpop.f32.mrf.mxu1 }
 0x258   : > { %v3850_v0 = vrot.slane %v3841_v60, 5 }
 0x25a   : > { %v3852_v1 = vsel %vm785_vm1, %v3849_v57, %v3850_v0  ;;  %v3829_v5 = vpop.f32.mrf.mxu2 }
 0x25b   : > { %v3853_v3 = vsel %vm787_vm2, %v3851_v44, %v3852_v1 }
 0x25c   : > { %v3855_v4 = vadd.f32 %v3853_v3, %v11980_v50 }
 0x25d   : > { %v3842_v46 = vpop.f32.mrf.mxu3 }
 0x26b   : > { %v4259_v9 = vpop.f32.mrf.mxu0 }
 0x26e   : > { %v4272_v29 = vpop.f32.mrf.mxu1 }
 0x26f   : > { %v4273_v6 = vadd.f32 %v4272_v29, %v4259_v9 }
 0x272   : > { %v4285_v16 = vpop.f32.mrf.mxu2 }
 0x273   : > { %v4261_v8 = vpop.f32.mrf.mxu0 }
 0x275   : > { %v4298_v10 = vpop.f32.mrf.mxu3 }
 0x276   : > { %v4299_v11 = vadd.f32 %v4298_v10, %v4285_v16  ;;  %v4274_v12 = vpop.f32.mrf.mxu1 }
 0x278   : > { %v4358_v37 = vrot.slane %v4299_v11, 7 }
 0x27a   : > { %v4361_v13 = vsel %vm783_vm0, %v4273_v6, %v4358_v37  ;;  %v4287_v15 = vpop.f32.mrf.mxu2 }
 0x27d   : > { %v4300_v14 = vpop.f32.mrf.mxu3 }
 0x28b   : > { %v4311_v18 = vpop.f32.mrf.mxu0 }
 0x28e   : > { %v4324_v17 = vpop.f32.mrf.mxu1 }
 0x28f   : > { %v4325_v20 = vadd.f32 %v4324_v17, %v4311_v18 }
 0x291   : > { %v4359_v21 = vrot.slane %v4325_v20, 6 }
 0x292   : > { %v4337_v27 = vpop.f32.mrf.mxu2 }
 0x293   : > { %v4313_v23 = vpop.f32.mrf.mxu0 }
 0x295   : > { %v4350_v50 = vpop.f32.mrf.mxu3 }
 0x296   : > { %v4351_v22 = vadd.f32 %v4350_v50, %v4337_v27  ;;  %v4326_v28 = vpop.f32.mrf.mxu1 }
 0x298   : > { %v4360_v24 = vrot.slane %v4351_v22, 5 }
 0x29a   : > { %v4362_v30 = vsel %vm785_vm1, %v4359_v21, %v4360_v24  ;;  %v4339_v35 = vpop.f32.mrf.mxu2 }
 0x29b   : > { %v4363_v31 = vsel %vm787_vm2, %v4361_v13, %v4362_v30 }
 0x29c   : > { %v4365_v32 = vadd.f32 %v4363_v31, %v3855_v4 }
 0x29d   : > { %v4352_v36 = vpop.f32.mrf.mxu3 }
 0x2ab   : > { %v4771_v59 = vpop.f32.mrf.mxu0 }
 0x2ae   : > { %v4784_v25 = vpop.f32.mrf.mxu1 }
 0x2af   : > { %v4785_v47 = vadd.f32 %v4784_v25, %v4771_v59 }
 0x2b2   : > { %v4797_v38 = vpop.f32.mrf.mxu2 }
 0x2b3   : > { %v4773_v39 = vpop.f32.mrf.mxu0 }
 0x2b5   : > { %v4810_v44 = vpop.f32.mrf.mxu3 }
 0x2b6   : > { %v4786_v40 = vpop.f32.mrf.mxu1  ;;  %v4811_v41 = vadd.f32 %v4810_v44, %v4797_v38 }
 0x2b8   : > { %v4870_v7 = vrot.slane %v4811_v41, 7 }
 0x2ba   : > { %v4799_v26 = vpop.f32.mrf.mxu2  ;;  %v4873_v2 = vsel %vm783_vm0, %v4785_v47, %v4870_v7 }
 0x2bd   : > { %v4812_v34 = vpop.f32.mrf.mxu3 }
 0x2cb   : > { %v4823_v42 = vpop.f32.mrf.mxu0 }
 0x2cc   : > { %v4836_v43 = vpop.f32.mrf.mxu1 }
 0x2cd   : > { %v4837_v58 = vadd.f32 %v4836_v43, %v4823_v42 }
 0x2cf   : > { %v4871_v48 = vrot.slane %v4837_v58, 6 }
 0x2d2   : > { %v4849_v52 = vpop.f32.mrf.mxu2 }
 0x2d3   : > { %v4862_v33 = vpop.f32.mrf.mxu3  ;;  %v4825_v56 = vpop.f32.mrf.mxu0 }
 0x2d4   : > { %v4863_v49 = vadd.f32 %v4862_v33, %v4849_v52  ;;  %v4838_v51 = vpop.f32.mrf.mxu1 }
 0x2d6   : > { %v4872_v61 = vrot.slane %v4863_v49, 5 }
 0x2d8   : > { %v4874_v53 = vsel %vm785_vm1, %v4871_v48, %v4872_v61 }
 0x2d9   : > { %v4875_v55 = vsel %vm787_vm2, %v4873_v2, %v4874_v53 }
 0x2da   : > { %v4877_v19 = vadd.f32 %v4875_v55, %v4365_v32  ;;  %v4851_v63 = vpop.f32.mrf.mxu2 }
 0x2db   : > { %v4864_v57 = vpop.f32.mrf.mxu3 }
 0x2dc   : > { %vm4878_vm3 = vcmp.ge.f32.partialorder %v4877_v19, 0.0  ;;  %v4879_v60 = vmul.f32 0.2, %v4877_v19 }
 0x2de   : > { %v4880_v62 = vsel %vm4878_vm3, %v4877_v19, %v4879_v60 }
 0x2df   : > { %4885 = vst.msk [vmem:[%s265_s26] sm:$0xf] %vm4883_vm4, %v4880_v62  ;;  %v4888_v0 = vmul.f32 %v4880_v62, %v4880_v62 }
 0x2e0   : > { %4887 = vst.msk [vmem:[%s270_s29] sm:$0xf] %vm4883_vm4, %v4880_v62 }
 0x2e1   : > { %4890 = vst.msk [vmem:[%s276_s18] sm:$0xf] %vm4883_vm4, %v4888_v0 }
 0x2e2 PF: > { %s16_s20 = sadd.s32 1, %s8511_s20   ;;  %s12240_s18 = smov %s8507_s19 }
 0x2e3   : > { %p13_p6 = scmp.ge.s32.totalorder %s16_s20, 4   ;;  %s12241_s19 = smov %s12243_s21 }
 0x2e5   :  { %15 = sbr.rel (!%p13_p6) target bundleno = 2 (0x2), region = 100 }

// kernel: discriminator_forward.9
= control target key start
LH: loop header
LB: loop body
LE: loop exit
PB: predicated region body
PF: predicated region fallthrough
CT: control target
= control target key end

     0   :  { %s5244_s12 = smov 0   ;;  %s5246_s13 = smov 0   ;;  %s6240_s0 = inlined_call_operand.vmem [shape: bf16[2,3,3,512], index: 0, kind: input, shape index: {}]   ;;  %s6241_s1 = inlined_call_operand.vmem [shape: bf16[9,512,128], index: 1, kind: input, shape index: {}]   ;;  %s6242_s2 = inlined_call_operand.vmem [shape: f32[1,128], index: 2, kind: input, shape index: {}]   ;;  %s6243_s3 = inlined_call_operand.vmem [shape: f32[2,1,1,128], index: 3, kind: output, shape index: {}]  }
   0x1   :  { %s5248_s14 = smov 0  }
   0x2 LB: > { %s25_s15 = sadd.s32 1, %s5218_s13  ;;  %p3213_p0 = scmp.ge.s32.totalorder %s5222_s14, 1  ;;  %s5222_s14 = sphi %s5248_s14, %s13_s14   ;;  %s5218_s13 = sphi %s5246_s13, %s6245_s13   ;;  %s5214_s12 = sphi %s5244_s12, %s6244_s12  }
   0x3   : > { %p27_p1 = scmp.ge.s32.totalorder %s25_s15, 2  ;;  %p151_p2 = scmp.lt.s32.totalorder %s5222_s14, 3 }
   0x5   : > { %s6247_s15 = smov (%p27_p1, %s25_s15), 0  ;;  %p152_p3 = pnand %p3213_p0, %p151_p2 }
   0x6   : > { %p176_p4 = scmp.lt.s32.totalorder (!%p152_p3), %s5214_s12, 1 }
   0x7   : > { %155 = sbr.rel (%p152_p3) target bundleno = 443 (0x1bb), region = 32 }
   0xc   : > { %v4894_v0 = vld [vmem:[%s6241_s1 + $0x38] sm:$0xff]  ;;  %v4893_v4 = vld [vmem:[%s6241_s1 + $0x30] sm:$0xff]  ;;  %s6249_s12 = smov (!%p176_p4, %s5214_s12), 1  ;;  %v4892_v8 = vld [vmem:[%s6241_s1 + $0x28] sm:$0xff] }
   0xd   : > { %v4902_v1 = vld [vmem:[%s6241_s1 + $0x78] sm:$0xff]  ;;  %458 = vmatpush.bf16.msra.mxu0 %v4894_v0  ;;  %v4901_v5 = vld [vmem:[%s6241_s1 + $0x70] sm:$0xff]  ;;  %v4900_v9 = vld [vmem:[%s6241_s1 + $0x68] sm:$0xff]  ;;  %s5175_s17 = smul.u32 24, %s6249_s12  ;;  %s186_s21 = scalar_lea.vmem %s6243_s3, %s6249_s12 }
   0xe   : > { %v4910_v2 = vld [vmem:[%s6241_s1 + $0xb8] sm:$0xff]  ;;  %471 = vmatpush.bf16.msra.mxu1 %v4902_v1  ;;  %v4909_v6 = vld [vmem:[%s6241_s1 + $0xb0] sm:$0xff]  ;;  %v4908_v10 = vld [vmem:[%s6241_s1 + $0xa8] sm:$0xff] }
   0xf   : > { %v4918_v3 = vld [vmem:[%s6241_s1 + $0xf8] sm:$0xff]  ;;  %484 = vmatpush.bf16.msra.mxu2 %v4910_v2  ;;  %v4917_v7 = vld [vmem:[%s6241_s1 + $0xf0] sm:$0xff]  ;;  %v4916_v11 = vld [vmem:[%s6241_s1 + $0xe8] sm:$0xff]  ;;  %s5316_s28 = scalar_lea.vmem %s6240_s0, %s5175_s17 }
  0x10   : > { %497 = vmatpush.bf16.msra.mxu3 %v4918_v3  ;;  %v4891_v12 = vld [vmem:[%s6241_s1 + $0x20] sm:$0xff]  ;;  %v4890_v16 = vld [vmem:[%s6241_s1 + $0x18] sm:$0xff]  ;;  %v4889_v21 = vld [vmem:[%s6241_s1 + $0x10] sm:$0xff] }
  0x11   : > { %459 = vmatpush.bf16.msra.mxu0 %v4893_v4  ;;  %v4899_v13 = vld [vmem:[%s6241_s1 + $0x60] sm:$0xff]  ;;  %v4898_v17 = vld [vmem:[%s6241_s1 + $0x58] sm:$0xff]  ;;  %v4897_v22 = vld [vmem:[%s6241_s1 + $0x50] sm:$0xff] }
  0x12   : > { %472 = vmatpush.bf16.msra.mxu1 %v4901_v5  ;;  %v4907_v14 = vld [vmem:[%s6241_s1 + $0xa0] sm:$0xff]  ;;  %v4906_v18 = vld [vmem:[%s6241_s1 + $0x98] sm:$0xff]  ;;  %v4905_v23 = vld [vmem:[%s6241_s1 + $0x90] sm:$0xff] }
  0x13   : > { %485 = vmatpush.bf16.msra.mxu2 %v4909_v6  ;;  %v4915_v15 = vld [vmem:[%s6241_s1 + $0xe0] sm:$0xff]  ;;  %v4914_v19 = vld [vmem:[%s6241_s1 + $0xd8] sm:$0xff]  ;;  %v4913_v24 = vld [vmem:[%s6241_s1 + $0xd0] sm:$0xff] }
  0x14   : > { %498 = vmatpush.bf16.msra.mxu3 %v4917_v7  ;;  %v191_v20 = vld [vmem:[%s5316_s28] sm:$0x55]  ;;  %v4888_v25 = vld [vmem:[%s6241_s1 + $0x8] sm:$0xff]  ;;  %v4926_v38 = vld [vmem:[%s6241_s1 + $0x138] sm:$0xff] }
  0x15   : > { %460 = vmatpush.bf16.msra.mxu0 %v4892_v8  ;;  %257 = vst [vmem:[#allocation1] ss:$4 sm:$0xff] %v191_v20  ;;  %v4896_v26 = vld [vmem:[%s6241_s1 + $0x48] sm:$0xff]  ;;  %v511_v29 = vld [vmem:[%s5316_s28] sm:$0x55]  ;;  %v4934_v39 = vld [vmem:[%s6241_s1 + $0x178] sm:$0xff] }
  0x16   : > { %473 = vmatpush.bf16.msra.mxu1 %v4900_v9  ;;  %v4904_v27 = vld [vmem:[%s6241_s1 + $0x88] sm:$0xff]  ;;  %v4887_v34 = vld [vmem:[%s6241_s1] sm:$0xff]  ;;  %v4942_v40 = vld [vmem:[%s6241_s1 + $0x1b8] sm:$0xff] }
  0x17   : > { %486 = vmatpush.bf16.msra.mxu2 %v4908_v10  ;;  %v4912_v28 = vld [vmem:[%s6241_s1 + $0xc8] sm:$0xff]  ;;  %v4895_v35 = vld [vmem:[%s6241_s1 + $0x40] sm:$0xff]  ;;  %v4950_v41 = vld [vmem:[%s6241_s1 + $0x1f8] sm:$0xff] }
  0x18   : > { %499 = vmatpush.bf16.msra.mxu3 %v4916_v11  ;;  %v4903_v36 = vld [vmem:[%s6241_s1 + $0x80] sm:$0xff]  ;;  %v4925_v42 = vld [vmem:[%s6241_s1 + $0x130] sm:$0xff]  ;;  %v4924_v46 = vld [vmem:[%s6241_s1 + $0x128] sm:$0xff] }
  0x19   : > { %461 = vmatpush.bf16.msra.mxu0 %v4891_v12  ;;  %v4911_v37 = vld [vmem:[%s6241_s1 + $0xc0] sm:$0xff]  ;;  %v4933_v43 = vld [vmem:[%s6241_s1 + $0x170] sm:$0xff]  ;;  %v4932_v50 = vld [vmem:[%s6241_s1 + $0x168] sm:$0xff] }
  0x1a   : > { %474 = vmatpush.bf16.msra.mxu1 %v4899_v13  ;;  %v4941_v44 = vld [vmem:[%s6241_s1 + $0x1b0] sm:$0xff]  ;;  %v840_v52 = vld [vmem:[%s5316_s28] sm:$0xaa]  ;;  %v4940_v53 = vld [vmem:[%s6241_s1 + $0x1a8] sm:$0xff] }
  0x1b   : > { %487 = vmatpush.bf16.msra.mxu2 %v4907_v14  ;;  %v4949_v45 = vld [vmem:[%s6241_s1 + $0x1f0] sm:$0xff]  ;;  %v4948_v54 = vld [vmem:[%s6241_s1 + $0x1e8] sm:$0xff]  ;;  %v4923_v55 = vld [vmem:[%s6241_s1 + $0x120] sm:$0xff] }
  0x1c   : > { %500 = vmatpush.bf16.msra.mxu3 %v4915_v15  ;;  %v260_v30 = vld.sshfl [vmem:[#allocation1 + $0x10] sm:$0xff pattern:$0x73625140]  ;;  %v261_v31 = vld.sshfl [vmem:[#allocation1 + $0x18] sm:$0xff pattern:$0x73625140] }
  0x1d   : > { %462 = vmatpush.bf16.msra.mxu0 %v4890_v16  ;;  %v258_v32 = vld.sshfl [vmem:[#allocation1] sm:$0xff pattern:$0x73625140]  ;;  %v259_v33 = vld.sshfl [vmem:[#allocation1 + $0x8] sm:$0xff pattern:$0x73625140] }
  0x1e   : > { %475 = vmatpush.bf16.msra.mxu1 %v4898_v17  ;;  %578 = vst [vmem:[#allocation1] ss:$4 sm:$0xff] %v511_v29  ;;  %v4931_v56 = vld [vmem:[%s6241_s1 + $0x160] sm:$0xff]  ;;  %v4922_v59 = vld [vmem:[%s6241_s1 + $0x118] sm:$0xff]  ;;  %v4921_v63 = vld [vmem:[%s6241_s1 + $0x110] sm:$0xff] }
  0x1f   : > { %488 = vmatpush.bf16.msra.mxu2 %v4906_v18  ;;  %v4939_v57 = vld [vmem:[%s6241_s1 + $0x1a0] sm:$0xff]  ;;  %v4930_v60 = vld [vmem:[%s6241_s1 + $0x158] sm:$0xff]  ;;  %v4929_v0 = vld [vmem:[%s6241_s1 + $0x150] sm:$0xff] }
  0x20   : > { %501 = vmatpush.bf16.msra.mxu3 %v4914_v19  ;;  %v4947_v58 = vld [vmem:[%s6241_s1 + $0x1e0] sm:$0xff]  ;;  %v4938_v61 = vld [vmem:[%s6241_s1 + $0x198] sm:$0xff]  ;;  %v4937_v1 = vld [vmem:[%s6241_s1 + $0x190] sm:$0xff] }
  0x21   : > { %463 = vmatpush.bf16.msra.mxu0 %v4889_v21  ;;  %v4946_v62 = vld [vmem:[%s6241_s1 + $0x1d8] sm:$0xff]  ;;  %v4945_v2 = vld [vmem:[%s6241_s1 + $0x1d0] sm:$0xff]  ;;  %v4920_v3 = vld [vmem:[%s6241_s1 + $0x108] sm:$0xff] }
  0x22   : > { %476 = vmatpush.bf16.msra.mxu1 %v4897_v22  ;;  %v4928_v4 = vld [vmem:[%s6241_s1 + $0x148] sm:$0xff]  ;;  %v4919_v7 = vld [vmem:[%s6241_s1 + $0x100] sm:$0xff]  ;;  %v4958_v11 = vld [vmem:[%s6241_s1 + $0x238] sm:$0xff] }
  0x23   : > { %489 = vmatpush.bf16.msra.mxu2 %v4905_v23  ;;  %v4936_v5 = vld [vmem:[%s6241_s1 + $0x188] sm:$0xff]  ;;  %v4927_v8 = vld [vmem:[%s6241_s1 + $0x140] sm:$0xff]  ;;  %v4966_v12 = vld [vmem:[%s6241_s1 + $0x278] sm:$0xff] }
  0x24   : > { %502 = vmatpush.bf16.msra.mxu3 %v4913_v24  ;;  %v4944_v6 = vld [vmem:[%s6241_s1 + $0x1c8] sm:$0xff]  ;;  %v4935_v9 = vld [vmem:[%s6241_s1 + $0x180] sm:$0xff]  ;;  %v4974_v13 = vld [vmem:[%s6241_s1 + $0x2b8] sm:$0xff] }
  0x25   : > { %464 = vmatpush.bf16.msra.mxu0 %v4888_v25  ;;  %v5395_v47 = vld.sshfl [vmem:[#allocation1 + $0x10] sm:$0xff pattern:$0x73625140]  ;;  %v5397_v48 = vld.sshfl [vmem:[#allocation1 + $0x18] sm:$0xff pattern:$0x73625140] }
  0x26   : > { %477 = vmatpush.bf16.msra.mxu1 %v4896_v26  ;;  %v5399_v49 = vld.sshfl [vmem:[#allocation1] sm:$0xff pattern:$0x73625140]  ;;  %v5404_v51 = vld.sshfl [vmem:[#allocation1 + $0x8] sm:$0xff pattern:$0x73625140] }
  0x27   : > { %490 = vmatpush.bf16.msra.mxu2 %v4904_v27  ;;  %907 = vst [vmem:[#allocation1] ss:$4 sm:$0xff] %v840_v52  ;;  %v4943_v10 = vld [vmem:[%s6241_s1 + $0x1c0] sm:$0xff]  ;;  %v4982_v14 = vld [vmem:[%s6241_s1 + $0x2f8] sm:$0xff]  ;;  %v587_v15 = vshrl.u32 %v5395_v47, 16  ;;  %v589_v16 = vshrl.u32 %v5397_v48, 16 }
  0x28   : > { %503 = vmatpush.bf16.msra.mxu3 %v4912_v28  ;;  %v583_v17 = vshrl.u32 %v5399_v49, 16  ;;  %v585_v18 = vshrl.u32 %v5404_v51, 16  ;;  %v4957_v19 = vld [vmem:[%s6241_s1 + $0x230] sm:$0xff]  ;;  %v4956_v23 = vld [vmem:[%s6241_s1 + $0x228] sm:$0xff]  ;;  %v4955_v27 = vld [vmem:[%s6241_s1 + $0x220] sm:$0xff] }
  0x29   : > { %465 = vmatpush.bf16.msra.mxu0 %v4887_v34  ;;  %v4965_v20 = vld [vmem:[%s6241_s1 + $0x270] sm:$0xff]  ;;  %v4964_v24 = vld [vmem:[%s6241_s1 + $0x268] sm:$0xff]  ;;  %v4963_v28 = vld [vmem:[%s6241_s1 + $0x260] sm:$0xff] }
  0x2a   : > { %478 = vmatpush.bf16.msra.mxu1 %v4895_v35  ;;  %v4973_v21 = vld [vmem:[%s6241_s1 + $0x2b0] sm:$0xff]  ;;  %v4972_v25 = vld [vmem:[%s6241_s1 + $0x2a8] sm:$0xff]  ;;  %v4971_v29 = vld [vmem:[%s6241_s1 + $0x2a0] sm:$0xff] }
  0x2b   : > { %491 = vmatpush.bf16.msra.mxu2 %v4903_v36  ;;  %v4981_v22 = vld [vmem:[%s6241_s1 + $0x2f0] sm:$0xff]  ;;  %v4980_v26 = vld [vmem:[%s6241_s1 + $0x2e8] sm:$0xff]  ;;  %v4978_v34 = vld [vmem:[%s6241_s1 + $0x2d8] sm:$0xff] }
  0x2c   : > { %504 = vmatpush.bf16.msra.mxu3 %v4911_v37  ;;  %466 = vmatmul.bf16.vlgmr.msra.gmra.mxu0 %v258_v32  ;;  %v4962_v32 = vld [vmem:[%s6241_s1 + $0x258] sm:$0xff]  ;;  %v4953_v35 = vld [vmem:[%s6241_s1 + $0x210] sm:$0xff]  ;;  %v3727_v47 = vld [vmem:[%s5316_s28 + $0x8] sm:$0x55] }
  0x2d   : > { %787 = vmatpush.bf16.msrb.mxu0 %v4926_v38  ;;  %479 = vmatmul.bf16.vlgmr.msra.gmra.mxu1 %v259_v33  ;;  %v4970_v33 = vld [vmem:[%s6241_s1 + $0x298] sm:$0xff]  ;;  %v4961_v36 = vld [vmem:[%s6241_s1 + $0x250] sm:$0xff]  ;;  %v4951_v48 = vld [vmem:[%s6241_s1 + $0x200] sm:$0xff] }
  0x2e   : > { %800 = vmatpush.bf16.msrb.mxu1 %v4934_v39  ;;  %492 = vmatmul.bf16.vlgmr.msra.gmra.mxu2 %v260_v30  ;;  %v4979_v30 = vld [vmem:[%s6241_s1 + $0x2e0] sm:$0xff]  ;;  %v4969_v37 = vld [vmem:[%s6241_s1 + $0x290] sm:$0xff]  ;;  %v4952_v39 = vld [vmem:[%s6241_s1 + $0x208] sm:$0xff] }
  0x2f   : > { %813 = vmatpush.bf16.msrb.mxu2 %v4942_v40  ;;  %505 = vmatmul.bf16.vlgmr.msra.gmra.mxu3 %v261_v31  ;;  %v4954_v31 = vld [vmem:[%s6241_s1 + $0x218] sm:$0xff]  ;;  %v4977_v38 = vld [vmem:[%s6241_s1 + $0x2d0] sm:$0xff]  ;;  %v4960_v40 = vld [vmem:[%s6241_s1 + $0x248] sm:$0xff] }
  0x30   : > { %826 = vmatpush.bf16.msrb.mxu3 %v4950_v41  ;;  %v4968_v41 = vld [vmem:[%s6241_s1 + $0x288] sm:$0xff]  ;;  %v4959_v49 = vld [vmem:[%s6241_s1 + $0x240] sm:$0xff]  ;;  %v4990_v52 = vld [vmem:[%s6241_s1 + $0x338] sm:$0xff] }
  0x31   : > { %788 = vmatpush.bf16.msrb.mxu0 %v4925_v42  ;;  %v4976_v42 = vld [vmem:[%s6241_s1 + $0x2c8] sm:$0xff]  ;;  %v4975_v51 = vld [vmem:[%s6241_s1 + $0x2c0] sm:$0xff] }
  0x32   : > { %801 = vmatpush.bf16.msrb.mxu1 %v4933_v43  ;;  %v912_v43 = vld.sshfl [vmem:[#allocation1 + $0x10] sm:$0xff pattern:$0x73625140] }
  0x33   : > { %814 = vmatpush.bf16.msrb.mxu2 %v4941_v44  ;;  %v914_v44 = vld.sshfl [vmem:[#allocation1 + $0x18] sm:$0xff pattern:$0x73625140] }
  0x34   : > { %827 = vmatpush.bf16.msrb.mxu3 %v4949_v45  ;;  %v908_v45 = vld.sshfl [vmem:[#allocation1] sm:$0xff pattern:$0x73625140] }
  0x35   : > { %789 = vmatpush.bf16.msrb.mxu0 %v4924_v46  ;;  %v910_v46 = vld.sshfl [vmem:[#allocation1 + $0x8] sm:$0xff pattern:$0x73625140] }
  0x36   : > { %802 = vmatpush.bf16.msrb.mxu1 %v4932_v50  ;;  %1240 = vst [vmem:[#allocation1] ss:$4 sm:$0xff] %v3727_v47  ;;  %v4967_v50 = vld [vmem:[%s6241_s1 + $0x280] sm:$0xff] }
  0x37   : > { %815 = vmatpush.bf16.msrb.mxu2 %v4940_v53  ;;  %v4998_v53 = vld [vmem:[%s6241_s1 + $0x378] sm:$0xff]  ;;  %v5027_v47 = vld [vmem:[%s6241_s1 + $0x460] sm:$0xff] }
  0x38   : > { %828 = vmatpush.bf16.msrb.mxu3 %v4948_v54  ;;  %v5006_v54 = vld [vmem:[%s6241_s1 + $0x3b8] sm:$0xff] }
  0x39   : > { %790 = vmatpush.bf16.msrb.mxu0 %v4923_v55  ;;  %v5014_v55 = vld [vmem:[%s6241_s1 + $0x3f8] sm:$0xff] }
  0x3a   : > { %803 = vmatpush.bf16.msrb.mxu1 %v4931_v56  ;;  %v918_v56 = vrot.slane %v912_v43, 1  ;;  %v5028_v43 = vld [vmem:[%s6241_s1 + $0x468] sm:$0xff] }
  0x3b   : > { %816 = vmatpush.bf16.msrb.mxu2 %v4939_v57  ;;  %v919_v57 = vrot.slane %v914_v44, 1  ;;  %v5036_v44 = vld [vmem:[%s6241_s1 + $0x4a8] sm:$0xff] }
  0x3c   : > { %829 = vmatpush.bf16.msrb.mxu3 %v4947_v58  ;;  %v916_v58 = vrot.slane %v908_v45, 1  ;;  %v5044_v45 = vld [vmem:[%s6241_s1 + $0x4e8] sm:$0xff] }
  0x3d   : > { %791 = vmatpush.bf16.msrb.mxu0 %v4922_v59  ;;  %v917_v59 = vrot.slane %v910_v46, 1  ;;  %v5019_v46 = vld [vmem:[%s6241_s1 + $0x420] sm:$0xff] }
  0x3e   : > { %804 = vmatpush.bf16.msrb.mxu1 %v4930_v60  ;;  %v4989_v60 = vld [vmem:[%s6241_s1 + $0x330] sm:$0xff] }
  0x3f   : > { %817 = vmatpush.bf16.msrb.mxu2 %v4938_v61  ;;  %v4997_v61 = vld [vmem:[%s6241_s1 + $0x370] sm:$0xff] }
  0x40   : > { %830 = vmatpush.bf16.msrb.mxu3 %v4946_v62  ;;  %v3920_v62 = vld [vmem:[%s5316_s28 + $0x8] sm:$0x55] }
  0x41   : > { %792 = vmatpush.bf16.msrb.mxu0 %v4921_v63  ;;  %v5005_v63 = vld [vmem:[%s6241_s1 + $0x3b0] sm:$0xff] }
  0x42   : > { %805 = vmatpush.bf16.msrb.mxu1 %v4929_v0  ;;  %v5013_v0 = vld [vmem:[%s6241_s1 + $0x3f0] sm:$0xff] }
  0x43   : > { %818 = vmatpush.bf16.msrb.mxu2 %v4937_v1  ;;  %v5599_v1 = vld.sshfl [vmem:[#allocation1 + $0x10] sm:$0xff pattern:$0x73625140] }
  0x44   : > { %831 = vmatpush.bf16.msrb.mxu3 %v4945_v2  ;;  %v5601_v2 = vld.sshfl [vmem:[#allocation1 + $0x18] sm:$0xff pattern:$0x73625140] }
  0x45   : > { %793 = vmatpush.bf16.msrb.mxu0 %v4920_v3  ;;  %v5603_v3 = vld.sshfl [vmem:[#allocation1] sm:$0xff pattern:$0x73625140] }
  0x46   : > { %806 = vmatpush.bf16.msrb.mxu1 %v4928_v4  ;;  %v5605_v4 = vld.sshfl [vmem:[#allocation1 + $0x8] sm:$0xff pattern:$0x73625140] }
  0x47   : > { %819 = vmatpush.bf16.msrb.mxu2 %v4936_v5  ;;  %v4988_v5 = vld [vmem:[%s6241_s1 + $0x328] sm:$0xff]  ;;  %1561 = vst [vmem:[#allocation1] ss:$4 sm:$0xff] %v3920_v62  ;;  %v5015_v62 = vld [vmem:[%s6241_s1 + $0x400] sm:$0xff] }
  0x48   : > { %832 = vmatpush.bf16.msrb.mxu3 %v4944_v6  ;;  %v4996_v6 = vld [vmem:[%s6241_s1 + $0x368] sm:$0xff] }
  0x49   : > { %794 = vmatpush.bf16.msrb.mxu0 %v4919_v7  ;;  %v5004_v7 = vld [vmem:[%s6241_s1 + $0x3a8] sm:$0xff] }
  0x4a   : > { %807 = vmatpush.bf16.msrb.mxu1 %v4927_v8  ;;  %v5012_v8 = vld [vmem:[%s6241_s1 + $0x3e8] sm:$0xff] }
  0x4b   : > { %820 = vmatpush.bf16.msrb.mxu2 %v4935_v9  ;;  %v4987_v9 = vld [vmem:[%s6241_s1 + $0x320] sm:$0xff] }
  0x4c   : > { %833 = vmatpush.bf16.msrb.mxu3 %v4943_v10  ;;  %795 = vmatmul.bf16.vlgmr.msrb.gmra.mxu0 %v583_v17  ;;  %v4995_v10 = vld [vmem:[%s6241_s1 + $0x360] sm:$0xff]  ;;  %v4985_v17 = vld [vmem:[%s6241_s1 + $0x310] sm:$0xff] }
  0x4d   : > { %1116 = vmatpush.bf16.msra.mxu0 %v4958_v11  ;;  %808 = vmatmul.bf16.vlgmr.msrb.gmra.mxu1 %v585_v18  ;;  %v5003_v11 = vld [vmem:[%s6241_s1 + $0x3a0] sm:$0xff]  ;;  %v4993_v18 = vld [vmem:[%s6241_s1 + $0x350] sm:$0xff] }
  0x4e   : > { %1129 = vmatpush.bf16.msra.mxu1 %v4966_v12  ;;  %821 = vmatmul.bf16.vlgmr.msrb.gmra.mxu2 %v587_v15  ;;  %v5011_v12 = vld [vmem:[%s6241_s1 + $0x3e0] sm:$0xff]  ;;  %v5002_v15 = vld [vmem:[%s6241_s1 + $0x398] sm:$0xff] }
  0x4f   : > { %1142 = vmatpush.bf16.msra.mxu2 %v4974_v13  ;;  %834 = vmatmul.bf16.vlgmr.msrb.gmra.mxu3 %v589_v16  ;;  %v4986_v13 = vld [vmem:[%s6241_s1 + $0x318] sm:$0xff] }
  0x50   : > { %1155 = vmatpush.bf16.msra.mxu3 %v4982_v14  ;;  %v4994_v14 = vld [vmem:[%s6241_s1 + $0x358] sm:$0xff] }
  0x51   : > { %1117 = vmatpush.bf16.msra.mxu0 %v4957_v19  ;;  %v5010_v16 = vld [vmem:[%s6241_s1 + $0x3d8] sm:$0xff]  ;;  %v5001_v19 = vld [vmem:[%s6241_s1 + $0x390] sm:$0xff] }
  0x52   : > { %1130 = vmatpush.bf16.msra.mxu1 %v4965_v20  ;;  %v5009_v20 = vld [vmem:[%s6241_s1 + $0x3d0] sm:$0xff] }
  0x53   : > { %1143 = vmatpush.bf16.msra.mxu2 %v4973_v21  ;;  %v4984_v21 = vld [vmem:[%s6241_s1 + $0x308] sm:$0xff] }
  0x54   : > { %1156 = vmatpush.bf16.msra.mxu3 %v4981_v22  ;;  %v4992_v22 = vld [vmem:[%s6241_s1 + $0x348] sm:$0xff] }
  0x55   : > { %1118 = vmatpush.bf16.msra.mxu0 %v4956_v23  ;;  %v5000_v23 = vld [vmem:[%s6241_s1 + $0x388] sm:$0xff] }
  0x56   : > { %1131 = vmatpush.bf16.msra.mxu1 %v4964_v24  ;;  %v5008_v24 = vld [vmem:[%s6241_s1 + $0x3c8] sm:$0xff] }
  0x57   : > { %1144 = vmatpush.bf16.msra.mxu2 %v4972_v25  ;;  %v4983_v25 = vld [vmem:[%s6241_s1 + $0x300] sm:$0xff] }
  0x58   : > { %1157 = vmatpush.bf16.msra.mxu3 %v4980_v26  ;;  %v4991_v26 = vld [vmem:[%s6241_s1 + $0x340] sm:$0xff] }
  0x59   : > { %1119 = vmatpush.bf16.msra.mxu0 %v4955_v27  ;;  %v4999_v27 = vld [vmem:[%s6241_s1 + $0x380] sm:$0xff] }
  0x5a   : > { %1132 = vmatpush.bf16.msra.mxu1 %v4963_v28  ;;  %v5007_v28 = vld [vmem:[%s6241_s1 + $0x3c0] sm:$0xff] }
  0x5b   : > { %1145 = vmatpush.bf16.msra.mxu2 %v4971_v29  ;;  %v5022_v29 = vld [vmem:[%s6241_s1 + $0x438] sm:$0xff] }
  0x5c   : > { %1158 = vmatpush.bf16.msra.mxu3 %v4979_v30  ;;  %v5030_v30 = vld [vmem:[%s6241_s1 + $0x478] sm:$0xff] }
  0x5d   : > { %1120 = vmatpush.bf16.msra.mxu0 %v4954_v31  ;;  %v5038_v31 = vld [vmem:[%s6241_s1 + $0x4b8] sm:$0xff] }
  0x5e   : > { %1133 = vmatpush.bf16.msra.mxu1 %v4962_v32  ;;  %v5046_v32 = vld [vmem:[%s6241_s1 + $0x4f8] sm:$0xff] }
  0x5f   : > { %1146 = vmatpush.bf16.msra.mxu2 %v4970_v33  ;;  %v4113_v33 = vld [vmem:[%s5316_s28 + $0x8] sm:$0xaa] }
  0x60   : > { %1159 = vmatpush.bf16.msra.mxu3 %v4978_v34  ;;  %v5021_v34 = vld [vmem:[%s6241_s1 + $0x430] sm:$0xff] }
  0x61   : > { %1121 = vmatpush.bf16.msra.mxu0 %v4953_v35  ;;  %v5029_v35 = vld [vmem:[%s6241_s1 + $0x470] sm:$0xff] }
  0x62   : > { %1134 = vmatpush.bf16.msra.mxu1 %v4961_v36  ;;  %v5037_v36 = vld [vmem:[%s6241_s1 + $0x4b0] sm:$0xff] }
  0x63   : > { %1147 = vmatpush.bf16.msra.mxu2 %v4969_v37  ;;  %v5045_v37 = vld [vmem:[%s6241_s1 + $0x4f0] sm:$0xff] }
  0x64   : > { %1160 = vmatpush.bf16.msra.mxu3 %v4977_v38  ;;  %v5704_v38 = vld.sshfl [vmem:[#allocation1 + $0x10] sm:$0xff pattern:$0x73625140] }
  0x65   : > { %1122 = vmatpush.bf16.msra.mxu0 %v4952_v39  ;;  %v5706_v39 = vld.sshfl [vmem:[#allocation1 + $0x18] sm:$0xff pattern:$0x73625140] }
  0x66   : > { %1135 = vmatpush.bf16.msra.mxu1 %v4960_v40  ;;  %v5710_v40 = vld.sshfl [vmem:[#allocation1] sm:$0xff pattern:$0x73625140] }
  0x67   : > { %1148 = vmatpush.bf16.msra.mxu2 %v4968_v41  ;;  %v5712_v41 = vld.sshfl [vmem:[#allocation1 + $0x8] sm:$0xff pattern:$0x73625140] }
  0x68   : > { %1161 = vmatpush.bf16.msra.mxu3 %v4976_v42  ;;  %1890 = vst [vmem:[#allocation1] ss:$4 sm:$0xff] %v4113_v33  ;;  %v5020_v42 = vld [vmem:[%s6241_s1 + $0x428] sm:$0xff]  ;;  %v5074_v33 = vld [vmem:[%s6241_s1 + $0x5d8] sm:$0xff] }
  0x69   : > { %1123 = vmatpush.bf16.msra.mxu0 %v4951_v48  ;;  %v5035_v48 = vld [vmem:[%s6241_s1 + $0x4a0] sm:$0xff] }
  0x6a   : > { %1136 = vmatpush.bf16.msra.mxu1 %v4959_v49  ;;  %v5043_v49 = vld [vmem:[%s6241_s1 + $0x4e0] sm:$0xff] }
  0x6b   : > { %1149 = vmatpush.bf16.msra.mxu2 %v4967_v50  ;;  %v5018_v50 = vld [vmem:[%s6241_s1 + $0x418] sm:$0xff] }
  0x6c   : > { %1162 = vmatpush.bf16.msra.mxu3 %v4975_v51  ;;  %1124 = vmatmul.bf16.vlgmr.msra.gmra.mxu0 %v916_v58  ;;  %v5026_v51 = vld [vmem:[%s6241_s1 + $0x458] sm:$0xff]  ;;  %v5016_v58 = vld [vmem:[%s6241_s1 + $0x408] sm:$0xff] }
  0x6d   : > { %1441 = vmatpush.bf16.msrb.mxu0 %v4990_v52  ;;  %1137 = vmatmul.bf16.vlgmr.msra.gmra.mxu1 %v917_v59  ;;  %v5034_v52 = vld [vmem:[%s6241_s1 + $0x498] sm:$0xff]  ;;  %v5024_v59 = vld [vmem:[%s6241_s1 + $0x448] sm:$0xff] }
  0x6e   : > { %1454 = vmatpush.bf16.msrb.mxu1 %v4998_v53  ;;  %1150 = vmatmul.bf16.vlgmr.msra.gmra.mxu2 %v918_v56  ;;  %v5042_v53 = vld [vmem:[%s6241_s1 + $0x4d8] sm:$0xff]  ;;  %v5033_v56 = vld [vmem:[%s6241_s1 + $0x490] sm:$0xff] }
  0x6f   : > { %1467 = vmatpush.bf16.msrb.mxu2 %v5006_v54  ;;  %1163 = vmatmul.bf16.vlgmr.msra.gmra.mxu3 %v919_v57  ;;  %v5017_v54 = vld [vmem:[%s6241_s1 + $0x410] sm:$0xff] }
  0x70   : > { %1480 = vmatpush.bf16.msrb.mxu3 %v5014_v55  ;;  %v5025_v55 = vld [vmem:[%s6241_s1 + $0x450] sm:$0xff] }
  0x71   : > { %1442 = vmatpush.bf16.msrb.mxu0 %v4989_v60  ;;  %v5041_v57 = vld [vmem:[%s6241_s1 + $0x4d0] sm:$0xff]  ;;  %v5032_v60 = vld [vmem:[%s6241_s1 + $0x488] sm:$0xff] }
  0x72   : > { %1455 = vmatpush.bf16.msrb.mxu1 %v4997_v61  ;;  %v5040_v61 = vld [vmem:[%s6241_s1 + $0x4c8] sm:$0xff] }
  0x73   : > { %1468 = vmatpush.bf16.msrb.mxu2 %v5005_v63  ;;  %v5023_v63 = vld [vmem:[%s6241_s1 + $0x440] sm:$0xff] }
  0x74   : > { %1481 = vmatpush.bf16.msrb.mxu3 %v5013_v0  ;;  %v5031_v0 = vld [vmem:[%s6241_s1 + $0x480] sm:$0xff] }
  0x75   : > { %1443 = vmatpush.bf16.msrb.mxu0 %v4988_v5  ;;  %v5078_v5 = vld [vmem:[%s6241_s1 + $0x5f8] sm:$0xff] }
  0x76   : > { %1456 = vmatpush.bf16.msrb.mxu1 %v4996_v6  ;;  %v1570_v6 = vshrl.u32 %v5704_v38, 16  ;;  %v5057_v38 = vld [vmem:[%s6241_s1 + $0x550] sm:$0xff] }
  0x77   : > { %1469 = vmatpush.bf16.msrb.mxu2 %v5004_v7  ;;  %v1572_v7 = vshrl.u32 %v5706_v39, 16 }
  0x78   : > { %1482 = vmatpush.bf16.msrb.mxu3 %v5012_v8  ;;  %v4306_v8 = vld [vmem:[%s5316_s28 + $0x10] sm:$0x55] }
  0x79   : > { %1444 = vmatpush.bf16.msrb.mxu0 %v4987_v9  ;;  %v5053_v9 = vld [vmem:[%s6241_s1 + $0x530] sm:$0xff] }
  0x7a   : > { %1457 = vmatpush.bf16.msrb.mxu1 %v4995_v10  ;;  %v1566_v10 = vshrl.u32 %v5710_v40, 16 }
  0x7b   : > { %1470 = vmatpush.bf16.msrb.mxu2 %v5003_v11  ;;  %v1568_v11 = vshrl.u32 %v5712_v41, 16 }
  0x7c   : > { %1483 = vmatpush.bf16.msrb.mxu3 %v5011_v12  ;;  %v5061_v12 = vld [vmem:[%s6241_s1 + $0x570] sm:$0xff] }
  0x7d   : > { %1445 = vmatpush.bf16.msrb.mxu0 %v4986_v13  ;;  %v5069_v13 = vld [vmem:[%s6241_s1 + $0x5b0] sm:$0xff] }
  0x7e   : > { %1458 = vmatpush.bf16.msrb.mxu1 %v4994_v14  ;;  %v5077_v14 = vld [vmem:[%s6241_s1 + $0x5f0] sm:$0xff] }
  0x7f   : > { %1471 = vmatpush.bf16.msrb.mxu2 %v5002_v15  ;;  %v5817_v15 = vld.sshfl [vmem:[#allocation1 + $0x10] sm:$0xff pattern:$0x73625140] }
  0x80   : > { %1484 = vmatpush.bf16.msrb.mxu3 %v5010_v16  ;;  %v5819_v16 = vld.sshfl [vmem:[#allocation1 + $0x18] sm:$0xff pattern:$0x73625140] }
  0x81   : > { %1446 = vmatpush.bf16.msrb.mxu0 %v4985_v17  ;;  %v5821_v17 = vld.sshfl [vmem:[#allocation1] sm:$0xff pattern:$0x73625140] }
  0x82   : > { %1459 = vmatpush.bf16.msrb.mxu1 %v4993_v18  ;;  %v5823_v18 = vld.sshfl [vmem:[#allocation1 + $0x8] sm:$0xff pattern:$0x73625140] }
  0x83   : > { %1472 = vmatpush.bf16.msrb.mxu2 %v5001_v19  ;;  %2223 = vst [vmem:[#allocation1] ss:$4 sm:$0xff] %v4306_v8  ;;  %v5052_v19 = vld [vmem:[%s6241_s1 + $0x528] sm:$0xff] }
  0x84   : > { %1485 = vmatpush.bf16.msrb.mxu3 %v5009_v20  ;;  %v5060_v20 = vld [vmem:[%s6241_s1 + $0x568] sm:$0xff] }
  0x85   : > { %1447 = vmatpush.bf16.msrb.mxu0 %v4984_v21  ;;  %v5068_v21 = vld [vmem:[%s6241_s1 + $0x5a8] sm:$0xff] }
  0x86   : > { %1460 = vmatpush.bf16.msrb.mxu1 %v4992_v22  ;;  %v5076_v22 = vld [vmem:[%s6241_s1 + $0x5e8] sm:$0xff] }
  0x87   : > { %1473 = vmatpush.bf16.msrb.mxu2 %v5000_v23  ;;  %v5051_v23 = vld [vmem:[%s6241_s1 + $0x520] sm:$0xff]  ;;  %v5092_v8 = vld [vmem:[%s6241_s1 + $0x668] sm:$0xff] }
  0x88   : > { %1486 = vmatpush.bf16.msrb.mxu3 %v5008_v24  ;;  %v5059_v24 = vld [vmem:[%s6241_s1 + $0x560] sm:$0xff] }
  0x89   : > { %1448 = vmatpush.bf16.msrb.mxu0 %v4983_v25 }
  0x8a   : > { %1461 = vmatpush.bf16.msrb.mxu1 %v4991_v26 }
  0x8b   : > { %1474 = vmatpush.bf16.msrb.mxu2 %v4999_v27  ;;  %v5067_v27 = vld [vmem:[%s6241_s1 + $0x5a0] sm:$0xff] }
  0x8c   : > { %1487 = vmatpush.bf16.msrb.mxu3 %v5007_v28  ;;  %1449 = vmatmul.bf16.vlgmr.msrb.gmra.mxu0 %v5603_v3  ;;  %v5062_v3 = vld [vmem:[%s6241_s1 + $0x578] sm:$0xff]  ;;  %v5075_v28 = vld [vmem:[%s6241_s1 + $0x5e0] sm:$0xff] }
  0x8d   : > { %1770 = vmatpush.bf16.msra.mxu0 %v5022_v29  ;;  %1462 = vmatmul.bf16.vlgmr.msrb.gmra.mxu1 %v5605_v4  ;;  %v5070_v4 = vld [vmem:[%s6241_s1 + $0x5b8] sm:$0xff] }
  0x8e   : > { %1783 = vmatpush.bf16.msra.mxu1 %v5030_v30  ;;  %1475 = vmatmul.bf16.vlgmr.msrb.gmra.mxu2 %v5599_v1  ;;  %v5039_v1 = vld [vmem:[%s6241_s1 + $0x4c0] sm:$0xff]  ;;  %v5050_v30 = vld [vmem:[%s6241_s1 + $0x518] sm:$0xff] }
  0x8f   : > { %1796 = vmatpush.bf16.msra.mxu2 %v5038_v31  ;;  %1488 = vmatmul.bf16.vlgmr.msrb.gmra.mxu3 %v5601_v2  ;;  %v5054_v2 = vld [vmem:[%s6241_s1 + $0x538] sm:$0xff] }
  0x90   : > { %1809 = vmatpush.bf16.msra.mxu3 %v5046_v32  ;;  %v5058_v31 = vld [vmem:[%s6241_s1 + $0x558] sm:$0xff] }
  0x91   : > { %1771 = vmatpush.bf16.msra.mxu0 %v5021_v34  ;;  %v5066_v32 = vld [vmem:[%s6241_s1 + $0x598] sm:$0xff] }
  0x92   : > { %1784 = vmatpush.bf16.msra.mxu1 %v5029_v35 }
  0x93   : > { %1797 = vmatpush.bf16.msra.mxu2 %v5037_v36 }
  0x94   : > { %1810 = vmatpush.bf16.msra.mxu3 %v5045_v37  ;;  %v5049_v37 = vld [vmem:[%s6241_s1 + $0x510] sm:$0xff] }
  0x95   : > { %1772 = vmatpush.bf16.msra.mxu0 %v5020_v42  ;;  %v5065_v42 = vld [vmem:[%s6241_s1 + $0x590] sm:$0xff] }
  0x96   : > { %1785 = vmatpush.bf16.msra.mxu1 %v5028_v43  ;;  %v5073_v43 = vld [vmem:[%s6241_s1 + $0x5d0] sm:$0xff] }
  0x97   : > { %1798 = vmatpush.bf16.msra.mxu2 %v5036_v44  ;;  %v5048_v44 = vld [vmem:[%s6241_s1 + $0x508] sm:$0xff] }
  0x98   : > { %1811 = vmatpush.bf16.msra.mxu3 %v5044_v45  ;;  %v5056_v45 = vld [vmem:[%s6241_s1 + $0x548] sm:$0xff] }
  0x99   : > { %1773 = vmatpush.bf16.msra.mxu0 %v5019_v46  ;;  %v5064_v46 = vld [vmem:[%s6241_s1 + $0x588] sm:$0xff] }
  0x9a   : > { %1786 = vmatpush.bf16.msra.mxu1 %v5027_v47  ;;  %v5072_v47 = vld [vmem:[%s6241_s1 + $0x5c8] sm:$0xff] }
  0x9b   : > { %1799 = vmatpush.bf16.msra.mxu2 %v5035_v48 }
  0x9c   : > { %1812 = vmatpush.bf16.msra.mxu3 %v5043_v49 }
  0x9d   : > { %1774 = vmatpush.bf16.msra.mxu0 %v5018_v50  ;;  %v5047_v50 = vld [vmem:[%s6241_s1 + $0x500] sm:$0xff] }
  0x9e   : > { %1787 = vmatpush.bf16.msra.mxu1 %v5026_v51  ;;  %v5055_v51 = vld [vmem:[%s6241_s1 + $0x540] sm:$0xff] }
  0x9f   : > { %1800 = vmatpush.bf16.msra.mxu2 %v5034_v52  ;;  %v5063_v52 = vld [vmem:[%s6241_s1 + $0x580] sm:$0xff] }
  0xa0   : > { %1813 = vmatpush.bf16.msra.mxu3 %v5042_v53  ;;  %v5071_v53 = vld [vmem:[%s6241_s1 + $0x5c0] sm:$0xff] }
  0xa1   : > { %1775 = vmatpush.bf16.msra.mxu0 %v5017_v54  ;;  %v5086_v54 = vld [vmem:[%s6241_s1 + $0x638] sm:$0xff] }
  0xa2   : > { %1788 = vmatpush.bf16.msra.mxu1 %v5025_v55  ;;  %v5094_v55 = vld [vmem:[%s6241_s1 + $0x678] sm:$0xff] }
  0xa3   : > { %1801 = vmatpush.bf16.msra.mxu2 %v5033_v56  ;;  %v5102_v56 = vld [vmem:[%s6241_s1 + $0x6b8] sm:$0xff] }
  0xa4   : > { %1814 = vmatpush.bf16.msra.mxu3 %v5041_v57  ;;  %v5110_v57 = vld [vmem:[%s6241_s1 + $0x6f8] sm:$0xff] }
  0xa5   : > { %1776 = vmatpush.bf16.msra.mxu0 %v5016_v58  ;;  %v1901_v58 = vrot.slane %v5817_v15, 1  ;;  %v5099_v15 = vld [vmem:[%s6241_s1 + $0x6a0] sm:$0xff] }
  0xa6   : > { %1789 = vmatpush.bf16.msra.mxu1 %v5024_v59  ;;  %v1902_v59 = vrot.slane %v5819_v16, 1  ;;  %v5107_v16 = vld [vmem:[%s6241_s1 + $0x6e0] sm:$0xff] }
  0xa7   : > { %1802 = vmatpush.bf16.msra.mxu2 %v5032_v60  ;;  %v1899_v60 = vrot.slane %v5821_v17, 1 }
  0xa8   : > { %1815 = vmatpush.bf16.msra.mxu3 %v5040_v61  ;;  %v1900_v61 = vrot.slane %v5823_v18, 1  ;;  %v5082_v18 = vld [vmem:[%s6241_s1 + $0x618] sm:$0xff] }
  0xa9   : > { %1777 = vmatpush.bf16.msra.mxu0 %v5015_v62  ;;  %v467_v25 = vpop.f32.mrf.mxu0  ;;  %v5085_v62 = vld [vmem:[%s6241_s1 + $0x630] sm:$0xff] }
  0xaa   : > { %1790 = vmatpush.bf16.msra.mxu1 %v5023_v63  ;;  %v480_v26 = vpop.f32.mrf.mxu1  ;;  %v5093_v63 = vld [vmem:[%s6241_s1 + $0x670] sm:$0xff] }
  0xab   : > { %1803 = vmatpush.bf16.msra.mxu2 %v5031_v0  ;;  %v481_v29 = vadd.f32 %v480_v26, %v467_v25  ;;  %v4499_v0 = vld [vmem:[%s5316_s28 + $0x10] sm:$0x55] }
  0xac   : > { %1816 = vmatpush.bf16.msra.mxu3 %v5039_v1  ;;  %1778 = vmatmul.bf16.vlgmr.msra.gmra.mxu0 %v1566_v10  ;;  %v5101_v1 = vld [vmem:[%s6241_s1 + $0x6b0] sm:$0xff]  ;;  %v5108_v10 = vld [vmem:[%s6241_s1 + $0x6e8] sm:$0xff] }
  0xad   : > { %2099 = vmatpush.bf16.msrb.mxu0 %v5054_v2  ;;  %1791 = vmatmul.bf16.vlgmr.msra.gmra.mxu1 %v1568_v11  ;;  %v5109_v2 = vld [vmem:[%s6241_s1 + $0x6f0] sm:$0xff]  ;;  %v5083_v11 = vld [vmem:[%s6241_s1 + $0x620] sm:$0xff] }
  0xae   : > { %2112 = vmatpush.bf16.msrb.mxu1 %v5062_v3  ;;  %1804 = vmatmul.bf16.vlgmr.msra.gmra.mxu2 %v1570_v6  ;;  %v5928_v3 = vld.sshfl [vmem:[#allocation1 + $0x10] sm:$0xff pattern:$0x73625140]  ;;  %v5934_v6 = vld.sshfl [vmem:[#allocation1 + $0x8] sm:$0xff pattern:$0x73625140] }
  0xaf   : > { %2125 = vmatpush.bf16.msrb.mxu2 %v5070_v4  ;;  %1817 = vmatmul.bf16.vlgmr.msra.gmra.mxu3 %v1572_v7  ;;  %v5930_v4 = vld.sshfl [vmem:[#allocation1 + $0x18] sm:$0xff pattern:$0x73625140]  ;;  %v5084_v7 = vld [vmem:[%s6241_s1 + $0x628] sm:$0xff] }
  0xb0   : > { %2138 = vmatpush.bf16.msrb.mxu3 %v5078_v5  ;;  %v5932_v5 = vld.sshfl [vmem:[#allocation1] sm:$0xff pattern:$0x73625140] }
  0xb1   : > { %2100 = vmatpush.bf16.msrb.mxu0 %v5053_v9  ;;  %v493_v34 = vpop.f32.mrf.mxu2  ;;  %v469_v40 = vpop.f32.mrf.mxu0  ;;  %2544 = vst [vmem:[#allocation1] ss:$4 sm:$0xff] %v4499_v0  ;;  %v5100_v9 = vld [vmem:[%s6241_s1 + $0x6a8] sm:$0xff] }
  0xb2   : > { %2113 = vmatpush.bf16.msrb.mxu1 %v5061_v12  ;;  %v506_v35 = vpop.f32.mrf.mxu3  ;;  %v494_v36 = vadd.f32 %v493_v34, %v481_v29  ;;  %v482_v41 = vpop.f32.mrf.mxu1  ;;  %v5091_v12 = vld [vmem:[%s6241_s1 + $0x660] sm:$0xff]  ;;  %v5089_v29 = vld [vmem:[%s6241_s1 + $0x650] sm:$0xff] }
  0xb3   : > { %2126 = vmatpush.bf16.msrb.mxu2 %v5069_v13  ;;  %v5079_v41 = vld [vmem:[%s6241_s1 + $0x600] sm:$0xff] }
  0xb4   : > { %2139 = vmatpush.bf16.msrb.mxu3 %v5077_v14  ;;  %v5867_v39 = vadd.f32 %v506_v35, %v494_v36  ;;  %v5080_v35 = vld [vmem:[%s6241_s1 + $0x608] sm:$0xff] }
  0xb5   : > { %2101 = vmatpush.bf16.msrb.mxu0 %v5052_v19  ;;  %v5090_v19 = vld [vmem:[%s6241_s1 + $0x658] sm:$0xff]  ;;  %v5088_v36 = vld [vmem:[%s6241_s1 + $0x648] sm:$0xff] }
  0xb6   : > { %2114 = vmatpush.bf16.msrb.mxu1 %v5060_v20  ;;  %v187_v20 = vld [vmem:[%s6242_s2] sm:$0x1] }
  0xb7   : > { %2127 = vmatpush.bf16.msrb.mxu2 %v5068_v21  ;;  %v5098_v21 = vld [vmem:[%s6241_s1 + $0x698] sm:$0xff]  ;;  %v510_v26 = vadd.f32 %v5867_v39, %v187_v20  ;;  %v5112_v20 = vld [vmem:[%s6241_s1 + $0x708] sm:$0xff] }
  0xb8   : > { %2140 = vmatpush.bf16.msrb.mxu3 %v5076_v22  ;;  %v5106_v22 = vld [vmem:[%s6241_s1 + $0x6d8] sm:$0xff] }
  0xb9   : > { %2102 = vmatpush.bf16.msrb.mxu0 %v5051_v23  ;;  %v495_v48 = vpop.f32.mrf.mxu2 }
  0xba   : > { %2115 = vmatpush.bf16.msrb.mxu1 %v5059_v24  ;;  %v508_v49 = vpop.f32.mrf.mxu3  ;;  %v5142_v48 = vld [vmem:[%s6241_s1 + $0x7f8] sm:$0xff] }
  0xbb   : > { %2128 = vmatpush.bf16.msrb.mxu2 %v5067_v27  ;;  %v4692_v49 = vld [vmem:[%s5316_s28 + $0x10] sm:$0xaa] }
  0xbc   : > { %2141 = vmatpush.bf16.msrb.mxu3 %v5075_v28  ;;  %v5081_v28 = vld [vmem:[%s6241_s1 + $0x610] sm:$0xff] }
  0xbd   : > { %2103 = vmatpush.bf16.msrb.mxu0 %v5050_v30 }
  0xbe   : > { %2116 = vmatpush.bf16.msrb.mxu1 %v5058_v31 }
  0xbf   : > { %2129 = vmatpush.bf16.msrb.mxu2 %v5066_v32  ;;  %v5097_v32 = vld [vmem:[%s6241_s1 + $0x690] sm:$0xff] }
  0xc0   : > { %2142 = vmatpush.bf16.msrb.mxu3 %v5074_v33  ;;  %v5105_v33 = vld [vmem:[%s6241_s1 + $0x6d0] sm:$0xff] }
  0xc1   : > { %2104 = vmatpush.bf16.msrb.mxu0 %v5049_v37  ;;  %v5096_v37 = vld [vmem:[%s6241_s1 + $0x688] sm:$0xff] }
  0xc2   : > { %2117 = vmatpush.bf16.msrb.mxu1 %v5057_v38  ;;  %v5104_v38 = vld [vmem:[%s6241_s1 + $0x6c8] sm:$0xff] }
  0xc3   : > { %2130 = vmatpush.bf16.msrb.mxu2 %v5065_v42  ;;  %v5087_v42 = vld [vmem:[%s6241_s1 + $0x640] sm:$0xff] }
  0xc4   : > { %2143 = vmatpush.bf16.msrb.mxu3 %v5073_v43  ;;  %v5095_v43 = vld [vmem:[%s6241_s1 + $0x680] sm:$0xff] }
  0xc5   : > { %2105 = vmatpush.bf16.msrb.mxu0 %v5048_v44  ;;  %v5103_v44 = vld [vmem:[%s6241_s1 + $0x6c0] sm:$0xff] }
  0xc6   : > { %2118 = vmatpush.bf16.msrb.mxu1 %v5056_v45  ;;  %v5118_v45 = vld [vmem:[%s6241_s1 + $0x738] sm:$0xff] }
  0xc7   : > { %2131 = vmatpush.bf16.msrb.mxu2 %v5064_v46  ;;  %v5126_v46 = vld [vmem:[%s6241_s1 + $0x778] sm:$0xff] }
  0xc8   : > { %2144 = vmatpush.bf16.msrb.mxu3 %v5072_v47  ;;  %v5134_v47 = vld [vmem:[%s6241_s1 + $0x7b8] sm:$0xff] }
  0xc9   : > { %2106 = vmatpush.bf16.msrb.mxu0 %v5047_v50  ;;  %v796_v13 = vpop.f32.mrf.mxu0  ;;  %v5117_v50 = vld [vmem:[%s6241_s1 + $0x730] sm:$0xff] }
  0xca   : > { %2119 = vmatpush.bf16.msrb.mxu1 %v5055_v51  ;;  %v809_v14 = vpop.f32.mrf.mxu1  ;;  %v5125_v51 = vld [vmem:[%s6241_s1 + $0x770] sm:$0xff] }
  0xcb   : > { %2132 = vmatpush.bf16.msrb.mxu2 %v5063_v52  ;;  %v810_v17 = vadd.f32 %v809_v14, %v796_v13  ;;  %v5133_v52 = vld [vmem:[%s6241_s1 + $0x7b0] sm:$0xff] }
  0xcc   : > { %2145 = vmatpush.bf16.msrb.mxu3 %v5071_v53  ;;  %2107 = vmatmul.bf16.vlgmr.msrb.gmra.mxu0 %v1899_v60  ;;  %v5141_v53 = vld [vmem:[%s6241_s1 + $0x7f0] sm:$0xff]  ;;  %v5132_v60 = vld [vmem:[%s6241_s1 + $0x7a8] sm:$0xff] }
  0xcd   : > { %2424 = vmatpush.bf16.msra.mxu0 %v5086_v54  ;;  %2120 = vmatmul.bf16.vlgmr.msrb.gmra.mxu1 %v1900_v61  ;;  %v6039_v54 = vld.sshfl [vmem:[#allocation1 + $0x10] sm:$0xff pattern:$0x73625140]  ;;  %v5140_v61 = vld [vmem:[%s6241_s1 + $0x7e8] sm:$0xff] }
  0xce   : > { %2437 = vmatpush.bf16.msra.mxu1 %v5094_v55  ;;  %2133 = vmatmul.bf16.vlgmr.msrb.gmra.mxu2 %v1901_v58  ;;  %v6041_v55 = vld.sshfl [vmem:[#allocation1 + $0x18] sm:$0xff pattern:$0x73625140]  ;;  %v5116_v58 = vld [vmem:[%s6241_s1 + $0x728] sm:$0xff]  ;;  %v5113_v13 = vld [vmem:[%s6241_s1 + $0x710] sm:$0xff] }
  0xcf   : > { %2450 = vmatpush.bf16.msra.mxu2 %v5102_v56  ;;  %2146 = vmatmul.bf16.vlgmr.msrb.gmra.mxu3 %v1902_v59  ;;  %v6045_v56 = vld.sshfl [vmem:[#allocation1] sm:$0xff pattern:$0x73625140]  ;;  %v5124_v59 = vld [vmem:[%s6241_s1 + $0x768] sm:$0xff]  ;;  %v5121_v14 = vld [vmem:[%s6241_s1 + $0x750] sm:$0xff] }
  0xd0   : > { %2463 = vmatpush.bf16.msra.mxu3 %v5110_v57  ;;  %v6047_v57 = vld.sshfl [vmem:[#allocation1 + $0x8] sm:$0xff pattern:$0x73625140] }
  0xd1   : > { %2425 = vmatpush.bf16.msra.mxu0 %v5085_v62  ;;  %v822_v23 = vpop.f32.mrf.mxu2  ;;  %v798_v30 = vpop.f32.mrf.mxu0  ;;  %2873 = vst [vmem:[#allocation1] ss:$4 sm:$0xff] %v4692_v49  ;;  %v5115_v62 = vld [vmem:[%s6241_s1 + $0x720] sm:$0xff] }
  0xd2   : > { %2438 = vmatpush.bf16.msra.mxu1 %v5093_v63  ;;  %v835_v24 = vpop.f32.mrf.mxu3  ;;  %v823_v25 = vadd.f32 %v822_v23, %v810_v17  ;;  %v811_v31 = vpop.f32.mrf.mxu1  ;;  %v5123_v63 = vld [vmem:[%s6241_s1 + $0x760] sm:$0xff]  ;;  %v5129_v17 = vld [vmem:[%s6241_s1 + $0x790] sm:$0xff]  ;;  %v5136_v23 = vld [vmem:[%s6241_s1 + $0x7c8] sm:$0xff] }
  0xd3   : > { %2451 = vmatpush.bf16.msra.mxu2 %v5101_v1  ;;  %v5150_v30 = vld [vmem:[%s6241_s1 + $0x838] sm:$0xff] }
  0xd4   : > { %2464 = vmatpush.bf16.msra.mxu3 %v5109_v2  ;;  %v836_v27 = vadd.f32 %v835_v24, %v823_v25  ;;  %v5131_v2 = vld [vmem:[%s6241_s1 + $0x7a0] sm:$0xff]  ;;  %v5158_v31 = vld [vmem:[%s6241_s1 + $0x878] sm:$0xff] }
  0xd5   : > { %2426 = vmatpush.bf16.msra.mxu0 %v5084_v7  ;;  %v5130_v7 = vld [vmem:[%s6241_s1 + $0x798] sm:$0xff] }
  0xd6   : > { %2439 = vmatpush.bf16.msra.mxu1 %v5092_v8  ;;  %v5988_v34 = vadd.f32 %v836_v27, %v510_v26  ;;  %v5138_v8 = vld [vmem:[%s6241_s1 + $0x7d8] sm:$0xff]  ;;  %v5111_v26 = vld [vmem:[%s6241_s1 + $0x700] sm:$0xff] }
  0xd7   : > { %2452 = vmatpush.bf16.msra.mxu2 %v5100_v9  ;;  %v5119_v27 = vld [vmem:[%s6241_s1 + $0x740] sm:$0xff] }
  0xd8   : > { %2465 = vmatpush.bf16.msra.mxu3 %v5108_v10 }
  0xd9   : > { %2427 = vmatpush.bf16.msra.mxu0 %v5083_v11  ;;  %v824_v39 = vpop.f32.mrf.mxu2 }
  0xda   : > { %2440 = vmatpush.bf16.msra.mxu1 %v5091_v12  ;;  %v837_v40 = vpop.f32.mrf.mxu3  ;;  %v5157_v39 = vld [vmem:[%s6241_s1 + $0x870] sm:$0xff] }
  0xdb   : > { %2453 = vmatpush.bf16.msra.mxu2 %v5099_v15  ;;  %v5165_v40 = vld [vmem:[%s6241_s1 + $0x8b0] sm:$0xff] }
  0xdc   : > { %2466 = vmatpush.bf16.msra.mxu3 %v5107_v16 }
  0xdd   : > { %2428 = vmatpush.bf16.msra.mxu0 %v5082_v18  ;;  %v5137_v18 = vld [vmem:[%s6241_s1 + $0x7d0] sm:$0xff] }
  0xde   : > { %2441 = vmatpush.bf16.msra.mxu1 %v5090_v19 }
  0xdf   : > { %2454 = vmatpush.bf16.msra.mxu2 %v5098_v21  ;;  %v5120_v21 = vld [vmem:[%s6241_s1 + $0x748] sm:$0xff] }
  0xe0   : > { %2467 = vmatpush.bf16.msra.mxu3 %v5106_v22  ;;  %v5128_v22 = vld [vmem:[%s6241_s1 + $0x788] sm:$0xff] }
  0xe1   : > { %2429 = vmatpush.bf16.msra.mxu0 %v5081_v28  ;;  %v5127_v28 = vld [vmem:[%s6241_s1 + $0x780] sm:$0xff] }
  0xe2   : > { %2442 = vmatpush.bf16.msra.mxu1 %v5089_v29  ;;  %v5135_v29 = vld [vmem:[%s6241_s1 + $0x7c0] sm:$0xff] }
  0xe3   : > { %2455 = vmatpush.bf16.msra.mxu2 %v5097_v32  ;;  %v5166_v32 = vld [vmem:[%s6241_s1 + $0x8b8] sm:$0xff] }
  0xe4   : > { %2468 = vmatpush.bf16.msra.mxu3 %v5105_v33  ;;  %v5174_v33 = vld [vmem:[%s6241_s1 + $0x8f8] sm:$0xff] }
  0xe5   : > { %2430 = vmatpush.bf16.msra.mxu0 %v5080_v35  ;;  %v2555_v35 = vshrl.u32 %v6041_v55, 16  ;;  %v5162_v55 = vld [vmem:[%s6241_s1 + $0x898] sm:$0xff] }
  0xe6   : > { %2443 = vmatpush.bf16.msra.mxu1 %v5088_v36  ;;  %v2549_v36 = vshrl.u32 %v6045_v56, 16  ;;  %v5170_v56 = vld [vmem:[%s6241_s1 + $0x8d8] sm:$0xff] }
  0xe7   : > { %2456 = vmatpush.bf16.msra.mxu2 %v5096_v37  ;;  %v2551_v37 = vshrl.u32 %v6047_v57, 16 }
  0xe8   : > { %2469 = vmatpush.bf16.msra.mxu3 %v5104_v38  ;;  %v5149_v38 = vld [vmem:[%s6241_s1 + $0x830] sm:$0xff] }
  0xe9   : > { %2431 = vmatpush.bf16.msra.mxu0 %v5079_v41  ;;  %v1125_v0 = vpop.f32.mrf.mxu0  ;;  %v5173_v41 = vld [vmem:[%s6241_s1 + $0x8f0] sm:$0xff] }
  0xea   : > { %2444 = vmatpush.bf16.msra.mxu1 %v5087_v42  ;;  %v1138_v1 = vpop.f32.mrf.mxu1  ;;  %v5148_v42 = vld [vmem:[%s6241_s1 + $0x828] sm:$0xff] }
  0xeb   : > { %2457 = vmatpush.bf16.msra.mxu2 %v5095_v43  ;;  %v5156_v43 = vld [vmem:[%s6241_s1 + $0x868] sm:$0xff] }
  0xec   : > { %2470 = vmatpush.bf16.msra.mxu3 %v5103_v44  ;;  %2432 = vmatmul.bf16.vlgmr.msra.gmra.mxu0 %v5932_v5  ;;  %v5114_v5 = vld [vmem:[%s6241_s1 + $0x718] sm:$0xff]  ;;  %v5164_v44 = vld [vmem:[%s6241_s1 + $0x8a8] sm:$0xff] }
  0xed   : > { %2753 = vmatpush.bf16.msrb.mxu0 %v5118_v45  ;;  %2445 = vmatmul.bf16.vlgmr.msra.gmra.mxu1 %v5934_v6  ;;  %v5122_v6 = vld [vmem:[%s6241_s1 + $0x758] sm:$0xff]  ;;  %v5172_v45 = vld [vmem:[%s6241_s1 + $0x8e8] sm:$0xff] }
  0xee   : > { %2766 = vmatpush.bf16.msrb.mxu1 %v5126_v46  ;;  %2458 = vmatmul.bf16.vlgmr.msra.gmra.mxu2 %v5928_v3  ;;  %v5139_v3 = vld [vmem:[%s6241_s1 + $0x7e0] sm:$0xff] }
  0xef   : > { %2779 = vmatpush.bf16.msrb.mxu2 %v5134_v47  ;;  %2471 = vmatmul.bf16.vlgmr.msra.gmra.mxu3 %v5930_v4  ;;  %v1139_v4 = vadd.f32 %v1138_v1, %v1125_v0  ;;  %v5147_v46 = vld [vmem:[%s6241_s1 + $0x820] sm:$0xff]  ;;  %v5161_v1 = vld [vmem:[%s6241_s1 + $0x890] sm:$0xff] }
  0xf0   : > { %2792 = vmatpush.bf16.msrb.mxu3 %v5142_v48  ;;  %v5155_v47 = vld [vmem:[%s6241_s1 + $0x860] sm:$0xff] }
  0xf1   : > { %2754 = vmatpush.bf16.msrb.mxu0 %v5117_v50  ;;  %v1151_v9 = vpop.f32.mrf.mxu2  ;;  %v1127_v15 = vpop.f32.mrf.mxu0  ;;  %v5163_v50 = vld [vmem:[%s6241_s1 + $0x8a0] sm:$0xff] }
  0xf2   : > { %2767 = vmatpush.bf16.msrb.mxu1 %v5125_v51  ;;  %v1164_v10 = vpop.f32.mrf.mxu3  ;;  %v1152_v11 = vadd.f32 %v1151_v9, %v1139_v4  ;;  %v1140_v16 = vpop.f32.mrf.mxu1  ;;  %v5171_v51 = vld [vmem:[%s6241_s1 + $0x8e0] sm:$0xff]  ;;  %v5144_v4 = vld [vmem:[%s6241_s1 + $0x808] sm:$0xff] }
  0xf3   : > { %2780 = vmatpush.bf16.msrb.mxu2 %v5133_v52  ;;  %v2876_v15 = vld.sshfl [vmem:[#allocation1 + $0x8] sm:$0xff pattern:$0x73625140]  ;;  %v2878_v16 = vld.sshfl [vmem:[#allocation1 + $0x10] sm:$0xff pattern:$0x73625140] }
  0xf4   : > { %2793 = vmatpush.bf16.msrb.mxu3 %v5141_v53  ;;  %v1165_v12 = vadd.f32 %v1164_v10, %v1152_v11  ;;  %v5146_v53 = vld [vmem:[%s6241_s1 + $0x818] sm:$0xff]  ;;  %v5143_v10 = vld [vmem:[%s6241_s1 + $0x800] sm:$0xff] }
  0xf5   : > { %2755 = vmatpush.bf16.msrb.mxu0 %v5116_v58  ;;  %v5151_v11 = vld [vmem:[%s6241_s1 + $0x840] sm:$0xff] }
  0xf6   : > { %2768 = vmatpush.bf16.msrb.mxu1 %v5124_v59  ;;  %v6100_v19 = vadd.f32 %v1165_v12, %v5988_v34  ;;  %v2553_v34 = vshrl.u32 %v6039_v54, 16  ;;  %v5154_v54 = vld [vmem:[%s6241_s1 + $0x858] sm:$0xff]  ;;  %v5159_v12 = vld [vmem:[%s6241_s1 + $0x880] sm:$0xff] }
  0xf7   : > { %2781 = vmatpush.bf16.msrb.mxu2 %v5132_v60 }
  0xf8   : > { %2794 = vmatpush.bf16.msrb.mxu3 %v5140_v61  ;;  %v5145_v61 = vld [vmem:[%s6241_s1 + $0x810] sm:$0xff] }
  0xf9   : > { %2756 = vmatpush.bf16.msrb.mxu0 %v5115_v62  ;;  %v1153_v24 = vpop.f32.mrf.mxu2  ;;  %v5153_v62 = vld [vmem:[%s6241_s1 + $0x850] sm:$0xff] }
  0xfa   : > { %2769 = vmatpush.bf16.msrb.mxu1 %v5123_v63  ;;  %v1166_v25 = vpop.f32.mrf.mxu3 }
  0xfb   : > { %2782 = vmatpush.bf16.msrb.mxu2 %v5131_v2  ;;  %v5169_v2 = vld [vmem:[%s6241_s1 + $0x8d0] sm:$0xff] }
  0xfc   : > { %2795 = vmatpush.bf16.msrb.mxu3 %v5139_v3 }
  0xfd   : > { %2757 = vmatpush.bf16.msrb.mxu0 %v5114_v5  ;;  %v5152_v5 = vld [vmem:[%s6241_s1 + $0x848] sm:$0xff] }
  0xfe   : > { %2770 = vmatpush.bf16.msrb.mxu1 %v5122_v6  ;;  %v5160_v6 = vld [vmem:[%s6241_s1 + $0x888] sm:$0xff] }
  0xff   : > { %2783 = vmatpush.bf16.msrb.mxu2 %v5130_v7  ;;  %v5168_v7 = vld [vmem:[%s6241_s1 + $0x8c8] sm:$0xff] }
 0x100   : > { %2796 = vmatpush.bf16.msrb.mxu3 %v5138_v8 }
 0x101   : > { %2758 = vmatpush.bf16.msrb.mxu0 %v5113_v13  ;;  %v5167_v13 = vld [vmem:[%s6241_s1 + $0x8c0] sm:$0xff] }
 0x102   : > { %2771 = vmatpush.bf16.msrb.mxu1 %v5121_v14  ;;  %v2874_v14 = vld.sshfl [vmem:[#allocation1] sm:$0xff pattern:$0x73625140] }
 0x103   : > { %2784 = vmatpush.bf16.msrb.mxu2 %v5129_v17  ;;  %v2880_v17 = vld.sshfl [vmem:[#allocation1 + $0x18] sm:$0xff pattern:$0x73625140] }
 0x104   : > { %2797 = vmatpush.bf16.msrb.mxu3 %v5137_v18  ;;  %v2882_v18 = vrot.slane %v2874_v14, 1 }
 0x105   : > { %2759 = vmatpush.bf16.msrb.mxu0 %v5112_v20  ;;  %v2884_v20 = vrot.slane %v2878_v16, 1 }
 0x106   : > { %2772 = vmatpush.bf16.msrb.mxu1 %v5120_v21  ;;  %v2885_v21 = vrot.slane %v2880_v17, 1 }
 0x107   : > { %2785 = vmatpush.bf16.msrb.mxu2 %v5128_v22 }
 0x108   : > { %2798 = vmatpush.bf16.msrb.mxu3 %v5136_v23 }
 0x109   : > { %2760 = vmatpush.bf16.msrb.mxu0 %v5111_v26  ;;  %v1450_v48 = vpop.f32.mrf.mxu0 }
 0x10a   : > { %2773 = vmatpush.bf16.msrb.mxu1 %v5119_v27  ;;  %v1463_v49 = vpop.f32.mrf.mxu1 }
 0x10b   : > { %2786 = vmatpush.bf16.msrb.mxu2 %v5127_v28  ;;  %v1464_v52 = vadd.f32 %v1463_v49, %v1450_v48 }
 0x10c   : > { %2799 = vmatpush.bf16.msrb.mxu3 %v5135_v29  ;;  %2761 = vmatmul.bf16.vlgmr.msrb.gmra.mxu0 %v2549_v36 }
 0x10d   : > { %3082 = vmatpush.bf16.msra.mxu0 %v5150_v30  ;;  %2774 = vmatmul.bf16.vlgmr.msrb.gmra.mxu1 %v2551_v37 }
 0x10e   : > { %3095 = vmatpush.bf16.msra.mxu1 %v5158_v31  ;;  %2787 = vmatmul.bf16.vlgmr.msrb.gmra.mxu2 %v2553_v34 }
 0x10f   : > { %3108 = vmatpush.bf16.msra.mxu2 %v5166_v32  ;;  %2800 = vmatmul.bf16.vlgmr.msrb.gmra.mxu3 %v2555_v35 }
 0x110   : > { %3121 = vmatpush.bf16.msra.mxu3 %v5174_v33 }
 0x111   : > { %3083 = vmatpush.bf16.msra.mxu0 %v5149_v38  ;;  %v1476_v57 = vpop.f32.mrf.mxu2  ;;  %v1452_v63 = vpop.f32.mrf.mxu0 }
 0x112   : > { %3096 = vmatpush.bf16.msra.mxu1 %v5157_v39  ;;  %v1489_v58 = vpop.f32.mrf.mxu3  ;;  %v1477_v59 = vadd.f32 %v1476_v57, %v1464_v52  ;;  %v1465_v0 = vpop.f32.mrf.mxu1 }
 0x113   : > { %3109 = vmatpush.bf16.msra.mxu2 %v5165_v40 }
 0x114   : > { %3122 = vmatpush.bf16.msra.mxu3 %v5173_v41  ;;  %v1490_v60 = vadd.f32 %v1489_v58, %v1477_v59 }
 0x115   : > { %3084 = vmatpush.bf16.msra.mxu0 %v5148_v42 }
 0x116   : > { %3097 = vmatpush.bf16.msra.mxu1 %v5156_v43  ;;  %v1493_v3 = vadd.f32 %v1490_v60, %v6100_v19  ;;  %v2883_v19 = vrot.slane %v2876_v15, 1 }
 0x117   : > { %3110 = vmatpush.bf16.msra.mxu2 %v5164_v44 }
 0x118   : > { %3123 = vmatpush.bf16.msra.mxu3 %v5172_v45 }
 0x119   : > { %3085 = vmatpush.bf16.msra.mxu0 %v5147_v46  ;;  %v1478_v8 = vpop.f32.mrf.mxu2 }
 0x11a   : > { %3098 = vmatpush.bf16.msra.mxu1 %v5155_v47  ;;  %v1491_v9 = vpop.f32.mrf.mxu3 }
 0x11b   : > { %3111 = vmatpush.bf16.msra.mxu2 %v5163_v50 }
 0x11c   : > { %3124 = vmatpush.bf16.msra.mxu3 %v5171_v51 }
 0x11d   : > { %3086 = vmatpush.bf16.msra.mxu0 %v5146_v53 }
 0x11e   : > { %3099 = vmatpush.bf16.msra.mxu1 %v5154_v54 }
 0x11f   : > { %3112 = vmatpush.bf16.msra.mxu2 %v5162_v55 }
 0x120   : > { %3125 = vmatpush.bf16.msra.mxu3 %v5170_v56 }
 0x121   : > { %3087 = vmatpush.bf16.msra.mxu0 %v5145_v61 }
 0x122   : > { %3100 = vmatpush.bf16.msra.mxu1 %v5153_v62 }
 0x123   : > { %3113 = vmatpush.bf16.msra.mxu2 %v5161_v1 }
 0x124   : > { %3126 = vmatpush.bf16.msra.mxu3 %v5169_v2 }
 0x125   : > { %3088 = vmatpush.bf16.msra.mxu0 %v5144_v4 }
 0x126   : > { %3101 = vmatpush.bf16.msra.mxu1 %v5152_v5 }
 0x127   : > { %3114 = vmatpush.bf16.msra.mxu2 %v5160_v6 }
 0x128   : > { %3127 = vmatpush.bf16.msra.mxu3 %v5168_v7 }
 0x129   : > { %3089 = vmatpush.bf16.msra.mxu0 %v5143_v10  ;;  %v1779_v22 = vpop.f32.mrf.mxu0 }
 0x12a   : > { %3102 = vmatpush.bf16.msra.mxu1 %v5151_v11  ;;  %v1792_v23 = vpop.f32.mrf.mxu1 }
 0x12b   : > { %3115 = vmatpush.bf16.msra.mxu2 %v5159_v12  ;;  %v1793_v24 = vadd.f32 %v1792_v23, %v1779_v22 }
 0x12c   : > { %3128 = vmatpush.bf16.msra.mxu3 %v5167_v13  ;;  %3090 = vmatmul.bf16.vlgmr.msra.gmra.mxu0 %v2882_v18 }
 0x12d   : > { %3103 = vmatmul.bf16.vlgmr.msra.gmra.mxu1 %v2883_v19 }
 0x12e   : > { %3116 = vmatmul.bf16.vlgmr.msra.gmra.mxu2 %v2884_v20 }
 0x12f   : > { %3129 = vmatmul.bf16.vlgmr.msra.gmra.mxu3 %v2885_v21 }
 0x131   : > { %v1805_v25 = vpop.f32.mrf.mxu2  ;;  %v1781_v29 = vpop.f32.mrf.mxu0 }
 0x132   : > { %v1818_v26 = vpop.f32.mrf.mxu3  ;;  %v1806_v27 = vadd.f32 %v1805_v25, %v1793_v24  ;;  %v1794_v30 = vpop.f32.mrf.mxu1 }
 0x134   : > { %v1819_v28 = vadd.f32 %v1818_v26, %v1806_v27 }
 0x136   : > { %v1822_v31 = vadd.f32 %v1819_v28, %v1493_v3 }
 0x139   : > { %v1807_v32 = vpop.f32.mrf.mxu2 }
 0x13a   : > { %v1820_v33 = vpop.f32.mrf.mxu3 }
 0x149   : > { %v2108_v34 = vpop.f32.mrf.mxu0 }
 0x14a   : > { %v2121_v35 = vpop.f32.mrf.mxu1 }
 0x14b   : > { %v2122_v36 = vadd.f32 %v2121_v35, %v2108_v34 }
 0x151   : > { %v2134_v37 = vpop.f32.mrf.mxu2  ;;  %v2110_v41 = vpop.f32.mrf.mxu0 }
 0x152   : > { %v2147_v38 = vpop.f32.mrf.mxu3  ;;  %v2135_v39 = vadd.f32 %v2134_v37, %v2122_v36  ;;  %v2123_v42 = vpop.f32.mrf.mxu1 }
 0x154   : > { %v2148_v40 = vadd.f32 %v2147_v38, %v2135_v39 }
 0x156   : > { %v2151_v43 = vadd.f32 %v2148_v40, %v1822_v31 }
 0x159   : > { %v2136_v44 = vpop.f32.mrf.mxu2 }
 0x15a   : > { %v2149_v45 = vpop.f32.mrf.mxu3 }
 0x169   : > { %v2433_v46 = vpop.f32.mrf.mxu0 }
 0x16a   : > { %v2446_v47 = vpop.f32.mrf.mxu1 }
 0x16b   : > { %v2447_v62 = vadd.f32 %v2446_v47, %v2433_v46 }
 0x171   : > { %v2459_v48 = vpop.f32.mrf.mxu2  ;;  %v2435_v50 = vpop.f32.mrf.mxu0 }
 0x172   : > { %v2472_v49 = vpop.f32.mrf.mxu3  ;;  %v2448_v51 = vpop.f32.mrf.mxu1  ;;  %v2460_v0 = vadd.f32 %v2459_v48, %v2447_v62 }
 0x174   : > { %v2473_v4 = vadd.f32 %v2472_v49, %v2460_v0 }
 0x176   : > { %v2476_v9 = vadd.f32 %v2473_v4, %v2151_v43 }
 0x179   : > { %v2461_v52 = vpop.f32.mrf.mxu2 }
 0x17a   : > { %v2474_v53 = vpop.f32.mrf.mxu3 }
 0x189   : > { %v2762_v54 = vpop.f32.mrf.mxu0 }
 0x18a   : > { %v2775_v55 = vpop.f32.mrf.mxu1 }
 0x18b   : > { %v2776_v63 = vadd.f32 %v2775_v55, %v2762_v54 }
 0x191   : > { %v2788_v56 = vpop.f32.mrf.mxu2  ;;  %v2764_v58 = vpop.f32.mrf.mxu0 }
 0x192   : > { %v2801_v57 = vpop.f32.mrf.mxu3  ;;  %v2777_v59 = vpop.f32.mrf.mxu1  ;;  %v2789_v3 = vadd.f32 %v2788_v56, %v2776_v63 }
 0x194   : > { %v2802_v6 = vadd.f32 %v2801_v57, %v2789_v3 }
 0x196   : > { %v2805_v13 = vadd.f32 %v2802_v6, %v2476_v9 }
 0x199   : > { %v2790_v60 = vpop.f32.mrf.mxu2 }
 0x19a   : > { %v2803_v61 = vpop.f32.mrf.mxu3 }
 0x1a9   : > { %v3091_v1 = vpop.f32.mrf.mxu0 }
 0x1aa   : > { %v3104_v2 = vpop.f32.mrf.mxu1 }
 0x1ab   : > { %v3105_v5 = vadd.f32 %v3104_v2, %v3091_v1 }
 0x1b1   : > { %v3117_v7 = vpop.f32.mrf.mxu2  ;;  %v3093_v11 = vpop.f32.mrf.mxu0 }
 0x1b2   : > { %v3130_v8 = vpop.f32.mrf.mxu3  ;;  %v3118_v10 = vadd.f32 %v3117_v7, %v3105_v5  ;;  %v3106_v12 = vpop.f32.mrf.mxu1 }
 0x1b4   : > { %v3131_v14 = vadd.f32 %v3130_v8, %v3118_v10 }
 0x1b6   : > { %v3134_v15 = vadd.f32 %v3131_v14, %v2805_v13 }
 0x1b8   : > { %3135 = vst [vmem:[%s186_s21] sm:$0x1] %v3134_v15 }
 0x1b9   : > { %v3119_v16 = vpop.f32.mrf.mxu2 }
 0x1ba   : > { %v3132_v17 = vpop.f32.mrf.mxu3 }
 0x1bb PF: > { %s13_s14 = sadd.s32 1, %s5222_s14   ;;  %s6244_s12 = smov %s5218_s13 }
 0x1bc   : > { %p10_p5 = scmp.ge.s32.totalorder %s13_s14, 4   ;;  %s6245_s13 = smov %s6247_s15 }
 0x1be   :  { %12 = sbr.rel (!%p10_p5) target bundleno = 2 (0x2), region = 73 }

</bundles_post_ra>
